<compile_context>
chip_gen: v7x
topology: tpu7x:2x2x1
jax: 0.10.0
libtpu: 0.0.40
codegen_flags: <defaults>
</compile_context>

<pallas_src>
from functools import partial

import jax
import jax.numpy as jnp
from jax import lax
from jax.experimental import pallas as pl
from jax.experimental.pallas import tpu as pltpu


# ------------------------------ halo geometry --------------------------------
_P0 = 2     # conceptual pad of the 5x5 depthwise conv
_P1 = 9     # conceptual pad of the dilated 7x7 depthwise conv
_DIL = 3
_LP0 = 8    # allocated (sublane-aligned) left W-pad for the stage-1 scratch
_LP1 = 16   # allocated (sublane-aligned) left W-pad for the stage-2 scratch


def _pick_row_block(H):
    for rb in (8, 4, 2, 1):
        if H % rb == 0:
            return rb
    return 1


# ------------------------- fused LKA kernel (one batch) ----------------------
def _lka_fused_kernel(x_ref, w0_ref, b0_ref, ws_ref, bs_ref, w1_ref, b1_ref,
                      o_ref, xp_scr, a1p_scr, *, H, W, C, RB):
    # x_ref   : (H, W, C)   NHWC input tile (batch dim squeezed)
    # w0_ref  : (25, C) flattened 5x5 dw taps          b0_ref : (1, C)
    # ws_ref  : (49, C) flattened 7x7 (dil 3) dw taps  bs_ref : (1, C)
    # w1_ref  : (C, C)  1x1 conv (C_in, C_out)         b1_ref : (1, C)
    # o_ref   : (H, W, C)   output tile
    # xp_scr  : (H+4,  W+_LP0+2, C) f32 padded input    (interior at [2, 8])
    # a1p_scr : (H+18, W+_LP1+9, C) f32 padded stage-1  (interior at [9, 16])
    NRB = H // RB

    # --- zero only the halo strips; interiors are fully rewritten below.
    xp_scr[0:_P0, :, :] = jnp.zeros((_P0, W + _LP0 + _P0, C), jnp.float32)
    xp_scr[_P0 + H:H + 2 * _P0, :, :] = jnp.zeros((_P0, W + _LP0 + _P0, C),
                                                  jnp.float32)
    xp_scr[:, 0:_LP0, :] = jnp.zeros((H + 2 * _P0, _LP0, C), jnp.float32)
    xp_scr[:, _LP0 + W:_LP0 + W + _P0, :] = jnp.zeros((H + 2 * _P0, _P0, C),
                                                      jnp.float32)

    a1p_scr[0:_P1, :, :] = jnp.zeros((_P1, W + _LP1 + _P1, C), jnp.float32)
    a1p_scr[_P1 + H:H + 2 * _P1, :, :] = jnp.zeros((_P1, W + _LP1 + _P1, C),
                                                   jnp.float32)
    a1p_scr[:, 0:_LP1, :] = jnp.zeros((H + 2 * _P1, _LP1, C), jnp.float32)
    a1p_scr[:, _LP1 + W:_LP1 + W + _P1, :] = jnp.zeros((H + 2 * _P1, _P1, C),
                                                       jnp.float32)

    # --- hoisted input cast: one f32 copy, reused as `u` by the gate below.
    xp_scr[_P0:_P0 + H, _LP0:_LP0 + W, :] = x_ref[...].astype(jnp.float32)

    b0v = b0_ref[0, :]
    bsv = bs_ref[0, :]
    b1v = b1_ref[0, :]

    # ---- stage 1: depthwise 5x5 (pad 2), one row block at a time ------------
    col0 = _LP0 - _P0            # actual col of conceptual padded col 0

    def s1_body(r, carry):
        row0 = pl.multiple_of(r * RB, RB)
        acc = jnp.zeros((RB, W, C), jnp.float32)
        for kh in range(5):
            for kw in range(5):
                patch = xp_scr[pl.ds(row0 + kh, RB),
                               col0 + kw: col0 + kw + W, :]
                acc = acc + patch * w0_ref[kh * 5 + kw, :]
        a1p_scr[pl.ds(_P1 + row0, RB), _LP1:_LP1 + W, :] = acc + b0v
        return carry

    lax.fori_loop(0, NRB, s1_body, 0)

    # ---- stage 2 (dw 7x7 dil 3, pad 9) + stage 3 (1x1) + u*attn gate --------
    col1 = _LP1 - _P1

    def s2_body(r, carry):
        row0 = pl.multiple_of(r * RB, RB)
        acc = jnp.zeros((RB, W, C), jnp.float32)
        for kh in range(7):
            for kw in range(7):
                patch = a1p_scr[pl.ds(row0 + kh * _DIL, RB),
                                col1 + kw * _DIL: col1 + kw * _DIL + W, :]
                acc = acc + patch * ws_ref[kh * 7 + kw, :]
        a2 = acc + bsv

        if C >= 32:
            # MXU path: (RB*W, C) x (C, C). Reshape is layout-free when W % 8 == 0.
            proj = jnp.dot(a2.reshape(RB * W, C), w1_ref[...],
                           preferred_element_type=jnp.float32)
            proj = proj.reshape(RB, W, C) + b1v
        else:
            # Tiny C: skip the nearly-empty systolic pass; C broadcast MACs on
            # the VPU instead.
            proj = jnp.zeros((RB, W, C), jnp.float32) + b1v
            for c in range(C):
                proj = proj + a2[:, :, c:c + 1] * w1_ref[c, :]

        u = xp_scr[pl.ds(_P0 + row0, RB), _LP0:_LP0 + W, :]
        o_ref[pl.ds(row0, RB), :, :] = (u * proj).astype(o_ref.dtype)
        return carry

    lax.fori_loop(0, NRB, s2_body, 0)


# ----------------------------- VMEM budgeting --------------------------------
def _roundup(v, m):
    return ((v + m - 1) // m) * m


def _tile_bytes(shape, itemsize):
    s = list(shape)
    s[-1] = _roundup(s[-1], 128)   # lane dim
    s[-2] = _roundup(s[-2], 8)     # sublane dim
    n = 1
    for d in s:
        n *= d
    return n * itemsize


def _vmem_budget(H, W, C, io_itemsize):
    scratch = (_tile_bytes((H + 2 * _P0, W + _LP0 + _P0, C), 4)
               + _tile_bytes((H + 2 * _P1, W + _LP1 + _P1, C), 4))
    io = 4 * _tile_bytes((H, W, C), io_itemsize)          # double-buffered in+out
    wts = 2 * (_tile_bytes((25, C), 4) + _tile_bytes((49, C), 4)
               + _tile_bytes((C, C), 4) + 3 * _tile_bytes((1, C), 4))
    need = scratch + io + wts + (4 << 20)
    return int(min(max(need, 32 << 20), 64 << 20))


# ------------------------------- entry point ---------------------------------
def lka_attention_nhwc(x, w0, b0, ws, bs, w1, b1):
    """x: (B, H, W, C). Fused LKA; returns (B, H, W, C)."""
    B, H, W, C = x.shape
    RB = _pick_row_block(H)
    kern = partial(_lka_fused_kernel, H=H, W=W, C=C, RB=RB)
    return pl.pallas_call(
        kern,
        out_shape=jax.ShapeDtypeStruct((B, H, W, C), x.dtype),
        grid=(B,),
        in_specs=[
            pl.BlockSpec((None, H, W, C), lambda b: (b, 0, 0, 0)),   # x
            pl.BlockSpec((25, C), lambda b: (0, 0)),                 # w0 taps
            pl.BlockSpec((1, C), lambda b: (0, 0)),                  # b0
            pl.BlockSpec((49, C), lambda b: (0, 0)),                 # ws taps
            pl.BlockSpec((1, C), lambda b: (0, 0)),                  # bs
            pl.BlockSpec((C, C), lambda b: (0, 0)),                  # w1
            pl.BlockSpec((1, C), lambda b: (0, 0)),                  # b1
        ],
        out_specs=pl.BlockSpec((None, H, W, C), lambda b: (b, 0, 0, 0)),
        scratch_shapes=[
            pltpu.VMEM((H + 2 * _P0, W + _LP0 + _P0, C), jnp.float32),
            pltpu.VMEM((H + 2 * _P1, W + _LP1 + _P1, C), jnp.float32),
        ],
        compiler_params=pltpu.CompilerParams(
            dimension_semantics=("parallel",),
            vmem_limit_bytes=_vmem_budget(H, W, C, x.dtype.itemsize)),
    )(x, w0, b0, ws, bs, w1, b1)


# ------------------------------- NCHW wrapper --------------------------------
def attention_module(x_nchw, params):
    B, C, H, W = x_nchw.shape
    # NCHW <-> NHWC only at the module boundary (PyTorch layout).
    x = jnp.transpose(x_nchw, (0, 2, 3, 1))
    w0 = params["w0"].reshape(25, C)       # (5,5,C)  -> contiguous tap rows
    ws = params["ws"].reshape(49, C)       # (7,7,C)  -> contiguous tap rows
    out = lka_attention_nhwc(x, w0, params["b0"], ws, params["bs"],
                             params["w1"], params["b1"])
    return jnp.transpose(out, (0, 3, 1, 2))


# ---------------------------- pure-JAX reference ------------------------------
def ref_forward(x_nchw, params):
    x = jnp.transpose(x_nchw, (0, 2, 3, 1))
    dn = ("NHWC", "HWIO", "NHWC")
    C = x.shape[-1]
    a = jax.lax.conv_general_dilated(
        x, params["w0"][:, :, None, :], window_strides=(1, 1),
        padding=((2, 2), (2, 2)), feature_group_count=C,
        dimension_numbers=dn) + params["b0"]
    a = jax.lax.conv_general_dilated(
        a, params["ws"][:, :, None, :], window_strides=(1, 1),
        padding=((9, 9), (9, 9)), rhs_dilation=(3, 3), feature_group_count=C,
        dimension_numbers=dn) + params["bs"]
    a = jax.lax.conv_general_dilated(
        a, params["w1"][None, None, :, :], window_strides=(1, 1),
        padding="VALID", dimension_numbers=dn) + params["b1"]
    out = x * a
    return jnp.transpose(out, (0, 3, 1, 2))


if __name__ == "__main__":
    B, C, H, W = 2, 4, 16, 16
    key = jax.random.PRNGKey(0)
    ks = jax.random.split(key, 7)
    x = jax.random.normal(ks[0], (B, C, H, W), jnp.float32)

    # Deterministic synthetic parameters (layouts vs PyTorch nn.Conv2d):
    # conv0.weight (C,1,5,5) -> (5,5,C); conv_spatial.weight (C,1,7,7) -> (7,7,C)
    # conv1.weight (C,C,1,1) -> (C_in, C_out): out[d] = sum_c in[c] * w1[c, d]
    params = dict(
        w0=0.1 * jax.random.normal(ks[1], (5, 5, C), jnp.float32),
        b0=0.1 * jax.random.normal(ks[2], (1, C), jnp.float32),
        ws=0.1 * jax.random.normal(ks[3], (7, 7, C), jnp.float32),
        bs=0.1 * jax.random.normal(ks[4], (1, C), jnp.float32),
        w1=0.1 * jax.random.normal(ks[5], (C, C), jnp.float32),
        b1=0.1 * jax.random.normal(ks[6], (1, C), jnp.float32),
    )

    out = jax.jit(attention_module)(x, params)
    jax.block_until_ready(out)

    ref = ref_forward(x, params)
    assert out.shape == x.shape
    err = float(jnp.max(jnp.abs(out - ref)))
    assert jnp.allclose(out, ref, atol=1e-4, rtol=1e-4), f"max abs err {err}"
    print("KERNEL_OK")
</pallas_src>

<mosaic_0001>
module attributes {stable_mosaic.version = 11 : i64} {
  func.func @_lka_fused_kernel(%arg0: i32, %arg1: memref<1x16x16x4xf32, #tpu.memory_space<vmem>>, %arg2: memref<25x4xf32, #tpu.memory_space<vmem>>, %arg3: memref<1x4xf32, #tpu.memory_space<vmem>>, %arg4: memref<49x4xf32, #tpu.memory_space<vmem>>, %arg5: memref<1x4xf32, #tpu.memory_space<vmem>>, %arg6: memref<4x4xf32, #tpu.memory_space<vmem>>, %arg7: memref<1x4xf32, #tpu.memory_space<vmem>>, %arg8: memref<1x16x16x4xf32, #tpu.memory_space<vmem>>, %arg9: memref<20x26x4xf32, #tpu.memory_space<vmem>>, %arg10: memref<34x41x4xf32, #tpu.memory_space<vmem>>) attributes {dimension_semantics = [#tpu.dimension_semantics<parallel>], iteration_bounds = array<i64: 2>, scalar_prefetch = 0 : i64, scratch_operands = 2 : i64, tpu.core_type = #tpu.core_type<tc>, window_params = [{transform_indices = @transform_0, window_bounds = array<i64: 1, 16, 16, 4>}, {pipeline_mode = #tpu.pipeline_mode<synchronous>, transform_indices = @transform_1, window_bounds = array<i64: 25, 4>}, {pipeline_mode = #tpu.pipeline_mode<synchronous>, transform_indices = @transform_2, window_bounds = array<i64: 1, 4>}, {pipeline_mode = #tpu.pipeline_mode<synchronous>, transform_indices = @transform_3, window_bounds = array<i64: 49, 4>}, {pipeline_mode = #tpu.pipeline_mode<synchronous>, transform_indices = @transform_4, window_bounds = array<i64: 1, 4>}, {pipeline_mode = #tpu.pipeline_mode<synchronous>, transform_indices = @transform_5, window_bounds = array<i64: 4, 4>}, {pipeline_mode = #tpu.pipeline_mode<synchronous>, transform_indices = @transform_6, window_bounds = array<i64: 1, 4>}, {transform_indices = @transform_7, window_bounds = array<i64: 1, 16, 16, 4>}]} {
    %cst = arith.constant 0.000000e+00 : f32
    %0 = vector.broadcast %cst : f32 to vector<2x26x4xf32>
    %c0 = arith.constant 0 : index
    %c0_0 = arith.constant 0 : index
    %c0_1 = arith.constant 0 : index
    %1 = vector.load %arg9[%c0, %c0_0, %c0_1] : memref<20x26x4xf32, #tpu.memory_space<vmem>>, vector<2x26x4xf32>
    tpu.vector_store %arg9[%c0, %c0_0, %c0_1], %0 {strides = array<i32>} : memref<20x26x4xf32, #tpu.memory_space<vmem>>, vector<2x26x4xf32>,
    %cst_2 = arith.constant 0.000000e+00 : f32
    %2 = vector.broadcast %cst_2 : f32 to vector<2x26x4xf32>
    %c18 = arith.constant 18 : index
    %c0_3 = arith.constant 0 : index
    %c0_4 = arith.constant 0 : index
    %3 = vector.load %arg9[%c18, %c0_3, %c0_4] : memref<20x26x4xf32, #tpu.memory_space<vmem>>, vector<2x26x4xf32>
    tpu.vector_store %arg9[%c18, %c0_3, %c0_4], %2 {strides = array<i32>} : memref<20x26x4xf32, #tpu.memory_space<vmem>>, vector<2x26x4xf32>,
    %cst_5 = arith.constant 0.000000e+00 : f32
    %4 = vector.broadcast %cst_5 : f32 to vector<20x8x4xf32>
    %c0_6 = arith.constant 0 : index
    %c0_7 = arith.constant 0 : index
    %c0_8 = arith.constant 0 : index
    %5 = vector.load %arg9[%c0_6, %c0_7, %c0_8] : memref<20x26x4xf32, #tpu.memory_space<vmem>>, vector<20x8x4xf32>
    tpu.vector_store %arg9[%c0_6, %c0_7, %c0_8], %4 {strides = array<i32>} : memref<20x26x4xf32, #tpu.memory_space<vmem>>, vector<20x8x4xf32>,
    %cst_9 = arith.constant 0.000000e+00 : f32
    %6 = vector.broadcast %cst_9 : f32 to vector<20x2x4xf32>
    %c0_10 = arith.constant 0 : index
    %c24 = arith.constant 24 : index
    %c0_11 = arith.constant 0 : index
    %7 = vector.load %arg9[%c0_10, %c24, %c0_11] : memref<20x26x4xf32, #tpu.memory_space<vmem>>, vector<20x2x4xf32>
    tpu.vector_store %arg9[%c0_10, %c24, %c0_11], %6 {strides = array<i32>} : memref<20x26x4xf32, #tpu.memory_space<vmem>>, vector<20x2x4xf32>,
    %cst_12 = arith.constant 0.000000e+00 : f32
    %8 = vector.broadcast %cst_12 : f32 to vector<9x41x4xf32>
    %c0_13 = arith.constant 0 : index
    %c0_14 = arith.constant 0 : index
    %c0_15 = arith.constant 0 : index
    %9 = vector.load %arg10[%c0_13, %c0_14, %c0_15] : memref<34x41x4xf32, #tpu.memory_space<vmem>>, vector<9x41x4xf32>
    tpu.vector_store %arg10[%c0_13, %c0_14, %c0_15], %8 {strides = array<i32>} : memref<34x41x4xf32, #tpu.memory_space<vmem>>, vector<9x41x4xf32>,
    %cst_16 = arith.constant 0.000000e+00 : f32
    %10 = vector.broadcast %cst_16 : f32 to vector<9x41x4xf32>
    %c25 = arith.constant 25 : index
    %c0_17 = arith.constant 0 : index
    %c0_18 = arith.constant 0 : index
    %11 = vector.load %arg10[%c25, %c0_17, %c0_18] : memref<34x41x4xf32, #tpu.memory_space<vmem>>, vector<9x41x4xf32>
    tpu.vector_store %arg10[%c25, %c0_17, %c0_18], %10 {strides = array<i32>} : memref<34x41x4xf32, #tpu.memory_space<vmem>>, vector<9x41x4xf32>,
    %cst_19 = arith.constant 0.000000e+00 : f32
    %12 = vector.broadcast %cst_19 : f32 to vector<34x16x4xf32>
    %c0_20 = arith.constant 0 : index
    %c0_21 = arith.constant 0 : index
    %c0_22 = arith.constant 0 : index
    %13 = vector.load %arg10[%c0_20, %c0_21, %c0_22] : memref<34x41x4xf32, #tpu.memory_space<vmem>>, vector<34x16x4xf32>
    tpu.vector_store %arg10[%c0_20, %c0_21, %c0_22], %12 {strides = array<i32>} : memref<34x41x4xf32, #tpu.memory_space<vmem>>, vector<34x16x4xf32>,
    %cst_23 = arith.constant 0.000000e+00 : f32
    %14 = vector.broadcast %cst_23 : f32 to vector<34x9x4xf32>
    %c0_24 = arith.constant 0 : index
    %c32 = arith.constant 32 : index
    %c0_25 = arith.constant 0 : index
    %15 = vector.load %arg10[%c0_24, %c32, %c0_25] : memref<34x41x4xf32, #tpu.memory_space<vmem>>, vector<34x9x4xf32>
    tpu.vector_store %arg10[%c0_24, %c32, %c0_25], %14 {strides = array<i32>} : memref<34x41x4xf32, #tpu.memory_space<vmem>>, vector<34x9x4xf32>,
    %c0_26 = arith.constant 0 : index
    %c0_27 = arith.constant 0 : index
    %c0_28 = arith.constant 0 : index
    %c0_29 = arith.constant 0 : index
    %16 = vector.load %arg1[%c0_26, %c0_27, %c0_28, %c0_29] : memref<1x16x16x4xf32, #tpu.memory_space<vmem>>, vector<1x16x16x4xf32>
    %17 = vector.shape_cast %16 : vector<1x16x16x4xf32> to vector<16x16x4xf32>
    %c2 = arith.constant 2 : index
    %c8 = arith.constant 8 : index
    %c0_30 = arith.constant 0 : index
    %18 = vector.load %arg9[%c2, %c8, %c0_30] : memref<20x26x4xf32, #tpu.memory_space<vmem>>, vector<16x16x4xf32>
    tpu.vector_store %arg9[%c2, %c8, %c0_30], %17 {strides = array<i32>} : memref<20x26x4xf32, #tpu.memory_space<vmem>>, vector<16x16x4xf32>,
    %c0_31 = arith.constant 0 : index
    %c0_32 = arith.constant 0 : index
    %19 = vector.load %arg3[%c0_31, %c0_32] : memref<1x4xf32, #tpu.memory_space<vmem>>, vector<1x4xf32>
    %20 = vector.shape_cast %19 : vector<1x4xf32> to vector<4xf32>
    %c0_33 = arith.constant 0 : index
    %c0_34 = arith.constant 0 : index
    %21 = vector.load %arg5[%c0_33, %c0_34] : memref<1x4xf32, #tpu.memory_space<vmem>>, vector<1x4xf32>
    %22 = vector.shape_cast %21 : vector<1x4xf32> to vector<4xf32>
    %c0_35 = arith.constant 0 : index
    %c0_36 = arith.constant 0 : index
    %23 = vector.load %arg7[%c0_35, %c0_36] : memref<1x4xf32, #tpu.memory_space<vmem>>, vector<1x4xf32>
    %24 = vector.shape_cast %23 : vector<1x4xf32> to vector<4xf32>
    %c0_i32 = arith.constant 0 : i32
    %c2_i32 = arith.constant 2 : i32
    %25 = arith.addi %c0_i32, %c2_i32 : i32
    %c1_i32 = arith.constant 1 : i32
    scf.for %arg11 = %c0_i32 to %25 step %c1_i32  : i32 {
      %c8_i32 = arith.constant 8 : i32
      %27 = arith.muli %arg11, %c8_i32 : i32
      %28 = tpu.assume_multiple %27, 8 : i32
      %cst_42 = arith.constant 0.000000e+00 : f32
      %29 = vector.broadcast %cst_42 : f32 to vector<8x16x4xf32>
      %c0_i32_43 = arith.constant 0 : i32
      %30 = arith.addi %28, %c0_i32_43 : i32
      %31 = arith.index_cast %30 : i32 to index
      %c6 = arith.constant 6 : index
      %c0_44 = arith.constant 0 : index
      %32 = vector.load %arg9[%31, %c6, %c0_44] : memref<20x26x4xf32, #tpu.memory_space<vmem>>, vector<8x16x4xf32>
      %c0_45 = arith.constant 0 : index
      %c0_46 = arith.constant 0 : index
      %33 = vector.load %arg2[%c0_45, %c0_46] : memref<25x4xf32, #tpu.memory_space<vmem>>, vector<1x4xf32>
      %34 = vector.shape_cast %33 : vector<1x4xf32> to vector<4xf32>
      %35 = vector.shape_cast %34 : vector<4xf32> to vector<1x1x4xf32>
      %36 = vector.broadcast %35 : vector<1x1x4xf32> to vector<8x16x4xf32>
      %37 = arith.mulf %32, %36 : vector<8x16x4xf32>
      %38 = arith.addf %29, %37 : vector<8x16x4xf32>
      %c0_i32_47 = arith.constant 0 : i32
      %39 = arith.addi %28, %c0_i32_47 : i32
      %40 = arith.index_cast %39 : i32 to index
      %c7 = arith.constant 7 : index
      %c0_48 = arith.constant 0 : index
      %41 = vector.load %arg9[%40, %c7, %c0_48] : memref<20x26x4xf32, #tpu.memory_space<vmem>>, vector<8x16x4xf32>
      %c1 = arith.constant 1 : index
      %c0_49 = arith.constant 0 : index
      %42 = vector.load %arg2[%c1, %c0_49] : memref<25x4xf32, #tpu.memory_space<vmem>>, vector<1x4xf32>
      %43 = vector.shape_cast %42 : vector<1x4xf32> to vector<4xf32>
      %44 = vector.shape_cast %43 : vector<4xf32> to vector<1x1x4xf32>
      %45 = vector.broadcast %44 : vector<1x1x4xf32> to vector<8x16x4xf32>
      %46 = arith.mulf %41, %45 : vector<8x16x4xf32>
      %47 = arith.addf %38, %46 : vector<8x16x4xf32>
      %c0_i32_50 = arith.constant 0 : i32
      %48 = arith.addi %28, %c0_i32_50 : i32
      %49 = arith.index_cast %48 : i32 to index
      %c8_51 = arith.constant 8 : index
      %c0_52 = arith.constant 0 : index
      %50 = vector.load %arg9[%49, %c8_51, %c0_52] : memref<20x26x4xf32, #tpu.memory_space<vmem>>, vector<8x16x4xf32>
      %c2_53 = arith.constant 2 : index
      %c0_54 = arith.constant 0 : index
      %51 = vector.load %arg2[%c2_53, %c0_54] : memref<25x4xf32, #tpu.memory_space<vmem>>, vector<1x4xf32>
      %52 = vector.shape_cast %51 : vector<1x4xf32> to vector<4xf32>
      %53 = vector.shape_cast %52 : vector<4xf32> to vector<1x1x4xf32>
      %54 = vector.broadcast %53 : vector<1x1x4xf32> to vector<8x16x4xf32>
      %55 = arith.mulf %50, %54 : vector<8x16x4xf32>
      %56 = arith.addf %47, %55 : vector<8x16x4xf32>
      %c0_i32_55 = arith.constant 0 : i32
      %57 = arith.addi %28, %c0_i32_55 : i32
      %58 = arith.index_cast %57 : i32 to index
      %c9 = arith.constant 9 : index
      %c0_56 = arith.constant 0 : index
      %59 = vector.load %arg9[%58, %c9, %c0_56] : memref<20x26x4xf32, #tpu.memory_space<vmem>>, vector<8x16x4xf32>
      %c3 = arith.constant 3 : index
      %c0_57 = arith.constant 0 : index
      %60 = vector.load %arg2[%c3, %c0_57] : memref<25x4xf32, #tpu.memory_space<vmem>>, vector<1x4xf32>
      %61 = vector.shape_cast %60 : vector<1x4xf32> to vector<4xf32>
      %62 = vector.shape_cast %61 : vector<4xf32> to vector<1x1x4xf32>
      %63 = vector.broadcast %62 : vector<1x1x4xf32> to vector<8x16x4xf32>
      %64 = arith.mulf %59, %63 : vector<8x16x4xf32>
      %65 = arith.addf %56, %64 : vector<8x16x4xf32>
      %c0_i32_58 = arith.constant 0 : i32
      %66 = arith.addi %28, %c0_i32_58 : i32
      %67 = arith.index_cast %66 : i32 to index
      %c10 = arith.constant 10 : index
      %c0_59 = arith.constant 0 : index
      %68 = vector.load %arg9[%67, %c10, %c0_59] : memref<20x26x4xf32, #tpu.memory_space<vmem>>, vector<8x16x4xf32>
      %c4 = arith.constant 4 : index
      %c0_60 = arith.constant 0 : index
      %69 = vector.load %arg2[%c4, %c0_60] : memref<25x4xf32, #tpu.memory_space<vmem>>, vector<1x4xf32>
      %70 = vector.shape_cast %69 : vector<1x4xf32> to vector<4xf32>
      %71 = vector.shape_cast %70 : vector<4xf32> to vector<1x1x4xf32>
      %72 = vector.broadcast %71 : vector<1x1x4xf32> to vector<8x16x4xf32>
      %73 = arith.mulf %68, %72 : vector<8x16x4xf32>
      %74 = arith.addf %65, %73 : vector<8x16x4xf32>
      %c1_i32_61 = arith.constant 1 : i32
      %75 = arith.addi %28, %c1_i32_61 : i32
      %76 = arith.index_cast %75 : i32 to index
      %c6_62 = arith.constant 6 : index
      %c0_63 = arith.constant 0 : index
      %77 = vector.load %arg9[%76, %c6_62, %c0_63] : memref<20x26x4xf32, #tpu.memory_space<vmem>>, vector<8x16x4xf32>
      %c5 = arith.constant 5 : index
      %c0_64 = arith.constant 0 : index
      %78 = vector.load %arg2[%c5, %c0_64] : memref<25x4xf32, #tpu.memory_space<vmem>>, vector<1x4xf32>
      %79 = vector.shape_cast %78 : vector<1x4xf32> to vector<4xf32>
      %80 = vector.shape_cast %79 : vector<4xf32> to vector<1x1x4xf32>
      %81 = vector.broadcast %80 : vector<1x1x4xf32> to vector<8x16x4xf32>
      %82 = arith.mulf %77, %81 : vector<8x16x4xf32>
      %83 = arith.addf %74, %82 : vector<8x16x4xf32>
      %c1_i32_65 = arith.constant 1 : i32
      %84 = arith.addi %28, %c1_i32_65 : i32
      %85 = arith.index_cast %84 : i32 to index
      %c7_66 = arith.constant 7 : index
      %c0_67 = arith.constant 0 : index
      %86 = vector.load %arg9[%85, %c7_66, %c0_67] : memref<20x26x4xf32, #tpu.memory_space<vmem>>, vector<8x16x4xf32>
      %c6_68 = arith.constant 6 : index
      %c0_69 = arith.constant 0 : index
      %87 = vector.load %arg2[%c6_68, %c0_69] : memref<25x4xf32, #tpu.memory_space<vmem>>, vector<1x4xf32>
      %88 = vector.shape_cast %87 : vector<1x4xf32> to vector<4xf32>
      %89 = vector.shape_cast %88 : vector<4xf32> to vector<1x1x4xf32>
      %90 = vector.broadcast %89 : vector<1x1x4xf32> to vector<8x16x4xf32>
      %91 = arith.mulf %86, %90 : vector<8x16x4xf32>
      %92 = arith.addf %83, %91 : vector<8x16x4xf32>
      %c1_i32_70 = arith.constant 1 : i32
      %93 = arith.addi %28, %c1_i32_70 : i32
      %94 = arith.index_cast %93 : i32 to index
      %c8_71 = arith.constant 8 : index
      %c0_72 = arith.constant 0 : index
      %95 = vector.load %arg9[%94, %c8_71, %c0_72] : memref<20x26x4xf32, #tpu.memory_space<vmem>>, vector<8x16x4xf32>
      %c7_73 = arith.constant 7 : index
      %c0_74 = arith.constant 0 : index
      %96 = vector.load %arg2[%c7_73, %c0_74] : memref<25x4xf32, #tpu.memory_space<vmem>>, vector<1x4xf32>
      %97 = vector.shape_cast %96 : vector<1x4xf32> to vector<4xf32>
      %98 = vector.shape_cast %97 : vector<4xf32> to vector<1x1x4xf32>
      %99 = vector.broadcast %98 : vector<1x1x4xf32> to vector<8x16x4xf32>
      %100 = arith.mulf %95, %99 : vector<8x16x4xf32>
      %101 = arith.addf %92, %100 : vector<8x16x4xf32>
      %c1_i32_75 = arith.constant 1 : i32
      %102 = arith.addi %28, %c1_i32_75 : i32
      %103 = arith.index_cast %102 : i32 to index
      %c9_76 = arith.constant 9 : index
      %c0_77 = arith.constant 0 : index
      %104 = vector.load %arg9[%103, %c9_76, %c0_77] : memref<20x26x4xf32, #tpu.memory_space<vmem>>, vector<8x16x4xf32>
      %c8_78 = arith.constant 8 : index
      %c0_79 = arith.constant 0 : index
      %105 = vector.load %arg2[%c8_78, %c0_79] : memref<25x4xf32, #tpu.memory_space<vmem>>, vector<1x4xf32>
      %106 = vector.shape_cast %105 : vector<1x4xf32> to vector<4xf32>
      %107 = vector.shape_cast %106 : vector<4xf32> to vector<1x1x4xf32>
      %108 = vector.broadcast %107 : vector<1x1x4xf32> to vector<8x16x4xf32>
      %109 = arith.mulf %104, %108 : vector<8x16x4xf32>
      %110 = arith.addf %101, %109 : vector<8x16x4xf32>
      %c1_i32_80 = arith.constant 1 : i32
      %111 = arith.addi %28, %c1_i32_80 : i32
      %112 = arith.index_cast %111 : i32 to index
      %c10_81 = arith.constant 10 : index
      %c0_82 = arith.constant 0 : index
      %113 = vector.load %arg9[%112, %c10_81, %c0_82] : memref<20x26x4xf32, #tpu.memory_space<vmem>>, vector<8x16x4xf32>
      %c9_83 = arith.constant 9 : index
      %c0_84 = arith.constant 0 : index
      %114 = vector.load %arg2[%c9_83, %c0_84] : memref<25x4xf32, #tpu.memory_space<vmem>>, vector<1x4xf32>
      %115 = vector.shape_cast %114 : vector<1x4xf32> to vector<4xf32>
      %116 = vector.shape_cast %115 : vector<4xf32> to vector<1x1x4xf32>
      %117 = vector.broadcast %116 : vector<1x1x4xf32> to vector<8x16x4xf32>
      %118 = arith.mulf %113, %117 : vector<8x16x4xf32>
      %119 = arith.addf %110, %118 : vector<8x16x4xf32>
      %c2_i32_85 = arith.constant 2 : i32
      %120 = arith.addi %28, %c2_i32_85 : i32
      %121 = arith.index_cast %120 : i32 to index
      %c6_86 = arith.constant 6 : index
      %c0_87 = arith.constant 0 : index
      %122 = vector.load %arg9[%121, %c6_86, %c0_87] : memref<20x26x4xf32, #tpu.memory_space<vmem>>, vector<8x16x4xf32>
      %c10_88 = arith.constant 10 : index
      %c0_89 = arith.constant 0 : index
      %123 = vector.load %arg2[%c10_88, %c0_89] : memref<25x4xf32, #tpu.memory_space<vmem>>, vector<1x4xf32>
      %124 = vector.shape_cast %123 : vector<1x4xf32> to vector<4xf32>
      %125 = vector.shape_cast %124 : vector<4xf32> to vector<1x1x4xf32>
      %126 = vector.broadcast %125 : vector<1x1x4xf32> to vector<8x16x4xf32>
      %127 = arith.mulf %122, %126 : vector<8x16x4xf32>
      %128 = arith.addf %119, %127 : vector<8x16x4xf32>
      %c2_i32_90 = arith.constant 2 : i32
      %129 = arith.addi %28, %c2_i32_90 : i32
      %130 = arith.index_cast %129 : i32 to index
      %c7_91 = arith.constant 7 : index
      %c0_92 = arith.constant 0 : index
      %131 = vector.load %arg9[%130, %c7_91, %c0_92] : memref<20x26x4xf32, #tpu.memory_space<vmem>>, vector<8x16x4xf32>
      %c11 = arith.constant 11 : index
      %c0_93 = arith.constant 0 : index
      %132 = vector.load %arg2[%c11, %c0_93] : memref<25x4xf32, #tpu.memory_space<vmem>>, vector<1x4xf32>
      %133 = vector.shape_cast %132 : vector<1x4xf32> to vector<4xf32>
      %134 = vector.shape_cast %133 : vector<4xf32> to vector<1x1x4xf32>
      %135 = vector.broadcast %134 : vector<1x1x4xf32> to vector<8x16x4xf32>
      %136 = arith.mulf %131, %135 : vector<8x16x4xf32>
      %137 = arith.addf %128, %136 : vector<8x16x4xf32>
      %c2_i32_94 = arith.constant 2 : i32
      %138 = arith.addi %28, %c2_i32_94 : i32
      %139 = arith.index_cast %138 : i32 to index
      %c8_95 = arith.constant 8 : index
      %c0_96 = arith.constant 0 : index
      %140 = vector.load %arg9[%139, %c8_95, %c0_96] : memref<20x26x4xf32, #tpu.memory_space<vmem>>, vector<8x16x4xf32>
      %c12 = arith.constant 12 : index
      %c0_97 = arith.constant 0 : index
      %141 = vector.load %arg2[%c12, %c0_97] : memref<25x4xf32, #tpu.memory_space<vmem>>, vector<1x4xf32>
      %142 = vector.shape_cast %141 : vector<1x4xf32> to vector<4xf32>
      %143 = vector.shape_cast %142 : vector<4xf32> to vector<1x1x4xf32>
      %144 = vector.broadcast %143 : vector<1x1x4xf32> to vector<8x16x4xf32>
      %145 = arith.mulf %140, %144 : vector<8x16x4xf32>
      %146 = arith.addf %137, %145 : vector<8x16x4xf32>
      %c2_i32_98 = arith.constant 2 : i32
      %147 = arith.addi %28, %c2_i32_98 : i32
      %148 = arith.index_cast %147 : i32 to index
      %c9_99 = arith.constant 9 : index
      %c0_100 = arith.constant 0 : index
      %149 = vector.load %arg9[%148, %c9_99, %c0_100] : memref<20x26x4xf32, #tpu.memory_space<vmem>>, vector<8x16x4xf32>
      %c13 = arith.constant 13 : index
      %c0_101 = arith.constant 0 : index
      %150 = vector.load %arg2[%c13, %c0_101] : memref<25x4xf32, #tpu.memory_space<vmem>>, vector<1x4xf32>
      %151 = vector.shape_cast %150 : vector<1x4xf32> to vector<4xf32>
      %152 = vector.shape_cast %151 : vector<4xf32> to vector<1x1x4xf32>
      %153 = vector.broadcast %152 : vector<1x1x4xf32> to vector<8x16x4xf32>
      %154 = arith.mulf %149, %153 : vector<8x16x4xf32>
      %155 = arith.addf %146, %154 : vector<8x16x4xf32>
      %c2_i32_102 = arith.constant 2 : i32
      %156 = arith.addi %28, %c2_i32_102 : i32
      %157 = arith.index_cast %156 : i32 to index
      %c10_103 = arith.constant 10 : index
      %c0_104 = arith.constant 0 : index
      %158 = vector.load %arg9[%157, %c10_103, %c0_104] : memref<20x26x4xf32, #tpu.memory_space<vmem>>, vector<8x16x4xf32>
      %c14 = arith.constant 14 : index
      %c0_105 = arith.constant 0 : index
      %159 = vector.load %arg2[%c14, %c0_105] : memref<25x4xf32, #tpu.memory_space<vmem>>, vector<1x4xf32>
      %160 = vector.shape_cast %159 : vector<1x4xf32> to vector<4xf32>
      %161 = vector.shape_cast %160 : vector<4xf32> to vector<1x1x4xf32>
      %162 = vector.broadcast %161 : vector<1x1x4xf32> to vector<8x16x4xf32>
      %163 = arith.mulf %158, %162 : vector<8x16x4xf32>
      %164 = arith.addf %155, %163 : vector<8x16x4xf32>
      %c3_i32 = arith.constant 3 : i32
      %165 = arith.addi %28, %c3_i32 : i32
      %166 = arith.index_cast %165 : i32 to index
      %c6_106 = arith.constant 6 : index
      %c0_107 = arith.constant 0 : index
      %167 = vector.load %arg9[%166, %c6_106, %c0_107] : memref<20x26x4xf32, #tpu.memory_space<vmem>>, vector<8x16x4xf32>
      %c15 = arith.constant 15 : index
      %c0_108 = arith.constant 0 : index
      %168 = vector.load %arg2[%c15, %c0_108] : memref<25x4xf32, #tpu.memory_space<vmem>>, vector<1x4xf32>
      %169 = vector.shape_cast %168 : vector<1x4xf32> to vector<4xf32>
      %170 = vector.shape_cast %169 : vector<4xf32> to vector<1x1x4xf32>
      %171 = vector.broadcast %170 : vector<1x1x4xf32> to vector<8x16x4xf32>
      %172 = arith.mulf %167, %171 : vector<8x16x4xf32>
      %173 = arith.addf %164, %172 : vector<8x16x4xf32>
      %c3_i32_109 = arith.constant 3 : i32
      %174 = arith.addi %28, %c3_i32_109 : i32
      %175 = arith.index_cast %174 : i32 to index
      %c7_110 = arith.constant 7 : index
      %c0_111 = arith.constant 0 : index
      %176 = vector.load %arg9[%175, %c7_110, %c0_111] : memref<20x26x4xf32, #tpu.memory_space<vmem>>, vector<8x16x4xf32>
      %c16 = arith.constant 16 : index
      %c0_112 = arith.constant 0 : index
      %177 = vector.load %arg2[%c16, %c0_112] : memref<25x4xf32, #tpu.memory_space<vmem>>, vector<1x4xf32>
      %178 = vector.shape_cast %177 : vector<1x4xf32> to vector<4xf32>
      %179 = vector.shape_cast %178 : vector<4xf32> to vector<1x1x4xf32>
      %180 = vector.broadcast %179 : vector<1x1x4xf32> to vector<8x16x4xf32>
      %181 = arith.mulf %176, %180 : vector<8x16x4xf32>
      %182 = arith.addf %173, %181 : vector<8x16x4xf32>
      %c3_i32_113 = arith.constant 3 : i32
      %183 = arith.addi %28, %c3_i32_113 : i32
      %184 = arith.index_cast %183 : i32 to index
      %c8_114 = arith.constant 8 : index
      %c0_115 = arith.constant 0 : index
      %185 = vector.load %arg9[%184, %c8_114, %c0_115] : memref<20x26x4xf32, #tpu.memory_space<vmem>>, vector<8x16x4xf32>
      %c17 = arith.constant 17 : index
      %c0_116 = arith.constant 0 : index
      %186 = vector.load %arg2[%c17, %c0_116] : memref<25x4xf32, #tpu.memory_space<vmem>>, vector<1x4xf32>
      %187 = vector.shape_cast %186 : vector<1x4xf32> to vector<4xf32>
      %188 = vector.shape_cast %187 : vector<4xf32> to vector<1x1x4xf32>
      %189 = vector.broadcast %188 : vector<1x1x4xf32> to vector<8x16x4xf32>
      %190 = arith.mulf %185, %189 : vector<8x16x4xf32>
      %191 = arith.addf %182, %190 : vector<8x16x4xf32>
      %c3_i32_117 = arith.constant 3 : i32
      %192 = arith.addi %28, %c3_i32_117 : i32
      %193 = arith.index_cast %192 : i32 to index
      %c9_118 = arith.constant 9 : index
      %c0_119 = arith.constant 0 : index
      %194 = vector.load %arg9[%193, %c9_118, %c0_119] : memref<20x26x4xf32, #tpu.memory_space<vmem>>, vector<8x16x4xf32>
      %c18_120 = arith.constant 18 : index
      %c0_121 = arith.constant 0 : index
      %195 = vector.load %arg2[%c18_120, %c0_121] : memref<25x4xf32, #tpu.memory_space<vmem>>, vector<1x4xf32>
      %196 = vector.shape_cast %195 : vector<1x4xf32> to vector<4xf32>
      %197 = vector.shape_cast %196 : vector<4xf32> to vector<1x1x4xf32>
      %198 = vector.broadcast %197 : vector<1x1x4xf32> to vector<8x16x4xf32>
      %199 = arith.mulf %194, %198 : vector<8x16x4xf32>
      %200 = arith.addf %191, %199 : vector<8x16x4xf32>
      %c3_i32_122 = arith.constant 3 : i32
      %201 = arith.addi %28, %c3_i32_122 : i32
      %202 = arith.index_cast %201 : i32 to index
      %c10_123 = arith.constant 10 : index
      %c0_124 = arith.constant 0 : index
      %203 = vector.load %arg9[%202, %c10_123, %c0_124] : memref<20x26x4xf32, #tpu.memory_space<vmem>>, vector<8x16x4xf32>
      %c19 = arith.constant 19 : index
      %c0_125 = arith.constant 0 : index
      %204 = vector.load %arg2[%c19, %c0_125] : memref<25x4xf32, #tpu.memory_space<vmem>>, vector<1x4xf32>
      %205 = vector.shape_cast %204 : vector<1x4xf32> to vector<4xf32>
      %206 = vector.shape_cast %205 : vector<4xf32> to vector<1x1x4xf32>
      %207 = vector.broadcast %206 : vector<1x1x4xf32> to vector<8x16x4xf32>
      %208 = arith.mulf %203, %207 : vector<8x16x4xf32>
      %209 = arith.addf %200, %208 : vector<8x16x4xf32>
      %c4_i32 = arith.constant 4 : i32
      %210 = arith.addi %28, %c4_i32 : i32
      %211 = arith.index_cast %210 : i32 to index
      %c6_126 = arith.constant 6 : index
      %c0_127 = arith.constant 0 : index
      %212 = vector.load %arg9[%211, %c6_126, %c0_127] : memref<20x26x4xf32, #tpu.memory_space<vmem>>, vector<8x16x4xf32>
      %c20 = arith.constant 20 : index
      %c0_128 = arith.constant 0 : index
      %213 = vector.load %arg2[%c20, %c0_128] : memref<25x4xf32, #tpu.memory_space<vmem>>, vector<1x4xf32>
      %214 = vector.shape_cast %213 : vector<1x4xf32> to vector<4xf32>
      %215 = vector.shape_cast %214 : vector<4xf32> to vector<1x1x4xf32>
      %216 = vector.broadcast %215 : vector<1x1x4xf32> to vector<8x16x4xf32>
      %217 = arith.mulf %212, %216 : vector<8x16x4xf32>
      %218 = arith.addf %209, %217 : vector<8x16x4xf32>
      %c4_i32_129 = arith.constant 4 : i32
      %219 = arith.addi %28, %c4_i32_129 : i32
      %220 = arith.index_cast %219 : i32 to index
      %c7_130 = arith.constant 7 : index
      %c0_131 = arith.constant 0 : index
      %221 = vector.load %arg9[%220, %c7_130, %c0_131] : memref<20x26x4xf32, #tpu.memory_space<vmem>>, vector<8x16x4xf32>
      %c21 = arith.constant 21 : index
      %c0_132 = arith.constant 0 : index
      %222 = vector.load %arg2[%c21, %c0_132] : memref<25x4xf32, #tpu.memory_space<vmem>>, vector<1x4xf32>
      %223 = vector.shape_cast %222 : vector<1x4xf32> to vector<4xf32>
      %224 = vector.shape_cast %223 : vector<4xf32> to vector<1x1x4xf32>
      %225 = vector.broadcast %224 : vector<1x1x4xf32> to vector<8x16x4xf32>
      %226 = arith.mulf %221, %225 : vector<8x16x4xf32>
      %227 = arith.addf %218, %226 : vector<8x16x4xf32>
      %c4_i32_133 = arith.constant 4 : i32
      %228 = arith.addi %28, %c4_i32_133 : i32
      %229 = arith.index_cast %228 : i32 to index
      %c8_134 = arith.constant 8 : index
      %c0_135 = arith.constant 0 : index
      %230 = vector.load %arg9[%229, %c8_134, %c0_135] : memref<20x26x4xf32, #tpu.memory_space<vmem>>, vector<8x16x4xf32>
      %c22 = arith.constant 22 : index
      %c0_136 = arith.constant 0 : index
      %231 = vector.load %arg2[%c22, %c0_136] : memref<25x4xf32, #tpu.memory_space<vmem>>, vector<1x4xf32>
      %232 = vector.shape_cast %231 : vector<1x4xf32> to vector<4xf32>
      %233 = vector.shape_cast %232 : vector<4xf32> to vector<1x1x4xf32>
      %234 = vector.broadcast %233 : vector<1x1x4xf32> to vector<8x16x4xf32>
      %235 = arith.mulf %230, %234 : vector<8x16x4xf32>
      %236 = arith.addf %227, %235 : vector<8x16x4xf32>
      %c4_i32_137 = arith.constant 4 : i32
      %237 = arith.addi %28, %c4_i32_137 : i32
      %238 = arith.index_cast %237 : i32 to index
      %c9_138 = arith.constant 9 : index
      %c0_139 = arith.constant 0 : index
      %239 = vector.load %arg9[%238, %c9_138, %c0_139] : memref<20x26x4xf32, #tpu.memory_space<vmem>>, vector<8x16x4xf32>
      %c23 = arith.constant 23 : index
      %c0_140 = arith.constant 0 : index
      %240 = vector.load %arg2[%c23, %c0_140] : memref<25x4xf32, #tpu.memory_space<vmem>>, vector<1x4xf32>
      %241 = vector.shape_cast %240 : vector<1x4xf32> to vector<4xf32>
      %242 = vector.shape_cast %241 : vector<4xf32> to vector<1x1x4xf32>
      %243 = vector.broadcast %242 : vector<1x1x4xf32> to vector<8x16x4xf32>
      %244 = arith.mulf %239, %243 : vector<8x16x4xf32>
      %245 = arith.addf %236, %244 : vector<8x16x4xf32>
      %c4_i32_141 = arith.constant 4 : i32
      %246 = arith.addi %28, %c4_i32_141 : i32
      %247 = arith.index_cast %246 : i32 to index
      %c10_142 = arith.constant 10 : index
      %c0_143 = arith.constant 0 : index
      %248 = vector.load %arg9[%247, %c10_142, %c0_143] : memref<20x26x4xf32, #tpu.memory_space<vmem>>, vector<8x16x4xf32>
      %c24_144 = arith.constant 24 : index
      %c0_145 = arith.constant 0 : index
      %249 = vector.load %arg2[%c24_144, %c0_145] : memref<25x4xf32, #tpu.memory_space<vmem>>, vector<1x4xf32>
      %250 = vector.shape_cast %249 : vector<1x4xf32> to vector<4xf32>
      %251 = vector.shape_cast %250 : vector<4xf32> to vector<1x1x4xf32>
      %252 = vector.broadcast %251 : vector<1x1x4xf32> to vector<8x16x4xf32>
      %253 = arith.mulf %248, %252 : vector<8x16x4xf32>
      %254 = arith.addf %245, %253 : vector<8x16x4xf32>
      %255 = vector.shape_cast %20 : vector<4xf32> to vector<1x1x4xf32>
      %256 = vector.broadcast %255 : vector<1x1x4xf32> to vector<8x16x4xf32>
      %257 = arith.addf %254, %256 : vector<8x16x4xf32>
      %c9_i32 = arith.constant 9 : i32
      %258 = arith.addi %c9_i32, %28 : i32
      %259 = arith.index_cast %258 : i32 to index
      %c16_146 = arith.constant 16 : index
      %c0_147 = arith.constant 0 : index
      %260 = vector.load %arg10[%259, %c16_146, %c0_147] : memref<34x41x4xf32, #tpu.memory_space<vmem>>, vector<8x16x4xf32>
      tpu.vector_store %arg10[%259, %c16_146, %c0_147], %257 {strides = array<i32>} : memref<34x41x4xf32, #tpu.memory_space<vmem>>, vector<8x16x4xf32>,
    }
    %c2_i32_37 = arith.constant 2 : i32
    %c0_i32_38 = arith.constant 0 : i32
    %c2_i32_39 = arith.constant 2 : i32
    %26 = arith.addi %c0_i32_38, %c2_i32_39 : i32
    %c1_i32_40 = arith.constant 1 : i32
    scf.for %arg11 = %c0_i32_38 to %26 step %c1_i32_40  : i32 {
      %c8_i32 = arith.constant 8 : i32
      %27 = arith.muli %arg11, %c8_i32 : i32
      %28 = tpu.assume_multiple %27, 8 : i32
      %cst_42 = arith.constant 0.000000e+00 : f32
      %29 = vector.broadcast %cst_42 : f32 to vector<8x16x4xf32>
      %c0_i32_43 = arith.constant 0 : i32
      %30 = arith.addi %28, %c0_i32_43 : i32
      %31 = arith.index_cast %30 : i32 to index
      %c7 = arith.constant 7 : index
      %c0_44 = arith.constant 0 : index
      %32 = vector.load %arg10[%31, %c7, %c0_44] : memref<34x41x4xf32, #tpu.memory_space<vmem>>, vector<8x16x4xf32>
      %c0_45 = arith.constant 0 : index
      %c0_46 = arith.constant 0 : index
      %33 = vector.load %arg4[%c0_45, %c0_46] : memref<49x4xf32, #tpu.memory_space<vmem>>, vector<1x4xf32>
      %34 = vector.shape_cast %33 : vector<1x4xf32> to vector<4xf32>
      %35 = vector.shape_cast %34 : vector<4xf32> to vector<1x1x4xf32>
      %36 = vector.broadcast %35 : vector<1x1x4xf32> to vector<8x16x4xf32>
      %37 = arith.mulf %32, %36 : vector<8x16x4xf32>
      %38 = arith.addf %29, %37 : vector<8x16x4xf32>
      %c0_i32_47 = arith.constant 0 : i32
      %39 = arith.addi %28, %c0_i32_47 : i32
      %40 = arith.index_cast %39 : i32 to index
      %c10 = arith.constant 10 : index
      %c0_48 = arith.constant 0 : index
      %41 = vector.load %arg10[%40, %c10, %c0_48] : memref<34x41x4xf32, #tpu.memory_space<vmem>>, vector<8x16x4xf32>
      %c1 = arith.constant 1 : index
      %c0_49 = arith.constant 0 : index
      %42 = vector.load %arg4[%c1, %c0_49] : memref<49x4xf32, #tpu.memory_space<vmem>>, vector<1x4xf32>
      %43 = vector.shape_cast %42 : vector<1x4xf32> to vector<4xf32>
      %44 = vector.shape_cast %43 : vector<4xf32> to vector<1x1x4xf32>
      %45 = vector.broadcast %44 : vector<1x1x4xf32> to vector<8x16x4xf32>
      %46 = arith.mulf %41, %45 : vector<8x16x4xf32>
      %47 = arith.addf %38, %46 : vector<8x16x4xf32>
      %c0_i32_50 = arith.constant 0 : i32
      %48 = arith.addi %28, %c0_i32_50 : i32
      %49 = arith.index_cast %48 : i32 to index
      %c13 = arith.constant 13 : index
      %c0_51 = arith.constant 0 : index
      %50 = vector.load %arg10[%49, %c13, %c0_51] : memref<34x41x4xf32, #tpu.memory_space<vmem>>, vector<8x16x4xf32>
      %c2_52 = arith.constant 2 : index
      %c0_53 = arith.constant 0 : index
      %51 = vector.load %arg4[%c2_52, %c0_53] : memref<49x4xf32, #tpu.memory_space<vmem>>, vector<1x4xf32>
      %52 = vector.shape_cast %51 : vector<1x4xf32> to vector<4xf32>
      %53 = vector.shape_cast %52 : vector<4xf32> to vector<1x1x4xf32>
      %54 = vector.broadcast %53 : vector<1x1x4xf32> to vector<8x16x4xf32>
      %55 = arith.mulf %50, %54 : vector<8x16x4xf32>
      %56 = arith.addf %47, %55 : vector<8x16x4xf32>
      %c0_i32_54 = arith.constant 0 : i32
      %57 = arith.addi %28, %c0_i32_54 : i32
      %58 = arith.index_cast %57 : i32 to index
      %c16 = arith.constant 16 : index
      %c0_55 = arith.constant 0 : index
      %59 = vector.load %arg10[%58, %c16, %c0_55] : memref<34x41x4xf32, #tpu.memory_space<vmem>>, vector<8x16x4xf32>
      %c3 = arith.constant 3 : index
      %c0_56 = arith.constant 0 : index
      %60 = vector.load %arg4[%c3, %c0_56] : memref<49x4xf32, #tpu.memory_space<vmem>>, vector<1x4xf32>
      %61 = vector.shape_cast %60 : vector<1x4xf32> to vector<4xf32>
      %62 = vector.shape_cast %61 : vector<4xf32> to vector<1x1x4xf32>
      %63 = vector.broadcast %62 : vector<1x1x4xf32> to vector<8x16x4xf32>
      %64 = arith.mulf %59, %63 : vector<8x16x4xf32>
      %65 = arith.addf %56, %64 : vector<8x16x4xf32>
      %c0_i32_57 = arith.constant 0 : i32
      %66 = arith.addi %28, %c0_i32_57 : i32
      %67 = arith.index_cast %66 : i32 to index
      %c19 = arith.constant 19 : index
      %c0_58 = arith.constant 0 : index
      %68 = vector.load %arg10[%67, %c19, %c0_58] : memref<34x41x4xf32, #tpu.memory_space<vmem>>, vector<8x16x4xf32>
      %c4 = arith.constant 4 : index
      %c0_59 = arith.constant 0 : index
      %69 = vector.load %arg4[%c4, %c0_59] : memref<49x4xf32, #tpu.memory_space<vmem>>, vector<1x4xf32>
      %70 = vector.shape_cast %69 : vector<1x4xf32> to vector<4xf32>
      %71 = vector.shape_cast %70 : vector<4xf32> to vector<1x1x4xf32>
      %72 = vector.broadcast %71 : vector<1x1x4xf32> to vector<8x16x4xf32>
      %73 = arith.mulf %68, %72 : vector<8x16x4xf32>
      %74 = arith.addf %65, %73 : vector<8x16x4xf32>
      %c0_i32_60 = arith.constant 0 : i32
      %75 = arith.addi %28, %c0_i32_60 : i32
      %76 = arith.index_cast %75 : i32 to index
      %c22 = arith.constant 22 : index
      %c0_61 = arith.constant 0 : index
      %77 = vector.load %arg10[%76, %c22, %c0_61] : memref<34x41x4xf32, #tpu.memory_space<vmem>>, vector<8x16x4xf32>
      %c5 = arith.constant 5 : index
      %c0_62 = arith.constant 0 : index
      %78 = vector.load %arg4[%c5, %c0_62] : memref<49x4xf32, #tpu.memory_space<vmem>>, vector<1x4xf32>
      %79 = vector.shape_cast %78 : vector<1x4xf32> to vector<4xf32>
      %80 = vector.shape_cast %79 : vector<4xf32> to vector<1x1x4xf32>
      %81 = vector.broadcast %80 : vector<1x1x4xf32> to vector<8x16x4xf32>
      %82 = arith.mulf %77, %81 : vector<8x16x4xf32>
      %83 = arith.addf %74, %82 : vector<8x16x4xf32>
      %c0_i32_63 = arith.constant 0 : i32
      %84 = arith.addi %28, %c0_i32_63 : i32
      %85 = arith.index_cast %84 : i32 to index
      %c25_64 = arith.constant 25 : index
      %c0_65 = arith.constant 0 : index
      %86 = vector.load %arg10[%85, %c25_64, %c0_65] : memref<34x41x4xf32, #tpu.memory_space<vmem>>, vector<8x16x4xf32>
      %c6 = arith.constant 6 : index
      %c0_66 = arith.constant 0 : index
      %87 = vector.load %arg4[%c6, %c0_66] : memref<49x4xf32, #tpu.memory_space<vmem>>, vector<1x4xf32>
      %88 = vector.shape_cast %87 : vector<1x4xf32> to vector<4xf32>
      %89 = vector.shape_cast %88 : vector<4xf32> to vector<1x1x4xf32>
      %90 = vector.broadcast %89 : vector<1x1x4xf32> to vector<8x16x4xf32>
      %91 = arith.mulf %86, %90 : vector<8x16x4xf32>
      %92 = arith.addf %83, %91 : vector<8x16x4xf32>
      %c3_i32 = arith.constant 3 : i32
      %93 = arith.addi %28, %c3_i32 : i32
      %94 = arith.index_cast %93 : i32 to index
      %c7_67 = arith.constant 7 : index
      %c0_68 = arith.constant 0 : index
      %95 = vector.load %arg10[%94, %c7_67, %c0_68] : memref<34x41x4xf32, #tpu.memory_space<vmem>>, vector<8x16x4xf32>
      %c7_69 = arith.constant 7 : index
      %c0_70 = arith.constant 0 : index
      %96 = vector.load %arg4[%c7_69, %c0_70] : memref<49x4xf32, #tpu.memory_space<vmem>>, vector<1x4xf32>
      %97 = vector.shape_cast %96 : vector<1x4xf32> to vector<4xf32>
      %98 = vector.shape_cast %97 : vector<4xf32> to vector<1x1x4xf32>
      %99 = vector.broadcast %98 : vector<1x1x4xf32> to vector<8x16x4xf32>
      %100 = arith.mulf %95, %99 : vector<8x16x4xf32>
      %101 = arith.addf %92, %100 : vector<8x16x4xf32>
      %c3_i32_71 = arith.constant 3 : i32
      %102 = arith.addi %28, %c3_i32_71 : i32
      %103 = arith.index_cast %102 : i32 to index
      %c10_72 = arith.constant 10 : index
      %c0_73 = arith.constant 0 : index
      %104 = vector.load %arg10[%103, %c10_72, %c0_73] : memref<34x41x4xf32, #tpu.memory_space<vmem>>, vector<8x16x4xf32>
      %c8_74 = arith.constant 8 : index
      %c0_75 = arith.constant 0 : index
      %105 = vector.load %arg4[%c8_74, %c0_75] : memref<49x4xf32, #tpu.memory_space<vmem>>, vector<1x4xf32>
      %106 = vector.shape_cast %105 : vector<1x4xf32> to vector<4xf32>
      %107 = vector.shape_cast %106 : vector<4xf32> to vector<1x1x4xf32>
      %108 = vector.broadcast %107 : vector<1x1x4xf32> to vector<8x16x4xf32>
      %109 = arith.mulf %104, %108 : vector<8x16x4xf32>
      %110 = arith.addf %101, %109 : vector<8x16x4xf32>
      %c3_i32_76 = arith.constant 3 : i32
      %111 = arith.addi %28, %c3_i32_76 : i32
      %112 = arith.index_cast %111 : i32 to index
      %c13_77 = arith.constant 13 : index
      %c0_78 = arith.constant 0 : index
      %113 = vector.load %arg10[%112, %c13_77, %c0_78] : memref<34x41x4xf32, #tpu.memory_space<vmem>>, vector<8x16x4xf32>
      %c9 = arith.constant 9 : index
      %c0_79 = arith.constant 0 : index
      %114 = vector.load %arg4[%c9, %c0_79] : memref<49x4xf32, #tpu.memory_space<vmem>>, vector<1x4xf32>
      %115 = vector.shape_cast %114 : vector<1x4xf32> to vector<4xf32>
      %116 = vector.shape_cast %115 : vector<4xf32> to vector<1x1x4xf32>
      %117 = vector.broadcast %116 : vector<1x1x4xf32> to vector<8x16x4xf32>
      %118 = arith.mulf %113, %117 : vector<8x16x4xf32>
      %119 = arith.addf %110, %118 : vector<8x16x4xf32>
      %c3_i32_80 = arith.constant 3 : i32
      %120 = arith.addi %28, %c3_i32_80 : i32
      %121 = arith.index_cast %120 : i32 to index
      %c16_81 = arith.constant 16 : index
      %c0_82 = arith.constant 0 : index
      %122 = vector.load %arg10[%121, %c16_81, %c0_82] : memref<34x41x4xf32, #tpu.memory_space<vmem>>, vector<8x16x4xf32>
      %c10_83 = arith.constant 10 : index
      %c0_84 = arith.constant 0 : index
      %123 = vector.load %arg4[%c10_83, %c0_84] : memref<49x4xf32, #tpu.memory_space<vmem>>, vector<1x4xf32>
      %124 = vector.shape_cast %123 : vector<1x4xf32> to vector<4xf32>
      %125 = vector.shape_cast %124 : vector<4xf32> to vector<1x1x4xf32>
      %126 = vector.broadcast %125 : vector<1x1x4xf32> to vector<8x16x4xf32>
      %127 = arith.mulf %122, %126 : vector<8x16x4xf32>
      %128 = arith.addf %119, %127 : vector<8x16x4xf32>
      %c3_i32_85 = arith.constant 3 : i32
      %129 = arith.addi %28, %c3_i32_85 : i32
      %130 = arith.index_cast %129 : i32 to index
      %c19_86 = arith.constant 19 : index
      %c0_87 = arith.constant 0 : index
      %131 = vector.load %arg10[%130, %c19_86, %c0_87] : memref<34x41x4xf32, #tpu.memory_space<vmem>>, vector<8x16x4xf32>
      %c11 = arith.constant 11 : index
      %c0_88 = arith.constant 0 : index
      %132 = vector.load %arg4[%c11, %c0_88] : memref<49x4xf32, #tpu.memory_space<vmem>>, vector<1x4xf32>
      %133 = vector.shape_cast %132 : vector<1x4xf32> to vector<4xf32>
      %134 = vector.shape_cast %133 : vector<4xf32> to vector<1x1x4xf32>
      %135 = vector.broadcast %134 : vector<1x1x4xf32> to vector<8x16x4xf32>
      %136 = arith.mulf %131, %135 : vector<8x16x4xf32>
      %137 = arith.addf %128, %136 : vector<8x16x4xf32>
      %c3_i32_89 = arith.constant 3 : i32
      %138 = arith.addi %28, %c3_i32_89 : i32
      %139 = arith.index_cast %138 : i32 to index
      %c22_90 = arith.constant 22 : index
      %c0_91 = arith.constant 0 : index
      %140 = vector.load %arg10[%139, %c22_90, %c0_91] : memref<34x41x4xf32, #tpu.memory_space<vmem>>, vector<8x16x4xf32>
      %c12 = arith.constant 12 : index
      %c0_92 = arith.constant 0 : index
      %141 = vector.load %arg4[%c12, %c0_92] : memref<49x4xf32, #tpu.memory_space<vmem>>, vector<1x4xf32>
      %142 = vector.shape_cast %141 : vector<1x4xf32> to vector<4xf32>
      %143 = vector.shape_cast %142 : vector<4xf32> to vector<1x1x4xf32>
      %144 = vector.broadcast %143 : vector<1x1x4xf32> to vector<8x16x4xf32>
      %145 = arith.mulf %140, %144 : vector<8x16x4xf32>
      %146 = arith.addf %137, %145 : vector<8x16x4xf32>
      %c3_i32_93 = arith.constant 3 : i32
      %147 = arith.addi %28, %c3_i32_93 : i32
      %148 = arith.index_cast %147 : i32 to index
      %c25_94 = arith.constant 25 : index
      %c0_95 = arith.constant 0 : index
      %149 = vector.load %arg10[%148, %c25_94, %c0_95] : memref<34x41x4xf32, #tpu.memory_space<vmem>>, vector<8x16x4xf32>
      %c13_96 = arith.constant 13 : index
      %c0_97 = arith.constant 0 : index
      %150 = vector.load %arg4[%c13_96, %c0_97] : memref<49x4xf32, #tpu.memory_space<vmem>>, vector<1x4xf32>
      %151 = vector.shape_cast %150 : vector<1x4xf32> to vector<4xf32>
      %152 = vector.shape_cast %151 : vector<4xf32> to vector<1x1x4xf32>
      %153 = vector.broadcast %152 : vector<1x1x4xf32> to vector<8x16x4xf32>
      %154 = arith.mulf %149, %153 : vector<8x16x4xf32>
      %155 = arith.addf %146, %154 : vector<8x16x4xf32>
      %c6_i32 = arith.constant 6 : i32
      %156 = arith.addi %28, %c6_i32 : i32
      %157 = arith.index_cast %156 : i32 to index
      %c7_98 = arith.constant 7 : index
      %c0_99 = arith.constant 0 : index
      %158 = vector.load %arg10[%157, %c7_98, %c0_99] : memref<34x41x4xf32, #tpu.memory_space<vmem>>, vector<8x16x4xf32>
      %c14 = arith.constant 14 : index
      %c0_100 = arith.constant 0 : index
      %159 = vector.load %arg4[%c14, %c0_100] : memref<49x4xf32, #tpu.memory_space<vmem>>, vector<1x4xf32>
      %160 = vector.shape_cast %159 : vector<1x4xf32> to vector<4xf32>
      %161 = vector.shape_cast %160 : vector<4xf32> to vector<1x1x4xf32>
      %162 = vector.broadcast %161 : vector<1x1x4xf32> to vector<8x16x4xf32>
      %163 = arith.mulf %158, %162 : vector<8x16x4xf32>
      %164 = arith.addf %155, %163 : vector<8x16x4xf32>
      %c6_i32_101 = arith.constant 6 : i32
      %165 = arith.addi %28, %c6_i32_101 : i32
      %166 = arith.index_cast %165 : i32 to index
      %c10_102 = arith.constant 10 : index
      %c0_103 = arith.constant 0 : index
      %167 = vector.load %arg10[%166, %c10_102, %c0_103] : memref<34x41x4xf32, #tpu.memory_space<vmem>>, vector<8x16x4xf32>
      %c15 = arith.constant 15 : index
      %c0_104 = arith.constant 0 : index
      %168 = vector.load %arg4[%c15, %c0_104] : memref<49x4xf32, #tpu.memory_space<vmem>>, vector<1x4xf32>
      %169 = vector.shape_cast %168 : vector<1x4xf32> to vector<4xf32>
      %170 = vector.shape_cast %169 : vector<4xf32> to vector<1x1x4xf32>
      %171 = vector.broadcast %170 : vector<1x1x4xf32> to vector<8x16x4xf32>
      %172 = arith.mulf %167, %171 : vector<8x16x4xf32>
      %173 = arith.addf %164, %172 : vector<8x16x4xf32>
      %c6_i32_105 = arith.constant 6 : i32
      %174 = arith.addi %28, %c6_i32_105 : i32
      %175 = arith.index_cast %174 : i32 to index
      %c13_106 = arith.constant 13 : index
      %c0_107 = arith.constant 0 : index
      %176 = vector.load %arg10[%175, %c13_106, %c0_107] : memref<34x41x4xf32, #tpu.memory_space<vmem>>, vector<8x16x4xf32>
      %c16_108 = arith.constant 16 : index
      %c0_109 = arith.constant 0 : index
      %177 = vector.load %arg4[%c16_108, %c0_109] : memref<49x4xf32, #tpu.memory_space<vmem>>, vector<1x4xf32>
      %178 = vector.shape_cast %177 : vector<1x4xf32> to vector<4xf32>
      %179 = vector.shape_cast %178 : vector<4xf32> to vector<1x1x4xf32>
      %180 = vector.broadcast %179 : vector<1x1x4xf32> to vector<8x16x4xf32>
      %181 = arith.mulf %176, %180 : vector<8x16x4xf32>
      %182 = arith.addf %173, %181 : vector<8x16x4xf32>
      %c6_i32_110 = arith.constant 6 : i32
      %183 = arith.addi %28, %c6_i32_110 : i32
      %184 = arith.index_cast %183 : i32 to index
      %c16_111 = arith.constant 16 : index
      %c0_112 = arith.constant 0 : index
      %185 = vector.load %arg10[%184, %c16_111, %c0_112] : memref<34x41x4xf32, #tpu.memory_space<vmem>>, vector<8x16x4xf32>
      %c17 = arith.constant 17 : index
      %c0_113 = arith.constant 0 : index
      %186 = vector.load %arg4[%c17, %c0_113] : memref<49x4xf32, #tpu.memory_space<vmem>>, vector<1x4xf32>
      %187 = vector.shape_cast %186 : vector<1x4xf32> to vector<4xf32>
      %188 = vector.shape_cast %187 : vector<4xf32> to vector<1x1x4xf32>
      %189 = vector.broadcast %188 : vector<1x1x4xf32> to vector<8x16x4xf32>
      %190 = arith.mulf %185, %189 : vector<8x16x4xf32>
      %191 = arith.addf %182, %190 : vector<8x16x4xf32>
      %c6_i32_114 = arith.constant 6 : i32
      %192 = arith.addi %28, %c6_i32_114 : i32
      %193 = arith.index_cast %192 : i32 to index
      %c19_115 = arith.constant 19 : index
      %c0_116 = arith.constant 0 : index
      %194 = vector.load %arg10[%193, %c19_115, %c0_116] : memref<34x41x4xf32, #tpu.memory_space<vmem>>, vector<8x16x4xf32>
      %c18_117 = arith.constant 18 : index
      %c0_118 = arith.constant 0 : index
      %195 = vector.load %arg4[%c18_117, %c0_118] : memref<49x4xf32, #tpu.memory_space<vmem>>, vector<1x4xf32>
      %196 = vector.shape_cast %195 : vector<1x4xf32> to vector<4xf32>
      %197 = vector.shape_cast %196 : vector<4xf32> to vector<1x1x4xf32>
      %198 = vector.broadcast %197 : vector<1x1x4xf32> to vector<8x16x4xf32>
      %199 = arith.mulf %194, %198 : vector<8x16x4xf32>
      %200 = arith.addf %191, %199 : vector<8x16x4xf32>
      %c6_i32_119 = arith.constant 6 : i32
      %201 = arith.addi %28, %c6_i32_119 : i32
      %202 = arith.index_cast %201 : i32 to index
      %c22_120 = arith.constant 22 : index
      %c0_121 = arith.constant 0 : index
      %203 = vector.load %arg10[%202, %c22_120, %c0_121] : memref<34x41x4xf32, #tpu.memory_space<vmem>>, vector<8x16x4xf32>
      %c19_122 = arith.constant 19 : index
      %c0_123 = arith.constant 0 : index
      %204 = vector.load %arg4[%c19_122, %c0_123] : memref<49x4xf32, #tpu.memory_space<vmem>>, vector<1x4xf32>
      %205 = vector.shape_cast %204 : vector<1x4xf32> to vector<4xf32>
      %206 = vector.shape_cast %205 : vector<4xf32> to vector<1x1x4xf32>
      %207 = vector.broadcast %206 : vector<1x1x4xf32> to vector<8x16x4xf32>
      %208 = arith.mulf %203, %207 : vector<8x16x4xf32>
      %209 = arith.addf %200, %208 : vector<8x16x4xf32>
      %c6_i32_124 = arith.constant 6 : i32
      %210 = arith.addi %28, %c6_i32_124 : i32
      %211 = arith.index_cast %210 : i32 to index
      %c25_125 = arith.constant 25 : index
      %c0_126 = arith.constant 0 : index
      %212 = vector.load %arg10[%211, %c25_125, %c0_126] : memref<34x41x4xf32, #tpu.memory_space<vmem>>, vector<8x16x4xf32>
      %c20 = arith.constant 20 : index
      %c0_127 = arith.constant 0 : index
      %213 = vector.load %arg4[%c20, %c0_127] : memref<49x4xf32, #tpu.memory_space<vmem>>, vector<1x4xf32>
      %214 = vector.shape_cast %213 : vector<1x4xf32> to vector<4xf32>
      %215 = vector.shape_cast %214 : vector<4xf32> to vector<1x1x4xf32>
      %216 = vector.broadcast %215 : vector<1x1x4xf32> to vector<8x16x4xf32>
      %217 = arith.mulf %212, %216 : vector<8x16x4xf32>
      %218 = arith.addf %209, %217 : vector<8x16x4xf32>
      %c9_i32 = arith.constant 9 : i32
      %219 = arith.addi %28, %c9_i32 : i32
      %220 = arith.index_cast %219 : i32 to index
      %c7_128 = arith.constant 7 : index
      %c0_129 = arith.constant 0 : index
      %221 = vector.load %arg10[%220, %c7_128, %c0_129] : memref<34x41x4xf32, #tpu.memory_space<vmem>>, vector<8x16x4xf32>
      %c21 = arith.constant 21 : index
      %c0_130 = arith.constant 0 : index
      %222 = vector.load %arg4[%c21, %c0_130] : memref<49x4xf32, #tpu.memory_space<vmem>>, vector<1x4xf32>
      %223 = vector.shape_cast %222 : vector<1x4xf32> to vector<4xf32>
      %224 = vector.shape_cast %223 : vector<4xf32> to vector<1x1x4xf32>
      %225 = vector.broadcast %224 : vector<1x1x4xf32> to vector<8x16x4xf32>
      %226 = arith.mulf %221, %225 : vector<8x16x4xf32>
      %227 = arith.addf %218, %226 : vector<8x16x4xf32>
      %c9_i32_131 = arith.constant 9 : i32
      %228 = arith.addi %28, %c9_i32_131 : i32
      %229 = arith.index_cast %228 : i32 to index
      %c10_132 = arith.constant 10 : index
      %c0_133 = arith.constant 0 : index
      %230 = vector.load %arg10[%229, %c10_132, %c0_133] : memref<34x41x4xf32, #tpu.memory_space<vmem>>, vector<8x16x4xf32>
      %c22_134 = arith.constant 22 : index
      %c0_135 = arith.constant 0 : index
      %231 = vector.load %arg4[%c22_134, %c0_135] : memref<49x4xf32, #tpu.memory_space<vmem>>, vector<1x4xf32>
      %232 = vector.shape_cast %231 : vector<1x4xf32> to vector<4xf32>
      %233 = vector.shape_cast %232 : vector<4xf32> to vector<1x1x4xf32>
      %234 = vector.broadcast %233 : vector<1x1x4xf32> to vector<8x16x4xf32>
      %235 = arith.mulf %230, %234 : vector<8x16x4xf32>
      %236 = arith.addf %227, %235 : vector<8x16x4xf32>
      %c9_i32_136 = arith.constant 9 : i32
      %237 = arith.addi %28, %c9_i32_136 : i32
      %238 = arith.index_cast %237 : i32 to index
      %c13_137 = arith.constant 13 : index
      %c0_138 = arith.constant 0 : index
      %239 = vector.load %arg10[%238, %c13_137, %c0_138] : memref<34x41x4xf32, #tpu.memory_space<vmem>>, vector<8x16x4xf32>
      %c23 = arith.constant 23 : index
      %c0_139 = arith.constant 0 : index
      %240 = vector.load %arg4[%c23, %c0_139] : memref<49x4xf32, #tpu.memory_space<vmem>>, vector<1x4xf32>
      %241 = vector.shape_cast %240 : vector<1x4xf32> to vector<4xf32>
      %242 = vector.shape_cast %241 : vector<4xf32> to vector<1x1x4xf32>
      %243 = vector.broadcast %242 : vector<1x1x4xf32> to vector<8x16x4xf32>
      %244 = arith.mulf %239, %243 : vector<8x16x4xf32>
      %245 = arith.addf %236, %244 : vector<8x16x4xf32>
      %c9_i32_140 = arith.constant 9 : i32
      %246 = arith.addi %28, %c9_i32_140 : i32
      %247 = arith.index_cast %246 : i32 to index
      %c16_141 = arith.constant 16 : index
      %c0_142 = arith.constant 0 : index
      %248 = vector.load %arg10[%247, %c16_141, %c0_142] : memref<34x41x4xf32, #tpu.memory_space<vmem>>, vector<8x16x4xf32>
      %c24_143 = arith.constant 24 : index
      %c0_144 = arith.constant 0 : index
      %249 = vector.load %arg4[%c24_143, %c0_144] : memref<49x4xf32, #tpu.memory_space<vmem>>, vector<1x4xf32>
      %250 = vector.shape_cast %249 : vector<1x4xf32> to vector<4xf32>
      %251 = vector.shape_cast %250 : vector<4xf32> to vector<1x1x4xf32>
      %252 = vector.broadcast %251 : vector<1x1x4xf32> to vector<8x16x4xf32>
      %253 = arith.mulf %248, %252 : vector<8x16x4xf32>
      %254 = arith.addf %245, %253 : vector<8x16x4xf32>
      %c9_i32_145 = arith.constant 9 : i32
      %255 = arith.addi %28, %c9_i32_145 : i32
      %256 = arith.index_cast %255 : i32 to index
      %c19_146 = arith.constant 19 : index
      %c0_147 = arith.constant 0 : index
      %257 = vector.load %arg10[%256, %c19_146, %c0_147] : memref<34x41x4xf32, #tpu.memory_space<vmem>>, vector<8x16x4xf32>
      %c25_148 = arith.constant 25 : index
      %c0_149 = arith.constant 0 : index
      %258 = vector.load %arg4[%c25_148, %c0_149] : memref<49x4xf32, #tpu.memory_space<vmem>>, vector<1x4xf32>
      %259 = vector.shape_cast %258 : vector<1x4xf32> to vector<4xf32>
      %260 = vector.shape_cast %259 : vector<4xf32> to vector<1x1x4xf32>
      %261 = vector.broadcast %260 : vector<1x1x4xf32> to vector<8x16x4xf32>
      %262 = arith.mulf %257, %261 : vector<8x16x4xf32>
      %263 = arith.addf %254, %262 : vector<8x16x4xf32>
      %c9_i32_150 = arith.constant 9 : i32
      %264 = arith.addi %28, %c9_i32_150 : i32
      %265 = arith.index_cast %264 : i32 to index
      %c22_151 = arith.constant 22 : index
      %c0_152 = arith.constant 0 : index
      %266 = vector.load %arg10[%265, %c22_151, %c0_152] : memref<34x41x4xf32, #tpu.memory_space<vmem>>, vector<8x16x4xf32>
      %c26 = arith.constant 26 : index
      %c0_153 = arith.constant 0 : index
      %267 = vector.load %arg4[%c26, %c0_153] : memref<49x4xf32, #tpu.memory_space<vmem>>, vector<1x4xf32>
      %268 = vector.shape_cast %267 : vector<1x4xf32> to vector<4xf32>
      %269 = vector.shape_cast %268 : vector<4xf32> to vector<1x1x4xf32>
      %270 = vector.broadcast %269 : vector<1x1x4xf32> to vector<8x16x4xf32>
      %271 = arith.mulf %266, %270 : vector<8x16x4xf32>
      %272 = arith.addf %263, %271 : vector<8x16x4xf32>
      %c9_i32_154 = arith.constant 9 : i32
      %273 = arith.addi %28, %c9_i32_154 : i32
      %274 = arith.index_cast %273 : i32 to index
      %c25_155 = arith.constant 25 : index
      %c0_156 = arith.constant 0 : index
      %275 = vector.load %arg10[%274, %c25_155, %c0_156] : memref<34x41x4xf32, #tpu.memory_space<vmem>>, vector<8x16x4xf32>
      %c27 = arith.constant 27 : index
      %c0_157 = arith.constant 0 : index
      %276 = vector.load %arg4[%c27, %c0_157] : memref<49x4xf32, #tpu.memory_space<vmem>>, vector<1x4xf32>
      %277 = vector.shape_cast %276 : vector<1x4xf32> to vector<4xf32>
      %278 = vector.shape_cast %277 : vector<4xf32> to vector<1x1x4xf32>
      %279 = vector.broadcast %278 : vector<1x1x4xf32> to vector<8x16x4xf32>
      %280 = arith.mulf %275, %279 : vector<8x16x4xf32>
      %281 = arith.addf %272, %280 : vector<8x16x4xf32>
      %c12_i32 = arith.constant 12 : i32
      %282 = arith.addi %28, %c12_i32 : i32
      %283 = arith.index_cast %282 : i32 to index
      %c7_158 = arith.constant 7 : index
      %c0_159 = arith.constant 0 : index
      %284 = vector.load %arg10[%283, %c7_158, %c0_159] : memref<34x41x4xf32, #tpu.memory_space<vmem>>, vector<8x16x4xf32>
      %c28 = arith.constant 28 : index
      %c0_160 = arith.constant 0 : index
      %285 = vector.load %arg4[%c28, %c0_160] : memref<49x4xf32, #tpu.memory_space<vmem>>, vector<1x4xf32>
      %286 = vector.shape_cast %285 : vector<1x4xf32> to vector<4xf32>
      %287 = vector.shape_cast %286 : vector<4xf32> to vector<1x1x4xf32>
      %288 = vector.broadcast %287 : vector<1x1x4xf32> to vector<8x16x4xf32>
      %289 = arith.mulf %284, %288 : vector<8x16x4xf32>
      %290 = arith.addf %281, %289 : vector<8x16x4xf32>
      %c12_i32_161 = arith.constant 12 : i32
      %291 = arith.addi %28, %c12_i32_161 : i32
      %292 = arith.index_cast %291 : i32 to index
      %c10_162 = arith.constant 10 : index
      %c0_163 = arith.constant 0 : index
      %293 = vector.load %arg10[%292, %c10_162, %c0_163] : memref<34x41x4xf32, #tpu.memory_space<vmem>>, vector<8x16x4xf32>
      %c29 = arith.constant 29 : index
      %c0_164 = arith.constant 0 : index
      %294 = vector.load %arg4[%c29, %c0_164] : memref<49x4xf32, #tpu.memory_space<vmem>>, vector<1x4xf32>
      %295 = vector.shape_cast %294 : vector<1x4xf32> to vector<4xf32>
      %296 = vector.shape_cast %295 : vector<4xf32> to vector<1x1x4xf32>
      %297 = vector.broadcast %296 : vector<1x1x4xf32> to vector<8x16x4xf32>
      %298 = arith.mulf %293, %297 : vector<8x16x4xf32>
      %299 = arith.addf %290, %298 : vector<8x16x4xf32>
      %c12_i32_165 = arith.constant 12 : i32
      %300 = arith.addi %28, %c12_i32_165 : i32
      %301 = arith.index_cast %300 : i32 to index
      %c13_166 = arith.constant 13 : index
      %c0_167 = arith.constant 0 : index
      %302 = vector.load %arg10[%301, %c13_166, %c0_167] : memref<34x41x4xf32, #tpu.memory_space<vmem>>, vector<8x16x4xf32>
      %c30 = arith.constant 30 : index
      %c0_168 = arith.constant 0 : index
      %303 = vector.load %arg4[%c30, %c0_168] : memref<49x4xf32, #tpu.memory_space<vmem>>, vector<1x4xf32>
      %304 = vector.shape_cast %303 : vector<1x4xf32> to vector<4xf32>
      %305 = vector.shape_cast %304 : vector<4xf32> to vector<1x1x4xf32>
      %306 = vector.broadcast %305 : vector<1x1x4xf32> to vector<8x16x4xf32>
      %307 = arith.mulf %302, %306 : vector<8x16x4xf32>
      %308 = arith.addf %299, %307 : vector<8x16x4xf32>
      %c12_i32_169 = arith.constant 12 : i32
      %309 = arith.addi %28, %c12_i32_169 : i32
      %310 = arith.index_cast %309 : i32 to index
      %c16_170 = arith.constant 16 : index
      %c0_171 = arith.constant 0 : index
      %311 = vector.load %arg10[%310, %c16_170, %c0_171] : memref<34x41x4xf32, #tpu.memory_space<vmem>>, vector<8x16x4xf32>
      %c31 = arith.constant 31 : index
      %c0_172 = arith.constant 0 : index
      %312 = vector.load %arg4[%c31, %c0_172] : memref<49x4xf32, #tpu.memory_space<vmem>>, vector<1x4xf32>
      %313 = vector.shape_cast %312 : vector<1x4xf32> to vector<4xf32>
      %314 = vector.shape_cast %313 : vector<4xf32> to vector<1x1x4xf32>
      %315 = vector.broadcast %314 : vector<1x1x4xf32> to vector<8x16x4xf32>
      %316 = arith.mulf %311, %315 : vector<8x16x4xf32>
      %317 = arith.addf %308, %316 : vector<8x16x4xf32>
      %c12_i32_173 = arith.constant 12 : i32
      %318 = arith.addi %28, %c12_i32_173 : i32
      %319 = arith.index_cast %318 : i32 to index
      %c19_174 = arith.constant 19 : index
      %c0_175 = arith.constant 0 : index
      %320 = vector.load %arg10[%319, %c19_174, %c0_175] : memref<34x41x4xf32, #tpu.memory_space<vmem>>, vector<8x16x4xf32>
      %c32_176 = arith.constant 32 : index
      %c0_177 = arith.constant 0 : index
      %321 = vector.load %arg4[%c32_176, %c0_177] : memref<49x4xf32, #tpu.memory_space<vmem>>, vector<1x4xf32>
      %322 = vector.shape_cast %321 : vector<1x4xf32> to vector<4xf32>
      %323 = vector.shape_cast %322 : vector<4xf32> to vector<1x1x4xf32>
      %324 = vector.broadcast %323 : vector<1x1x4xf32> to vector<8x16x4xf32>
      %325 = arith.mulf %320, %324 : vector<8x16x4xf32>
      %326 = arith.addf %317, %325 : vector<8x16x4xf32>
      %c12_i32_178 = arith.constant 12 : i32
      %327 = arith.addi %28, %c12_i32_178 : i32
      %328 = arith.index_cast %327 : i32 to index
      %c22_179 = arith.constant 22 : index
      %c0_180 = arith.constant 0 : index
      %329 = vector.load %arg10[%328, %c22_179, %c0_180] : memref<34x41x4xf32, #tpu.memory_space<vmem>>, vector<8x16x4xf32>
      %c33 = arith.constant 33 : index
      %c0_181 = arith.constant 0 : index
      %330 = vector.load %arg4[%c33, %c0_181] : memref<49x4xf32, #tpu.memory_space<vmem>>, vector<1x4xf32>
      %331 = vector.shape_cast %330 : vector<1x4xf32> to vector<4xf32>
      %332 = vector.shape_cast %331 : vector<4xf32> to vector<1x1x4xf32>
      %333 = vector.broadcast %332 : vector<1x1x4xf32> to vector<8x16x4xf32>
      %334 = arith.mulf %329, %333 : vector<8x16x4xf32>
      %335 = arith.addf %326, %334 : vector<8x16x4xf32>
      %c12_i32_182 = arith.constant 12 : i32
      %336 = arith.addi %28, %c12_i32_182 : i32
      %337 = arith.index_cast %336 : i32 to index
      %c25_183 = arith.constant 25 : index
      %c0_184 = arith.constant 0 : index
      %338 = vector.load %arg10[%337, %c25_183, %c0_184] : memref<34x41x4xf32, #tpu.memory_space<vmem>>, vector<8x16x4xf32>
      %c34 = arith.constant 34 : index
      %c0_185 = arith.constant 0 : index
      %339 = vector.load %arg4[%c34, %c0_185] : memref<49x4xf32, #tpu.memory_space<vmem>>, vector<1x4xf32>
      %340 = vector.shape_cast %339 : vector<1x4xf32> to vector<4xf32>
      %341 = vector.shape_cast %340 : vector<4xf32> to vector<1x1x4xf32>
      %342 = vector.broadcast %341 : vector<1x1x4xf32> to vector<8x16x4xf32>
      %343 = arith.mulf %338, %342 : vector<8x16x4xf32>
      %344 = arith.addf %335, %343 : vector<8x16x4xf32>
      %c15_i32 = arith.constant 15 : i32
      %345 = arith.addi %28, %c15_i32 : i32
      %346 = arith.index_cast %345 : i32 to index
      %c7_186 = arith.constant 7 : index
      %c0_187 = arith.constant 0 : index
      %347 = vector.load %arg10[%346, %c7_186, %c0_187] : memref<34x41x4xf32, #tpu.memory_space<vmem>>, vector<8x16x4xf32>
      %c35 = arith.constant 35 : index
      %c0_188 = arith.constant 0 : index
      %348 = vector.load %arg4[%c35, %c0_188] : memref<49x4xf32, #tpu.memory_space<vmem>>, vector<1x4xf32>
      %349 = vector.shape_cast %348 : vector<1x4xf32> to vector<4xf32>
      %350 = vector.shape_cast %349 : vector<4xf32> to vector<1x1x4xf32>
      %351 = vector.broadcast %350 : vector<1x1x4xf32> to vector<8x16x4xf32>
      %352 = arith.mulf %347, %351 : vector<8x16x4xf32>
      %353 = arith.addf %344, %352 : vector<8x16x4xf32>
      %c15_i32_189 = arith.constant 15 : i32
      %354 = arith.addi %28, %c15_i32_189 : i32
      %355 = arith.index_cast %354 : i32 to index
      %c10_190 = arith.constant 10 : index
      %c0_191 = arith.constant 0 : index
      %356 = vector.load %arg10[%355, %c10_190, %c0_191] : memref<34x41x4xf32, #tpu.memory_space<vmem>>, vector<8x16x4xf32>
      %c36 = arith.constant 36 : index
      %c0_192 = arith.constant 0 : index
      %357 = vector.load %arg4[%c36, %c0_192] : memref<49x4xf32, #tpu.memory_space<vmem>>, vector<1x4xf32>
      %358 = vector.shape_cast %357 : vector<1x4xf32> to vector<4xf32>
      %359 = vector.shape_cast %358 : vector<4xf32> to vector<1x1x4xf32>
      %360 = vector.broadcast %359 : vector<1x1x4xf32> to vector<8x16x4xf32>
      %361 = arith.mulf %356, %360 : vector<8x16x4xf32>
      %362 = arith.addf %353, %361 : vector<8x16x4xf32>
      %c15_i32_193 = arith.constant 15 : i32
      %363 = arith.addi %28, %c15_i32_193 : i32
      %364 = arith.index_cast %363 : i32 to index
      %c13_194 = arith.constant 13 : index
      %c0_195 = arith.constant 0 : index
      %365 = vector.load %arg10[%364, %c13_194, %c0_195] : memref<34x41x4xf32, #tpu.memory_space<vmem>>, vector<8x16x4xf32>
      %c37 = arith.constant 37 : index
      %c0_196 = arith.constant 0 : index
      %366 = vector.load %arg4[%c37, %c0_196] : memref<49x4xf32, #tpu.memory_space<vmem>>, vector<1x4xf32>
      %367 = vector.shape_cast %366 : vector<1x4xf32> to vector<4xf32>
      %368 = vector.shape_cast %367 : vector<4xf32> to vector<1x1x4xf32>
      %369 = vector.broadcast %368 : vector<1x1x4xf32> to vector<8x16x4xf32>
      %370 = arith.mulf %365, %369 : vector<8x16x4xf32>
      %371 = arith.addf %362, %370 : vector<8x16x4xf32>
      %c15_i32_197 = arith.constant 15 : i32
      %372 = arith.addi %28, %c15_i32_197 : i32
      %373 = arith.index_cast %372 : i32 to index
      %c16_198 = arith.constant 16 : index
      %c0_199 = arith.constant 0 : index
      %374 = vector.load %arg10[%373, %c16_198, %c0_199] : memref<34x41x4xf32, #tpu.memory_space<vmem>>, vector<8x16x4xf32>
      %c38 = arith.constant 38 : index
      %c0_200 = arith.constant 0 : index
      %375 = vector.load %arg4[%c38, %c0_200] : memref<49x4xf32, #tpu.memory_space<vmem>>, vector<1x4xf32>
      %376 = vector.shape_cast %375 : vector<1x4xf32> to vector<4xf32>
      %377 = vector.shape_cast %376 : vector<4xf32> to vector<1x1x4xf32>
      %378 = vector.broadcast %377 : vector<1x1x4xf32> to vector<8x16x4xf32>
      %379 = arith.mulf %374, %378 : vector<8x16x4xf32>
      %380 = arith.addf %371, %379 : vector<8x16x4xf32>
      %c15_i32_201 = arith.constant 15 : i32
      %381 = arith.addi %28, %c15_i32_201 : i32
      %382 = arith.index_cast %381 : i32 to index
      %c19_202 = arith.constant 19 : index
      %c0_203 = arith.constant 0 : index
      %383 = vector.load %arg10[%382, %c19_202, %c0_203] : memref<34x41x4xf32, #tpu.memory_space<vmem>>, vector<8x16x4xf32>
      %c39 = arith.constant 39 : index
      %c0_204 = arith.constant 0 : index
      %384 = vector.load %arg4[%c39, %c0_204] : memref<49x4xf32, #tpu.memory_space<vmem>>, vector<1x4xf32>
      %385 = vector.shape_cast %384 : vector<1x4xf32> to vector<4xf32>
      %386 = vector.shape_cast %385 : vector<4xf32> to vector<1x1x4xf32>
      %387 = vector.broadcast %386 : vector<1x1x4xf32> to vector<8x16x4xf32>
      %388 = arith.mulf %383, %387 : vector<8x16x4xf32>
      %389 = arith.addf %380, %388 : vector<8x16x4xf32>
      %c15_i32_205 = arith.constant 15 : i32
      %390 = arith.addi %28, %c15_i32_205 : i32
      %391 = arith.index_cast %390 : i32 to index
      %c22_206 = arith.constant 22 : index
      %c0_207 = arith.constant 0 : index
      %392 = vector.load %arg10[%391, %c22_206, %c0_207] : memref<34x41x4xf32, #tpu.memory_space<vmem>>, vector<8x16x4xf32>
      %c40 = arith.constant 40 : index
      %c0_208 = arith.constant 0 : index
      %393 = vector.load %arg4[%c40, %c0_208] : memref<49x4xf32, #tpu.memory_space<vmem>>, vector<1x4xf32>
      %394 = vector.shape_cast %393 : vector<1x4xf32> to vector<4xf32>
      %395 = vector.shape_cast %394 : vector<4xf32> to vector<1x1x4xf32>
      %396 = vector.broadcast %395 : vector<1x1x4xf32> to vector<8x16x4xf32>
      %397 = arith.mulf %392, %396 : vector<8x16x4xf32>
      %398 = arith.addf %389, %397 : vector<8x16x4xf32>
      %c15_i32_209 = arith.constant 15 : i32
      %399 = arith.addi %28, %c15_i32_209 : i32
      %400 = arith.index_cast %399 : i32 to index
      %c25_210 = arith.constant 25 : index
      %c0_211 = arith.constant 0 : index
      %401 = vector.load %arg10[%400, %c25_210, %c0_211] : memref<34x41x4xf32, #tpu.memory_space<vmem>>, vector<8x16x4xf32>
      %c41 = arith.constant 41 : index
      %c0_212 = arith.constant 0 : index
      %402 = vector.load %arg4[%c41, %c0_212] : memref<49x4xf32, #tpu.memory_space<vmem>>, vector<1x4xf32>
      %403 = vector.shape_cast %402 : vector<1x4xf32> to vector<4xf32>
      %404 = vector.shape_cast %403 : vector<4xf32> to vector<1x1x4xf32>
      %405 = vector.broadcast %404 : vector<1x1x4xf32> to vector<8x16x4xf32>
      %406 = arith.mulf %401, %405 : vector<8x16x4xf32>
      %407 = arith.addf %398, %406 : vector<8x16x4xf32>
      %c18_i32 = arith.constant 18 : i32
      %408 = arith.addi %28, %c18_i32 : i32
      %409 = arith.index_cast %408 : i32 to index
      %c7_213 = arith.constant 7 : index
      %c0_214 = arith.constant 0 : index
      %410 = vector.load %arg10[%409, %c7_213, %c0_214] : memref<34x41x4xf32, #tpu.memory_space<vmem>>, vector<8x16x4xf32>
      %c42 = arith.constant 42 : index
      %c0_215 = arith.constant 0 : index
      %411 = vector.load %arg4[%c42, %c0_215] : memref<49x4xf32, #tpu.memory_space<vmem>>, vector<1x4xf32>
      %412 = vector.shape_cast %411 : vector<1x4xf32> to vector<4xf32>
      %413 = vector.shape_cast %412 : vector<4xf32> to vector<1x1x4xf32>
      %414 = vector.broadcast %413 : vector<1x1x4xf32> to vector<8x16x4xf32>
      %415 = arith.mulf %410, %414 : vector<8x16x4xf32>
      %416 = arith.addf %407, %415 : vector<8x16x4xf32>
      %c18_i32_216 = arith.constant 18 : i32
      %417 = arith.addi %28, %c18_i32_216 : i32
      %418 = arith.index_cast %417 : i32 to index
      %c10_217 = arith.constant 10 : index
      %c0_218 = arith.constant 0 : index
      %419 = vector.load %arg10[%418, %c10_217, %c0_218] : memref<34x41x4xf32, #tpu.memory_space<vmem>>, vector<8x16x4xf32>
      %c43 = arith.constant 43 : index
      %c0_219 = arith.constant 0 : index
      %420 = vector.load %arg4[%c43, %c0_219] : memref<49x4xf32, #tpu.memory_space<vmem>>, vector<1x4xf32>
      %421 = vector.shape_cast %420 : vector<1x4xf32> to vector<4xf32>
      %422 = vector.shape_cast %421 : vector<4xf32> to vector<1x1x4xf32>
      %423 = vector.broadcast %422 : vector<1x1x4xf32> to vector<8x16x4xf32>
      %424 = arith.mulf %419, %423 : vector<8x16x4xf32>
      %425 = arith.addf %416, %424 : vector<8x16x4xf32>
      %c18_i32_220 = arith.constant 18 : i32
      %426 = arith.addi %28, %c18_i32_220 : i32
      %427 = arith.index_cast %426 : i32 to index
      %c13_221 = arith.constant 13 : index
      %c0_222 = arith.constant 0 : index
      %428 = vector.load %arg10[%427, %c13_221, %c0_222] : memref<34x41x4xf32, #tpu.memory_space<vmem>>, vector<8x16x4xf32>
      %c44 = arith.constant 44 : index
      %c0_223 = arith.constant 0 : index
      %429 = vector.load %arg4[%c44, %c0_223] : memref<49x4xf32, #tpu.memory_space<vmem>>, vector<1x4xf32>
      %430 = vector.shape_cast %429 : vector<1x4xf32> to vector<4xf32>
      %431 = vector.shape_cast %430 : vector<4xf32> to vector<1x1x4xf32>
      %432 = vector.broadcast %431 : vector<1x1x4xf32> to vector<8x16x4xf32>
      %433 = arith.mulf %428, %432 : vector<8x16x4xf32>
      %434 = arith.addf %425, %433 : vector<8x16x4xf32>
      %c18_i32_224 = arith.constant 18 : i32
      %435 = arith.addi %28, %c18_i32_224 : i32
      %436 = arith.index_cast %435 : i32 to index
      %c16_225 = arith.constant 16 : index
      %c0_226 = arith.constant 0 : index
      %437 = vector.load %arg10[%436, %c16_225, %c0_226] : memref<34x41x4xf32, #tpu.memory_space<vmem>>, vector<8x16x4xf32>
      %c45 = arith.constant 45 : index
      %c0_227 = arith.constant 0 : index
      %438 = vector.load %arg4[%c45, %c0_227] : memref<49x4xf32, #tpu.memory_space<vmem>>, vector<1x4xf32>
      %439 = vector.shape_cast %438 : vector<1x4xf32> to vector<4xf32>
      %440 = vector.shape_cast %439 : vector<4xf32> to vector<1x1x4xf32>
      %441 = vector.broadcast %440 : vector<1x1x4xf32> to vector<8x16x4xf32>
      %442 = arith.mulf %437, %441 : vector<8x16x4xf32>
      %443 = arith.addf %434, %442 : vector<8x16x4xf32>
      %c18_i32_228 = arith.constant 18 : i32
      %444 = arith.addi %28, %c18_i32_228 : i32
      %445 = arith.index_cast %444 : i32 to index
      %c19_229 = arith.constant 19 : index
      %c0_230 = arith.constant 0 : index
      %446 = vector.load %arg10[%445, %c19_229, %c0_230] : memref<34x41x4xf32, #tpu.memory_space<vmem>>, vector<8x16x4xf32>
      %c46 = arith.constant 46 : index
      %c0_231 = arith.constant 0 : index
      %447 = vector.load %arg4[%c46, %c0_231] : memref<49x4xf32, #tpu.memory_space<vmem>>, vector<1x4xf32>
      %448 = vector.shape_cast %447 : vector<1x4xf32> to vector<4xf32>
      %449 = vector.shape_cast %448 : vector<4xf32> to vector<1x1x4xf32>
      %450 = vector.broadcast %449 : vector<1x1x4xf32> to vector<8x16x4xf32>
      %451 = arith.mulf %446, %450 : vector<8x16x4xf32>
      %452 = arith.addf %443, %451 : vector<8x16x4xf32>
      %c18_i32_232 = arith.constant 18 : i32
      %453 = arith.addi %28, %c18_i32_232 : i32
      %454 = arith.index_cast %453 : i32 to index
      %c22_233 = arith.constant 22 : index
      %c0_234 = arith.constant 0 : index
      %455 = vector.load %arg10[%454, %c22_233, %c0_234] : memref<34x41x4xf32, #tpu.memory_space<vmem>>, vector<8x16x4xf32>
      %c47 = arith.constant 47 : index
      %c0_235 = arith.constant 0 : index
      %456 = vector.load %arg4[%c47, %c0_235] : memref<49x4xf32, #tpu.memory_space<vmem>>, vector<1x4xf32>
      %457 = vector.shape_cast %456 : vector<1x4xf32> to vector<4xf32>
      %458 = vector.shape_cast %457 : vector<4xf32> to vector<1x1x4xf32>
      %459 = vector.broadcast %458 : vector<1x1x4xf32> to vector<8x16x4xf32>
      %460 = arith.mulf %455, %459 : vector<8x16x4xf32>
      %461 = arith.addf %452, %460 : vector<8x16x4xf32>
      %c18_i32_236 = arith.constant 18 : i32
      %462 = arith.addi %28, %c18_i32_236 : i32
      %463 = arith.index_cast %462 : i32 to index
      %c25_237 = arith.constant 25 : index
      %c0_238 = arith.constant 0 : index
      %464 = vector.load %arg10[%463, %c25_237, %c0_238] : memref<34x41x4xf32, #tpu.memory_space<vmem>>, vector<8x16x4xf32>
      %c48 = arith.constant 48 : index
      %c0_239 = arith.constant 0 : index
      %465 = vector.load %arg4[%c48, %c0_239] : memref<49x4xf32, #tpu.memory_space<vmem>>, vector<1x4xf32>
      %466 = vector.shape_cast %465 : vector<1x4xf32> to vector<4xf32>
      %467 = vector.shape_cast %466 : vector<4xf32> to vector<1x1x4xf32>
      %468 = vector.broadcast %467 : vector<1x1x4xf32> to vector<8x16x4xf32>
      %469 = arith.mulf %464, %468 : vector<8x16x4xf32>
      %470 = arith.addf %461, %469 : vector<8x16x4xf32>
      %471 = vector.shape_cast %22 : vector<4xf32> to vector<1x1x4xf32>
      %472 = vector.broadcast %471 : vector<1x1x4xf32> to vector<8x16x4xf32>
      %473 = arith.addf %470, %472 : vector<8x16x4xf32>
      %cst_240 = arith.constant 0.000000e+00 : f32
      %474 = vector.broadcast %cst_240 : f32 to vector<8x16x4xf32>
      %475 = vector.shape_cast %24 : vector<4xf32> to vector<1x1x4xf32>
      %476 = vector.broadcast %475 : vector<1x1x4xf32> to vector<8x16x4xf32>
      %477 = arith.addf %474, %476 : vector<8x16x4xf32>
      %478 = vector.extract_strided_slice %473 {offsets = [0, 0, 0], sizes = [8, 16, 1], strides = [1, 1, 1]} : vector<8x16x4xf32> to vector<8x16x1xf32>
      %c0_241 = arith.constant 0 : index
      %c0_242 = arith.constant 0 : index
      %479 = vector.load %arg6[%c0_241, %c0_242] : memref<4x4xf32, #tpu.memory_space<vmem>>, vector<1x4xf32>
      %480 = vector.shape_cast %479 : vector<1x4xf32> to vector<4xf32>
      %481 = vector.shape_cast %480 : vector<4xf32> to vector<1x1x4xf32>
      %482 = vector.broadcast %478 : vector<8x16x1xf32> to vector<8x16x4xf32>
      %483 = vector.broadcast %481 : vector<1x1x4xf32> to vector<8x16x4xf32>
      %484 = arith.mulf %482, %483 : vector<8x16x4xf32>
      %485 = arith.addf %477, %484 : vector<8x16x4xf32>
      %486 = vector.extract_strided_slice %473 {offsets = [0, 0, 1], sizes = [8, 16, 1], strides = [1, 1, 1]} : vector<8x16x4xf32> to vector<8x16x1xf32>
      %c1_243 = arith.constant 1 : index
      %c0_244 = arith.constant 0 : index
      %487 = vector.load %arg6[%c1_243, %c0_244] : memref<4x4xf32, #tpu.memory_space<vmem>>, vector<1x4xf32>
      %488 = vector.shape_cast %487 : vector<1x4xf32> to vector<4xf32>
      %489 = vector.shape_cast %488 : vector<4xf32> to vector<1x1x4xf32>
      %490 = vector.broadcast %486 : vector<8x16x1xf32> to vector<8x16x4xf32>
      %491 = vector.broadcast %489 : vector<1x1x4xf32> to vector<8x16x4xf32>
      %492 = arith.mulf %490, %491 : vector<8x16x4xf32>
      %493 = arith.addf %485, %492 : vector<8x16x4xf32>
      %494 = vector.extract_strided_slice %473 {offsets = [0, 0, 2], sizes = [8, 16, 1], strides = [1, 1, 1]} : vector<8x16x4xf32> to vector<8x16x1xf32>
      %c2_245 = arith.constant 2 : index
      %c0_246 = arith.constant 0 : index
      %495 = vector.load %arg6[%c2_245, %c0_246] : memref<4x4xf32, #tpu.memory_space<vmem>>, vector<1x4xf32>
      %496 = vector.shape_cast %495 : vector<1x4xf32> to vector<4xf32>
      %497 = vector.shape_cast %496 : vector<4xf32> to vector<1x1x4xf32>
      %498 = vector.broadcast %494 : vector<8x16x1xf32> to vector<8x16x4xf32>
      %499 = vector.broadcast %497 : vector<1x1x4xf32> to vector<8x16x4xf32>
      %500 = arith.mulf %498, %499 : vector<8x16x4xf32>
      %501 = arith.addf %493, %500 : vector<8x16x4xf32>
      %502 = vector.extract_strided_slice %473 {offsets = [0, 0, 3], sizes = [8, 16, 1], strides = [1, 1, 1]} : vector<8x16x4xf32> to vector<8x16x1xf32>
      %c3_247 = arith.constant 3 : index
      %c0_248 = arith.constant 0 : index
      %503 = vector.load %arg6[%c3_247, %c0_248] : memref<4x4xf32, #tpu.memory_space<vmem>>, vector<1x4xf32>
      %504 = vector.shape_cast %503 : vector<1x4xf32> to vector<4xf32>
      %505 = vector.shape_cast %504 : vector<4xf32> to vector<1x1x4xf32>
      %506 = vector.broadcast %502 : vector<8x16x1xf32> to vector<8x16x4xf32>
      %507 = vector.broadcast %505 : vector<1x1x4xf32> to vector<8x16x4xf32>
      %508 = arith.mulf %506, %507 : vector<8x16x4xf32>
      %509 = arith.addf %501, %508 : vector<8x16x4xf32>
      %c2_i32_249 = arith.constant 2 : i32
      %510 = arith.addi %c2_i32_249, %28 : i32
      %511 = arith.index_cast %510 : i32 to index
      %c8_250 = arith.constant 8 : index
      %c0_251 = arith.constant 0 : index
      %512 = vector.load %arg9[%511, %c8_250, %c0_251] : memref<20x26x4xf32, #tpu.memory_space<vmem>>, vector<8x16x4xf32>
      %513 = arith.mulf %512, %509 : vector<8x16x4xf32>
      %c0_252 = arith.constant 0 : index
      %514 = arith.index_cast %28 : i32 to index
      %c0_253 = arith.constant 0 : index
      %c0_254 = arith.constant 0 : index
      %515 = vector.load %arg8[%c0_252, %514, %c0_253, %c0_254] : memref<1x16x16x4xf32, #tpu.memory_space<vmem>>, vector<1x8x16x4xf32>
      %516 = vector.shape_cast %515 : vector<1x8x16x4xf32> to vector<8x16x4xf32>
      %517 = vector.shape_cast %513 : vector<8x16x4xf32> to vector<1x8x16x4xf32>
      tpu.vector_store %arg8[%c0_252, %514, %c0_253, %c0_254], %517 {strides = array<i32>} : memref<1x16x16x4xf32, #tpu.memory_space<vmem>>, vector<1x8x16x4xf32>,
    }
    %c2_i32_41 = arith.constant 2 : i32
    return
  }
  func.func @transform_0(%arg0: i32) -> (i32, i32, i32, i32) {
    %c0_i32 = arith.constant 0 : i32
    %c0_i32_0 = arith.constant 0 : i32
    %c0_i32_1 = arith.constant 0 : i32
    %c0_i32_2 = arith.constant 0 : i32
    return %arg0, %c0_i32, %c0_i32_0, %c0_i32_1 : i32, i32, i32, i32
  }
  func.func @transform_1(%arg0: i32) -> (i32, i32) {
    %c0_i32 = arith.constant 0 : i32
    %c0_i32_0 = arith.constant 0 : i32
    %c0_i32_1 = arith.constant 0 : i32
    return %c0_i32, %c0_i32_0 : i32, i32
  }
  func.func @transform_2(%arg0: i32) -> (i32, i32) {
    %c0_i32 = arith.constant 0 : i32
    %c0_i32_0 = arith.constant 0 : i32
    %c0_i32_1 = arith.constant 0 : i32
    return %c0_i32, %c0_i32_0 : i32, i32
  }
  func.func @transform_3(%arg0: i32) -> (i32, i32) {
    %c0_i32 = arith.constant 0 : i32
    %c0_i32_0 = arith.constant 0 : i32
    %c0_i32_1 = arith.constant 0 : i32
    return %c0_i32, %c0_i32_0 : i32, i32
  }
  func.func @transform_4(%arg0: i32) -> (i32, i32) {
    %c0_i32 = arith.constant 0 : i32
    %c0_i32_0 = arith.constant 0 : i32
    %c0_i32_1 = arith.constant 0 : i32
    return %c0_i32, %c0_i32_0 : i32, i32
  }
  func.func @transform_5(%arg0: i32) -> (i32, i32) {
    %c0_i32 = arith.constant 0 : i32
    %c0_i32_0 = arith.constant 0 : i32
    %c0_i32_1 = arith.constant 0 : i32
    return %c0_i32, %c0_i32_0 : i32, i32
  }
  func.func @transform_6(%arg0: i32) -> (i32, i32) {
    %c0_i32 = arith.constant 0 : i32
    %c0_i32_0 = arith.constant 0 : i32
    %c0_i32_1 = arith.constant 0 : i32
    return %c0_i32, %c0_i32_0 : i32, i32
  }
  func.func @transform_7(%arg0: i32) -> (i32, i32, i32, i32) {
    %c0_i32 = arith.constant 0 : i32
    %c0_i32_0 = arith.constant 0 : i32
    %c0_i32_1 = arith.constant 0 : i32
    %c0_i32_2 = arith.constant 0 : i32
    return %arg0, %c0_i32, %c0_i32_0, %c0_i32_1 : i32, i32, i32, i32
  }
}

</mosaic_0001>

<bundles_post_ra>
// kernel: attention_module.1
= control target key start
LH: loop header
LB: loop body
LE: loop exit
PB: predicated region body
PF: predicated region fallthrough
CT: control target
= control target key end

     0   :  { %s6691_s24 = smov 0   ;;  %s11611_s0 = inlined_call_operand.vmem [shape: f32[2,16,16,4], index: 0, kind: input, shape index: {}]   ;;  %s11612_s1 = inlined_call_operand.vmem [shape: f32[25,4], index: 1, kind: input, shape index: {}]   ;;  %s11613_s2 = inlined_call_operand.vmem [shape: f32[1,4], index: 2, kind: input, shape index: {}]   ;;  %s11614_s3 = inlined_call_operand.vmem [shape: f32[49,4], index: 3, kind: input, shape index: {}]   ;;  %s11615_s4 = inlined_call_operand.vmem [shape: f32[1,4], index: 4, kind: input, shape index: {}]   ;;  %s11616_s5 = inlined_call_operand.vmem [shape: f32[4,4], index: 5, kind: input, shape index: {}]   ;;  %s11617_s6 = inlined_call_operand.vmem [shape: f32[1,4], index: 6, kind: input, shape index: {}]   ;;  %s11618_s7 = inlined_call_operand.vmem [shape: f32[2,16,16,4], index: 7, kind: output, shape index: {}]  }
   0x1 LB: > { %s5284_s25 = sadd.s32 4294967295, %s6636_s24   ;;  %p5288_p0 = scmp.ge.s32.totalorder %s6636_s24, 1  ;;  %s6636_s24 = sphi %s6691_s24, %s17_s24  }
   0x2   : > { %p237_p1 = scmp.lt.s32.totalorder %s6636_s24, 3 }
   0x4   : > { %p238_p2 = pnand %p5288_p0, %p237_p1 }
   0x6   : > { %241 = sbr.rel (%p238_p2) target bundleno = 1140 (0x474), region = 48 }
   0xd   : > { %vm279_vm0 = vcmask 31744   ;;  %vm283_vm1 = vcmask 25600   ;;  %v6702_v0 = vld [vmem:[%s11613_s2] ss:$0 sm:$0xff]  ;;  %vm343_vm2 = vcmask 24576   ;;  %v6646_v1 = vmov 0.0  }
   0xe   : > { %12046 = vst [vmem:[#allocation4_spill] sm:$0xff] %v6702_v0  ;;  %280 = vst.msk [vmem:[#allocation2] sm:$0xff] %vm279_vm0, %v6646_v1  ;;  %v7079_v2 = vld [vmem:[%s11615_s4] ss:$0 sm:$0xff]  ;;  %p7156_p3 = scmp.lt.s32.totalorder %s5284_s25, 1  ;;  %s7398_s17 = smov 0  }
   0xf   : > { %281 = vst.msk [vmem:[#allocation2 + $0x8] sm:$0xff] %vm279_vm0, %v6646_v1  ;;  %282 = vst.msk [vmem:[#allocation2 + $0x10] sm:$0xff] %vm279_vm0, %v6646_v1  ;;  %v7084_v3 = vld [vmem:[%s11617_s6] ss:$0 sm:$0xff] }
  0x10   : > { %285 = vst.msk [vmem:[#allocation2 + $0x20] sm:$0xff] %vm279_vm0, %v6646_v1  ;;  %286 = vst.msk [vmem:[#allocation2 + $0x28] sm:$0xff] %vm279_vm0, %v6646_v1  ;;  %s12701_s25 = smov (!%p7156_p3, %s5284_s25), 1 }
  0x11   : > { %287 = vst.msk [vmem:[#allocation2 + $0x30] sm:$0xff] %vm279_vm0, %v6646_v1  ;;  %290 = vst.msk [vmem:[#allocation2 + $0x240] sm:$0xff] %vm279_vm0, %v6646_v1  ;;  %s6429_s10 = sshll.u32 %s12701_s25, 8 }
  0x12   : > { %291 = vst.msk [vmem:[#allocation2 + $0x248] sm:$0xff] %vm279_vm0, %v6646_v1  ;;  %292 = vst.msk [vmem:[#allocation2 + $0x250] sm:$0xff] %vm279_vm0, %v6646_v1  ;;  %s7327_s13 = scalar_lea.vmem %s11611_s0, %s6429_s10  ;;  %s7332_s16 = scalar_lea.vmem %s11618_s7, %s6429_s10 }
  0x13   : > { %294 = vst.msk [vmem:[#allocation2 + $0x260] sm:$0xff] %vm279_vm0, %v6646_v1  ;;  %295 = vst.msk [vmem:[#allocation2 + $0x268] sm:$0xff] %vm279_vm0, %v6646_v1  ;;  %v584_v4 = vld [vmem:[%s7327_s13] sm:$0xff]  ;;  %v585_v5 = vld [vmem:[%s7327_s13 + $0x8] sm:$0xff] }
  0x14   : > { %296 = vst.msk [vmem:[#allocation2 + $0x270] sm:$0xff] %vm279_vm0, %v6646_v1  ;;  %300 = vst.msk [vmem:[#allocation2 + $0x40] sm:$0xff] %vm279_vm0, %v6646_v1  ;;  %v586_v6 = vld [vmem:[%s7327_s13 + $0x10] sm:$0xff]  ;;  %v587_v7 = vld [vmem:[%s7327_s13 + $0x18] sm:$0xff] }
  0x15   : > { %301 = vst.msk [vmem:[#allocation2 + $0x60] sm:$0xff] %vm279_vm0, %v6646_v1  ;;  %302 = vst.msk [vmem:[#allocation2 + $0x80] sm:$0xff] %vm279_vm0, %v6646_v1  ;;  %v588_v8 = vld [vmem:[%s7327_s13 + $0x20] sm:$0xff]  ;;  %v589_v9 = vld [vmem:[%s7327_s13 + $0x28] sm:$0xff] }
  0x16   : > { %303 = vst.msk [vmem:[#allocation2 + $0xa0] sm:$0xff] %vm279_vm0, %v6646_v1  ;;  %304 = vst.msk [vmem:[#allocation2 + $0xc0] sm:$0xff] %vm279_vm0, %v6646_v1  ;;  %v590_v10 = vld [vmem:[%s7327_s13 + $0x30] sm:$0xff]  ;;  %v591_v11 = vld [vmem:[%s7327_s13 + $0x38] sm:$0xff] }
  0x17   : > { %305 = vst.msk [vmem:[#allocation2 + $0xe0] sm:$0xff] %vm279_vm0, %v6646_v1  ;;  %306 = vst.msk [vmem:[#allocation2 + $0x100] sm:$0xff] %vm279_vm0, %v6646_v1  ;;  %v592_v12 = vld [vmem:[%s7327_s13 + $0x40] sm:$0xff]  ;;  %v593_v13 = vld [vmem:[%s7327_s13 + $0x48] sm:$0xff] }
  0x18   : > { %307 = vst.msk [vmem:[#allocation2 + $0x120] sm:$0xff] %vm279_vm0, %v6646_v1  ;;  %308 = vst.msk [vmem:[#allocation2 + $0x140] sm:$0xff] %vm279_vm0, %v6646_v1  ;;  %v594_v14 = vld [vmem:[%s7327_s13 + $0x50] sm:$0xff]  ;;  %v595_v15 = vld [vmem:[%s7327_s13 + $0x58] sm:$0xff] }
  0x19   : > { %309 = vst.msk [vmem:[#allocation2 + $0x160] sm:$0xff] %vm279_vm0, %v6646_v1  ;;  %310 = vst.msk [vmem:[#allocation2 + $0x180] sm:$0xff] %vm279_vm0, %v6646_v1  ;;  %v596_v16 = vld [vmem:[%s7327_s13 + $0x60] sm:$0xff]  ;;  %v597_v17 = vld [vmem:[%s7327_s13 + $0x68] sm:$0xff] }
  0x1a   : > { %311 = vst.msk [vmem:[#allocation2 + $0x1a0] sm:$0xff] %vm279_vm0, %v6646_v1  ;;  %312 = vst.msk [vmem:[#allocation2 + $0x1c0] sm:$0xff] %vm279_vm0, %v6646_v1  ;;  %v598_v18 = vld [vmem:[%s7327_s13 + $0x70] sm:$0xff]  ;;  %v599_v19 = vld [vmem:[%s7327_s13 + $0x78] sm:$0xff] }
  0x1b   : > { %313 = vst.msk [vmem:[#allocation2 + $0x1e0] sm:$0xff] %vm279_vm0, %v6646_v1  ;;  %314 = vst.msk [vmem:[#allocation2 + $0x200] sm:$0xff] %vm279_vm0, %v6646_v1  ;;  %v600_v20 = vld [vmem:[%s7327_s13 + $0x80] sm:$0xff]  ;;  %v601_v21 = vld [vmem:[%s7327_s13 + $0x88] sm:$0xff] }
  0x1c   : > { %315 = vst.msk [vmem:[#allocation2 + $0x220] sm:$0xff] %vm279_vm0, %v6646_v1  ;;  %338 = vst.msk [vmem:[#allocation3] sm:$0xff] %vm279_vm0, %v6646_v1  ;;  %v602_v22 = vld [vmem:[%s7327_s13 + $0x90] sm:$0xff]  ;;  %v603_v23 = vld [vmem:[%s7327_s13 + $0x98] sm:$0xff] }
  0x1d   : > { %339 = vst.msk [vmem:[#allocation3 + $0x8] sm:$0xff] %vm279_vm0, %v6646_v1  ;;  %340 = vst.msk [vmem:[#allocation3 + $0x10] sm:$0xff] %vm279_vm0, %v6646_v1  ;;  %v604_v24 = vld [vmem:[%s7327_s13 + $0xa0] sm:$0xff]  ;;  %v605_v25 = vld [vmem:[%s7327_s13 + $0xa8] sm:$0xff] }
  0x1e   : > { %341 = vst.msk [vmem:[#allocation3 + $0x18] sm:$0xff] %vm279_vm0, %v6646_v1  ;;  %342 = vst.msk [vmem:[#allocation3 + $0x20] sm:$0xff] %vm279_vm0, %v6646_v1  ;;  %v606_v26 = vld [vmem:[%s7327_s13 + $0xb0] sm:$0xff]  ;;  %v607_v27 = vld [vmem:[%s7327_s13 + $0xb8] sm:$0xff] }
  0x1f   : > { %345 = vst.msk [vmem:[#allocation3 + $0x30] sm:$0xff] %vm279_vm0, %v6646_v1  ;;  %346 = vst.msk [vmem:[#allocation3 + $0x38] sm:$0xff] %vm279_vm0, %v6646_v1  ;;  %v608_v28 = vld [vmem:[%s7327_s13 + $0xc0] sm:$0xff]  ;;  %v609_v29 = vld [vmem:[%s7327_s13 + $0xc8] sm:$0xff] }
  0x20   : > { %347 = vst.msk [vmem:[#allocation3 + $0x40] sm:$0xff] %vm279_vm0, %v6646_v1  ;;  %348 = vst.msk [vmem:[#allocation3 + $0x48] sm:$0xff] %vm279_vm0, %v6646_v1  ;;  %v610_v30 = vld [vmem:[%s7327_s13 + $0xd0] sm:$0xff]  ;;  %v611_v31 = vld [vmem:[%s7327_s13 + $0xd8] sm:$0xff] }
  0x21   : > { %349 = vst.msk [vmem:[#allocation3 + $0x50] sm:$0xff] %vm279_vm0, %v6646_v1  ;;  %351 = vst.msk [vmem:[#allocation3 + $0x60] sm:$0xff] %vm279_vm0, %v6646_v1  ;;  %v612_v32 = vld [vmem:[%s7327_s13 + $0xe0] sm:$0xff]  ;;  %v613_v33 = vld [vmem:[%s7327_s13 + $0xe8] sm:$0xff] }
  0x22   : > { %352 = vst.msk [vmem:[#allocation3 + $0x68] sm:$0xff] %vm279_vm0, %v6646_v1  ;;  %353 = vst.msk [vmem:[#allocation3 + $0x70] sm:$0xff] %vm279_vm0, %v6646_v1  ;;  %v614_v34 = vld [vmem:[%s7327_s13 + $0xf0] sm:$0xff]  ;;  %v615_v35 = vld [vmem:[%s7327_s13 + $0xf8] sm:$0xff] }
  0x23   : > { %354 = vst.msk [vmem:[#allocation3 + $0x78] sm:$0xff] %vm279_vm0, %v6646_v1  ;;  %355 = vst.msk [vmem:[#allocation3 + $0x80] sm:$0xff] %vm279_vm0, %v6646_v1 }
  0x24   : > { %357 = vst.msk [vmem:[#allocation3 + $0x90] sm:$0xff] %vm279_vm0, %v6646_v1  ;;  %358 = vst.msk [vmem:[#allocation3 + $0x98] sm:$0xff] %vm279_vm0, %v6646_v1 }
  0x25   : > { %359 = vst.msk [vmem:[#allocation3 + $0xa0] sm:$0xff] %vm279_vm0, %v6646_v1  ;;  %360 = vst.msk [vmem:[#allocation3 + $0xa8] sm:$0xff] %vm279_vm0, %v6646_v1 }
  0x26   : > { %361 = vst.msk [vmem:[#allocation3 + $0xb0] sm:$0xff] %vm279_vm0, %v6646_v1  ;;  %363 = vst.msk [vmem:[#allocation3 + $0xc0] sm:$0xff] %vm279_vm0, %v6646_v1 }
  0x27   : > { %364 = vst.msk [vmem:[#allocation3 + $0xc8] sm:$0xff] %vm279_vm0, %v6646_v1  ;;  %365 = vst.msk [vmem:[#allocation3 + $0xd0] sm:$0xff] %vm279_vm0, %v6646_v1 }
  0x28   : > { %366 = vst.msk [vmem:[#allocation3 + $0xd8] sm:$0xff] %vm279_vm0, %v6646_v1  ;;  %367 = vst.msk [vmem:[#allocation3 + $0xe0] sm:$0xff] %vm279_vm0, %v6646_v1 }
  0x29   : > { %369 = vst.msk [vmem:[#allocation3 + $0xf0] sm:$0xff] %vm279_vm0, %v6646_v1  ;;  %370 = vst.msk [vmem:[#allocation3 + $0xf8] sm:$0xff] %vm279_vm0, %v6646_v1 }
  0x2a   : > { %371 = vst.msk [vmem:[#allocation3 + $0x100] sm:$0xff] %vm279_vm0, %v6646_v1  ;;  %372 = vst.msk [vmem:[#allocation3 + $0x108] sm:$0xff] %vm279_vm0, %v6646_v1 }
  0x2b   : > { %373 = vst.msk [vmem:[#allocation3 + $0x110] sm:$0xff] %vm279_vm0, %v6646_v1  ;;  %375 = vst.msk [vmem:[#allocation3 + $0x120] sm:$0xff] %vm279_vm0, %v6646_v1 }
  0x2c   : > { %376 = vst.msk [vmem:[#allocation3 + $0x128] sm:$0xff] %vm279_vm0, %v6646_v1  ;;  %377 = vst.msk [vmem:[#allocation3 + $0x130] sm:$0xff] %vm279_vm0, %v6646_v1 }
  0x2d   : > { %378 = vst.msk [vmem:[#allocation3 + $0x138] sm:$0xff] %vm279_vm0, %v6646_v1  ;;  %379 = vst.msk [vmem:[#allocation3 + $0x140] sm:$0xff] %vm279_vm0, %v6646_v1 }
  0x2e   : > { %381 = vst.msk [vmem:[#allocation3 + $0x150] sm:$0xff] %vm279_vm0, %v6646_v1  ;;  %382 = vst.msk [vmem:[#allocation3 + $0x158] sm:$0xff] %vm279_vm0, %v6646_v1 }
  0x2f   : > { %383 = vst.msk [vmem:[#allocation3 + $0x160] sm:$0xff] %vm279_vm0, %v6646_v1  ;;  %384 = vst.msk [vmem:[#allocation3 + $0x168] sm:$0xff] %vm279_vm0, %v6646_v1 }
  0x30   : > { %385 = vst.msk [vmem:[#allocation3 + $0x170] sm:$0xff] %vm279_vm0, %v6646_v1  ;;  %387 = vst.msk [vmem:[#allocation3 + $0x180] sm:$0xff] %vm279_vm0, %v6646_v1 }
  0x31   : > { %388 = vst.msk [vmem:[#allocation3 + $0x188] sm:$0xff] %vm279_vm0, %v6646_v1  ;;  %389 = vst.msk [vmem:[#allocation3 + $0x190] sm:$0xff] %vm279_vm0, %v6646_v1 }
  0x32   : > { %390 = vst.msk [vmem:[#allocation3 + $0x198] sm:$0xff] %vm279_vm0, %v6646_v1  ;;  %391 = vst.msk [vmem:[#allocation3 + $0x1a0] sm:$0xff] %vm279_vm0, %v6646_v1 }
  0x33   : > { %394 = vst.msk [vmem:[#allocation3 + $0x4b0] sm:$0xff] %vm279_vm0, %v6646_v1  ;;  %395 = vst.msk [vmem:[#allocation3 + $0x4b8] sm:$0xff] %vm279_vm0, %v6646_v1 }
  0x34   : > { %396 = vst.msk [vmem:[#allocation3 + $0x4c0] sm:$0xff] %vm279_vm0, %v6646_v1  ;;  %397 = vst.msk [vmem:[#allocation3 + $0x4c8] sm:$0xff] %vm279_vm0, %v6646_v1 }
  0x35   : > { %398 = vst.msk [vmem:[#allocation3 + $0x4d0] sm:$0xff] %vm279_vm0, %v6646_v1  ;;  %400 = vst.msk [vmem:[#allocation3 + $0x4e0] sm:$0xff] %vm279_vm0, %v6646_v1 }
  0x36   : > { %401 = vst.msk [vmem:[#allocation3 + $0x4e8] sm:$0xff] %vm279_vm0, %v6646_v1  ;;  %402 = vst.msk [vmem:[#allocation3 + $0x4f0] sm:$0xff] %vm279_vm0, %v6646_v1 }
  0x37   : > { %403 = vst.msk [vmem:[#allocation3 + $0x4f8] sm:$0xff] %vm279_vm0, %v6646_v1  ;;  %404 = vst.msk [vmem:[#allocation3 + $0x500] sm:$0xff] %vm279_vm0, %v6646_v1 }
  0x38   : > { %406 = vst.msk [vmem:[#allocation3 + $0x510] sm:$0xff] %vm279_vm0, %v6646_v1  ;;  %407 = vst.msk [vmem:[#allocation3 + $0x518] sm:$0xff] %vm279_vm0, %v6646_v1 }
  0x39   : > { %408 = vst.msk [vmem:[#allocation3 + $0x520] sm:$0xff] %vm279_vm0, %v6646_v1  ;;  %409 = vst.msk [vmem:[#allocation3 + $0x528] sm:$0xff] %vm279_vm0, %v6646_v1 }
  0x3a   : > { %410 = vst.msk [vmem:[#allocation3 + $0x530] sm:$0xff] %vm279_vm0, %v6646_v1  ;;  %412 = vst.msk [vmem:[#allocation3 + $0x540] sm:$0xff] %vm279_vm0, %v6646_v1 }
  0x3b   : > { %413 = vst.msk [vmem:[#allocation3 + $0x548] sm:$0xff] %vm279_vm0, %v6646_v1  ;;  %414 = vst.msk [vmem:[#allocation3 + $0x550] sm:$0xff] %vm279_vm0, %v6646_v1 }
  0x3c   : > { %415 = vst.msk [vmem:[#allocation3 + $0x558] sm:$0xff] %vm279_vm0, %v6646_v1  ;;  %416 = vst.msk [vmem:[#allocation3 + $0x560] sm:$0xff] %vm279_vm0, %v6646_v1 }
  0x3d   : > { %418 = vst.msk [vmem:[#allocation3 + $0x570] sm:$0xff] %vm279_vm0, %v6646_v1  ;;  %419 = vst.msk [vmem:[#allocation3 + $0x578] sm:$0xff] %vm279_vm0, %v6646_v1 }
  0x3e   : > { %420 = vst.msk [vmem:[#allocation3 + $0x580] sm:$0xff] %vm279_vm0, %v6646_v1  ;;  %421 = vst.msk [vmem:[#allocation3 + $0x588] sm:$0xff] %vm279_vm0, %v6646_v1 }
  0x3f   : > { %422 = vst.msk [vmem:[#allocation3 + $0x590] sm:$0xff] %vm279_vm0, %v6646_v1  ;;  %424 = vst.msk [vmem:[#allocation3 + $0x5a0] sm:$0xff] %vm279_vm0, %v6646_v1 }
  0x40   : > { %425 = vst.msk [vmem:[#allocation3 + $0x5a8] sm:$0xff] %vm279_vm0, %v6646_v1  ;;  %426 = vst.msk [vmem:[#allocation3 + $0x5b0] sm:$0xff] %vm279_vm0, %v6646_v1 }
  0x41   : > { %427 = vst.msk [vmem:[#allocation3 + $0x5b8] sm:$0xff] %vm279_vm0, %v6646_v1  ;;  %428 = vst.msk [vmem:[#allocation3 + $0x5c0] sm:$0xff] %vm279_vm0, %v6646_v1 }
  0x42   : > { %430 = vst.msk [vmem:[#allocation3 + $0x5d0] sm:$0xff] %vm279_vm0, %v6646_v1  ;;  %431 = vst.msk [vmem:[#allocation3 + $0x5d8] sm:$0xff] %vm279_vm0, %v6646_v1 }
  0x43   : > { %432 = vst.msk [vmem:[#allocation3 + $0x5e0] sm:$0xff] %vm279_vm0, %v6646_v1  ;;  %433 = vst.msk [vmem:[#allocation3 + $0x5e8] sm:$0xff] %vm279_vm0, %v6646_v1 }
  0x44   : > { %434 = vst.msk [vmem:[#allocation3 + $0x5f0] sm:$0xff] %vm279_vm0, %v6646_v1  ;;  %436 = vst.msk [vmem:[#allocation3 + $0x600] sm:$0xff] %vm279_vm0, %v6646_v1 }
  0x45   : > { %437 = vst.msk [vmem:[#allocation3 + $0x608] sm:$0xff] %vm279_vm0, %v6646_v1  ;;  %438 = vst.msk [vmem:[#allocation3 + $0x610] sm:$0xff] %vm279_vm0, %v6646_v1 }
  0x46   : > { %439 = vst.msk [vmem:[#allocation3 + $0x618] sm:$0xff] %vm279_vm0, %v6646_v1  ;;  %440 = vst.msk [vmem:[#allocation3 + $0x620] sm:$0xff] %vm279_vm0, %v6646_v1 }
  0x47   : > { %442 = vst.msk [vmem:[#allocation3 + $0x630] sm:$0xff] %vm279_vm0, %v6646_v1  ;;  %443 = vst.msk [vmem:[#allocation3 + $0x638] sm:$0xff] %vm279_vm0, %v6646_v1 }
  0x48   : > { %444 = vst.msk [vmem:[#allocation3 + $0x640] sm:$0xff] %vm279_vm0, %v6646_v1  ;;  %445 = vst.msk [vmem:[#allocation3 + $0x648] sm:$0xff] %vm279_vm0, %v6646_v1 }
  0x49   : > { %446 = vst.msk [vmem:[#allocation3 + $0x650] sm:$0xff] %vm279_vm0, %v6646_v1  ;;  %466 = vst.msk [vmem:[#allocation3 + $0x1b0] sm:$0xff] %vm279_vm0, %v6646_v1 }
  0x4a   : > { %467 = vst.msk [vmem:[#allocation3 + $0x1b8] sm:$0xff] %vm279_vm0, %v6646_v1  ;;  %468 = vst.msk [vmem:[#allocation3 + $0x1e0] sm:$0xff] %vm279_vm0, %v6646_v1 }
  0x4b   : > { %469 = vst.msk [vmem:[#allocation3 + $0x1e8] sm:$0xff] %vm279_vm0, %v6646_v1  ;;  %470 = vst.msk [vmem:[#allocation3 + $0x210] sm:$0xff] %vm279_vm0, %v6646_v1 }
  0x4c   : > { %471 = vst.msk [vmem:[#allocation3 + $0x218] sm:$0xff] %vm279_vm0, %v6646_v1  ;;  %472 = vst.msk [vmem:[#allocation3 + $0x240] sm:$0xff] %vm279_vm0, %v6646_v1 }
  0x4d   : > { %473 = vst.msk [vmem:[#allocation3 + $0x248] sm:$0xff] %vm279_vm0, %v6646_v1  ;;  %474 = vst.msk [vmem:[#allocation3 + $0x270] sm:$0xff] %vm279_vm0, %v6646_v1 }
  0x4e   : > { %475 = vst.msk [vmem:[#allocation3 + $0x278] sm:$0xff] %vm279_vm0, %v6646_v1  ;;  %476 = vst.msk [vmem:[#allocation3 + $0x2a0] sm:$0xff] %vm279_vm0, %v6646_v1 }
  0x4f   : > { %477 = vst.msk [vmem:[#allocation3 + $0x2a8] sm:$0xff] %vm279_vm0, %v6646_v1  ;;  %478 = vst.msk [vmem:[#allocation3 + $0x2d0] sm:$0xff] %vm279_vm0, %v6646_v1 }
  0x50   : > { %479 = vst.msk [vmem:[#allocation3 + $0x2d8] sm:$0xff] %vm279_vm0, %v6646_v1  ;;  %480 = vst.msk [vmem:[#allocation3 + $0x300] sm:$0xff] %vm279_vm0, %v6646_v1 }
  0x51   : > { %481 = vst.msk [vmem:[#allocation3 + $0x308] sm:$0xff] %vm279_vm0, %v6646_v1  ;;  %482 = vst.msk [vmem:[#allocation3 + $0x330] sm:$0xff] %vm279_vm0, %v6646_v1 }
  0x52   : > { %483 = vst.msk [vmem:[#allocation3 + $0x338] sm:$0xff] %vm279_vm0, %v6646_v1  ;;  %484 = vst.msk [vmem:[#allocation3 + $0x360] sm:$0xff] %vm279_vm0, %v6646_v1 }
  0x53   : > { %485 = vst.msk [vmem:[#allocation3 + $0x368] sm:$0xff] %vm279_vm0, %v6646_v1  ;;  %486 = vst.msk [vmem:[#allocation3 + $0x390] sm:$0xff] %vm279_vm0, %v6646_v1 }
  0x54   : > { %487 = vst.msk [vmem:[#allocation3 + $0x398] sm:$0xff] %vm279_vm0, %v6646_v1  ;;  %488 = vst.msk [vmem:[#allocation3 + $0x3c0] sm:$0xff] %vm279_vm0, %v6646_v1 }
  0x55   : > { %489 = vst.msk [vmem:[#allocation3 + $0x3c8] sm:$0xff] %vm279_vm0, %v6646_v1  ;;  %490 = vst.msk [vmem:[#allocation3 + $0x3f0] sm:$0xff] %vm279_vm0, %v6646_v1 }
  0x56   : > { %491 = vst.msk [vmem:[#allocation3 + $0x3f8] sm:$0xff] %vm279_vm0, %v6646_v1  ;;  %492 = vst.msk [vmem:[#allocation3 + $0x420] sm:$0xff] %vm279_vm0, %v6646_v1 }
  0x57   : > { %493 = vst.msk [vmem:[#allocation3 + $0x428] sm:$0xff] %vm279_vm0, %v6646_v1  ;;  %494 = vst.msk [vmem:[#allocation3 + $0x450] sm:$0xff] %vm279_vm0, %v6646_v1 }
  0x58   : > { %495 = vst.msk [vmem:[#allocation3 + $0x458] sm:$0xff] %vm279_vm0, %v6646_v1  ;;  %496 = vst.msk [vmem:[#allocation3 + $0x480] sm:$0xff] %vm279_vm0, %v6646_v1 }
  0x59   : > { %497 = vst.msk [vmem:[#allocation3 + $0x488] sm:$0xff] %vm279_vm0, %v6646_v1  ;;  %534 = vst.msk [vmem:[#allocation3 + $0x1d0] sm:$0xff] %vm279_vm0, %v6646_v1 }
  0x5a   : > { %536 = vst.msk [vmem:[#allocation3 + $0x200] sm:$0xff] %vm279_vm0, %v6646_v1  ;;  %538 = vst.msk [vmem:[#allocation3 + $0x230] sm:$0xff] %vm279_vm0, %v6646_v1 }
  0x5b   : > { %540 = vst.msk [vmem:[#allocation3 + $0x260] sm:$0xff] %vm279_vm0, %v6646_v1  ;;  %542 = vst.msk [vmem:[#allocation3 + $0x290] sm:$0xff] %vm279_vm0, %v6646_v1 }
  0x5c   : > { %544 = vst.msk [vmem:[#allocation3 + $0x2c0] sm:$0xff] %vm279_vm0, %v6646_v1  ;;  %546 = vst.msk [vmem:[#allocation3 + $0x2f0] sm:$0xff] %vm279_vm0, %v6646_v1 }
  0x5d   : > { %548 = vst.msk [vmem:[#allocation3 + $0x320] sm:$0xff] %vm279_vm0, %v6646_v1  ;;  %550 = vst.msk [vmem:[#allocation3 + $0x350] sm:$0xff] %vm279_vm0, %v6646_v1 }
  0x5e   : > { %552 = vst.msk [vmem:[#allocation3 + $0x380] sm:$0xff] %vm279_vm0, %v6646_v1  ;;  %554 = vst.msk [vmem:[#allocation3 + $0x3b0] sm:$0xff] %vm279_vm0, %v6646_v1 }
  0x5f   : > { %556 = vst.msk [vmem:[#allocation3 + $0x3e0] sm:$0xff] %vm279_vm0, %v6646_v1  ;;  %558 = vst.msk [vmem:[#allocation3 + $0x410] sm:$0xff] %vm279_vm0, %v6646_v1 }
  0x60   : > { %560 = vst.msk [vmem:[#allocation3 + $0x440] sm:$0xff] %vm279_vm0, %v6646_v1  ;;  %562 = vst.msk [vmem:[#allocation3 + $0x470] sm:$0xff] %vm279_vm0, %v6646_v1 }
  0x61   : > { %564 = vst.msk [vmem:[#allocation3 + $0x4a0] sm:$0xff] %vm279_vm0, %v6646_v1  ;;  %12047 = vst [vmem:[#allocation5_spill] sm:$0xff] %v7079_v2 }
  0x62   : > { %284 = vst.msk [vmem:[#allocation2 + $0x18] sm:$0x3] %vm283_vm1, %v6646_v1  ;;  %288 = vst.msk [vmem:[#allocation2 + $0x38] sm:$0x3] %vm283_vm1, %v6646_v1 }
  0x63   : > { %293 = vst.msk [vmem:[#allocation2 + $0x258] sm:$0x3] %vm283_vm1, %v6646_v1  ;;  %297 = vst.msk [vmem:[#allocation2 + $0x278] sm:$0x3] %vm283_vm1, %v6646_v1 }
  0x64   : > { %320 = vst.msk [vmem:[#allocation2 + $0x58] sm:$0x3] %vm283_vm1, %v6646_v1  ;;  %321 = vst.msk [vmem:[#allocation2 + $0x78] sm:$0x3] %vm283_vm1, %v6646_v1 }
  0x65   : > { %322 = vst.msk [vmem:[#allocation2 + $0x98] sm:$0x3] %vm283_vm1, %v6646_v1  ;;  %323 = vst.msk [vmem:[#allocation2 + $0xb8] sm:$0x3] %vm283_vm1, %v6646_v1 }
  0x66   : > { %324 = vst.msk [vmem:[#allocation2 + $0xd8] sm:$0x3] %vm283_vm1, %v6646_v1  ;;  %325 = vst.msk [vmem:[#allocation2 + $0xf8] sm:$0x3] %vm283_vm1, %v6646_v1 }
  0x67   : > { %326 = vst.msk [vmem:[#allocation2 + $0x118] sm:$0x3] %vm283_vm1, %v6646_v1  ;;  %327 = vst.msk [vmem:[#allocation2 + $0x138] sm:$0x3] %vm283_vm1, %v6646_v1 }
  0x68   : > { %328 = vst.msk [vmem:[#allocation2 + $0x158] sm:$0x3] %vm283_vm1, %v6646_v1  ;;  %329 = vst.msk [vmem:[#allocation2 + $0x178] sm:$0x3] %vm283_vm1, %v6646_v1 }
  0x69   : > { %330 = vst.msk [vmem:[#allocation2 + $0x198] sm:$0x3] %vm283_vm1, %v6646_v1  ;;  %331 = vst.msk [vmem:[#allocation2 + $0x1b8] sm:$0x3] %vm283_vm1, %v6646_v1 }
  0x6a   : > { %332 = vst.msk [vmem:[#allocation2 + $0x1d8] sm:$0x3] %vm283_vm1, %v6646_v1  ;;  %333 = vst.msk [vmem:[#allocation2 + $0x1f8] sm:$0x3] %vm283_vm1, %v6646_v1 }
  0x6b   : > { %334 = vst.msk [vmem:[#allocation2 + $0x218] sm:$0x3] %vm283_vm1, %v6646_v1  ;;  %335 = vst.msk [vmem:[#allocation2 + $0x238] sm:$0x3] %vm283_vm1, %v6646_v1 }
  0x6c   : > { %12048 = vst [vmem:[#allocation6_spill] sm:$0xff] %v7084_v3  ;;  %344 = vst.msk [vmem:[#allocation3 + $0x28] sm:$0x1] %vm343_vm2, %v6646_v1 }
  0x6d   : > { %350 = vst.msk [vmem:[#allocation3 + $0x58] sm:$0x1] %vm343_vm2, %v6646_v1  ;;  %356 = vst.msk [vmem:[#allocation3 + $0x88] sm:$0x1] %vm343_vm2, %v6646_v1 }
  0x6e   : > { %362 = vst.msk [vmem:[#allocation3 + $0xb8] sm:$0x1] %vm343_vm2, %v6646_v1  ;;  %368 = vst.msk [vmem:[#allocation3 + $0xe8] sm:$0x1] %vm343_vm2, %v6646_v1 }
  0x6f   : > { %374 = vst.msk [vmem:[#allocation3 + $0x118] sm:$0x1] %vm343_vm2, %v6646_v1  ;;  %380 = vst.msk [vmem:[#allocation3 + $0x148] sm:$0x1] %vm343_vm2, %v6646_v1 }
  0x70   : > { %386 = vst.msk [vmem:[#allocation3 + $0x178] sm:$0x1] %vm343_vm2, %v6646_v1  ;;  %392 = vst.msk [vmem:[#allocation3 + $0x1a8] sm:$0x1] %vm343_vm2, %v6646_v1 }
  0x71   : > { %399 = vst.msk [vmem:[#allocation3 + $0x4d8] sm:$0x1] %vm343_vm2, %v6646_v1  ;;  %405 = vst.msk [vmem:[#allocation3 + $0x508] sm:$0x1] %vm343_vm2, %v6646_v1 }
  0x72   : > { %411 = vst.msk [vmem:[#allocation3 + $0x538] sm:$0x1] %vm343_vm2, %v6646_v1  ;;  %417 = vst.msk [vmem:[#allocation3 + $0x568] sm:$0x1] %vm343_vm2, %v6646_v1 }
  0x73   : > { %423 = vst.msk [vmem:[#allocation3 + $0x598] sm:$0x1] %vm343_vm2, %v6646_v1  ;;  %429 = vst.msk [vmem:[#allocation3 + $0x5c8] sm:$0x1] %vm343_vm2, %v6646_v1 }
  0x74   : > { %435 = vst.msk [vmem:[#allocation3 + $0x5f8] sm:$0x1] %vm343_vm2, %v6646_v1  ;;  %441 = vst.msk [vmem:[#allocation3 + $0x628] sm:$0x1] %vm343_vm2, %v6646_v1 }
  0x75   : > { %447 = vst.msk [vmem:[#allocation3 + $0x658] sm:$0x1] %vm343_vm2, %v6646_v1  ;;  %535 = vst.msk [vmem:[#allocation3 + $0x1d8] sm:$0x1] %vm343_vm2, %v6646_v1 }
  0x76   : > { %537 = vst.msk [vmem:[#allocation3 + $0x208] sm:$0x1] %vm343_vm2, %v6646_v1  ;;  %539 = vst.msk [vmem:[#allocation3 + $0x238] sm:$0x1] %vm343_vm2, %v6646_v1 }
  0x77   : > { %541 = vst.msk [vmem:[#allocation3 + $0x268] sm:$0x1] %vm343_vm2, %v6646_v1  ;;  %543 = vst.msk [vmem:[#allocation3 + $0x298] sm:$0x1] %vm343_vm2, %v6646_v1 }
  0x78   : > { %545 = vst.msk [vmem:[#allocation3 + $0x2c8] sm:$0x1] %vm343_vm2, %v6646_v1  ;;  %547 = vst.msk [vmem:[#allocation3 + $0x2f8] sm:$0x1] %vm343_vm2, %v6646_v1 }
  0x79   : > { %549 = vst.msk [vmem:[#allocation3 + $0x328] sm:$0x1] %vm343_vm2, %v6646_v1  ;;  %551 = vst.msk [vmem:[#allocation3 + $0x358] sm:$0x1] %vm343_vm2, %v6646_v1 }
  0x7a   : > { %553 = vst.msk [vmem:[#allocation3 + $0x388] sm:$0x1] %vm343_vm2, %v6646_v1  ;;  %555 = vst.msk [vmem:[#allocation3 + $0x3b8] sm:$0x1] %vm343_vm2, %v6646_v1 }
  0x7b   : > { %557 = vst.msk [vmem:[#allocation3 + $0x3e8] sm:$0x1] %vm343_vm2, %v6646_v1  ;;  %559 = vst.msk [vmem:[#allocation3 + $0x418] sm:$0x1] %vm343_vm2, %v6646_v1 }
  0x7c   : > { %561 = vst.msk [vmem:[#allocation3 + $0x448] sm:$0x1] %vm343_vm2, %v6646_v1  ;;  %563 = vst.msk [vmem:[#allocation3 + $0x478] sm:$0x1] %vm343_vm2, %v6646_v1 }
  0x7d   : > { %565 = vst.msk [vmem:[#allocation3 + $0x4a8] sm:$0x1] %vm343_vm2, %v6646_v1  ;;  %517 = vst.msk [vmem:[#allocation3 + $0x28] sm:$0x1] %vm343_vm2, %v6646_v1 }
  0x7e   : > { %298 = vst.msk [vmem:[#allocation2] sm:$0xff] %vm279_vm0, %v6646_v1  ;;  %299 = vst.msk [vmem:[#allocation2 + $0x20] sm:$0xff] %vm279_vm0, %v6646_v1 }
  0x7f   : > { %316 = vst.msk [vmem:[#allocation2 + $0x240] sm:$0xff] %vm279_vm0, %v6646_v1  ;;  %317 = vst.msk [vmem:[#allocation2 + $0x260] sm:$0xff] %vm279_vm0, %v6646_v1 }
  0x80   : > { %318 = vst.msk [vmem:[#allocation2 + $0x18] sm:$0x3] %vm283_vm1, %v6646_v1  ;;  %319 = vst.msk [vmem:[#allocation2 + $0x38] sm:$0x3] %vm283_vm1, %v6646_v1 }
  0x81   : > { %448 = vst.msk [vmem:[#allocation3] sm:$0xff] %vm279_vm0, %v6646_v1  ;;  %449 = vst.msk [vmem:[#allocation3 + $0x8] sm:$0xff] %vm279_vm0, %v6646_v1 }
  0x82   : > { %450 = vst.msk [vmem:[#allocation3 + $0x30] sm:$0xff] %vm279_vm0, %v6646_v1  ;;  %451 = vst.msk [vmem:[#allocation3 + $0x38] sm:$0xff] %vm279_vm0, %v6646_v1 }
  0x83   : > { %452 = vst.msk [vmem:[#allocation3 + $0x60] sm:$0xff] %vm279_vm0, %v6646_v1  ;;  %453 = vst.msk [vmem:[#allocation3 + $0x68] sm:$0xff] %vm279_vm0, %v6646_v1 }
  0x84   : > { %454 = vst.msk [vmem:[#allocation3 + $0x90] sm:$0xff] %vm279_vm0, %v6646_v1  ;;  %455 = vst.msk [vmem:[#allocation3 + $0x98] sm:$0xff] %vm279_vm0, %v6646_v1 }
  0x85   : > { %456 = vst.msk [vmem:[#allocation3 + $0xc0] sm:$0xff] %vm279_vm0, %v6646_v1  ;;  %457 = vst.msk [vmem:[#allocation3 + $0xc8] sm:$0xff] %vm279_vm0, %v6646_v1 }
  0x86   : > { %458 = vst.msk [vmem:[#allocation3 + $0xf0] sm:$0xff] %vm279_vm0, %v6646_v1  ;;  %459 = vst.msk [vmem:[#allocation3 + $0xf8] sm:$0xff] %vm279_vm0, %v6646_v1 }
  0x87   : > { %460 = vst.msk [vmem:[#allocation3 + $0x120] sm:$0xff] %vm279_vm0, %v6646_v1  ;;  %461 = vst.msk [vmem:[#allocation3 + $0x128] sm:$0xff] %vm279_vm0, %v6646_v1 }
  0x88   : > { %462 = vst.msk [vmem:[#allocation3 + $0x150] sm:$0xff] %vm279_vm0, %v6646_v1  ;;  %463 = vst.msk [vmem:[#allocation3 + $0x158] sm:$0xff] %vm279_vm0, %v6646_v1 }
  0x89   : > { %464 = vst.msk [vmem:[#allocation3 + $0x180] sm:$0xff] %vm279_vm0, %v6646_v1  ;;  %465 = vst.msk [vmem:[#allocation3 + $0x188] sm:$0xff] %vm279_vm0, %v6646_v1 }
  0x8a   : > { %498 = vst.msk [vmem:[#allocation3 + $0x4b0] sm:$0xff] %vm279_vm0, %v6646_v1  ;;  %499 = vst.msk [vmem:[#allocation3 + $0x4b8] sm:$0xff] %vm279_vm0, %v6646_v1 }
  0x8b   : > { %500 = vst.msk [vmem:[#allocation3 + $0x4e0] sm:$0xff] %vm279_vm0, %v6646_v1  ;;  %501 = vst.msk [vmem:[#allocation3 + $0x4e8] sm:$0xff] %vm279_vm0, %v6646_v1 }
  0x8c   : > { %502 = vst.msk [vmem:[#allocation3 + $0x510] sm:$0xff] %vm279_vm0, %v6646_v1  ;;  %503 = vst.msk [vmem:[#allocation3 + $0x518] sm:$0xff] %vm279_vm0, %v6646_v1 }
  0x8d   : > { %504 = vst.msk [vmem:[#allocation3 + $0x540] sm:$0xff] %vm279_vm0, %v6646_v1  ;;  %505 = vst.msk [vmem:[#allocation3 + $0x548] sm:$0xff] %vm279_vm0, %v6646_v1 }
  0x8e   : > { %506 = vst.msk [vmem:[#allocation3 + $0x570] sm:$0xff] %vm279_vm0, %v6646_v1  ;;  %507 = vst.msk [vmem:[#allocation3 + $0x578] sm:$0xff] %vm279_vm0, %v6646_v1 }
  0x8f   : > { %508 = vst.msk [vmem:[#allocation3 + $0x5a0] sm:$0xff] %vm279_vm0, %v6646_v1  ;;  %509 = vst.msk [vmem:[#allocation3 + $0x5a8] sm:$0xff] %vm279_vm0, %v6646_v1 }
  0x90   : > { %510 = vst.msk [vmem:[#allocation3 + $0x5d0] sm:$0xff] %vm279_vm0, %v6646_v1  ;;  %511 = vst.msk [vmem:[#allocation3 + $0x5d8] sm:$0xff] %vm279_vm0, %v6646_v1 }
  0x91   : > { %512 = vst.msk [vmem:[#allocation3 + $0x600] sm:$0xff] %vm279_vm0, %v6646_v1  ;;  %513 = vst.msk [vmem:[#allocation3 + $0x608] sm:$0xff] %vm279_vm0, %v6646_v1 }
  0x92   : > { %514 = vst.msk [vmem:[#allocation3 + $0x630] sm:$0xff] %vm279_vm0, %v6646_v1  ;;  %515 = vst.msk [vmem:[#allocation3 + $0x638] sm:$0xff] %vm279_vm0, %v6646_v1 }
  0x93   : > { %516 = vst.msk [vmem:[#allocation3 + $0x20] sm:$0xff] %vm279_vm0, %v6646_v1  ;;  %518 = vst.msk [vmem:[#allocation3 + $0x50] sm:$0xff] %vm279_vm0, %v6646_v1 }
  0x94   : > { %520 = vst.msk [vmem:[#allocation3 + $0x80] sm:$0xff] %vm279_vm0, %v6646_v1  ;;  %522 = vst.msk [vmem:[#allocation3 + $0xb0] sm:$0xff] %vm279_vm0, %v6646_v1 }
  0x95   : > { %524 = vst.msk [vmem:[#allocation3 + $0xe0] sm:$0xff] %vm279_vm0, %v6646_v1  ;;  %526 = vst.msk [vmem:[#allocation3 + $0x110] sm:$0xff] %vm279_vm0, %v6646_v1 }
  0x96   : > { %528 = vst.msk [vmem:[#allocation3 + $0x140] sm:$0xff] %vm279_vm0, %v6646_v1  ;;  %530 = vst.msk [vmem:[#allocation3 + $0x170] sm:$0xff] %vm279_vm0, %v6646_v1 }
  0x97   : > { %532 = vst.msk [vmem:[#allocation3 + $0x1a0] sm:$0xff] %vm279_vm0, %v6646_v1  ;;  %566 = vst.msk [vmem:[#allocation3 + $0x4d0] sm:$0xff] %vm279_vm0, %v6646_v1 }
  0x98   : > { %568 = vst.msk [vmem:[#allocation3 + $0x500] sm:$0xff] %vm279_vm0, %v6646_v1  ;;  %570 = vst.msk [vmem:[#allocation3 + $0x530] sm:$0xff] %vm279_vm0, %v6646_v1 }
  0x99   : > { %572 = vst.msk [vmem:[#allocation3 + $0x560] sm:$0xff] %vm279_vm0, %v6646_v1  ;;  %574 = vst.msk [vmem:[#allocation3 + $0x590] sm:$0xff] %vm279_vm0, %v6646_v1 }
  0x9a   : > { %576 = vst.msk [vmem:[#allocation3 + $0x5c0] sm:$0xff] %vm279_vm0, %v6646_v1  ;;  %578 = vst.msk [vmem:[#allocation3 + $0x5f0] sm:$0xff] %vm279_vm0, %v6646_v1 }
  0x9b   : > { %580 = vst.msk [vmem:[#allocation3 + $0x620] sm:$0xff] %vm279_vm0, %v6646_v1  ;;  %582 = vst.msk [vmem:[#allocation3 + $0x650] sm:$0xff] %vm279_vm0, %v6646_v1 }
  0x9c   : > { %336 = vst.msk [vmem:[#allocation2 + $0x258] sm:$0x3] %vm283_vm1, %v6646_v1  ;;  %337 = vst.msk [vmem:[#allocation2 + $0x278] sm:$0x3] %vm283_vm1, %v6646_v1 }
  0x9d   : > { %519 = vst.msk [vmem:[#allocation3 + $0x58] sm:$0x1] %vm343_vm2, %v6646_v1  ;;  %521 = vst.msk [vmem:[#allocation3 + $0x88] sm:$0x1] %vm343_vm2, %v6646_v1 }
  0x9e   : > { %523 = vst.msk [vmem:[#allocation3 + $0xb8] sm:$0x1] %vm343_vm2, %v6646_v1  ;;  %525 = vst.msk [vmem:[#allocation3 + $0xe8] sm:$0x1] %vm343_vm2, %v6646_v1 }
  0x9f   : > { %527 = vst.msk [vmem:[#allocation3 + $0x118] sm:$0x1] %vm343_vm2, %v6646_v1  ;;  %529 = vst.msk [vmem:[#allocation3 + $0x148] sm:$0x1] %vm343_vm2, %v6646_v1 }
  0xa0   : > { %531 = vst.msk [vmem:[#allocation3 + $0x178] sm:$0x1] %vm343_vm2, %v6646_v1  ;;  %533 = vst.msk [vmem:[#allocation3 + $0x1a8] sm:$0x1] %vm343_vm2, %v6646_v1 }
  0xa1   : > { %567 = vst.msk [vmem:[#allocation3 + $0x4d8] sm:$0x1] %vm343_vm2, %v6646_v1  ;;  %569 = vst.msk [vmem:[#allocation3 + $0x508] sm:$0x1] %vm343_vm2, %v6646_v1 }
  0xa2   : > { %571 = vst.msk [vmem:[#allocation3 + $0x538] sm:$0x1] %vm343_vm2, %v6646_v1  ;;  %573 = vst.msk [vmem:[#allocation3 + $0x568] sm:$0x1] %vm343_vm2, %v6646_v1 }
  0xa3   : > { %575 = vst.msk [vmem:[#allocation3 + $0x598] sm:$0x1] %vm343_vm2, %v6646_v1  ;;  %577 = vst.msk [vmem:[#allocation3 + $0x5c8] sm:$0x1] %vm343_vm2, %v6646_v1 }
  0xa4   : > { %579 = vst.msk [vmem:[#allocation3 + $0x5f8] sm:$0x1] %vm343_vm2, %v6646_v1  ;;  %581 = vst.msk [vmem:[#allocation3 + $0x628] sm:$0x1] %vm343_vm2, %v6646_v1 }
  0xa5   : > { %583 = vst.msk [vmem:[#allocation3 + $0x658] sm:$0x1] %vm343_vm2, %v6646_v1 }
  0xa6   : > { %617 = vst.msk [vmem:[#allocation2 + $0x48] sm:$0xff] %vm279_vm0, %v584_v4  ;;  %618 = vst.msk [vmem:[#allocation2 + $0x50] sm:$0xff] %vm279_vm0, %v585_v5 }
  0xa7   : > { %619 = vst.msk [vmem:[#allocation2 + $0x68] sm:$0xff] %vm279_vm0, %v586_v6  ;;  %620 = vst.msk [vmem:[#allocation2 + $0x70] sm:$0xff] %vm279_vm0, %v587_v7 }
  0xa8   : > { %621 = vst.msk [vmem:[#allocation2 + $0x88] sm:$0xff] %vm279_vm0, %v588_v8  ;;  %622 = vst.msk [vmem:[#allocation2 + $0x90] sm:$0xff] %vm279_vm0, %v589_v9 }
  0xa9   : > { %623 = vst.msk [vmem:[#allocation2 + $0xa8] sm:$0xff] %vm279_vm0, %v590_v10  ;;  %624 = vst.msk [vmem:[#allocation2 + $0xb0] sm:$0xff] %vm279_vm0, %v591_v11 }
  0xaa   : > { %625 = vst.msk [vmem:[#allocation2 + $0xc8] sm:$0xff] %vm279_vm0, %v592_v12  ;;  %626 = vst.msk [vmem:[#allocation2 + $0xd0] sm:$0xff] %vm279_vm0, %v593_v13 }
  0xab   : > { %627 = vst.msk [vmem:[#allocation2 + $0xe8] sm:$0xff] %vm279_vm0, %v594_v14  ;;  %628 = vst.msk [vmem:[#allocation2 + $0xf0] sm:$0xff] %vm279_vm0, %v595_v15 }
  0xac   : > { %629 = vst.msk [vmem:[#allocation2 + $0x108] sm:$0xff] %vm279_vm0, %v596_v16  ;;  %630 = vst.msk [vmem:[#allocation2 + $0x110] sm:$0xff] %vm279_vm0, %v597_v17 }
  0xad   : > { %631 = vst.msk [vmem:[#allocation2 + $0x128] sm:$0xff] %vm279_vm0, %v598_v18  ;;  %632 = vst.msk [vmem:[#allocation2 + $0x130] sm:$0xff] %vm279_vm0, %v599_v19 }
  0xae   : > { %633 = vst.msk [vmem:[#allocation2 + $0x148] sm:$0xff] %vm279_vm0, %v600_v20  ;;  %634 = vst.msk [vmem:[#allocation2 + $0x150] sm:$0xff] %vm279_vm0, %v601_v21 }
  0xaf   : > { %635 = vst.msk [vmem:[#allocation2 + $0x168] sm:$0xff] %vm279_vm0, %v602_v22  ;;  %636 = vst.msk [vmem:[#allocation2 + $0x170] sm:$0xff] %vm279_vm0, %v603_v23 }
  0xb0   : > { %637 = vst.msk [vmem:[#allocation2 + $0x188] sm:$0xff] %vm279_vm0, %v604_v24  ;;  %638 = vst.msk [vmem:[#allocation2 + $0x190] sm:$0xff] %vm279_vm0, %v605_v25 }
  0xb1   : > { %639 = vst.msk [vmem:[#allocation2 + $0x1a8] sm:$0xff] %vm279_vm0, %v606_v26  ;;  %640 = vst.msk [vmem:[#allocation2 + $0x1b0] sm:$0xff] %vm279_vm0, %v607_v27 }
  0xb2   : > { %641 = vst.msk [vmem:[#allocation2 + $0x1c8] sm:$0xff] %vm279_vm0, %v608_v28  ;;  %642 = vst.msk [vmem:[#allocation2 + $0x1d0] sm:$0xff] %vm279_vm0, %v609_v29 }
  0xb3   : > { %643 = vst.msk [vmem:[#allocation2 + $0x1e8] sm:$0xff] %vm279_vm0, %v610_v30  ;;  %644 = vst.msk [vmem:[#allocation2 + $0x1f0] sm:$0xff] %vm279_vm0, %v611_v31 }
  0xb4   : > { %645 = vst.msk [vmem:[#allocation2 + $0x208] sm:$0xff] %vm279_vm0, %v612_v32  ;;  %646 = vst.msk [vmem:[#allocation2 + $0x210] sm:$0xff] %vm279_vm0, %v613_v33 }
  0xb5   : > { %647 = vst.msk [vmem:[#allocation2 + $0x228] sm:$0xff] %vm279_vm0, %v614_v34  ;;  %648 = vst.msk [vmem:[#allocation2 + $0x230] sm:$0xff] %vm279_vm0, %v615_v35 }
  0xb6 LB: >> { %s6431_s18 = sshll.u32 %s6640_s17, 8  ;;  %v5295_v36 = vld [vmem:[%s11612_s1] ss:$0 sm:$0xff]  ;;  %v7410_v37 = vld [vmem:[%s11612_s1 + $0x5] ss:$0 sm:$0xff]  ;;  %s6640_s17 = sphi %s7398_s17, %s657_s17  }
  0xb7   : >> { %s7412_s23 = scalar_lea.vmem [#allocation2], %s6431_s18  ;;  %v7429_v47 = vld [vmem:[%s11612_s1 + $0x1] ss:$0 sm:$0xff] }
  0xbc   : >> { %v661_v38 = vld [vmem:[%s7412_s23 + $0x6] sm:$0xff]  ;;  %v662_v39 = vld [vmem:[%s7412_s23 + $0xe] sm:$0xff] }
  0xbd   : >> { %v663_v40 = vld [vmem:[%s7412_s23 + $0x26] sm:$0xff]  ;;  %v664_v41 = vld [vmem:[%s7412_s23 + $0x2e] sm:$0xff]  ;;  %v682_v44 = vmul.f32 %v5295_v36, %v661_v38  ;;  %v683_v45 = vmul.f32 %v5295_v36, %v662_v39 }
  0xbe   : >> { %v7419_v42 = vld [vmem:[%s7412_s23 + $0x46] sm:$0xff]  ;;  %v7422_v43 = vld [vmem:[%s7412_s23 + $0x4e] sm:$0xff]  ;;  %v7424_v46 = vmul.f32 %v5295_v36, %v663_v40  ;;  %v7432_v48 = vmul.f32 %v7410_v37, %v663_v40  ;;  %v7443_v52 = vmul.f32 %v5295_v36, %v664_v41  ;;  %v7452_v55 = vmul.f32 %v7410_v37, %v664_v41 }
  0xbf   : >> { %12050 = vst [vmem:[#allocation7_spill] sm:$0xff] %v7419_v42  ;;  %12051 = vst [vmem:[#allocation8_spill] sm:$0xff] %v7422_v43  ;;  %v7435_v49 = vld [vmem:[%s7412_s23 + $0x66] sm:$0xff]  ;;  %v7438_v50 = vld [vmem:[%s7412_s23 + $0x6e] sm:$0xff]  ;;  %v7446_v53 = vmul.f32 %v5295_v36, %v7419_v42  ;;  %v7449_v54 = vmul.f32 %v5295_v36, %v7422_v43  ;;  %v7468_v62 = vmul.f32 %v7410_v37, %v7419_v42 }
  0xc0   : >> { %12052 = vst [vmem:[#allocation9_spill] sm:$0xff] %v7435_v49  ;;  %12053 = vst [vmem:[#allocation10_spill] sm:$0xff] %v7438_v50  ;;  %v7441_v51 = vld [vmem:[%s7412_s23 + $0x86] sm:$0xff]  ;;  %v7455_v56 = vld [vmem:[%s7412_s23 + $0x8e] sm:$0xff]  ;;  %v688_v59 = vmul.f32 %v5295_v36, %v7435_v49  ;;  %v689_v60 = vmul.f32 %v5295_v36, %v7438_v50  ;;  %v7484_v8 = vmul.f32 %v7410_v37, %v7422_v43 }
  0xc1   : >> { %12054 = vst [vmem:[#allocation11_spill] sm:$0xff] %v7441_v51  ;;  %v7458_v57 = vld [vmem:[%s7412_s23 + $0xa6] sm:$0xff]  ;;  %v7461_v58 = vld [vmem:[%s7412_s23 + $0xae] sm:$0xff]  ;;  %v690_v61 = vmul.f32 %v5295_v36, %v7441_v51  ;;  %v691_v5 = vmul.f32 %v5295_v36, %v7455_v56  ;;  %v7496_v15 = vmul.f32 %v7410_v37, %v7435_v49  ;;  %v7512_v22 = vmul.f32 %v7410_v37, %v7438_v50 }
  0xc2   : >> { %v7471_v63 = vld [vmem:[%s7412_s23 + $0xc6] sm:$0xff]  ;;  %v7474_v1 = vld [vmem:[%s7412_s23 + $0xce] sm:$0xff]  ;;  %v692_v6 = vmul.f32 %v5295_v36, %v7458_v57  ;;  %v693_v7 = vmul.f32 %v5295_v36, %v7461_v58  ;;  %v7531_v29 = vmul.f32 %v7410_v37, %v7441_v51 }
  0xc3   : >> { %v7477_v4 = vld [vmem:[%s7412_s23 + $0xe6] sm:$0xff]  ;;  %v7487_v9 = vld [vmem:[%s7412_s23 + $0xee] sm:$0xff]  ;;  %v694_v10 = vmul.f32 %v5295_v36, %v7471_v63  ;;  %v695_v11 = vmul.f32 %v5295_v36, %v7474_v1  ;;  %12058 = vst [vmem:[#allocation15_spill] sm:$0xff] %v7512_v22 }
  0xc4   : >> { %v696_v12 = vmul.f32 %v5295_v36, %v7477_v4  ;;  %v714_v13 = vld [vmem:[%s7412_s23 + $0x7] sm:$0xff]  ;;  %v715_v14 = vld [vmem:[%s7412_s23 + $0xf] sm:$0xff]  ;;  %v697_v16 = vmul.f32 %v5295_v36, %v7487_v9  ;;  %12062 = vst [vmem:[#allocation19_spill] sm:$0xff] %v7531_v29 }
  0xc5   : >> { %v7500_v17 = vld [vmem:[%s7412_s23 + $0x27] sm:$0xff]  ;;  %v7503_v18 = vld [vmem:[%s7412_s23 + $0x2f] sm:$0xff]  ;;  %v735_v20 = vmul.f32 %v7429_v47, %v714_v13  ;;  %v736_v21 = vmul.f32 %v7429_v47, %v715_v14 }
  0xc6   : >> { %12055 = vst [vmem:[#allocation12_spill] sm:$0xff] %v7500_v17  ;;  %12056 = vst [vmem:[#allocation13_spill] sm:$0xff] %v7503_v18  ;;  %v7506_v19 = vld [vmem:[%s7412_s23 + $0x47] sm:$0xff]  ;;  %v7515_v23 = vld [vmem:[%s7412_s23 + $0x4f] sm:$0xff]  ;;  %v737_v26 = vmul.f32 %v7429_v47, %v7500_v17  ;;  %v738_v27 = vmul.f32 %v7429_v47, %v7503_v18 }
  0xc7   : >> { %12057 = vst [vmem:[#allocation14_spill] sm:$0xff] %v7506_v19  ;;  %12059 = vst [vmem:[#allocation16_spill] sm:$0xff] %v7515_v23  ;;  %v7518_v24 = vld [vmem:[%s7412_s23 + $0x67] sm:$0xff]  ;;  %v7521_v25 = vld [vmem:[%s7412_s23 + $0x6f] sm:$0xff]  ;;  %v739_v28 = vmul.f32 %v7429_v47, %v7506_v19  ;;  %v740_v33 = vmul.f32 %v7429_v47, %v7515_v23  ;;  %v751_v36 = vadd.f32 %v735_v20, %v682_v44 }
  0xc8   : >> { %12060 = vst [vmem:[#allocation17_spill] sm:$0xff] %v7518_v24  ;;  %12061 = vst [vmem:[#allocation18_spill] sm:$0xff] %v7521_v25  ;;  %v7534_v30 = vld [vmem:[%s7412_s23 + $0x87] sm:$0xff]  ;;  %v7537_v31 = vld [vmem:[%s7412_s23 + $0x8f] sm:$0xff]  ;;  %v741_v34 = vmul.f32 %v7429_v47, %v7518_v24  ;;  %v742_v35 = vmul.f32 %v7429_v47, %v7521_v25  ;;  %v752_v3 = vadd.f32 %v736_v21, %v683_v45 }
  0xc9   : >> { %12063 = vst [vmem:[#allocation20_spill] sm:$0xff] %v7534_v30  ;;  %12064 = vst [vmem:[#allocation21_spill] sm:$0xff] %v7537_v31  ;;  %v7540_v32 = vld [vmem:[%s7412_s23 + $0xa7] sm:$0xff]  ;;  %v7549_v38 = vld [vmem:[%s7412_s23 + $0xaf] sm:$0xff]  ;;  %v743_v41 = vmul.f32 %v7429_v47, %v7534_v30  ;;  %v744_v13 = vmul.f32 %v7429_v47, %v7537_v31  ;;  %v753_v45 = vadd.f32 %v737_v26, %v7424_v46 }
  0xca   : >> { %12065 = vst [vmem:[#allocation22_spill] sm:$0xff] %v7540_v32  ;;  %12066 = vst [vmem:[#allocation23_spill] sm:$0xff] %v7549_v38  ;;  %v7552_v39 = vld [vmem:[%s7412_s23 + $0xc7] sm:$0xff]  ;;  %v7555_v40 = vld [vmem:[%s7412_s23 + $0xcf] sm:$0xff]  ;;  %v745_v14 = vmul.f32 %v7429_v47, %v7540_v32  ;;  %v746_v0 = vmul.f32 %v7429_v47, %v7549_v38  ;;  %v754_v42 = vadd.f32 %v738_v27, %v7443_v52 }
  0xcb   : >> { %12067 = vst [vmem:[#allocation24_spill] sm:$0xff] %v7552_v39  ;;  %12068 = vst [vmem:[#allocation25_spill] sm:$0xff] %v7555_v40  ;;  %v5297_v44 = vld [vmem:[%s11612_s1 + $0x2] ss:$0 sm:$0xff]  ;;  %v7567_v20 = vld [vmem:[%s7412_s23 + $0xe7] sm:$0xff]  ;;  %v747_v51 = vmul.f32 %v7429_v47, %v7552_v39  ;;  %v748_v50 = vmul.f32 %v7429_v47, %v7555_v40  ;;  %v755_v38 = vadd.f32 %v739_v28, %v7446_v53 }
  0xcc   : >> { %12069 = vst [vmem:[#allocation26_spill] sm:$0xff] %v7567_v20  ;;  %v7570_v2 = vld [vmem:[%s7412_s23 + $0xef] sm:$0xff]  ;;  %v749_v49 = vmul.f32 %v7429_v47, %v7567_v20  ;;  %v756_v46 = vadd.f32 %v740_v33, %v7449_v54  ;;  %v757_v26 = vadd.f32 %v741_v34, %v688_v59  ;;  %v758_v20 = vadd.f32 %v742_v35, %v689_v60 }
  0xcd   : >> { %12070 = vst [vmem:[#allocation27_spill] sm:$0xff] %v7570_v2  ;;  %v767_v21 = vld [vmem:[%s7412_s23 + $0x8] sm:$0xff]  ;;  %v750_v43 = vmul.f32 %v7429_v47, %v7570_v2  ;;  %v768_v39 = vld [vmem:[%s7412_s23 + $0x10] sm:$0xff]  ;;  %v759_v31 = vadd.f32 %v743_v41, %v690_v61  ;;  %v760_v27 = vadd.f32 %v744_v13, %v691_v5  ;;  %v761_v28 = vadd.f32 %v745_v14, %v692_v6 }
  0xce   : >> { %v7588_v32 = vld [vmem:[%s7412_s23 + $0x28] sm:$0xff]  ;;  %v7591_v40 = vld [vmem:[%s7412_s23 + $0x30] sm:$0xff]  ;;  %v762_v2 = vadd.f32 %v746_v0, %v693_v7  ;;  %v763_v30 = vadd.f32 %v747_v51, %v694_v10  ;;  %v764_v61 = vadd.f32 %v748_v50, %v695_v11  ;;  %v765_v33 = vadd.f32 %v749_v49, %v696_v12 }
  0xcf   : >> { %12071 = vst [vmem:[#allocation28_spill] sm:$0xff] %v7588_v32  ;;  %12072 = vst [vmem:[#allocation29_spill] sm:$0xff] %v7591_v40  ;;  %v7595_v47 = vld [vmem:[%s7412_s23 + $0x48] sm:$0xff]  ;;  %v7598_v52 = vld [vmem:[%s7412_s23 + $0x50] sm:$0xff]  ;;  %v766_v34 = vadd.f32 %v750_v43, %v697_v16  ;;  %v788_v5 = vmul.f32 %v5297_v44, %v767_v21  ;;  %v789_v6 = vmul.f32 %v5297_v44, %v768_v39 }
  0xd0   : >> { %12073 = vst [vmem:[#allocation30_spill] sm:$0xff] %v7595_v47  ;;  %12074 = vst [vmem:[#allocation31_spill] sm:$0xff] %v7598_v52  ;;  %v7601_v53 = vld [vmem:[%s7412_s23 + $0x68] sm:$0xff]  ;;  %v7604_v54 = vld [vmem:[%s7412_s23 + $0x70] sm:$0xff]  ;;  %v790_v7 = vmul.f32 %v5297_v44, %v7588_v32  ;;  %v791_v49 = vmul.f32 %v5297_v44, %v7591_v40  ;;  %v792_v43 = vmul.f32 %v5297_v44, %v7595_v47 }
  0xd1   : >> { %12075 = vst [vmem:[#allocation32_spill] sm:$0xff] %v7601_v53  ;;  %12076 = vst [vmem:[#allocation33_spill] sm:$0xff] %v7604_v54  ;;  %v7607_v59 = vld [vmem:[%s7412_s23 + $0x88] sm:$0xff]  ;;  %v7610_v60 = vld [vmem:[%s7412_s23 + $0x90] sm:$0xff]  ;;  %v793_v50 = vmul.f32 %v5297_v44, %v7598_v52  ;;  %v794_v10 = vmul.f32 %v5297_v44, %v7601_v53  ;;  %v795_v11 = vmul.f32 %v5297_v44, %v7604_v54 }
  0xd2   : >> { %12077 = vst [vmem:[#allocation34_spill] sm:$0xff] %v7607_v59  ;;  %12078 = vst [vmem:[#allocation35_spill] sm:$0xff] %v7610_v60  ;;  %v7613_v35 = vld [vmem:[%s7412_s23 + $0xa8] sm:$0xff]  ;;  %v7616_v41 = vld [vmem:[%s7412_s23 + $0xb0] sm:$0xff]  ;;  %v796_v12 = vmul.f32 %v5297_v44, %v7607_v59  ;;  %v797_v16 = vmul.f32 %v5297_v44, %v7610_v60  ;;  %v804_v53 = vadd.f32 %v788_v5, %v751_v36 }
  0xd3   : >> { %12079 = vst [vmem:[#allocation36_spill] sm:$0xff] %v7613_v35  ;;  %12080 = vst [vmem:[#allocation37_spill] sm:$0xff] %v7616_v41  ;;  %v7619_v25 = vld [vmem:[%s7412_s23 + $0xc8] sm:$0xff]  ;;  %v7622_v13 = vld [vmem:[%s7412_s23 + $0xd0] sm:$0xff]  ;;  %v798_v39 = vmul.f32 %v5297_v44, %v7613_v35  ;;  %v799_v14 = vmul.f32 %v5297_v44, %v7616_v41  ;;  %v805_v35 = vadd.f32 %v789_v6, %v752_v3 }
  0xd4   : >> { %12081 = vst [vmem:[#allocation38_spill] sm:$0xff] %v7619_v25  ;;  %12082 = vst [vmem:[#allocation39_spill] sm:$0xff] %v7622_v13  ;;  %v7625_v0 = vld [vmem:[%s7412_s23 + $0xe8] sm:$0xff]  ;;  %v7628_v51 = vld [vmem:[%s7412_s23 + $0xf0] sm:$0xff]  ;;  %v800_v21 = vmul.f32 %v5297_v44, %v7619_v25  ;;  %v801_v47 = vmul.f32 %v5297_v44, %v7622_v13  ;;  %v806_v40 = vadd.f32 %v790_v7, %v753_v45 }
  0xd5   : >> { %12083 = vst [vmem:[#allocation40_spill] sm:$0xff] %v7625_v0  ;;  %12084 = vst [vmem:[#allocation41_spill] sm:$0xff] %v7628_v51  ;;  %v802_v52 = vmul.f32 %v5297_v44, %v7625_v0  ;;  %v803_v54 = vmul.f32 %v5297_v44, %v7628_v51  ;;  %v820_v59 = vld [vmem:[%s7412_s23 + $0x9] sm:$0xff]  ;;  %v5298_v60 = vld [vmem:[%s11612_s1 + $0x3] ss:$0 sm:$0xff]  ;;  %v807_v41 = vadd.f32 %v791_v49, %v754_v42 }
  0xd6   : >> { %v808_v25 = vadd.f32 %v792_v43, %v755_v38  ;;  %v821_v13 = vld [vmem:[%s7412_s23 + $0x11] sm:$0xff]  ;;  %v7650_v0 = vld [vmem:[%s7412_s23 + $0x29] sm:$0xff]  ;;  %v809_v44 = vadd.f32 %v793_v50, %v756_v46  ;;  %v810_v36 = vadd.f32 %v794_v10, %v757_v26  ;;  %v811_v5 = vadd.f32 %v795_v11, %v758_v20 }
  0xd7   : >> { %12085 = vst [vmem:[#allocation42_spill] sm:$0xff] %v7650_v0  ;;  %v7653_v32 = vld [vmem:[%s7412_s23 + $0x31] sm:$0xff]  ;;  %v812_v51 = vadd.f32 %v796_v12, %v759_v31  ;;  %v7656_v24 = vld [vmem:[%s7412_s23 + $0x49] sm:$0xff]  ;;  %v813_v38 = vadd.f32 %v797_v16, %v760_v27  ;;  %v814_v45 = vadd.f32 %v798_v39, %v761_v28  ;;  %v815_v6 = vadd.f32 %v799_v14, %v762_v2 }
  0xd8   : >> { %12086 = vst [vmem:[#allocation43_spill] sm:$0xff] %v7653_v32  ;;  %12087 = vst [vmem:[#allocation44_spill] sm:$0xff] %v7656_v24  ;;  %v7659_v3 = vld [vmem:[%s7412_s23 + $0x51] sm:$0xff]  ;;  %v7662_v42 = vld [vmem:[%s7412_s23 + $0x69] sm:$0xff]  ;;  %v816_v7 = vadd.f32 %v800_v21, %v763_v30  ;;  %v817_v31 = vadd.f32 %v801_v47, %v764_v61  ;;  %v818_v49 = vadd.f32 %v802_v52, %v765_v33 }
  0xd9   : >> { %12088 = vst [vmem:[#allocation45_spill] sm:$0xff] %v7659_v3  ;;  %12089 = vst [vmem:[#allocation46_spill] sm:$0xff] %v7662_v42  ;;  %v7665_v46 = vld [vmem:[%s7412_s23 + $0x71] sm:$0xff]  ;;  %v7668_v26 = vld [vmem:[%s7412_s23 + $0x89] sm:$0xff]  ;;  %v819_v43 = vadd.f32 %v803_v54, %v766_v34  ;;  %v841_v27 = vmul.f32 %v5298_v60, %v820_v59  ;;  %v842_v28 = vmul.f32 %v5298_v60, %v821_v13 }
  0xda   : >> { %12090 = vst [vmem:[#allocation47_spill] sm:$0xff] %v7665_v46  ;;  %12091 = vst [vmem:[#allocation48_spill] sm:$0xff] %v7668_v26  ;;  %v7671_v20 = vld [vmem:[%s7412_s23 + $0x91] sm:$0xff]  ;;  %v7674_v50 = vld [vmem:[%s7412_s23 + $0xa9] sm:$0xff]  ;;  %v843_v16 = vmul.f32 %v5298_v60, %v7650_v0  ;;  %v844_v47 = vmul.f32 %v5298_v60, %v7653_v32  ;;  %v845_v52 = vmul.f32 %v5298_v60, %v7656_v24 }
  0xdb   : >> { %12092 = vst [vmem:[#allocation49_spill] sm:$0xff] %v7671_v20  ;;  %12093 = vst [vmem:[#allocation50_spill] sm:$0xff] %v7674_v50  ;;  %v7677_v10 = vld [vmem:[%s7412_s23 + $0xb1] sm:$0xff]  ;;  %v7680_v11 = vld [vmem:[%s7412_s23 + $0xc9] sm:$0xff]  ;;  %v846_v54 = vmul.f32 %v5298_v60, %v7659_v3  ;;  %v847_v61 = vmul.f32 %v5298_v60, %v7662_v42  ;;  %v848_v59 = vmul.f32 %v5298_v60, %v7665_v46 }
  0xdc   : >> { %12094 = vst [vmem:[#allocation51_spill] sm:$0xff] %v7677_v10  ;;  %12095 = vst [vmem:[#allocation52_spill] sm:$0xff] %v7680_v11  ;;  %v7683_v12 = vld [vmem:[%s7412_s23 + $0xd1] sm:$0xff]  ;;  %v7686_v2 = vld [vmem:[%s7412_s23 + $0xe9] sm:$0xff]  ;;  %v849_v33 = vmul.f32 %v5298_v60, %v7668_v26  ;;  %v850_v34 = vmul.f32 %v5298_v60, %v7671_v20  ;;  %v851_v13 = vmul.f32 %v5298_v60, %v7674_v50 }
  0xdd   : >> { %12096 = vst [vmem:[#allocation53_spill] sm:$0xff] %v7683_v12  ;;  %12097 = vst [vmem:[#allocation54_spill] sm:$0xff] %v7686_v2  ;;  %v7689_v30 = vld [vmem:[%s7412_s23 + $0xf1] sm:$0xff]  ;;  %v852_v39 = vmul.f32 %v5298_v60, %v7677_v10  ;;  %v853_v14 = vmul.f32 %v5298_v60, %v7680_v11  ;;  %v854_v21 = vmul.f32 %v5298_v60, %v7683_v12  ;;  %v5299_v20 = vld [vmem:[%s11612_s1 + $0x4] ss:$0 sm:$0xff] }
  0xde   : >> { %12098 = vst [vmem:[#allocation55_spill] sm:$0xff] %v7689_v30  ;;  %v855_v3 = vmul.f32 %v5298_v60, %v7686_v2  ;;  %v856_v46 = vmul.f32 %v5298_v60, %v7689_v30  ;;  %v857_v42 = vadd.f32 %v841_v27, %v804_v53  ;;  %v873_v26 = vld [vmem:[%s7412_s23 + $0xa] sm:$0xff]  ;;  %v858_v50 = vadd.f32 %v842_v28, %v805_v35  ;;  %v874_v12 = vld [vmem:[%s7412_s23 + $0x12] sm:$0xff] }
  0xdf   : >> { %v859_v24 = vadd.f32 %v843_v16, %v806_v40  ;;  %v860_v10 = vadd.f32 %v844_v47, %v807_v41  ;;  %v861_v11 = vadd.f32 %v845_v52, %v808_v25  ;;  %v7711_v2 = vld [vmem:[%s7412_s23 + $0x2a] sm:$0xff]  ;;  %v7714_v32 = vld [vmem:[%s7412_s23 + $0x32] sm:$0xff]  ;;  %v862_v60 = vadd.f32 %v846_v54, %v809_v44 }
  0xe0   : >> { %12099 = vst [vmem:[#allocation56_spill] sm:$0xff] %v7711_v2  ;;  %12100 = vst [vmem:[#allocation57_spill] sm:$0xff] %v7714_v32  ;;  %v863_v53 = vadd.f32 %v847_v61, %v810_v36  ;;  %v864_v27 = vadd.f32 %v848_v59, %v811_v5  ;;  %v865_v30 = vadd.f32 %v849_v33, %v812_v51  ;;  %v7717_v0 = vld [vmem:[%s7412_s23 + $0x4a] sm:$0xff]  ;;  %v7720_v40 = vld [vmem:[%s7412_s23 + $0x52] sm:$0xff] }
  0xe1   : >> { %12101 = vst [vmem:[#allocation58_spill] sm:$0xff] %v7717_v0  ;;  %12102 = vst [vmem:[#allocation59_spill] sm:$0xff] %v7720_v40  ;;  %v7723_v25 = vld [vmem:[%s7412_s23 + $0x6a] sm:$0xff]  ;;  %v866_v35 = vadd.f32 %v850_v34, %v813_v38  ;;  %v867_v41 = vadd.f32 %v851_v13, %v814_v45  ;;  %v868_v28 = vadd.f32 %v852_v39, %v815_v6  ;;  %v7726_v44 = vld [vmem:[%s7412_s23 + $0x72] sm:$0xff] }
  0xe2   : >> { %12103 = vst [vmem:[#allocation60_spill] sm:$0xff] %v7723_v25  ;;  %v869_v16 = vadd.f32 %v853_v14, %v816_v7  ;;  %12104 = vst [vmem:[#allocation61_spill] sm:$0xff] %v7726_v44  ;;  %v7729_v36 = vld [vmem:[%s7412_s23 + $0x8a] sm:$0xff]  ;;  %v7732_v5 = vld [vmem:[%s7412_s23 + $0x92] sm:$0xff]  ;;  %v870_v51 = vadd.f32 %v854_v21, %v817_v31  ;;  %v871_v47 = vadd.f32 %v855_v3, %v818_v49 }
  0xe3   : >> { %12105 = vst [vmem:[#allocation62_spill] sm:$0xff] %v7729_v36  ;;  %12106 = vst [vmem:[#allocation63_spill] sm:$0xff] %v7732_v5  ;;  %v872_v52 = vadd.f32 %v856_v46, %v819_v43  ;;  %v7735_v54 = vld [vmem:[%s7412_s23 + $0xaa] sm:$0xff]  ;;  %v7738_v61 = vld [vmem:[%s7412_s23 + $0xb2] sm:$0xff]  ;;  %v894_v38 = vmul.f32 %v5299_v20, %v873_v26  ;;  %v895_v7 = vmul.f32 %v5299_v20, %v874_v12 }
  0xe4   : >> { %12107 = vst [vmem:[#allocation64_spill] sm:$0xff] %v7735_v54  ;;  %12108 = vst [vmem:[#allocation65_spill] sm:$0xff] %v7738_v61  ;;  %v7741_v59 = vld [vmem:[%s7412_s23 + $0xca] sm:$0xff]  ;;  %v7744_v33 = vld [vmem:[%s7412_s23 + $0xd2] sm:$0xff]  ;;  %v896_v34 = vmul.f32 %v5299_v20, %v7711_v2  ;;  %v897_v31 = vmul.f32 %v5299_v20, %v7714_v32  ;;  %v898_v3 = vmul.f32 %v5299_v20, %v7717_v0 }
  0xe5   : >> { %12109 = vst [vmem:[#allocation66_spill] sm:$0xff] %v7741_v59  ;;  %12110 = vst [vmem:[#allocation67_spill] sm:$0xff] %v7744_v33  ;;  %v7747_v45 = vld [vmem:[%s7412_s23 + $0xea] sm:$0xff]  ;;  %v7750_v6 = vld [vmem:[%s7412_s23 + $0xf2] sm:$0xff]  ;;  %v899_v46 = vmul.f32 %v5299_v20, %v7720_v40  ;;  %v900_v49 = vmul.f32 %v5299_v20, %v7723_v25  ;;  %v901_v43 = vmul.f32 %v5299_v20, %v7726_v44 }
  0xe6   : >> { %12111 = vst [vmem:[#allocation68_spill] sm:$0xff] %v7747_v45  ;;  %12112 = vst [vmem:[#allocation69_spill] sm:$0xff] %v7750_v6  ;;  %v902_v26 = vmul.f32 %v5299_v20, %v7729_v36  ;;  %v903_v13 = vmul.f32 %v5299_v20, %v7732_v5  ;;  %v904_v39 = vmul.f32 %v5299_v20, %v7735_v54  ;;  %v7770_v29 = vld [vmem:[%s7412_s23 + $0x10e] sm:$0xff] }
  0xe7   : >> { %v905_v12 = vmul.f32 %v5299_v20, %v7738_v61  ;;  %v906_v14 = vmul.f32 %v5299_v20, %v7741_v59  ;;  %v907_v21 = vmul.f32 %v5299_v20, %v7744_v33  ;;  %v908_v0 = vmul.f32 %v5299_v20, %v7747_v45  ;;  %v7767_v33 = vld [vmem:[%s7412_s23 + $0x106] sm:$0xff] }
  0xe8   : >> { %v909_v25 = vmul.f32 %v5299_v20, %v7750_v6  ;;  %v910_v40 = vadd.f32 %v894_v38, %v857_v42  ;;  %v911_v44 = vadd.f32 %v895_v7, %v858_v50  ;;  %v912_v32 = vadd.f32 %v896_v34, %v859_v24 }
  0xe9   : >> { %v913_v36 = vadd.f32 %v897_v31, %v860_v10  ;;  %v914_v2 = vadd.f32 %v898_v3, %v861_v11  ;;  %v915_v5 = vadd.f32 %v899_v46, %v862_v60  ;;  %v916_v23 = vadd.f32 %v900_v49, %v863_v53  ;;  %v12120_v3 = vld [vmem:[#allocation16_spill] sm:$0xff] }
  0xea   : >> { %v917_v54 = vadd.f32 %v901_v43, %v864_v27  ;;  %v918_v19 = vadd.f32 %v902_v26, %v865_v30  ;;  %v919_v61 = vadd.f32 %v903_v13, %v866_v35  ;;  %v920_v18 = vadd.f32 %v904_v39, %v867_v41  ;;  %v12125_v43 = vld [vmem:[#allocation22_spill] sm:$0xff]  ;;  %v12126_v13 = vld [vmem:[#allocation23_spill] sm:$0xff] }
  0xeb   : >> { %v921_v59 = vadd.f32 %v905_v12, %v868_v28  ;;  %v922_v17 = vadd.f32 %v906_v14, %v869_v16  ;;  %v923_v45 = vadd.f32 %v907_v21, %v870_v51  ;;  %v924_v22 = vadd.f32 %v908_v0, %v871_v47  ;;  %v12113_v16 = vld [vmem:[#allocation15_spill] sm:$0xff]  ;;  %v12127_v12 = vld [vmem:[#allocation24_spill] sm:$0xff]  ;;  %v12128_v21 = vld [vmem:[#allocation25_spill] sm:$0xff] }
  0xec   : >> { %v925_v20 = vadd.f32 %v909_v25, %v872_v52  ;;  %v957_v24 = vmul.f32 %v7410_v37, %v7455_v56  ;;  %v958_v42 = vmul.f32 %v7410_v37, %v7458_v57  ;;  %v959_v50 = vmul.f32 %v7410_v37, %v7461_v58  ;;  %v12114_v47 = vld [vmem:[#allocation19_spill] sm:$0xff] }
  0xed   : >> { %v960_v10 = vmul.f32 %v7410_v37, %v7471_v63  ;;  %v961_v11 = vmul.f32 %v7410_v37, %v7474_v1  ;;  %v962_v30 = vmul.f32 %v7410_v37, %v7477_v4  ;;  %v963_v0 = vmul.f32 %v7410_v37, %v7487_v9 }
  0xee   : >> { %v964_v60 = vmul.f32 %v7410_v37, %v7767_v33  ;;  %v965_v53 = vmul.f32 %v7410_v37, %v7770_v29  ;;  %v966_v27 = vadd.f32 %v7432_v48, %v910_v40  ;;  %v967_v25 = vadd.f32 %v7452_v55, %v911_v44  ;;  %v5335_v37 = vld [vmem:[%s11612_s1 + $0x6] ss:$0 sm:$0xff] }
  0xef   : >> { %v968_v35 = vadd.f32 %v7468_v62, %v912_v32  ;;  %v969_v41 = vadd.f32 %v7484_v8, %v913_v36  ;;  %v970_v28 = vadd.f32 %v7496_v15, %v914_v2  ;;  %v971_v51 = vadd.f32 %v12113_v16, %v915_v5  ;;  %v7801_v8 = vld [vmem:[%s7412_s23 + $0x107] sm:$0xff]  ;;  %v7804_v15 = vld [vmem:[%s7412_s23 + $0x10f] sm:$0xff] }
  0xf0   : >> { %v972_v52 = vadd.f32 %v12114_v47, %v916_v23  ;;  %v973_v38 = vadd.f32 %v957_v24, %v917_v54  ;;  %v974_v48 = vadd.f32 %v958_v42, %v918_v19  ;;  %v975_v40 = vadd.f32 %v959_v50, %v919_v61  ;;  %12115 = vst [vmem:[#allocation15_spill] sm:$0xff] %v7801_v8  ;;  %v12117_v2 = vld [vmem:[#allocation12_spill] sm:$0xff]  ;;  %v12118_v23 = vld [vmem:[#allocation13_spill] sm:$0xff]  ;;  %v12119_v54 = vld [vmem:[#allocation14_spill] sm:$0xff] }
  0xf1   : >> { %v976_v55 = vadd.f32 %v960_v10, %v920_v18  ;;  %v977_v44 = vadd.f32 %v961_v11, %v921_v59  ;;  %v978_v7 = vadd.f32 %v962_v30, %v922_v17  ;;  %v979_v62 = vadd.f32 %v963_v0, %v923_v45  ;;  %12116 = vst [vmem:[#allocation19_spill] sm:$0xff] %v7804_v15  ;;  %v12121_v19 = vld [vmem:[#allocation17_spill] sm:$0xff]  ;;  %v12122_v18 = vld [vmem:[#allocation18_spill] sm:$0xff]  ;;  %v12123_v17 = vld [vmem:[#allocation20_spill] sm:$0xff] }
  0xf2   : >> { %v980_v32 = vadd.f32 %v964_v60, %v924_v22  ;;  %v981_v34 = vadd.f32 %v965_v53, %v925_v20  ;;  %v1003_v36 = vmul.f32 %v5335_v37, %v12117_v2  ;;  %v1004_v5 = vmul.f32 %v5335_v37, %v12118_v23  ;;  %v12124_v22 = vld [vmem:[#allocation21_spill] sm:$0xff]  ;;  %v12129_v24 = vld [vmem:[#allocation26_spill] sm:$0xff]  ;;  %v12130_v50 = vld [vmem:[#allocation27_spill] sm:$0xff] }
  0xf3   : >> { %v1005_v31 = vmul.f32 %v5335_v37, %v12119_v54  ;;  %v1006_v46 = vmul.f32 %v5335_v37, %v12120_v3  ;;  %v1007_v61 = vmul.f32 %v5335_v37, %v12121_v19  ;;  %v1008_v59 = vmul.f32 %v5335_v37, %v12122_v18 }
  0xf4   : >> { %v1009_v45 = vmul.f32 %v5335_v37, %v12123_v17  ;;  %v1010_v49 = vmul.f32 %v5335_v37, %v12124_v22  ;;  %v1011_v26 = vmul.f32 %v5335_v37, %v12125_v43  ;;  %v1012_v39 = vmul.f32 %v5335_v37, %v12126_v13 }
  0xf5   : >> { %v1013_v14 = vmul.f32 %v5335_v37, %v12127_v12  ;;  %v1014_v20 = vmul.f32 %v5335_v37, %v12128_v21  ;;  %v1015_v42 = vmul.f32 %v5335_v37, %v12129_v24  ;;  %v1016_v10 = vmul.f32 %v5335_v37, %v12130_v50  ;;  %v5352_v24 = vld [vmem:[%s11612_s1 + $0x7] ss:$0 sm:$0xff] }
  0xf6   : >> { %v1017_v11 = vmul.f32 %v5335_v37, %v7801_v8  ;;  %v1018_v30 = vmul.f32 %v5335_v37, %v7804_v15  ;;  %v1019_v0 = vadd.f32 %v1003_v36, %v966_v27  ;;  %v1020_v60 = vadd.f32 %v1004_v5, %v967_v25  ;;  %v7826_v36 = vld [vmem:[%s7412_s23 + $0x108] sm:$0xff] }
  0xf7   : >> { %v1021_v53 = vadd.f32 %v1005_v31, %v968_v35  ;;  %v1022_v16 = vadd.f32 %v1006_v46, %v969_v41  ;;  %v1023_v47 = vadd.f32 %v1007_v61, %v970_v28  ;;  %v1024_v2 = vadd.f32 %v1008_v59, %v971_v51  ;;  %12131 = vst [vmem:[#allocation12_spill] sm:$0xff] %v7826_v36  ;;  %v7829_v35 = vld [vmem:[%s7412_s23 + $0x110] sm:$0xff]  ;;  %v12133_v41 = vld [vmem:[#allocation28_spill] sm:$0xff]  ;;  %v12134_v51 = vld [vmem:[#allocation29_spill] sm:$0xff] }
  0xf8   : >> { %v1025_v23 = vadd.f32 %v1009_v45, %v972_v52  ;;  %v1026_v12 = vadd.f32 %v1010_v49, %v973_v38  ;;  %v1027_v21 = vadd.f32 %v1011_v26, %v974_v48  ;;  %v1028_v50 = vadd.f32 %v1012_v39, %v975_v40  ;;  %12132 = vst [vmem:[#allocation13_spill] sm:$0xff] %v7829_v35  ;;  %v12135_v38 = vld [vmem:[#allocation30_spill] sm:$0xff]  ;;  %v12136_v31 = vld [vmem:[#allocation31_spill] sm:$0xff]  ;;  %v12137_v48 = vld [vmem:[#allocation32_spill] sm:$0xff] }
  0xf9   : >> { %v1029_v13 = vadd.f32 %v1013_v14, %v976_v55  ;;  %v1030_v8 = vadd.f32 %v1014_v20, %v977_v44  ;;  %v1031_v43 = vadd.f32 %v1015_v42, %v978_v7  ;;  %v1032_v37 = vadd.f32 %v1016_v10, %v979_v62  ;;  %v12138_v55 = vld [vmem:[#allocation33_spill] sm:$0xff]  ;;  %v12139_v7 = vld [vmem:[#allocation34_spill] sm:$0xff]  ;;  %v12141_v61 = vld [vmem:[#allocation36_spill] sm:$0xff] }
  0xfa   : >> { %v1033_v27 = vadd.f32 %v1017_v11, %v980_v32  ;;  %v1034_v25 = vadd.f32 %v1018_v30, %v981_v34  ;;  %v1056_v28 = vmul.f32 %v5352_v24, %v12133_v41  ;;  %v1057_v52 = vmul.f32 %v5352_v24, %v12134_v51  ;;  %v12140_v32 = vld [vmem:[#allocation35_spill] sm:$0xff]  ;;  %v12142_v45 = vld [vmem:[#allocation37_spill] sm:$0xff]  ;;  %v12143_v26 = vld [vmem:[#allocation38_spill] sm:$0xff] }
  0xfb   : >> { %v1058_v5 = vmul.f32 %v5352_v24, %v12135_v38  ;;  %v1059_v46 = vmul.f32 %v5352_v24, %v12136_v31  ;;  %v1060_v40 = vmul.f32 %v5352_v24, %v12137_v48  ;;  %v1061_v44 = vmul.f32 %v5352_v24, %v12138_v55  ;;  %v12144_v14 = vld [vmem:[#allocation39_spill] sm:$0xff]  ;;  %v12145_v42 = vld [vmem:[#allocation40_spill] sm:$0xff]  ;;  %v12146_v11 = vld [vmem:[#allocation41_spill] sm:$0xff] }
  0xfc   : >> { %v1062_v62 = vmul.f32 %v5352_v24, %v12139_v7  ;;  %v1063_v34 = vmul.f32 %v5352_v24, %v12140_v32  ;;  %v1064_v59 = vmul.f32 %v5352_v24, %v12141_v61  ;;  %v1065_v49 = vmul.f32 %v5352_v24, %v12142_v45 }
  0xfd   : >> { %v1066_v39 = vmul.f32 %v5352_v24, %v12143_v26  ;;  %v1067_v20 = vmul.f32 %v5352_v24, %v12144_v14  ;;  %v1068_v10 = vmul.f32 %v5352_v24, %v12145_v42  ;;  %v1069_v30 = vmul.f32 %v5352_v24, %v12146_v11  ;;  %v5369_v42 = vld [vmem:[%s11612_s1 + $0x8] ss:$0 sm:$0xff] }
  0xfe   : >> { %v1070_v41 = vmul.f32 %v5352_v24, %v7826_v36  ;;  %v1071_v51 = vmul.f32 %v5352_v24, %v7829_v35  ;;  %v1072_v55 = vadd.f32 %v1056_v28, %v1019_v0  ;;  %v1073_v7 = vadd.f32 %v1057_v52, %v1020_v60  ;;  %v7851_v28 = vld [vmem:[%s7412_s23 + $0x109] sm:$0xff] }
  0xff   : >> { %v1074_v32 = vadd.f32 %v1058_v5, %v1021_v53  ;;  %v1075_v61 = vadd.f32 %v1059_v46, %v1022_v16  ;;  %v1076_v48 = vadd.f32 %v1060_v40, %v1023_v47  ;;  %v1077_v45 = vadd.f32 %v1061_v44, %v1024_v2  ;;  %12147 = vst [vmem:[#allocation14_spill] sm:$0xff] %v7851_v28  ;;  %v7854_v53 = vld [vmem:[%s7412_s23 + $0x111] sm:$0xff]  ;;  %v12151_v5 = vld [vmem:[#allocation45_spill] sm:$0xff] }
 0x100   : >> { %v1078_v31 = vadd.f32 %v1062_v62, %v1025_v23  ;;  %v1079_v26 = vadd.f32 %v1063_v34, %v1026_v12  ;;  %v1080_v14 = vadd.f32 %v1064_v59, %v1027_v21  ;;  %v1081_v11 = vadd.f32 %v1065_v49, %v1028_v50  ;;  %v12148_v16 = vld [vmem:[#allocation42_spill] sm:$0xff]  ;;  %v12149_v2 = vld [vmem:[#allocation43_spill] sm:$0xff]  ;;  %v12150_v23 = vld [vmem:[#allocation44_spill] sm:$0xff] }
 0x101   : >> { %v1082_v38 = vadd.f32 %v1066_v39, %v1029_v13  ;;  %v1083_v36 = vadd.f32 %v1067_v20, %v1030_v8  ;;  %v1084_v15 = vadd.f32 %v1068_v10, %v1031_v43  ;;  %v1085_v24 = vadd.f32 %v1069_v30, %v1032_v37  ;;  %v12152_v21 = vld [vmem:[#allocation46_spill] sm:$0xff]  ;;  %v12153_v13 = vld [vmem:[#allocation47_spill] sm:$0xff]  ;;  %v12154_v43 = vld [vmem:[#allocation48_spill] sm:$0xff] }
 0x102   : >> { %v1086_v0 = vadd.f32 %v1070_v41, %v1033_v27  ;;  %v1087_v60 = vadd.f32 %v1071_v51, %v1034_v25  ;;  %v1109_v47 = vmul.f32 %v5369_v42, %v12148_v16  ;;  %v1110_v12 = vmul.f32 %v5369_v42, %v12149_v2  ;;  %v12155_v27 = vld [vmem:[#allocation49_spill] sm:$0xff]  ;;  %v12156_v40 = vld [vmem:[#allocation50_spill] sm:$0xff]  ;;  %v12157_v62 = vld [vmem:[#allocation51_spill] sm:$0xff] }
 0x103   : >> { %v1111_v52 = vmul.f32 %v5369_v42, %v12150_v23  ;;  %v1112_v46 = vmul.f32 %v5369_v42, %v12151_v5  ;;  %v1113_v50 = vmul.f32 %v5369_v42, %v12152_v21  ;;  %v1114_v8 = vmul.f32 %v5369_v42, %v12153_v13  ;;  %v12158_v59 = vld [vmem:[#allocation52_spill] sm:$0xff]  ;;  %v12159_v39 = vld [vmem:[#allocation53_spill] sm:$0xff]  ;;  %v12160_v10 = vld [vmem:[#allocation54_spill] sm:$0xff] }
 0x104   : >> { %v1115_v37 = vmul.f32 %v5369_v42, %v12154_v43  ;;  %v1116_v25 = vmul.f32 %v5369_v42, %v12155_v27  ;;  %v1117_v44 = vmul.f32 %v5369_v42, %v12156_v40  ;;  %v1118_v34 = vmul.f32 %v5369_v42, %v12157_v62  ;;  %v12161_v41 = vld [vmem:[#allocation55_spill] sm:$0xff] }
 0x105   : >> { %v1119_v49 = vmul.f32 %v5369_v42, %v12158_v59  ;;  %v1120_v20 = vmul.f32 %v5369_v42, %v12159_v39  ;;  %v1121_v30 = vmul.f32 %v5369_v42, %v12160_v10  ;;  %v1122_v51 = vmul.f32 %v5369_v42, %v12161_v41  ;;  %v5386_v10 = vld [vmem:[%s11612_s1 + $0x9] ss:$0 sm:$0xff] }
 0x106   : >> { %v1123_v16 = vmul.f32 %v5369_v42, %v7851_v28  ;;  %v1124_v2 = vmul.f32 %v5369_v42, %v7854_v53  ;;  %v1125_v13 = vadd.f32 %v1109_v47, %v1072_v55  ;;  %v1126_v43 = vadd.f32 %v1110_v12, %v1073_v7  ;;  %v7876_v47 = vld [vmem:[%s7412_s23 + $0x10a] sm:$0xff] }
 0x107   : >> { %v1127_v27 = vadd.f32 %v1111_v52, %v1074_v32  ;;  %v1128_v40 = vadd.f32 %v1112_v46, %v1075_v61  ;;  %v1129_v21 = vadd.f32 %v1113_v50, %v1076_v48  ;;  %v1130_v62 = vadd.f32 %v1114_v8, %v1077_v45  ;;  %12162 = vst [vmem:[#allocation16_spill] sm:$0xff] %v7876_v47  ;;  %v7879_v32 = vld [vmem:[%s7412_s23 + $0x112] sm:$0xff]  ;;  %v12163_v48 = vld [vmem:[#allocation56_spill] sm:$0xff] }
 0x108   : >> { %v1131_v5 = vadd.f32 %v1115_v37, %v1078_v31  ;;  %v1132_v59 = vadd.f32 %v1116_v25, %v1079_v26  ;;  %v1133_v39 = vadd.f32 %v1117_v44, %v1080_v14  ;;  %v1134_v41 = vadd.f32 %v1118_v34, %v1081_v11  ;;  %v12164_v31 = vld [vmem:[#allocation57_spill] sm:$0xff]  ;;  %v12165_v26 = vld [vmem:[#allocation58_spill] sm:$0xff]  ;;  %v12166_v52 = vld [vmem:[#allocation59_spill] sm:$0xff] }
 0x109   : >> { %v1135_v23 = vadd.f32 %v1119_v49, %v1082_v38  ;;  %v1136_v28 = vadd.f32 %v1120_v20, %v1083_v36  ;;  %v1137_v35 = vadd.f32 %v1121_v30, %v1084_v15  ;;  %v1138_v42 = vadd.f32 %v1122_v51, %v1085_v24  ;;  %v12167_v14 = vld [vmem:[#allocation60_spill] sm:$0xff]  ;;  %v12168_v38 = vld [vmem:[#allocation61_spill] sm:$0xff]  ;;  %v12169_v15 = vld [vmem:[#allocation62_spill] sm:$0xff] }
 0x10a   : >> { %v1139_v55 = vadd.f32 %v1123_v16, %v1086_v0  ;;  %v1140_v7 = vadd.f32 %v1124_v2, %v1087_v60  ;;  %v1162_v61 = vmul.f32 %v5386_v10, %v12163_v48  ;;  %v1163_v45 = vmul.f32 %v5386_v10, %v12164_v31  ;;  %v12170_v0 = vld [vmem:[#allocation63_spill] sm:$0xff]  ;;  %v12171_v50 = vld [vmem:[#allocation64_spill] sm:$0xff]  ;;  %v12172_v37 = vld [vmem:[#allocation65_spill] sm:$0xff] }
 0x10b   : >> { %v1164_v12 = vmul.f32 %v5386_v10, %v12165_v26  ;;  %v1165_v46 = vmul.f32 %v5386_v10, %v12166_v52  ;;  %v1166_v11 = vmul.f32 %v5386_v10, %v12167_v14  ;;  %v1167_v36 = vmul.f32 %v5386_v10, %v12168_v38  ;;  %v12173_v44 = vld [vmem:[#allocation66_spill] sm:$0xff]  ;;  %v12174_v49 = vld [vmem:[#allocation67_spill] sm:$0xff]  ;;  %v12175_v30 = vld [vmem:[#allocation68_spill] sm:$0xff] }
 0x10c   : >> { %v1168_v24 = vmul.f32 %v5386_v10, %v12169_v15  ;;  %v1169_v60 = vmul.f32 %v5386_v10, %v12170_v0  ;;  %v1170_v8 = vmul.f32 %v5386_v10, %v12171_v50  ;;  %v1171_v25 = vmul.f32 %v5386_v10, %v12172_v37 }
 0x10d   : >> { %v1172_v34 = vmul.f32 %v5386_v10, %v12173_v44  ;;  %v1173_v20 = vmul.f32 %v5386_v10, %v12174_v49  ;;  %v1174_v51 = vmul.f32 %v5386_v10, %v12175_v30  ;;  %v1175_v16 = vmul.f32 %v5386_v10, %v7750_v6  ;;  %v5405_v30 = vld [vmem:[%s11612_s1 + $0xa] ss:$0 sm:$0xff] }
 0x10e   : >> { %v1176_v2 = vmul.f32 %v5386_v10, %v7876_v47  ;;  %v1177_v48 = vmul.f32 %v5386_v10, %v7879_v32  ;;  %v1178_v31 = vadd.f32 %v1162_v61, %v1125_v13  ;;  %v1179_v15 = vadd.f32 %v1163_v45, %v1126_v43  ;;  %v7901_v61 = vld [vmem:[%s7412_s23 + $0x126] sm:$0xff] }
 0x10f   : >> { %v1180_v0 = vadd.f32 %v1164_v12, %v1127_v27  ;;  %v1181_v50 = vadd.f32 %v1165_v46, %v1128_v40  ;;  %v1182_v38 = vadd.f32 %v1166_v11, %v1129_v21  ;;  %v1183_v37 = vadd.f32 %v1167_v36, %v1130_v62  ;;  %12176 = vst [vmem:[#allocation17_spill] sm:$0xff] %v7901_v61  ;;  %v7904_v27 = vld [vmem:[%s7412_s23 + $0x12e] sm:$0xff]  ;;  %v12178_v21 = vld [vmem:[#allocation7_spill] sm:$0xff] }
 0x110   : >> { %v1184_v14 = vadd.f32 %v1168_v24, %v1131_v5  ;;  %v1185_v44 = vadd.f32 %v1169_v60, %v1132_v59  ;;  %v1186_v49 = vadd.f32 %v1170_v8, %v1133_v39  ;;  %v1187_v6 = vadd.f32 %v1171_v25, %v1134_v41  ;;  %12177 = vst [vmem:[#allocation18_spill] sm:$0xff] %v7904_v27  ;;  %v12179_v5 = vld [vmem:[#allocation8_spill] sm:$0xff]  ;;  %v12180_v59 = vld [vmem:[#allocation9_spill] sm:$0xff]  ;;  %v12181_v12 = vld [vmem:[#allocation10_spill] sm:$0xff] }
 0x111   : >> { %v1188_v52 = vadd.f32 %v1172_v34, %v1135_v23  ;;  %v1189_v47 = vadd.f32 %v1173_v20, %v1136_v28  ;;  %v1190_v26 = vadd.f32 %v1174_v51, %v1137_v35  ;;  %v1191_v10 = vadd.f32 %v1175_v16, %v1138_v42  ;;  %v12182_v39 = vld [vmem:[#allocation11_spill] sm:$0xff] }
 0x112   : >> { %v1192_v13 = vadd.f32 %v1176_v2, %v1139_v55  ;;  %v1193_v43 = vadd.f32 %v1177_v48, %v1140_v7  ;;  %v1218_v40 = vmul.f32 %v5405_v30, %v12178_v21  ;;  %v1219_v62 = vmul.f32 %v5405_v30, %v12179_v5  ;;  %v7926_v21 = vld [vmem:[%s7412_s23 + $0x127] sm:$0xff]  ;;  %v12189_v5 = vld [vmem:[#allocation26_spill] sm:$0xff] }
 0x113   : >> { %v1220_v45 = vmul.f32 %v5405_v30, %v12180_v59  ;;  %v1221_v46 = vmul.f32 %v5405_v30, %v12181_v12  ;;  %v1222_v41 = vmul.f32 %v5405_v30, %v12182_v39  ;;  %v1223_v28 = vmul.f32 %v5405_v30, %v7455_v56  ;;  %12183 = vst [vmem:[#allocation20_spill] sm:$0xff] %v7926_v21  ;;  %v12191_v59 = vld [vmem:[#allocation15_spill] sm:$0xff] }
 0x114   : >> { %v1224_v35 = vmul.f32 %v5405_v30, %v7458_v57  ;;  %v1225_v23 = vmul.f32 %v5405_v30, %v7461_v58  ;;  %v1226_v42 = vmul.f32 %v5405_v30, %v7471_v63  ;;  %v1227_v55 = vmul.f32 %v5405_v30, %v7474_v1 }
 0x115   : >> { %v1228_v7 = vmul.f32 %v5405_v30, %v7477_v4  ;;  %v1229_v11 = vmul.f32 %v5405_v30, %v7487_v9  ;;  %v1230_v36 = vmul.f32 %v5405_v30, %v7767_v33  ;;  %v1231_v24 = vmul.f32 %v5405_v30, %v7770_v29  ;;  %v5422_v9 = vld [vmem:[%s11612_s1 + $0xb] ss:$0 sm:$0xff] }
 0x116   : >> { %v1232_v60 = vmul.f32 %v5405_v30, %v7901_v61  ;;  %v1233_v56 = vmul.f32 %v5405_v30, %v7904_v27  ;;  %v1234_v8 = vadd.f32 %v1218_v40, %v1178_v31  ;;  %v1235_v57 = vadd.f32 %v1219_v62, %v1179_v15  ;;  %v12190_v62 = vld [vmem:[#allocation27_spill] sm:$0xff] }
 0x117   : >> { %v1236_v58 = vadd.f32 %v1220_v45, %v1180_v0  ;;  %v1237_v63 = vadd.f32 %v1221_v46, %v1181_v50  ;;  %v1238_v25 = vadd.f32 %v1222_v41, %v1182_v38  ;;  %v1239_v1 = vadd.f32 %v1223_v28, %v1183_v37  ;;  %v7929_v0 = vld [vmem:[%s7412_s23 + $0x12f] sm:$0xff]  ;;  %v12192_v45 = vld [vmem:[#allocation19_spill] sm:$0xff] }
 0x118   : >> { %v1240_v34 = vadd.f32 %v1224_v35, %v1184_v14  ;;  %v1241_v4 = vadd.f32 %v1225_v23, %v1185_v44  ;;  %v1242_v20 = vadd.f32 %v1226_v42, %v1186_v49  ;;  %v1243_v51 = vadd.f32 %v1227_v55, %v1187_v6  ;;  %12184 = vst [vmem:[#allocation21_spill] sm:$0xff] %v7929_v0  ;;  %v12186_v44 = vld [vmem:[#allocation23_spill] sm:$0xff]  ;;  %v5439_v55 = vld [vmem:[%s11612_s1 + $0xc] ss:$0 sm:$0xff] }
 0x119   : >> { %v1244_v16 = vadd.f32 %v1228_v7, %v1188_v52  ;;  %v1245_v2 = vadd.f32 %v1229_v11, %v1189_v47  ;;  %v1246_v48 = vadd.f32 %v1230_v36, %v1190_v26  ;;  %v1247_v30 = vadd.f32 %v1231_v24, %v1191_v10  ;;  %v12185_v26 = vld [vmem:[#allocation22_spill] sm:$0xff]  ;;  %v12187_v10 = vld [vmem:[#allocation24_spill] sm:$0xff] }
 0x11a   : >> { %v1248_v31 = vadd.f32 %v1232_v60, %v1192_v13  ;;  %v1249_v15 = vadd.f32 %v1233_v56, %v1193_v43  ;;  %v1271_v38 = vmul.f32 %v5422_v9, %v12119_v54  ;;  %v1272_v14 = vmul.f32 %v5422_v9, %v12120_v3  ;;  %v12188_v43 = vld [vmem:[#allocation25_spill] sm:$0xff] }
 0x11b   : >> { %v1273_v50 = vmul.f32 %v5422_v9, %v12121_v19  ;;  %v1274_v37 = vmul.f32 %v5422_v9, %v12122_v18  ;;  %v1275_v6 = vmul.f32 %v5422_v9, %v12123_v17  ;;  %v1276_v47 = vmul.f32 %v5422_v9, %v12124_v22 }
 0x11c   : >> { %v1277_v52 = vmul.f32 %v5422_v9, %v12185_v26  ;;  %v1278_v49 = vmul.f32 %v5422_v9, %v12186_v44  ;;  %v1279_v13 = vmul.f32 %v5422_v9, %v12187_v10  ;;  %v1280_v40 = vmul.f32 %v5422_v9, %v12188_v43 }
 0x11d   : >> { %v1281_v54 = vmul.f32 %v5422_v9, %v12189_v5  ;;  %v1282_v3 = vmul.f32 %v5422_v9, %v12190_v62  ;;  %v1283_v19 = vmul.f32 %v5422_v9, %v12191_v59  ;;  %v1284_v18 = vmul.f32 %v5422_v9, %v12192_v45 }
 0x11e   : >> { %v1285_v17 = vmul.f32 %v5422_v9, %v7926_v21  ;;  %v1286_v22 = vmul.f32 %v5422_v9, %v7929_v0  ;;  %v1287_v12 = vadd.f32 %v1271_v38, %v1234_v8  ;;  %v1288_v46 = vadd.f32 %v1272_v14, %v1235_v57  ;;  %v7951_v9 = vld [vmem:[%s7412_s23 + $0x128] sm:$0xff] }
 0x11f   : >> { %v1289_v39 = vadd.f32 %v1273_v50, %v1236_v58  ;;  %v1290_v41 = vadd.f32 %v1274_v37, %v1237_v63  ;;  %v1291_v28 = vadd.f32 %v1275_v6, %v1238_v25  ;;  %v1292_v35 = vadd.f32 %v1276_v47, %v1239_v1  ;;  %12193 = vst [vmem:[#allocation28_spill] sm:$0xff] %v7951_v9  ;;  %v7954_v58 = vld [vmem:[%s7412_s23 + $0x130] sm:$0xff]  ;;  %v12196_v1 = vld [vmem:[#allocation31_spill] sm:$0xff]  ;;  %v12198_v14 = vld [vmem:[#allocation33_spill] sm:$0xff] }
 0x120   : >> { %v1293_v23 = vadd.f32 %v1277_v52, %v1240_v34  ;;  %v1294_v42 = vadd.f32 %v1278_v49, %v1241_v4  ;;  %v1295_v7 = vadd.f32 %v1279_v13, %v1242_v20  ;;  %v1296_v11 = vadd.f32 %v1280_v40, %v1243_v51  ;;  %12194 = vst [vmem:[#allocation29_spill] sm:$0xff] %v7954_v58  ;;  %v12195_v63 = vld [vmem:[#allocation30_spill] sm:$0xff]  ;;  %v12197_v4 = vld [vmem:[#allocation32_spill] sm:$0xff]  ;;  %v12204_v47 = vld [vmem:[#allocation39_spill] sm:$0xff] }
 0x121   : >> { %v1297_v36 = vadd.f32 %v1281_v54, %v1244_v16  ;;  %v1298_v24 = vadd.f32 %v1282_v3, %v1245_v2  ;;  %v1299_v60 = vadd.f32 %v1283_v19, %v1246_v48  ;;  %v1300_v56 = vadd.f32 %v1284_v18, %v1247_v30  ;;  %v12199_v20 = vld [vmem:[#allocation34_spill] sm:$0xff]  ;;  %v12200_v16 = vld [vmem:[#allocation35_spill] sm:$0xff]  ;;  %v12201_v48 = vld [vmem:[#allocation36_spill] sm:$0xff] }
 0x122   : >> { %v1301_v8 = vadd.f32 %v1285_v17, %v1248_v31  ;;  %v1302_v57 = vadd.f32 %v1286_v22, %v1249_v15  ;;  %v1324_v25 = vmul.f32 %v5439_v55, %v12195_v63  ;;  %v1325_v34 = vmul.f32 %v5439_v55, %v12196_v1  ;;  %v12202_v31 = vld [vmem:[#allocation37_spill] sm:$0xff]  ;;  %v12203_v37 = vld [vmem:[#allocation38_spill] sm:$0xff]  ;;  %v12205_v52 = vld [vmem:[#allocation40_spill] sm:$0xff] }
 0x123   : >> { %v1326_v38 = vmul.f32 %v5439_v55, %v12197_v4  ;;  %v1327_v50 = vmul.f32 %v5439_v55, %v12198_v14  ;;  %v1328_v51 = vmul.f32 %v5439_v55, %v12199_v20  ;;  %v1329_v2 = vmul.f32 %v5439_v55, %v12200_v16  ;;  %v12206_v49 = vld [vmem:[#allocation41_spill] sm:$0xff]  ;;  %v12207_v13 = vld [vmem:[#allocation12_spill] sm:$0xff] }
 0x124   : >> { %v1330_v30 = vmul.f32 %v5439_v55, %v12201_v48  ;;  %v1331_v15 = vmul.f32 %v5439_v55, %v12202_v31  ;;  %v1332_v6 = vmul.f32 %v5439_v55, %v12203_v37  ;;  %v1333_v26 = vmul.f32 %v5439_v55, %v12204_v47  ;;  %v12208_v40 = vld [vmem:[#allocation13_spill] sm:$0xff] }
 0x125   : >> { %v1334_v44 = vmul.f32 %v5439_v55, %v12205_v52  ;;  %v1335_v10 = vmul.f32 %v5439_v55, %v12206_v49  ;;  %v1336_v43 = vmul.f32 %v5439_v55, %v12207_v13  ;;  %v1337_v5 = vmul.f32 %v5439_v55, %v12208_v40  ;;  %v5456_v14 = vld [vmem:[%s11612_s1 + $0xd] ss:$0 sm:$0xff] }
 0x126   : >> { %v1338_v54 = vmul.f32 %v5439_v55, %v7951_v9  ;;  %v1339_v62 = vmul.f32 %v5439_v55, %v7954_v58  ;;  %v1340_v3 = vadd.f32 %v1324_v25, %v1287_v12  ;;  %v1341_v19 = vadd.f32 %v1325_v34, %v1288_v46  ;;  %v7976_v25 = vld [vmem:[%s7412_s23 + $0x129] sm:$0xff] }
 0x127   : >> { %v1342_v18 = vadd.f32 %v1326_v38, %v1289_v39  ;;  %v1343_v17 = vadd.f32 %v1327_v50, %v1290_v41  ;;  %v1344_v22 = vadd.f32 %v1328_v51, %v1291_v28  ;;  %v1345_v63 = vadd.f32 %v1329_v2, %v1292_v35  ;;  %12209 = vst [vmem:[#allocation42_spill] sm:$0xff] %v7976_v25  ;;  %v7979_v39 = vld [vmem:[%s7412_s23 + $0x131] sm:$0xff]  ;;  %v12211_v41 = vld [vmem:[#allocation44_spill] sm:$0xff]  ;;  %v12212_v35 = vld [vmem:[#allocation45_spill] sm:$0xff] }
 0x128   : >> { %v1346_v1 = vadd.f32 %v1330_v30, %v1293_v23  ;;  %v1347_v4 = vadd.f32 %v1331_v15, %v1294_v42  ;;  %v1348_v20 = vadd.f32 %v1332_v6, %v1295_v7  ;;  %v1349_v16 = vadd.f32 %v1333_v26, %v1296_v11  ;;  %12210 = vst [vmem:[#allocation43_spill] sm:$0xff] %v7979_v39  ;;  %v12213_v42 = vld [vmem:[#allocation46_spill] sm:$0xff]  ;;  %v12214_v38 = vld [vmem:[#allocation47_spill] sm:$0xff]  ;;  %v12215_v7 = vld [vmem:[#allocation48_spill] sm:$0xff] }
 0x129   : >> { %v1350_v48 = vadd.f32 %v1334_v44, %v1297_v36  ;;  %v1351_v31 = vadd.f32 %v1335_v10, %v1298_v24  ;;  %v1352_v37 = vadd.f32 %v1336_v43, %v1299_v60  ;;  %v1353_v55 = vadd.f32 %v1337_v5, %v1300_v56  ;;  %v12216_v36 = vld [vmem:[#allocation49_spill] sm:$0xff]  ;;  %v12217_v60 = vld [vmem:[#allocation50_spill] sm:$0xff]  ;;  %v12219_v51 = vld [vmem:[#allocation52_spill] sm:$0xff] }
 0x12a   : >> { %v1354_v12 = vadd.f32 %v1338_v54, %v1301_v8  ;;  %v1355_v46 = vadd.f32 %v1339_v62, %v1302_v57  ;;  %v1377_v28 = vmul.f32 %v5456_v14, %v12211_v41  ;;  %v1378_v23 = vmul.f32 %v5456_v14, %v12212_v35  ;;  %v12218_v8 = vld [vmem:[#allocation51_spill] sm:$0xff]  ;;  %v12220_v30 = vld [vmem:[#allocation53_spill] sm:$0xff]  ;;  %v12221_v6 = vld [vmem:[#allocation54_spill] sm:$0xff] }
 0x12b   : >> { %v1379_v34 = vmul.f32 %v5456_v14, %v12213_v42  ;;  %v1380_v50 = vmul.f32 %v5456_v14, %v12214_v38  ;;  %v1381_v11 = vmul.f32 %v5456_v14, %v12215_v7  ;;  %v1382_v24 = vmul.f32 %v5456_v14, %v12216_v36  ;;  %v12222_v26 = vld [vmem:[#allocation55_spill] sm:$0xff]  ;;  %v12223_v44 = vld [vmem:[#allocation14_spill] sm:$0xff] }
 0x12c   : >> { %v1383_v56 = vmul.f32 %v5456_v14, %v12217_v60  ;;  %v1384_v57 = vmul.f32 %v5456_v14, %v12218_v8  ;;  %v1385_v2 = vmul.f32 %v5456_v14, %v12219_v51  ;;  %v1386_v15 = vmul.f32 %v5456_v14, %v12220_v30  ;;  %v5473_v60 = vld [vmem:[%s11612_s1 + $0xe] ss:$0 sm:$0xff] }
 0x12d   : >> { %v1387_v47 = vmul.f32 %v5456_v14, %v12221_v6  ;;  %v1388_v52 = vmul.f32 %v5456_v14, %v12222_v26  ;;  %v1389_v49 = vmul.f32 %v5456_v14, %v12223_v44  ;;  %v1390_v10 = vmul.f32 %v5456_v14, %v7854_v53 }
 0x12e   : >> { %v1391_v43 = vmul.f32 %v5456_v14, %v7976_v25  ;;  %v1392_v5 = vmul.f32 %v5456_v14, %v7979_v39  ;;  %v1393_v54 = vadd.f32 %v1377_v28, %v1340_v3  ;;  %v1394_v62 = vadd.f32 %v1378_v23, %v1341_v19  ;;  %v8001_v28 = vld [vmem:[%s7412_s23 + $0x12a] sm:$0xff] }
 0x12f   : >> { %v1395_v41 = vadd.f32 %v1379_v34, %v1342_v18  ;;  %v1396_v35 = vadd.f32 %v1380_v50, %v1343_v17  ;;  %v1397_v42 = vadd.f32 %v1381_v11, %v1344_v22  ;;  %v1398_v38 = vadd.f32 %v1382_v24, %v1345_v63  ;;  %12224 = vst [vmem:[#allocation56_spill] sm:$0xff] %v8001_v28  ;;  %v8004_v18 = vld [vmem:[%s7412_s23 + $0x132] sm:$0xff]  ;;  %v12229_v34 = vld [vmem:[#allocation61_spill] sm:$0xff] }
 0x130   : >> { %v1399_v7 = vadd.f32 %v1383_v56, %v1346_v1  ;;  %v1400_v36 = vadd.f32 %v1384_v57, %v1347_v4  ;;  %v1401_v8 = vadd.f32 %v1385_v2, %v1348_v20  ;;  %v1402_v51 = vadd.f32 %v1386_v15, %v1349_v16  ;;  %12225 = vst [vmem:[#allocation57_spill] sm:$0xff] %v8004_v18  ;;  %v12226_v17 = vld [vmem:[#allocation58_spill] sm:$0xff]  ;;  %v12227_v63 = vld [vmem:[#allocation59_spill] sm:$0xff]  ;;  %v12228_v4 = vld [vmem:[#allocation60_spill] sm:$0xff] }
 0x131   : >> { %v1403_v30 = vadd.f32 %v1387_v47, %v1350_v48  ;;  %v1404_v6 = vadd.f32 %v1388_v52, %v1351_v31  ;;  %v1405_v26 = vadd.f32 %v1389_v49, %v1352_v37  ;;  %v1406_v14 = vadd.f32 %v1390_v10, %v1353_v55  ;;  %v12230_v20 = vld [vmem:[#allocation62_spill] sm:$0xff]  ;;  %v12231_v48 = vld [vmem:[#allocation63_spill] sm:$0xff]  ;;  %v12232_v37 = vld [vmem:[#allocation64_spill] sm:$0xff] }
 0x132   : >> { %v1407_v3 = vadd.f32 %v1391_v43, %v1354_v12  ;;  %v1408_v19 = vadd.f32 %v1392_v5, %v1355_v46  ;;  %v1430_v22 = vmul.f32 %v5473_v60, %v12226_v17  ;;  %v1431_v1 = vmul.f32 %v5473_v60, %v12227_v63  ;;  %v12233_v12 = vld [vmem:[#allocation65_spill] sm:$0xff]  ;;  %v12234_v11 = vld [vmem:[#allocation66_spill] sm:$0xff]  ;;  %v12235_v56 = vld [vmem:[#allocation67_spill] sm:$0xff] }
 0x133   : >> { %v1432_v23 = vmul.f32 %v5473_v60, %v12228_v4  ;;  %v1433_v50 = vmul.f32 %v5473_v60, %v12229_v34  ;;  %v1434_v16 = vmul.f32 %v5473_v60, %v12230_v20  ;;  %v1435_v31 = vmul.f32 %v5473_v60, %v12231_v48  ;;  %v12236_v2 = vld [vmem:[#allocation68_spill] sm:$0xff]  ;;  %v12237_v47 = vld [vmem:[#allocation69_spill] sm:$0xff] }
 0x134   : >> { %v1436_v55 = vmul.f32 %v5473_v60, %v12232_v37  ;;  %v1437_v46 = vmul.f32 %v5473_v60, %v12233_v12  ;;  %v1438_v24 = vmul.f32 %v5473_v60, %v12234_v11  ;;  %v1439_v57 = vmul.f32 %v5473_v60, %v12235_v56  ;;  %v12238_v49 = vld [vmem:[#allocation16_spill] sm:$0xff]  ;;  %v5477_v37 = vld [vmem:[%s7412_s23 + $0x6e] sm:$0xff] }
 0x135   : >> { %v1440_v15 = vmul.f32 %v5473_v60, %v12236_v2  ;;  %v1441_v52 = vmul.f32 %v5473_v60, %v12237_v47  ;;  %v1442_v10 = vmul.f32 %v5473_v60, %v12238_v49  ;;  %v1443_v43 = vmul.f32 %v5473_v60, %v7879_v32  ;;  %v5476_v48 = vld [vmem:[%s7412_s23 + $0x66] sm:$0xff] }
 0x136   : >> { %v1444_v5 = vmul.f32 %v5473_v60, %v8001_v28  ;;  %v1445_v17 = vmul.f32 %v5473_v60, %v8004_v18  ;;  %v1446_v63 = vadd.f32 %v1430_v22, %v1393_v54  ;;  %v1447_v4 = vadd.f32 %v1431_v1, %v1394_v62  ;;  %v8025_v12 = vld [vmem:[%s7412_s23 + $0x86] sm:$0xff]  ;;  %v8028_v28 = vld [vmem:[%s7412_s23 + $0x8e] sm:$0xff] }
 0x137   : >> { %v1448_v34 = vadd.f32 %v1432_v23, %v1395_v41  ;;  %v1449_v20 = vadd.f32 %v1433_v50, %v1396_v35  ;;  %v1450_v11 = vadd.f32 %v1434_v16, %v1397_v42  ;;  %v1451_v56 = vadd.f32 %v1435_v31, %v1398_v38  ;;  %v8031_v54 = vld [vmem:[%s7412_s23 + $0xa6] sm:$0xff]  ;;  %v5492_v62 = vld [vmem:[%s11612_s1 + $0xf] ss:$0 sm:$0xff] }
 0x138   : >> { %v1452_v2 = vadd.f32 %v1436_v55, %v1399_v7  ;;  %v1453_v47 = vadd.f32 %v1437_v46, %v1400_v36  ;;  %v1454_v41 = vadd.f32 %v1438_v24, %v1401_v8  ;;  %v1455_v35 = vadd.f32 %v1439_v57, %v1402_v51  ;;  %v8037_v42 = vld [vmem:[%s7412_s23 + $0xae] sm:$0xff]  ;;  %v8040_v38 = vld [vmem:[%s7412_s23 + $0xc6] sm:$0xff] }
 0x139   : >> { %v1456_v60 = vadd.f32 %v1440_v15, %v1403_v30  ;;  %v1457_v22 = vadd.f32 %v1441_v52, %v1404_v6  ;;  %12239 = vst [vmem:[#allocation7_spill] sm:$0xff] %v8037_v42  ;;  %12240 = vst [vmem:[#allocation8_spill] sm:$0xff] %v8040_v38  ;;  %v8043_v7 = vld [vmem:[%s7412_s23 + $0xce] sm:$0xff]  ;;  %v1458_v36 = vadd.f32 %v1442_v10, %v1405_v26  ;;  %v8046_v16 = vld [vmem:[%s7412_s23 + $0xe6] sm:$0xff] }
 0x13a   : >> { %12241 = vst [vmem:[#allocation9_spill] sm:$0xff] %v8043_v7  ;;  %v1459_v1 = vadd.f32 %v1443_v43, %v1406_v14  ;;  %v1460_v23 = vadd.f32 %v1444_v5, %v1407_v3  ;;  %v1461_v50 = vadd.f32 %v1445_v17, %v1408_v19  ;;  %12242 = vst [vmem:[#allocation10_spill] sm:$0xff] %v8046_v16  ;;  %v8049_v31 = vld [vmem:[%s7412_s23 + $0xee] sm:$0xff]  ;;  %v8052_v55 = vld [vmem:[%s7412_s23 + $0x146] sm:$0xff] }
 0x13b   : >> { %12243 = vst [vmem:[#allocation11_spill] sm:$0xff] %v8049_v31  ;;  %12244 = vst [vmem:[#allocation22_spill] sm:$0xff] %v8052_v55  ;;  %v8055_v8 = vld [vmem:[%s7412_s23 + $0x14e] sm:$0xff]  ;;  %v1486_v51 = vmul.f32 %v5492_v62, %v5476_v48  ;;  %v1487_v30 = vmul.f32 %v5492_v62, %v5477_v37  ;;  %v1488_v6 = vmul.f32 %v5492_v62, %v8025_v12 }
 0x13c   : >> { %v1489_v46 = vmul.f32 %v5492_v62, %v8028_v28  ;;  %v1490_v24 = vmul.f32 %v5492_v62, %v8031_v54  ;;  %v1491_v26 = vmul.f32 %v5492_v62, %v8037_v42  ;;  %v1492_v14 = vmul.f32 %v5492_v62, %v8040_v38 }
 0x13d   : >> { %v1493_v3 = vmul.f32 %v5492_v62, %v8043_v7  ;;  %v1494_v19 = vmul.f32 %v5492_v62, %v8046_v16  ;;  %v1495_v57 = vmul.f32 %v5492_v62, %v8049_v31  ;;  %v1496_v15 = vmul.f32 %v5492_v62, %v7767_v33  ;;  %v5493_v31 = vld [vmem:[%s7412_s23 + $0x67] sm:$0xff]  ;;  %v5494_v33 = vld [vmem:[%s7412_s23 + $0x6f] sm:$0xff] }
 0x13e   : >> { %v1497_v52 = vmul.f32 %v5492_v62, %v7770_v29  ;;  %v1498_v10 = vmul.f32 %v5492_v62, %v7901_v61  ;;  %v1499_v43 = vmul.f32 %v5492_v62, %v7904_v27  ;;  %v1500_v5 = vmul.f32 %v5492_v62, %v8052_v55  ;;  %v8074_v29 = vld [vmem:[%s7412_s23 + $0x87] sm:$0xff]  ;;  %v8077_v55 = vld [vmem:[%s7412_s23 + $0x8f] sm:$0xff] }
 0x13f   : >> { %v1501_v17 = vmul.f32 %v5492_v62, %v8055_v8  ;;  %v1502_v48 = vadd.f32 %v1486_v51, %v1446_v63  ;;  %v1503_v37 = vadd.f32 %v1487_v30, %v1447_v4  ;;  %v1504_v7 = vadd.f32 %v1488_v6, %v1448_v34  ;;  %v8080_v63 = vld [vmem:[%s7412_s23 + $0xa7] sm:$0xff]  ;;  %v5509_v4 = vld [vmem:[%s11612_s1 + $0x10] ss:$0 sm:$0xff] }
 0x140   : >> { %v1505_v16 = vadd.f32 %v1489_v46, %v1449_v20  ;;  %v1506_v38 = vadd.f32 %v1490_v24, %v1450_v11  ;;  %v1507_v61 = vadd.f32 %v1491_v26, %v1451_v56  ;;  %v1508_v42 = vadd.f32 %v1492_v14, %v1452_v2  ;;  %v8086_v11 = vld [vmem:[%s7412_s23 + $0xaf] sm:$0xff]  ;;  %v8089_v56 = vld [vmem:[%s7412_s23 + $0xc7] sm:$0xff] }
 0x141   : >> { %v1509_v27 = vadd.f32 %v1493_v3, %v1453_v47  ;;  %v1510_v34 = vadd.f32 %v1494_v19, %v1454_v41  ;;  %v1511_v20 = vadd.f32 %v1495_v57, %v1455_v35  ;;  %v1512_v62 = vadd.f32 %v1496_v15, %v1456_v60  ;;  %12245 = vst [vmem:[#allocation23_spill] sm:$0xff] %v8086_v11  ;;  %v8092_v2 = vld [vmem:[%s7412_s23 + $0xcf] sm:$0xff]  ;;  %v8095_v24 = vld [vmem:[%s7412_s23 + $0xe7] sm:$0xff] }
 0x142   : >> { %v1513_v51 = vadd.f32 %v1497_v52, %v1457_v22  ;;  %12246 = vst [vmem:[#allocation24_spill] sm:$0xff] %v8089_v56  ;;  %12247 = vst [vmem:[#allocation25_spill] sm:$0xff] %v8092_v2  ;;  %v1514_v47 = vadd.f32 %v1498_v10, %v1458_v36  ;;  %v1515_v30 = vadd.f32 %v1499_v43, %v1459_v1  ;;  %v8098_v26 = vld [vmem:[%s7412_s23 + $0xef] sm:$0xff]  ;;  %v8101_v14 = vld [vmem:[%s7412_s23 + $0x147] sm:$0xff] }
 0x143   : >> { %v1516_v6 = vadd.f32 %v1500_v5, %v1460_v23  ;;  %v1517_v46 = vadd.f32 %v1501_v17, %v1461_v50  ;;  %12248 = vst [vmem:[#allocation26_spill] sm:$0xff] %v8095_v24  ;;  %12249 = vst [vmem:[#allocation27_spill] sm:$0xff] %v8098_v26  ;;  %v8104_v41 = vld [vmem:[%s7412_s23 + $0x14f] sm:$0xff]  ;;  %v1539_v35 = vmul.f32 %v5509_v4, %v5493_v31 }
 0x144   : >> { %12250 = vst [vmem:[#allocation15_spill] sm:$0xff] %v8101_v14  ;;  %v1540_v60 = vmul.f32 %v5509_v4, %v5494_v33  ;;  %v1541_v22 = vmul.f32 %v5509_v4, %v8074_v29  ;;  %v1542_v3 = vmul.f32 %v5509_v4, %v8077_v55  ;;  %v1543_v19 = vmul.f32 %v5509_v4, %v8080_v63 }
 0x145   : >> { %v1544_v36 = vmul.f32 %v5509_v4, %v8086_v11  ;;  %v1545_v1 = vmul.f32 %v5509_v4, %v8089_v56  ;;  %v1546_v23 = vmul.f32 %v5509_v4, %v8092_v2  ;;  %v1547_v50 = vmul.f32 %v5509_v4, %v8095_v24 }
 0x146   : >> { %v1548_v31 = vmul.f32 %v5509_v4, %v8098_v26  ;;  %v1549_v57 = vmul.f32 %v5509_v4, %v12191_v59  ;;  %v1550_v15 = vmul.f32 %v5509_v4, %v12192_v45  ;;  %v1551_v52 = vmul.f32 %v5509_v4, %v7926_v21  ;;  %v5510_v26 = vld [vmem:[%s7412_s23 + $0x68] sm:$0xff]  ;;  %v5511_v59 = vld [vmem:[%s7412_s23 + $0x70] sm:$0xff] }
 0x147   : >> { %v1552_v10 = vmul.f32 %v5509_v4, %v7929_v0  ;;  %v1553_v43 = vmul.f32 %v5509_v4, %v8101_v14  ;;  %v1554_v5 = vmul.f32 %v5509_v4, %v8104_v41  ;;  %v1555_v17 = vadd.f32 %v1539_v35, %v1502_v48  ;;  %v8123_v45 = vld [vmem:[%s7412_s23 + $0x88] sm:$0xff]  ;;  %v8126_v14 = vld [vmem:[%s7412_s23 + $0x90] sm:$0xff] }
 0x148   : >> { %v1556_v33 = vadd.f32 %v1540_v60, %v1503_v37  ;;  %v1557_v2 = vadd.f32 %v1541_v22, %v1504_v7  ;;  %v1558_v24 = vadd.f32 %v1542_v3, %v1505_v16  ;;  %v1559_v56 = vadd.f32 %v1543_v19, %v1506_v38  ;;  %v8129_v48 = vld [vmem:[%s7412_s23 + $0xa8] sm:$0xff]  ;;  %v5526_v7 = vld [vmem:[%s11612_s1 + $0x11] ss:$0 sm:$0xff] }
 0x149   : >> { %v1560_v21 = vadd.f32 %v1544_v36, %v1507_v61  ;;  %v1561_v11 = vadd.f32 %v1545_v1, %v1508_v42  ;;  %v1562_v0 = vadd.f32 %v1546_v23, %v1509_v27  ;;  %v1563_v16 = vadd.f32 %v1547_v50, %v1510_v34  ;;  %v8135_v38 = vld [vmem:[%s7412_s23 + $0xb0] sm:$0xff]  ;;  %v8138_v61 = vld [vmem:[%s7412_s23 + $0xc8] sm:$0xff] }
 0x14a   : >> { %v1564_v37 = vadd.f32 %v1548_v31, %v1511_v20  ;;  %v1565_v4 = vadd.f32 %v1549_v57, %v1512_v62  ;;  %v1566_v35 = vadd.f32 %v1550_v15, %v1513_v51  ;;  %12251 = vst [vmem:[#allocation19_spill] sm:$0xff] %v8135_v38  ;;  %12252 = vst [vmem:[#allocation30_spill] sm:$0xff] %v8138_v61  ;;  %v8141_v27 = vld [vmem:[%s7412_s23 + $0xd0] sm:$0xff]  ;;  %v8144_v19 = vld [vmem:[%s7412_s23 + $0xe8] sm:$0xff] }
 0x14b   : >> { %12253 = vst [vmem:[#allocation31_spill] sm:$0xff] %v8141_v27  ;;  %v1567_v42 = vadd.f32 %v1551_v52, %v1514_v47  ;;  %v1568_v60 = vadd.f32 %v1552_v10, %v1515_v30  ;;  %v1569_v22 = vadd.f32 %v1553_v43, %v1516_v6  ;;  %v1570_v3 = vadd.f32 %v1554_v5, %v1517_v46  ;;  %v8147_v36 = vld [vmem:[%s7412_s23 + $0xf0] sm:$0xff]  ;;  %v8150_v1 = vld [vmem:[%s7412_s23 + $0x148] sm:$0xff] }
 0x14c   : >> { %12254 = vst [vmem:[#allocation32_spill] sm:$0xff] %v8144_v19  ;;  %12255 = vst [vmem:[#allocation33_spill] sm:$0xff] %v8147_v36  ;;  %v8153_v34 = vld [vmem:[%s7412_s23 + $0x150] sm:$0xff]  ;;  %v1592_v20 = vmul.f32 %v5526_v7, %v5510_v26  ;;  %v1593_v62 = vmul.f32 %v5526_v7, %v5511_v59  ;;  %v1594_v51 = vmul.f32 %v5526_v7, %v8123_v45 }
 0x14d   : >> { %12256 = vst [vmem:[#allocation34_spill] sm:$0xff] %v8150_v1  ;;  %v1595_v23 = vmul.f32 %v5526_v7, %v8126_v14  ;;  %v1596_v50 = vmul.f32 %v5526_v7, %v8129_v48  ;;  %v1597_v47 = vmul.f32 %v5526_v7, %v8135_v38  ;;  %v1598_v30 = vmul.f32 %v5526_v7, %v8138_v61 }
 0x14e   : >> { %v1599_v6 = vmul.f32 %v5526_v7, %v8141_v27  ;;  %v1600_v46 = vmul.f32 %v5526_v7, %v8144_v19  ;;  %v1601_v26 = vmul.f32 %v5526_v7, %v8147_v36  ;;  %v1602_v31 = vmul.f32 %v5526_v7, %v12207_v13  ;;  %v5527_v36 = vld [vmem:[%s7412_s23 + $0x69] sm:$0xff]  ;;  %v5528_v13 = vld [vmem:[%s7412_s23 + $0x71] sm:$0xff] }
 0x14f   : >> { %v1603_v57 = vmul.f32 %v5526_v7, %v12208_v40  ;;  %v1604_v15 = vmul.f32 %v5526_v7, %v7951_v9  ;;  %v1605_v52 = vmul.f32 %v5526_v7, %v7954_v58  ;;  %v1606_v10 = vmul.f32 %v5526_v7, %v8150_v1  ;;  %v8172_v40 = vld [vmem:[%s7412_s23 + $0x89] sm:$0xff]  ;;  %v8175_v1 = vld [vmem:[%s7412_s23 + $0x91] sm:$0xff] }
 0x150   : >> { %v1607_v43 = vmul.f32 %v5526_v7, %v8153_v34  ;;  %v1608_v5 = vadd.f32 %v1592_v20, %v1555_v17  ;;  %v1609_v59 = vadd.f32 %v1593_v62, %v1556_v33  ;;  %v1610_v27 = vadd.f32 %v1594_v51, %v1557_v2  ;;  %v8178_v17 = vld [vmem:[%s7412_s23 + $0xa9] sm:$0xff]  ;;  %v5543_v2 = vld [vmem:[%s11612_s1 + $0x12] ss:$0 sm:$0xff] }
 0x151   : >> { %v1611_v19 = vadd.f32 %v1595_v23, %v1558_v24  ;;  %v1612_v61 = vadd.f32 %v1596_v50, %v1559_v56  ;;  %v1613_v9 = vadd.f32 %v1597_v47, %v1560_v21  ;;  %v1614_v38 = vadd.f32 %v1598_v30, %v1561_v11  ;;  %v8184_v56 = vld [vmem:[%s7412_s23 + $0xb1] sm:$0xff]  ;;  %v8187_v21 = vld [vmem:[%s7412_s23 + $0xc9] sm:$0xff] }
 0x152   : >> { %v1615_v58 = vadd.f32 %v1599_v6, %v1562_v0  ;;  %v1616_v24 = vadd.f32 %v1600_v46, %v1563_v16  ;;  %v1617_v33 = vadd.f32 %v1601_v26, %v1564_v37  ;;  %v1618_v7 = vadd.f32 %v1602_v31, %v1565_v4  ;;  %12257 = vst [vmem:[#allocation35_spill] sm:$0xff] %v8184_v56  ;;  %v8190_v0 = vld [vmem:[%s7412_s23 + $0xd1] sm:$0xff]  ;;  %v8193_v50 = vld [vmem:[%s7412_s23 + $0xe9] sm:$0xff] }
 0x153   : >> { %v1619_v20 = vadd.f32 %v1603_v57, %v1566_v35  ;;  %12258 = vst [vmem:[#allocation36_spill] sm:$0xff] %v8187_v21  ;;  %12259 = vst [vmem:[#allocation37_spill] sm:$0xff] %v8190_v0  ;;  %v1620_v11 = vadd.f32 %v1604_v15, %v1567_v42  ;;  %v1621_v62 = vadd.f32 %v1605_v52, %v1568_v60  ;;  %v8196_v47 = vld [vmem:[%s7412_s23 + $0xf1] sm:$0xff]  ;;  %v8199_v30 = vld [vmem:[%s7412_s23 + $0x149] sm:$0xff] }
 0x154   : >> { %v1622_v51 = vadd.f32 %v1606_v10, %v1569_v22  ;;  %v1623_v23 = vadd.f32 %v1607_v43, %v1570_v3  ;;  %12260 = vst [vmem:[#allocation38_spill] sm:$0xff] %v8193_v50  ;;  %12261 = vst [vmem:[#allocation39_spill] sm:$0xff] %v8196_v47  ;;  %v8202_v16 = vld [vmem:[%s7412_s23 + $0x151] sm:$0xff]  ;;  %v1645_v37 = vmul.f32 %v5543_v2, %v5527_v36 }
 0x155   : >> { %12262 = vst [vmem:[#allocation40_spill] sm:$0xff] %v8199_v30  ;;  %v1646_v4 = vmul.f32 %v5543_v2, %v5528_v13  ;;  %v1647_v35 = vmul.f32 %v5543_v2, %v8172_v40  ;;  %v1648_v6 = vmul.f32 %v5543_v2, %v8175_v1  ;;  %v1649_v46 = vmul.f32 %v5543_v2, %v8178_v17 }
 0x156   : >> { %v1650_v42 = vmul.f32 %v5543_v2, %v8184_v56  ;;  %v1651_v60 = vmul.f32 %v5543_v2, %v8187_v21  ;;  %v1652_v22 = vmul.f32 %v5543_v2, %v8190_v0  ;;  %v1653_v3 = vmul.f32 %v5543_v2, %v8193_v50 }
 0x157   : >> { %v1654_v36 = vmul.f32 %v5543_v2, %v8196_v47  ;;  %v1655_v26 = vmul.f32 %v5543_v2, %v12223_v44  ;;  %v1656_v31 = vmul.f32 %v5543_v2, %v7854_v53  ;;  %v1657_v57 = vmul.f32 %v5543_v2, %v7976_v25  ;;  %v5544_v47 = vld [vmem:[%s7412_s23 + $0x6a] sm:$0xff]  ;;  %v5545_v44 = vld [vmem:[%s7412_s23 + $0x72] sm:$0xff] }
 0x158   : >> { %v1658_v15 = vmul.f32 %v5543_v2, %v7979_v39  ;;  %v1659_v52 = vmul.f32 %v5543_v2, %v8199_v30  ;;  %v1660_v10 = vmul.f32 %v5543_v2, %v8202_v16  ;;  %v1661_v43 = vadd.f32 %v1645_v37, %v1608_v5  ;;  %v8221_v53 = vld [vmem:[%s7412_s23 + $0x8a] sm:$0xff]  ;;  %v8224_v30 = vld [vmem:[%s7412_s23 + $0x92] sm:$0xff] }
 0x159   : >> { %v1662_v13 = vadd.f32 %v1646_v4, %v1609_v59  ;;  %v1663_v0 = vadd.f32 %v1647_v35, %v1610_v27  ;;  %v1664_v50 = vadd.f32 %v1648_v6, %v1611_v19  ;;  %v1665_v21 = vadd.f32 %v1649_v46, %v1612_v61  ;;  %v8227_v5 = vld [vmem:[%s7412_s23 + $0xaa] sm:$0xff]  ;;  %v5560_v27 = vld [vmem:[%s11612_s1 + $0x13] ss:$0 sm:$0xff] }
 0x15a   : >> { %v1666_v25 = vadd.f32 %v1650_v42, %v1613_v9  ;;  %v1667_v56 = vadd.f32 %v1651_v60, %v1614_v38  ;;  %v1668_v39 = vadd.f32 %v1652_v22, %v1615_v58  ;;  %12263 = vst [vmem:[#allocation41_spill] sm:$0xff] %v8227_v5  ;;  %v1669_v19 = vadd.f32 %v1653_v3, %v1616_v24  ;;  %v8233_v61 = vld [vmem:[%s7412_s23 + $0xb2] sm:$0xff]  ;;  %v8236_v9 = vld [vmem:[%s7412_s23 + $0xca] sm:$0xff] }
 0x15b   : >> { %v1670_v59 = vadd.f32 %v1654_v36, %v1617_v33  ;;  %v1671_v2 = vadd.f32 %v1655_v26, %v1618_v7  ;;  %v1672_v37 = vadd.f32 %v1656_v31, %v1619_v20  ;;  %12264 = vst [vmem:[#allocation12_spill] sm:$0xff] %v8233_v61  ;;  %12265 = vst [vmem:[#allocation13_spill] sm:$0xff] %v8236_v9  ;;  %v8239_v58 = vld [vmem:[%s7412_s23 + $0xd2] sm:$0xff]  ;;  %v8242_v46 = vld [vmem:[%s7412_s23 + $0xea] sm:$0xff] }
 0x15c   : >> { %12266 = vst [vmem:[#allocation44_spill] sm:$0xff] %v8239_v58  ;;  %v1673_v38 = vadd.f32 %v1657_v57, %v1620_v11  ;;  %v1674_v4 = vadd.f32 %v1658_v15, %v1621_v62  ;;  %v1675_v35 = vadd.f32 %v1659_v52, %v1622_v51  ;;  %v1676_v6 = vadd.f32 %v1660_v10, %v1623_v23  ;;  %v8245_v42 = vld [vmem:[%s7412_s23 + $0xf2] sm:$0xff]  ;;  %v8248_v60 = vld [vmem:[%s7412_s23 + $0x14a] sm:$0xff]  ;;  %v12270_v31 = vld [vmem:[#allocation56_spill] sm:$0xff] }
 0x15d   : >> { %12267 = vst [vmem:[#allocation45_spill] sm:$0xff] %v8242_v46  ;;  %12268 = vst [vmem:[#allocation46_spill] sm:$0xff] %v8245_v42  ;;  %v8251_v24 = vld [vmem:[%s7412_s23 + $0x152] sm:$0xff]  ;;  %v1698_v33 = vmul.f32 %v5560_v27, %v5544_v47  ;;  %v1699_v7 = vmul.f32 %v5560_v27, %v5545_v44  ;;  %v1700_v20 = vmul.f32 %v5560_v27, %v8221_v53 }
 0x15e   : >> { %12269 = vst [vmem:[#allocation47_spill] sm:$0xff] %v8248_v60  ;;  %v1701_v22 = vmul.f32 %v5560_v27, %v8224_v30  ;;  %v1702_v3 = vmul.f32 %v5560_v27, %v8227_v5  ;;  %v1703_v11 = vmul.f32 %v5560_v27, %v8233_v61  ;;  %v1704_v62 = vmul.f32 %v5560_v27, %v8236_v9 }
 0x15f   : >> { %v1705_v51 = vmul.f32 %v5560_v27, %v8239_v58  ;;  %v1706_v23 = vmul.f32 %v5560_v27, %v8242_v46  ;;  %v1707_v36 = vmul.f32 %v5560_v27, %v8245_v42  ;;  %v1708_v26 = vmul.f32 %v5560_v27, %v12238_v49 }
 0x160   : >> { %v1709_v47 = vmul.f32 %v5560_v27, %v7879_v32  ;;  %v1710_v57 = vmul.f32 %v5560_v27, %v12270_v31  ;;  %v1711_v15 = vmul.f32 %v5560_v27, %v8004_v18  ;;  %v1712_v52 = vmul.f32 %v5560_v27, %v8248_v60  ;;  %v5579_v18 = vld [vmem:[%s11612_s1 + $0x14] ss:$0 sm:$0xff] }
 0x161   : >> { %v1713_v10 = vmul.f32 %v5560_v27, %v8251_v24  ;;  %v1714_v44 = vadd.f32 %v1698_v33, %v1661_v43  ;;  %v1715_v9 = vadd.f32 %v1699_v7, %v1662_v13  ;;  %v1716_v58 = vadd.f32 %v1700_v20, %v1663_v0  ;;  %v5571_v7 = vld [vmem:[%s7412_s23 + $0x106] sm:$0xff] }
 0x162   : >> { %v1717_v46 = vadd.f32 %v1701_v22, %v1664_v50  ;;  %v1718_v42 = vadd.f32 %v1702_v3, %v1665_v21  ;;  %v1719_v49 = vadd.f32 %v1703_v11, %v1666_v25  ;;  %v1720_v61 = vadd.f32 %v1704_v62, %v1667_v56  ;;  %v5572_v50 = vld [vmem:[%s7412_s23 + $0x10e] sm:$0xff]  ;;  %v5577_v20 = vld [vmem:[%s7412_s23 + $0x166] sm:$0xff]  ;;  %v12271_v22 = vld [vmem:[#allocation7_spill] sm:$0xff] }
 0x163   : >> { %v1721_v32 = vadd.f32 %v1705_v51, %v1668_v39  ;;  %v1722_v31 = vadd.f32 %v1706_v23, %v1669_v19  ;;  %v1723_v60 = vadd.f32 %v1707_v36, %v1670_v59  ;;  %v1724_v5 = vadd.f32 %v1708_v26, %v1671_v2  ;;  %v5578_v21 = vld [vmem:[%s7412_s23 + $0x16e] sm:$0xff]  ;;  %v12272_v19 = vld [vmem:[#allocation8_spill] sm:$0xff] }
 0x164   : >> { %v1725_v27 = vadd.f32 %v1709_v47, %v1672_v37  ;;  %v1726_v43 = vadd.f32 %v1710_v57, %v1673_v38  ;;  %v1727_v13 = vadd.f32 %v1711_v15, %v1674_v4  ;;  %v1728_v33 = vadd.f32 %v1712_v52, %v1675_v35  ;;  %v12273_v2 = vld [vmem:[#allocation9_spill] sm:$0xff]  ;;  %v12274_v38 = vld [vmem:[#allocation10_spill] sm:$0xff]  ;;  %v12275_v35 = vld [vmem:[#allocation11_spill] sm:$0xff] }
 0x165   : >> { %v1729_v0 = vadd.f32 %v1713_v10, %v1676_v6  ;;  %v1754_v25 = vmul.f32 %v5579_v18, %v8025_v12  ;;  %v1755_v39 = vmul.f32 %v5579_v18, %v8028_v28  ;;  %v1756_v56 = vmul.f32 %v5579_v18, %v8031_v54  ;;  %v12276_v51 = vld [vmem:[#allocation17_spill] sm:$0xff]  ;;  %v12277_v36 = vld [vmem:[#allocation18_spill] sm:$0xff] }
 0x166   : >> { %v1757_v3 = vmul.f32 %v5579_v18, %v12271_v22  ;;  %v1758_v59 = vmul.f32 %v5579_v18, %v12272_v19  ;;  %v1759_v37 = vmul.f32 %v5579_v18, %v12273_v2  ;;  %v1760_v4 = vmul.f32 %v5579_v18, %v12274_v38  ;;  %v12278_v26 = vld [vmem:[#allocation22_spill] sm:$0xff] }
 0x167   : >> { %v1761_v6 = vmul.f32 %v5579_v18, %v12275_v35  ;;  %v1762_v11 = vmul.f32 %v5579_v18, %v5571_v7  ;;  %v1763_v62 = vmul.f32 %v5579_v18, %v5572_v50  ;;  %v1764_v23 = vmul.f32 %v5579_v18, %v12276_v51  ;;  %v5596_v38 = vld [vmem:[%s11612_s1 + $0x15] ss:$0 sm:$0xff] }
 0x168   : >> { %v1765_v12 = vmul.f32 %v5579_v18, %v12277_v36  ;;  %v1766_v28 = vmul.f32 %v5579_v18, %v12278_v26  ;;  %v1767_v54 = vmul.f32 %v5579_v18, %v8055_v8  ;;  %v1768_v47 = vmul.f32 %v5579_v18, %v5577_v20 }
 0x169   : >> { %v1769_v57 = vmul.f32 %v5579_v18, %v5578_v21  ;;  %v1770_v15 = vadd.f32 %v1754_v25, %v1714_v44  ;;  %v1771_v52 = vadd.f32 %v1755_v39, %v1715_v9  ;;  %v1772_v10 = vadd.f32 %v1756_v56, %v1716_v58  ;;  %v5588_v25 = vld [vmem:[%s7412_s23 + $0x107] sm:$0xff]  ;;  %v12279_v56 = vld [vmem:[#allocation23_spill] sm:$0xff] }
 0x16a   : >> { %v1773_v22 = vadd.f32 %v1757_v3, %v1717_v46  ;;  %v1774_v19 = vadd.f32 %v1758_v59, %v1718_v42  ;;  %v1775_v7 = vadd.f32 %v1759_v37, %v1719_v49  ;;  %v1776_v50 = vadd.f32 %v1760_v4, %v1720_v61  ;;  %v5589_v46 = vld [vmem:[%s7412_s23 + $0x10f] sm:$0xff]  ;;  %v5594_v39 = vld [vmem:[%s7412_s23 + $0x167] sm:$0xff] }
 0x16b   : >> { %v1777_v2 = vadd.f32 %v1761_v6, %v1721_v32  ;;  %v1778_v35 = vadd.f32 %v1762_v11, %v1722_v31  ;;  %v1779_v8 = vadd.f32 %v1763_v62, %v1723_v60  ;;  %v1780_v20 = vadd.f32 %v1764_v23, %v1724_v5  ;;  %v5595_v42 = vld [vmem:[%s7412_s23 + $0x16f] sm:$0xff]  ;;  %v12280_v31 = vld [vmem:[#allocation24_spill] sm:$0xff]  ;;  %v12286_v62 = vld [vmem:[#allocation15_spill] sm:$0xff] }
 0x16c   : >> { %v1781_v18 = vadd.f32 %v1765_v12, %v1725_v27  ;;  %v1782_v44 = vadd.f32 %v1766_v28, %v1726_v43  ;;  %v1783_v9 = vadd.f32 %v1767_v54, %v1727_v13  ;;  %v1784_v21 = vadd.f32 %v1768_v47, %v1728_v33  ;;  %v12281_v5 = vld [vmem:[#allocation25_spill] sm:$0xff]  ;;  %v12282_v43 = vld [vmem:[#allocation26_spill] sm:$0xff]  ;;  %v12283_v33 = vld [vmem:[#allocation27_spill] sm:$0xff] }
 0x16d   : >> { %v1785_v58 = vadd.f32 %v1769_v57, %v1729_v0  ;;  %v1807_v49 = vmul.f32 %v5596_v38, %v8074_v29  ;;  %v1808_v61 = vmul.f32 %v5596_v38, %v8077_v55  ;;  %v1809_v32 = vmul.f32 %v5596_v38, %v8080_v63  ;;  %v12284_v4 = vld [vmem:[#allocation20_spill] sm:$0xff]  ;;  %v12285_v11 = vld [vmem:[#allocation21_spill] sm:$0xff] }
 0x16e   : >> { %v1810_v3 = vmul.f32 %v5596_v38, %v12279_v56  ;;  %v1811_v60 = vmul.f32 %v5596_v38, %v12280_v31  ;;  %v1812_v27 = vmul.f32 %v5596_v38, %v12281_v5  ;;  %v1813_v13 = vmul.f32 %v5596_v38, %v12282_v43  ;;  %v12292_v5 = vld [vmem:[#allocation28_spill] sm:$0xff]  ;;  %v12293_v43 = vld [vmem:[#allocation29_spill] sm:$0xff] }
 0x16f   : >> { %v1814_v0 = vmul.f32 %v5596_v38, %v12283_v33  ;;  %v1815_v59 = vmul.f32 %v5596_v38, %v5588_v25  ;;  %v1816_v37 = vmul.f32 %v5596_v38, %v5589_v46  ;;  %v1817_v6 = vmul.f32 %v5596_v38, %v12284_v4  ;;  %v5613_v46 = vld [vmem:[%s11612_s1 + $0x16] ss:$0 sm:$0xff] }
 0x170   : >> { %v1818_v29 = vmul.f32 %v5596_v38, %v12285_v11  ;;  %v1819_v55 = vmul.f32 %v5596_v38, %v12286_v62  ;;  %v1820_v63 = vmul.f32 %v5596_v38, %v8104_v41  ;;  %v1821_v51 = vmul.f32 %v5596_v38, %v5594_v39 }
 0x171   : >> { %v1822_v23 = vmul.f32 %v5596_v38, %v5595_v42  ;;  %v1823_v36 = vadd.f32 %v1807_v49, %v1770_v15  ;;  %v1824_v12 = vadd.f32 %v1808_v61, %v1771_v52  ;;  %v1825_v26 = vadd.f32 %v1809_v32, %v1772_v10  ;;  %v5605_v49 = vld [vmem:[%s7412_s23 + $0x108] sm:$0xff]  ;;  %v12287_v32 = vld [vmem:[#allocation19_spill] sm:$0xff] }
 0x172   : >> { %v1826_v28 = vadd.f32 %v1810_v3, %v1773_v22  ;;  %v1827_v54 = vadd.f32 %v1811_v60, %v1774_v19  ;;  %v1828_v47 = vadd.f32 %v1812_v27, %v1775_v7  ;;  %v1829_v57 = vadd.f32 %v1813_v13, %v1776_v50  ;;  %v5606_v22 = vld [vmem:[%s7412_s23 + $0x110] sm:$0xff]  ;;  %v5611_v61 = vld [vmem:[%s7412_s23 + $0x168] sm:$0xff] }
 0x173   : >> { %v1830_v25 = vadd.f32 %v1814_v0, %v1777_v2  ;;  %v1831_v56 = vadd.f32 %v1815_v59, %v1778_v35  ;;  %v1832_v41 = vadd.f32 %v1816_v37, %v1779_v8  ;;  %v1833_v39 = vadd.f32 %v1817_v6, %v1780_v20  ;;  %v5612_v19 = vld [vmem:[%s7412_s23 + $0x170] sm:$0xff]  ;;  %v12289_v20 = vld [vmem:[#allocation31_spill] sm:$0xff] }
 0x174   : >> { %v1834_v38 = vadd.f32 %v1818_v29, %v1781_v18  ;;  %v1835_v15 = vadd.f32 %v1819_v55, %v1782_v44  ;;  %v1836_v52 = vadd.f32 %v1820_v63, %v1783_v9  ;;  %v1837_v42 = vadd.f32 %v1821_v51, %v1784_v21  ;;  %v12288_v35 = vld [vmem:[#allocation30_spill] sm:$0xff]  ;;  %v12290_v44 = vld [vmem:[#allocation32_spill] sm:$0xff]  ;;  %v12291_v21 = vld [vmem:[#allocation33_spill] sm:$0xff] }
 0x175   : >> { %v1838_v10 = vadd.f32 %v1822_v23, %v1785_v58  ;;  %v1860_v7 = vmul.f32 %v5613_v46, %v8123_v45  ;;  %v1861_v50 = vmul.f32 %v5613_v46, %v8126_v14  ;;  %v1862_v2 = vmul.f32 %v5613_v46, %v8129_v48  ;;  %v12294_v13 = vld [vmem:[#allocation34_spill] sm:$0xff] }
 0x176   : >> { %v1863_v3 = vmul.f32 %v5613_v46, %v12287_v32  ;;  %v1864_v8 = vmul.f32 %v5613_v46, %v12288_v35  ;;  %v1865_v18 = vmul.f32 %v5613_v46, %v12289_v20  ;;  %v1866_v9 = vmul.f32 %v5613_v46, %v12290_v44  ;;  %v5630_v63 = vld [vmem:[%s11612_s1 + $0x17] ss:$0 sm:$0xff]  ;;  %v12301_v35 = vld [vmem:[#allocation43_spill] sm:$0xff] }
 0x177   : >> { %v1867_v58 = vmul.f32 %v5613_v46, %v12291_v21  ;;  %v1868_v31 = vmul.f32 %v5613_v46, %v5605_v49  ;;  %v1869_v60 = vmul.f32 %v5613_v46, %v5606_v22  ;;  %v1870_v27 = vmul.f32 %v5613_v46, %v12292_v5  ;;  %v5622_v22 = vld [vmem:[%s7412_s23 + $0x109] sm:$0xff] }
 0x178   : >> { %v1871_v45 = vmul.f32 %v5613_v46, %v12293_v43  ;;  %v1872_v14 = vmul.f32 %v5613_v46, %v12294_v13  ;;  %v1873_v48 = vmul.f32 %v5613_v46, %v8153_v34  ;;  %v1874_v33 = vmul.f32 %v5613_v46, %v5611_v61  ;;  %v5628_v61 = vld [vmem:[%s7412_s23 + $0x169] sm:$0xff]  ;;  %v5647_v43 = vld [vmem:[%s11612_s1 + $0x18] ss:$0 sm:$0xff] }
 0x179   : >> { %v1875_v0 = vmul.f32 %v5613_v46, %v5612_v19  ;;  %v1876_v59 = vadd.f32 %v1860_v7, %v1823_v36  ;;  %v1877_v37 = vadd.f32 %v1861_v50, %v1824_v12  ;;  %v1878_v4 = vadd.f32 %v1862_v2, %v1825_v26  ;;  %v12295_v19 = vld [vmem:[#allocation35_spill] sm:$0xff]  ;;  %v12300_v32 = vld [vmem:[#allocation42_spill] sm:$0xff] }
 0x17a   : >> { %v1879_v6 = vadd.f32 %v1863_v3, %v1826_v28  ;;  %v1880_v11 = vadd.f32 %v1864_v8, %v1827_v54  ;;  %v1881_v29 = vadd.f32 %v1865_v18, %v1828_v47  ;;  %v1882_v62 = vadd.f32 %v1866_v9, %v1829_v57  ;;  %v5623_v28 = vld [vmem:[%s7412_s23 + $0x111] sm:$0xff]  ;;  %v12302_v8 = vld [vmem:[#allocation40_spill] sm:$0xff] }
 0x17b   : >> { %v1883_v55 = vadd.f32 %v1867_v58, %v1830_v25  ;;  %v1884_v51 = vadd.f32 %v1868_v31, %v1831_v56  ;;  %v1885_v34 = vadd.f32 %v1869_v60, %v1832_v41  ;;  %v1886_v23 = vadd.f32 %v1870_v27, %v1833_v39  ;;  %v5629_v54 = vld [vmem:[%s7412_s23 + $0x171] sm:$0xff]  ;;  %v12296_v56 = vld [vmem:[#allocation36_spill] sm:$0xff]  ;;  %v12297_v39 = vld [vmem:[#allocation37_spill] sm:$0xff] }
 0x17c   : >> { %v1887_v46 = vadd.f32 %v1871_v45, %v1834_v38  ;;  %v1888_v36 = vadd.f32 %v1872_v14, %v1835_v15  ;;  %v1889_v12 = vadd.f32 %v1873_v48, %v1836_v52  ;;  %v1890_v49 = vadd.f32 %v1874_v33, %v1837_v42  ;;  %v12298_v15 = vld [vmem:[#allocation38_spill] sm:$0xff]  ;;  %v12299_v42 = vld [vmem:[#allocation39_spill] sm:$0xff] }
 0x17d   : >> { %v1891_v26 = vadd.f32 %v1875_v0, %v1838_v10  ;;  %v1913_v47 = vmul.f32 %v5630_v63, %v8172_v40  ;;  %v1914_v57 = vmul.f32 %v5630_v63, %v8175_v1  ;;  %v1915_v25 = vmul.f32 %v5630_v63, %v8178_v17 }
 0x17e   : >> { %v1916_v7 = vmul.f32 %v5630_v63, %v12295_v19  ;;  %v1917_v41 = vmul.f32 %v5630_v63, %v12296_v56  ;;  %v1918_v38 = vmul.f32 %v5630_v63, %v12297_v39  ;;  %v1919_v52 = vmul.f32 %v5630_v63, %v12298_v15  ;;  %v12311_v19 = vld [vmem:[#allocation47_spill] sm:$0xff] }
 0x17f   : >> { %v1920_v10 = vmul.f32 %v5630_v63, %v12299_v42  ;;  %v1921_v50 = vmul.f32 %v5630_v63, %v5622_v22  ;;  %v1922_v2 = vmul.f32 %v5630_v63, %v5623_v28  ;;  %v1923_v3 = vmul.f32 %v5630_v63, %v12300_v32  ;;  %v12304_v22 = vld [vmem:[#allocation12_spill] sm:$0xff] }
 0x180   : >> { %v1924_v40 = vmul.f32 %v5630_v63, %v12301_v35  ;;  %v1925_v1 = vmul.f32 %v5630_v63, %v12302_v8  ;;  %v1926_v17 = vmul.f32 %v5630_v63, %v8202_v16  ;;  %v1927_v20 = vmul.f32 %v5630_v63, %v5628_v61 }
 0x181   : >> { %v1928_v18 = vmul.f32 %v5630_v63, %v5629_v54  ;;  %v1929_v44 = vadd.f32 %v1913_v47, %v1876_v59  ;;  %v1930_v9 = vadd.f32 %v1914_v57, %v1877_v37  ;;  %v1931_v21 = vadd.f32 %v1915_v25, %v1878_v4  ;;  %v5639_v37 = vld [vmem:[%s7412_s23 + $0x10a] sm:$0xff]  ;;  %v5640_v4 = vld [vmem:[%s7412_s23 + $0x112] sm:$0xff]  ;;  %v12309_v47 = vld [vmem:[#allocation56_spill] sm:$0xff] }
 0x182   : >> { %v1932_v58 = vadd.f32 %v1916_v7, %v1879_v6  ;;  %v1933_v31 = vadd.f32 %v1917_v41, %v1880_v11  ;;  %v1934_v60 = vadd.f32 %v1918_v38, %v1881_v29  ;;  %v1935_v5 = vadd.f32 %v1919_v52, %v1882_v62  ;;  %v5645_v6 = vld [vmem:[%s7412_s23 + $0x16a] sm:$0xff]  ;;  %v5646_v11 = vld [vmem:[%s7412_s23 + $0x172] sm:$0xff]  ;;  %s5650_s23 = smul.u32 384, %s6640_s17  ;;  %s657_s17 = sadd.s32 1, %s6640_s17  }
 0x183   : >> { %v1936_v27 = vadd.f32 %v1920_v10, %v1883_v55  ;;  %v1937_v45 = vadd.f32 %v1921_v50, %v1884_v51  ;;  %v1938_v16 = vadd.f32 %v1922_v2, %v1885_v34  ;;  %v1939_v13 = vadd.f32 %v1923_v3, %v1886_v23  ;;  %v12303_v55 = vld [vmem:[#allocation41_spill] sm:$0xff]  ;;  %p654_p4 = scmp.ge.s32.totalorder %s657_s17, 2  }
 0x184   : >> { %v1940_v14 = vadd.f32 %v1924_v40, %v1887_v46  ;;  %v1941_v48 = vadd.f32 %v1925_v1, %v1888_v36  ;;  %v1942_v33 = vadd.f32 %v1926_v17, %v1889_v12  ;;  %v1943_v0 = vadd.f32 %v1927_v20, %v1890_v49  ;;  %v12305_v34 = vld [vmem:[#allocation13_spill] sm:$0xff]  ;;  %v12306_v46 = vld [vmem:[#allocation44_spill] sm:$0xff]  ;;  %s5216_s10 = scalar_lea.vmem [#allocation3], %s5650_s23  ;;  %s8398_s11 = smov (%p654_p4), 0  }
 0x185   : >> { %v1944_v59 = vadd.f32 %v1928_v18, %v1891_v26  ;;  %v1966_v29 = vmul.f32 %v5647_v43, %v8221_v53  ;;  %v1967_v62 = vmul.f32 %v5647_v43, %v8224_v30  ;;  %v1968_v63 = vmul.f32 %v5647_v43, %v12303_v55  ;;  %v12307_v12 = vld [vmem:[#allocation45_spill] sm:$0xff]  ;;  %v12308_v26 = vld [vmem:[#allocation46_spill] sm:$0xff] }
 0x186   : >> { %v1969_v51 = vmul.f32 %v5647_v43, %v12304_v22  ;;  %v1970_v23 = vmul.f32 %v5647_v43, %v12305_v34  ;;  %v1971_v36 = vmul.f32 %v5647_v43, %v12306_v46  ;;  %v1972_v49 = vmul.f32 %v5647_v43, %v12307_v12  ;;  %v12310_v53 = vld [vmem:[#allocation57_spill] sm:$0xff] }
 0x187   : >> { %v1973_v28 = vmul.f32 %v5647_v43, %v12308_v26  ;;  %v1974_v61 = vmul.f32 %v5647_v43, %v5639_v37  ;;  %v1975_v54 = vmul.f32 %v5647_v43, %v5640_v4  ;;  %v1976_v57 = vmul.f32 %v5647_v43, %v12309_v47 }
 0x188   : >> { %v1977_v25 = vmul.f32 %v5647_v43, %v12310_v53  ;;  %v1978_v30 = vmul.f32 %v5647_v43, %v12311_v19  ;;  %v1979_v7 = vmul.f32 %v5647_v43, %v8251_v24  ;;  %v1980_v56 = vmul.f32 %v5647_v43, %v5645_v6  ;;  %v12312_v24 = vld [vmem:[#allocation4_spill] sm:$0xff] }
 0x189   : >> { %v1981_v41 = vmul.f32 %v5647_v43, %v5646_v11  ;;  %v1982_v39 = vadd.f32 %v1966_v29, %v1929_v44  ;;  %v1983_v38 = vadd.f32 %v1967_v62, %v1930_v9  ;;  %v1984_v15 = vadd.f32 %v1968_v63, %v1931_v21 }
 0x18a   : >> { %v1985_v52 = vadd.f32 %v1969_v51, %v1932_v58  ;;  %v1986_v42 = vadd.f32 %v1970_v23, %v1933_v31  ;;  %v1987_v10 = vadd.f32 %v1971_v36, %v1934_v60  ;;  %v1988_v50 = vadd.f32 %v1972_v49, %v1935_v5 }
 0x18b   : >> { %v1989_v2 = vadd.f32 %v1973_v28, %v1936_v27  ;;  %v1990_v32 = vadd.f32 %v1974_v61, %v1937_v45  ;;  %v1991_v3 = vadd.f32 %v1975_v54, %v1938_v16  ;;  %v1992_v35 = vadd.f32 %v1976_v57, %v1939_v13 }
 0x18c   : >> { %v1993_v40 = vadd.f32 %v1977_v25, %v1940_v14  ;;  %v1994_v8 = vadd.f32 %v1978_v30, %v1941_v48  ;;  %v1995_v1 = vadd.f32 %v1979_v7, %v1942_v33  ;;  %v1996_v17 = vadd.f32 %v1980_v56, %v1943_v0 }
 0x18d   : >> { %v1997_v20 = vadd.f32 %v1981_v41, %v1944_v59  ;;  %v2004_v18 = vadd.f32 %v12312_v24, %v1982_v39  ;;  %v2005_v43 = vadd.f32 %v12312_v24, %v1983_v38  ;;  %v2006_v44 = vadd.f32 %v12312_v24, %v1984_v15 }
 0x18e   : >> { %v2007_v9 = vadd.f32 %v12312_v24, %v1985_v52  ;;  %v2008_v21 = vadd.f32 %v12312_v24, %v1986_v42  ;;  %v2009_v58 = vadd.f32 %v12312_v24, %v1987_v10  ;;  %v2010_v31 = vadd.f32 %v12312_v24, %v1988_v50 }
 0x18f   : >> { %v2011_v60 = vadd.f32 %v12312_v24, %v1989_v2  ;;  %v2012_v5 = vadd.f32 %v12312_v24, %v1990_v32  ;;  %v2013_v27 = vadd.f32 %v12312_v24, %v1991_v3  ;;  %v2014_v45 = vadd.f32 %v12312_v24, %v1992_v35  ;;  %5651 = vst.msk [vmem:[%s5216_s10 + $0x1c0] sm:$0xff] %vm279_vm0, %v2004_v18 }
 0x190   : >> { %v2015_v16 = vadd.f32 %v12312_v24, %v1993_v40  ;;  %5652 = vst.msk [vmem:[%s5216_s10 + $0x1c8] sm:$0xff] %vm279_vm0, %v2005_v43  ;;  %5653 = vst.msk [vmem:[%s5216_s10 + $0x1f0] sm:$0xff] %vm279_vm0, %v2006_v44  ;;  %v2016_v13 = vadd.f32 %v12312_v24, %v1994_v8  ;;  %v2017_v14 = vadd.f32 %v12312_v24, %v1995_v1 }
 0x191   : >> { %5654 = vst.msk [vmem:[%s5216_s10 + $0x1f8] sm:$0xff] %vm279_vm0, %v2007_v9  ;;  %v2018_v48 = vadd.f32 %v12312_v24, %v1996_v17  ;;  %v2019_v33 = vadd.f32 %v12312_v24, %v1997_v20  ;;  %5655 = vst.msk [vmem:[%s5216_s10 + $0x220] sm:$0xff] %vm279_vm0, %v2008_v21  ;;  %656 = sbr.rel (!%p654_p4) target bundleno = 182 (0xb6), region = 110 }
 0x192   : >> { %5656 = vst.msk [vmem:[%s5216_s10 + $0x228] sm:$0xff] %vm279_vm0, %v2009_v58  ;;  %5657 = vst.msk [vmem:[%s5216_s10 + $0x250] sm:$0xff] %vm279_vm0, %v2010_v31 }
 0x193   : >> { %5658 = vst.msk [vmem:[%s5216_s10 + $0x258] sm:$0xff] %vm279_vm0, %v2011_v60  ;;  %5659 = vst.msk [vmem:[%s5216_s10 + $0x280] sm:$0xff] %vm279_vm0, %v2012_v5 }
 0x194   : >> { %5660 = vst.msk [vmem:[%s5216_s10 + $0x288] sm:$0xff] %vm279_vm0, %v2013_v27  ;;  %5661 = vst.msk [vmem:[%s5216_s10 + $0x2b0] sm:$0xff] %vm279_vm0, %v2014_v45 }
 0x195   : >> { %5662 = vst.msk [vmem:[%s5216_s10 + $0x2b8] sm:$0xff] %vm279_vm0, %v2015_v16  ;;  %5663 = vst.msk [vmem:[%s5216_s10 + $0x2e0] sm:$0xff] %vm279_vm0, %v2016_v13 }
 0x196   : >> { %5664 = vst.msk [vmem:[%s5216_s10 + $0x2e8] sm:$0xff] %vm279_vm0, %v2017_v14  ;;  %5665 = vst.msk [vmem:[%s5216_s10 + $0x310] sm:$0xff] %vm279_vm0, %v2018_v48 }
 0x197   : >> { %5666 = vst.msk [vmem:[%s5216_s10 + $0x318] sm:$0xff] %vm279_vm0, %v2019_v33 }
 0x198 LB: >> { %v6647_v0 = vmov 0   ;;  %s5668_s12 = smul.u32 384, %s6644_s11  ;;  %v8407_v59 = vld [vmem:[%s11614_s3] ss:$0 sm:$0xff]  ;;  %v8412_v37 = vld [vmem:[%s11614_s3 + $0x1] ss:$0 sm:$0xff]  ;;  %s6644_s11 = sphi %s8398_s11, %s2044_s11  }
 0x199   : >> { %6468 = vset.pattern.permute.xlu1 %v6647_v0  ;;  %6467 = vset.pattern.permute.xlu0 %v6647_v0  ;;  %12313 = vst [vmem:[#allocation70_spill] sm:$0xff] %v8407_v59  ;;  %12314 = vst [vmem:[#allocation71_spill] sm:$0xff] %v8412_v37  ;;  %v8417_v4 = vld [vmem:[%s11614_s3 + $0x2] ss:$0 sm:$0xff]  ;;  %v8422_v6 = vld [vmem:[%s11614_s3 + $0x3] ss:$0 sm:$0xff] }
 0x19a   : >> { %12315 = vst [vmem:[#allocation72_spill] sm:$0xff] %v8417_v4  ;;  %12316 = vst [vmem:[#allocation73_spill] sm:$0xff] %v8422_v6  ;;  %s8424_s22 = scalar_lea.vmem [#allocation3], %s5668_s12  ;;  %v8437_v23 = vld [vmem:[%s11614_s3 + $0x4] ss:$0 sm:$0xff]  ;;  %s6436_s10 = sshll.u32 %s6644_s11, 8 }
 0x19b   : >> { %12317 = vst [vmem:[#allocation74_spill] sm:$0xff] %v8437_v23  ;;  %v8444_v49 = vld [vmem:[%s11614_s3 + $0x5] ss:$0 sm:$0xff]  ;;  %v8451_v54 = vld [vmem:[%s11614_s3 + $0x6] ss:$0 sm:$0xff]  ;;  %s11469_s14 = scalar_lea.vmem [#allocation2], %s6436_s10 }
 0x19c   : >> { %v8458_v25 = vld [vmem:[%s11614_s3 + $0x7] ss:$0 sm:$0xff]  ;;  %v8465_v56 = vld [vmem:[%s11614_s3 + $0x8] ss:$0 sm:$0xff]  ;;  %v8472_v15 = vld [vmem:[%s11614_s3 + $0x9] ss:$0 sm:$0xff] }
 0x19d   : >> { %v8479_v50 = vld [vmem:[%s11614_s3 + $0xa] ss:$0 sm:$0xff]  ;;  %v8486_v35 = vld [vmem:[%s11614_s3 + $0xb] ss:$0 sm:$0xff]  ;;  %v8493_v17 = vld [vmem:[%s11614_s3 + $0xc] ss:$0 sm:$0xff] }
 0x19e   : >> { %v2050_v11 = vld [vmem:[%s8424_s22 + $0x37] sm:$0xff]  ;;  %v2209_v51 = vld [vmem:[%s8424_s22 + $0x40] sm:$0xff]  ;;  %v2368_v61 = vld [vmem:[%s8424_s22 + $0x49] sm:$0xff]  ;;  %s6437_s15 = sshll.u32 %s6644_s11, 7  ;;  %s2044_s11 = sadd.s32 1, %s6644_s11  }
 0x19f   : >> { %v2103_v29 = vld [vmem:[%s8424_s22 + $0x3a] sm:$0xff]  ;;  %v2071_v55 = vmul.f32 %v8407_v59, %v2050_v11  ;;  %v2262_v34 = vld [vmem:[%s8424_s22 + $0x43] sm:$0xff]  ;;  %v2230_v36 = vmul.f32 %v8422_v6, %v2209_v51  ;;  %v2389_v30 = vmul.f32 %v8451_v54, %v2368_v61  ;;  %v5714_v38 = vld [vmem:[%s8424_s22 + $0xcd] sm:$0xff]  ;;  %s11477_s17 = scalar_lea.vmem %s7332_s16, %s6437_s15  ;;  %p2041_p5 = scmp.ge.s32.totalorder %s2044_s11, 2  }
 0x1a0   : >> { %v2156_v62 = vld [vmem:[%s8424_s22 + $0x3d] sm:$0xff]  ;;  %v2124_v63 = vmul.f32 %v8412_v37, %v2103_v29  ;;  %v2315_v12 = vld [vmem:[%s8424_s22 + $0x46] sm:$0xff]  ;;  %v2283_v28 = vmul.f32 %v8437_v23, %v2262_v34  ;;  %v5731_v10 = vld [vmem:[%s8424_s22 + $0xd0] sm:$0xff]  ;;  %v2551_v32 = vmul.f32 %v8472_v15, %v5714_v38 }
 0x1a1   : >> { %v2177_v22 = vmul.f32 %v8417_v4, %v2156_v62  ;;  %v2336_v57 = vmul.f32 %v8444_v49, %v2315_v12  ;;  %v5680_v53 = vld [vmem:[%s8424_s22 + $0xc7] sm:$0xff]  ;;  %v5748_v3 = vld [vmem:[%s8424_s22 + $0xd3] sm:$0xff]  ;;  %v2604_v8 = vmul.f32 %v8479_v50, %v5731_v10  ;;  %v8514_v27 = vld [vmem:[%s11614_s3 + $0xf] ss:$0 sm:$0xff] }
 0x1a2   : >> { %v2140_v46 = vadd.f32 %v2124_v63, %v2071_v55  ;;  %v5697_v7 = vld [vmem:[%s8424_s22 + $0xca] sm:$0xff]  ;;  %v2445_v39 = vmul.f32 %v8458_v25, %v5680_v53  ;;  %v5765_v1 = vld [vmem:[%s8424_s22 + $0xd6] sm:$0xff]  ;;  %v2657_v24 = vmul.f32 %v8486_v35, %v5748_v3  ;;  %v5852_v0 = vld [vmem:[%s8424_s22 + $0x160] sm:$0xff] }
 0x1a3   : >> { %v2498_v42 = vmul.f32 %v8465_v56, %v5697_v7  ;;  %v5782_v18 = vld [vmem:[%s8424_s22 + $0xd9] sm:$0xff]  ;;  %v8500_v43 = vld [vmem:[%s11614_s3 + $0xd] ss:$0 sm:$0xff]  ;;  %v2710_v9 = vmul.f32 %v8493_v17, %v5765_v1  ;;  %v8507_v58 = vld [vmem:[%s11614_s3 + $0xe] ss:$0 sm:$0xff] }
 0x1a4   : >> { %v2193_v26 = vadd.f32 %v2177_v22, %v2140_v46  ;;  %v5801_v21 = vld [vmem:[%s8424_s22 + $0x157] sm:$0xff]  ;;  %v2763_v60 = vmul.f32 %v8500_v43, %v5782_v18  ;;  %v8521_v14 = vld [vmem:[%s11614_s3 + $0x10] ss:$0 sm:$0xff]  ;;  %v8528_v11 = vld [vmem:[%s11614_s3 + $0x11] ss:$0 sm:$0xff] }
 0x1a5   : >> { %v5818_v5 = vld [vmem:[%s8424_s22 + $0x15a] sm:$0xff]  ;;  %v2819_v16 = vmul.f32 %v8507_v58, %v5801_v21  ;;  %v2048_v29 = vld [vmem:[%s8424_s22 + $0x7] sm:$0xff]  ;;  %v2207_v34 = vld [vmem:[%s8424_s22 + $0x10] sm:$0xff]  ;;  %v2978_v61 = vmul.f32 %v8528_v11, %v5852_v0 }
 0x1a6   : >> { %v2246_v47 = vadd.f32 %v2230_v36, %v2193_v26  ;;  %v5835_v13 = vld [vmem:[%s8424_s22 + $0x15d] sm:$0xff]  ;;  %v2872_v33 = vmul.f32 %v8514_v27, %v5818_v5  ;;  %v2069_v63 = vmul.f32 %v8407_v59, %v2048_v29  ;;  %v2101_v22 = vld [vmem:[%s8424_s22 + $0xa] sm:$0xff]  ;;  %v8540_v36 = vld [vmem:[%s11614_s3 + $0x12] ss:$0 sm:$0xff] }
 0x1a7   : >> { %v2925_v55 = vmul.f32 %v8521_v14, %v5835_v13  ;;  %v2154_v51 = vld [vmem:[%s8424_s22 + $0xd] sm:$0xff]  ;;  %v5869_v46 = vld [vmem:[%s8424_s22 + $0x163] sm:$0xff]  ;;  %v2122_v12 = vmul.f32 %v8412_v37, %v2101_v22  ;;  %v2366_v3 = vld [vmem:[%s8424_s22 + $0x19] sm:$0xff] }
 0x1a8   : >> { %v2299_v19 = vadd.f32 %v2283_v28, %v2246_v47  ;;  %v2175_v26 = vmul.f32 %v8417_v4, %v2154_v51  ;;  %v2260_v47 = vld [vmem:[%s8424_s22 + $0x13] sm:$0xff]  ;;  %v5903_v38 = vld [vmem:[%s8424_s22 + $0x169] sm:$0xff] }
 0x1a9   : >> { %v8550_v53 = vld [vmem:[%s11614_s3 + $0x13] ss:$0 sm:$0xff]  ;;  %v2281_v10 = vmul.f32 %v8437_v23, %v2260_v47  ;;  %v8577_v21 = vld [vmem:[%s11614_s3 + $0x16] ss:$0 sm:$0xff]  ;;  %v5695_v29 = vld [vmem:[%s8424_s22 + $0x9a] sm:$0xff] }
 0x1aa   : >> { %v2352_v41 = vadd.f32 %v2336_v57, %v2299_v19  ;;  %v5886_v57 = vld [vmem:[%s8424_s22 + $0x166] sm:$0xff]  ;;  %v2138_v19 = vadd.f32 %v2122_v12, %v2069_v63  ;;  %12319 = vst [vmem:[#allocation76_spill] sm:$0xff] %v8577_v21  ;;  %v5990_v0 = vld [vmem:[%s8424_s22 + $0x1f3] sm:$0xff]  ;;  %v8619_v47 = vld [vmem:[%s11614_s3 + $0x1c] ss:$0 sm:$0xff] }
 0x1ab   : >> { %v8604_v63 = vld [vmem:[%s11614_s3 + $0x1a] ss:$0 sm:$0xff]  ;;  %12325 = vst [vmem:[#allocation82_spill] sm:$0xff] %v8619_v47 }
 0x1ac   : >> { %v2405_v52 = vadd.f32 %v2389_v30, %v2352_v41  ;;  %v2228_v30 = vmul.f32 %v8422_v6, %v2207_v34  ;;  %v3031_v41 = vmul.f32 %v8540_v36, %v5869_v46  ;;  %12323 = vst [vmem:[#allocation80_spill] sm:$0xff] %v8604_v63  ;;  %v6024_v12 = vld [vmem:[%s8424_s22 + $0x1f9] sm:$0xff] }
 0x1ae   : >> { %v2461_v2 = vadd.f32 %v2445_v39, %v2405_v52  ;;  %v2313_v39 = vld [vmem:[%s8424_s22 + $0x16] sm:$0xff]  ;;  %v8559_v52 = vld [vmem:[%s11614_s3 + $0x14] ss:$0 sm:$0xff] }
 0x1af   : >> { %v3137_v18 = vmul.f32 %v8559_v52, %v5903_v38  ;;  %v8628_v38 = vld [vmem:[%s11614_s3 + $0x1d] ss:$0 sm:$0xff] }
 0x1b0   : >> { %v2514_v40 = vadd.f32 %v2498_v42, %v2461_v2  ;;  %v2191_v42 = vadd.f32 %v2175_v26, %v2138_v19  ;;  %v8612_v26 = vld [vmem:[%s11614_s3 + $0x1b] ss:$0 sm:$0xff]  ;;  %12326 = vst [vmem:[#allocation83_spill] sm:$0xff] %v8628_v38 }
 0x1b1   : >> { %12324 = vst [vmem:[#allocation81_spill] sm:$0xff] %v8612_v26 }
 0x1b2   : >> { %v2567_v20 = vadd.f32 %v2551_v32, %v2514_v40  ;;  %v3084_v32 = vmul.f32 %v8550_v53, %v5886_v57  ;;  %v5922_v40 = vld [vmem:[%s8424_s22 + $0x1e7] sm:$0xff]  ;;  %v2244_v1 = vadd.f32 %v2228_v30, %v2191_v42  ;;  %v6060_v57 = vld [vmem:[%s8424_s22 + $0x27a] sm:$0xff]  ;;  %v2496_v30 = vmul.f32 %v8465_v56, %v5695_v29 }
 0x1b3   : >> { %v6077_v42 = vld [vmem:[%s8424_s22 + $0x27d] sm:$0xff]  ;;  %v2157_v29 = vld [vmem:[%s8424_s22 + $0x45] sm:$0xff] }
 0x1b4   : >> { %v2620_v44 = vadd.f32 %v2604_v8, %v2567_v20  ;;  %v8568_v8 = vld [vmem:[%s11614_s3 + $0x15] ss:$0 sm:$0xff]  ;;  %v2334_v20 = vmul.f32 %v8444_v49, %v2313_v39  ;;  %v2297_v5 = vadd.f32 %v2281_v10, %v2244_v1  ;;  %v8634_v10 = vld [vmem:[%s11614_s3 + $0x1e] ss:$0 sm:$0xff]  ;;  %v6111_v1 = vld [vmem:[%s8424_s22 + $0x283] sm:$0xff] }
 0x1b5   : >> { %12318 = vst [vmem:[#allocation75_spill] sm:$0xff] %v8568_v8  ;;  %v3193_v13 = vmul.f32 %v8568_v8, %v5922_v40  ;;  %12327 = vst [vmem:[#allocation84_spill] sm:$0xff] %v8634_v10  ;;  %v8642_v40 = vld [vmem:[%s11614_s3 + $0x1f] ss:$0 sm:$0xff] }
 0x1b6   : >> { %v2673_v31 = vadd.f32 %v2657_v24, %v2620_v44  ;;  %v5939_v44 = vld [vmem:[%s8424_s22 + $0x1ea] sm:$0xff]  ;;  %v2350_v22 = vadd.f32 %v2334_v20, %v2297_v5  ;;  %12328 = vst [vmem:[#allocation85_spill] sm:$0xff] %v8642_v40  ;;  %v8648_v20 = vld [vmem:[%s11614_s3 + $0x20] ss:$0 sm:$0xff] }
 0x1b7   : >> { %v3246_v46 = vmul.f32 %v8577_v21, %v5939_v44  ;;  %12329 = vst [vmem:[#allocation86_spill] sm:$0xff] %v8648_v20 }
 0x1b8   : >> { %v2726_v45 = vadd.f32 %v2710_v9, %v2673_v31  ;;  %v5678_v9 = vld [vmem:[%s8424_s22 + $0x97] sm:$0xff]  ;;  %v5956_v31 = vld [vmem:[%s8424_s22 + $0x1ed] sm:$0xff] }
 0x1b9   : >> { %v2443_v51 = vmul.f32 %v8458_v25, %v5678_v9 }
 0x1ba   : >> { %v2779_v48 = vadd.f32 %v2763_v60, %v2726_v45  ;;  %v8583_v60 = vld [vmem:[%s11614_s3 + $0x17] ss:$0 sm:$0xff]  ;;  %v2387_v45 = vmul.f32 %v8451_v54, %v2366_v3  ;;  %v6094_v3 = vld [vmem:[%s8424_s22 + $0x280] sm:$0xff] }
 0x1bb   : >> { %12320 = vst [vmem:[#allocation77_spill] sm:$0xff] %v8583_v60  ;;  %v3299_v39 = vmul.f32 %v8583_v60, %v5956_v31  ;;  %v5746_v31 = vld [vmem:[%s8424_s22 + $0xa3] sm:$0xff] }
 0x1bc   : >> { %v2835_v62 = vadd.f32 %v2819_v16, %v2779_v48  ;;  %v5973_v48 = vld [vmem:[%s8424_s22 + $0x1f0] sm:$0xff]  ;;  %v2403_v19 = vadd.f32 %v2387_v45, %v2350_v22  ;;  %v8728_v60 = vld [vmem:[%s11614_s3 + $0x27] ss:$0 sm:$0xff] }
 0x1bd   : >> { %v6145_v22 = vld [vmem:[%s8424_s22 + $0x289] sm:$0xff]  ;;  %12336 = vst [vmem:[#allocation93_spill] sm:$0xff] %v8728_v60 }
 0x1be   : >> { %v2888_v28 = vadd.f32 %v2872_v33, %v2835_v62  ;;  %v8591_v33 = vld [vmem:[%s11614_s3 + $0x18] ss:$0 sm:$0xff]  ;;  %v8598_v62 = vld [vmem:[%s11614_s3 + $0x19] ss:$0 sm:$0xff]  ;;  %v2459_v44 = vadd.f32 %v2443_v51, %v2403_v19  ;;  %v8672_v51 = vld [vmem:[%s11614_s3 + $0x22] ss:$0 sm:$0xff] }
 0x1bf   : >> { %12321 = vst [vmem:[#allocation78_spill] sm:$0xff] %v8591_v33  ;;  %12322 = vst [vmem:[#allocation79_spill] sm:$0xff] %v8598_v62 }
 0x1c0   : >> { %v2941_v7 = vadd.f32 %v2925_v55, %v2888_v28  ;;  %v6007_v55 = vld [vmem:[%s8424_s22 + $0x1f6] sm:$0xff]  ;;  %12331 = vst [vmem:[#allocation88_spill] sm:$0xff] %v8672_v51 }
 0x1c1   : >> { %v5712_v28 = vld [vmem:[%s8424_s22 + $0x9d] sm:$0xff]  ;;  %v8659_v45 = vmul.f32 %v8604_v63, %v6007_v55 }
 0x1c2   : >> { %v2994_v2 = vadd.f32 %v2978_v61, %v2941_v7  ;;  %v6043_v61 = vld [vmem:[%s8424_s22 + $0x277] sm:$0xff]  ;;  %v5729_v7 = vld [vmem:[%s8424_s22 + $0xa0] sm:$0xff]  ;;  %v2549_v9 = vmul.f32 %v8472_v15, %v5712_v28 }
 0x1c3   : >> { %v8678_v55 = vld [vmem:[%s11614_s3 + $0x23] ss:$0 sm:$0xff]  ;;  %v8686_v63 = vmul.f32 %v8619_v47, %v6043_v61  ;;  %v8705_v61 = vld [vmem:[%s11614_s3 + $0x25] ss:$0 sm:$0xff] }
 0x1c4   : >> { %v3047_v24 = vadd.f32 %v3031_v41, %v2994_v2  ;;  %v3352_v2 = vmul.f32 %v8591_v33, %v5973_v48  ;;  %v2051_v48 = vld [vmem:[%s8424_s22 + $0x3f] sm:$0xff]  ;;  %12332 = vst [vmem:[#allocation89_spill] sm:$0xff] %v8678_v55  ;;  %v8692_v33 = vmul.f32 %v8634_v10, %v6077_v42  ;;  %12334 = vst [vmem:[#allocation91_spill] sm:$0xff] %v8705_v61  ;;  %v6232_v42 = vld [vmem:[%s8424_s22 + $0x313] sm:$0xff] }
 0x1c5   : >> { %v2072_v28 = vmul.f32 %v8407_v59, %v2051_v48  ;;  %v2263_v48 = vld [vmem:[%s8424_s22 + $0x4b] sm:$0xff] }
 0x1c6   : >> { %v3100_v16 = vadd.f32 %v3084_v32, %v3047_v24  ;;  %v3405_v32 = vmul.f32 %v8598_v62, %v5990_v0  ;;  %v6128_v24 = vld [vmem:[%s8424_s22 + $0x286] sm:$0xff]  ;;  %v8689_v62 = vmul.f32 %v8628_v38, %v6060_v57  ;;  %v6215_v57 = vld [vmem:[%s8424_s22 + $0x310] sm:$0xff] }
 0x1c7   : >> { %v2104_v0 = vld [vmem:[%s8424_s22 + $0x42] sm:$0xff] }
 0x1c8   : >> { %v3153_v34 = vadd.f32 %v3137_v18, %v3100_v16  ;;  %v8654_v18 = vld [vmem:[%s11614_s3 + $0x21] ss:$0 sm:$0xff]  ;;  %v8662_v16 = vmul.f32 %v8612_v26, %v6024_v12  ;;  %v2512_v12 = vadd.f32 %v2496_v30, %v2459_v44  ;;  %v2125_v19 = vmul.f32 %v8412_v37, %v2104_v0  ;;  %v8697_v30 = vld [vmem:[%s11614_s3 + $0x24] ss:$0 sm:$0xff]  ;;  %v5763_v44 = vld [vmem:[%s8424_s22 + $0xa6] sm:$0xff] }
 0x1c9   : >> { %12330 = vst [vmem:[#allocation87_spill] sm:$0xff] %v8654_v18  ;;  %12333 = vst [vmem:[#allocation90_spill] sm:$0xff] %v8697_v30  ;;  %v6198_v0 = vld [vmem:[%s8424_s22 + $0x30d] sm:$0xff]  ;;  %v8720_v37 = vmul.f32 %v8648_v20, %v6111_v1  ;;  %v8723_v59 = vmul.f32 %v8654_v18, %v6128_v24  ;;  %v6285_v1 = vld [vmem:[%s8424_s22 + $0x397] sm:$0xff]  ;;  %v8748_v20 = vmul.f32 %v8672_v51, %v6145_v22 }
 0x1ca   : >> { %v3209_v41 = vadd.f32 %v3193_v13, %v3153_v34  ;;  %v2602_v13 = vmul.f32 %v8479_v50, %v5729_v7  ;;  %v6164_v34 = vld [vmem:[%s8424_s22 + $0x307] sm:$0xff]  ;;  %v2178_v7 = vmul.f32 %v8417_v4, %v2157_v29  ;;  %v2655_v29 = vmul.f32 %v8486_v35, %v5746_v31  ;;  %v6319_v22 = vld [vmem:[%s8424_s22 + $0x39d] sm:$0xff] }
 0x1cb   : >> { %v2141_v10 = vadd.f32 %v2125_v19, %v2072_v28  ;;  %v8717_v4 = vmul.f32 %v8642_v40, %v6094_v3  ;;  %v2316_v31 = vld [vmem:[%s8424_s22 + $0x4e] sm:$0xff]  ;;  %v8742_v3 = vld [vmem:[%s11614_s3 + $0x29] ss:$0 sm:$0xff]  ;;  %v2708_v28 = vmul.f32 %v8493_v17, %v5763_v44  ;;  %v8751_v40 = vmul.f32 %v8678_v55, %v6164_v34  ;;  %v8773_v34 = vld [vmem:[%s11614_s3 + $0x2c] ss:$0 sm:$0xff] }
 0x1cc   : >> { %v3262_v5 = vadd.f32 %v3246_v46, %v3209_v41  ;;  %v6181_v46 = vld [vmem:[%s8424_s22 + $0x30a] sm:$0xff]  ;;  %12338 = vst [vmem:[#allocation95_spill] sm:$0xff] %v8742_v3  ;;  %12343 = vst [vmem:[#allocation100_spill] sm:$0xff] %v8773_v34  ;;  %v8779_v55 = vmul.f32 %v8705_v61, %v6198_v0 }
 0x1cd   : >> { %v2210_v41 = vld [vmem:[%s8424_s22 + $0x48] sm:$0xff]  ;;  %v2194_v19 = vadd.f32 %v2178_v7, %v2141_v10  ;;  %12339 = vst [vmem:[#allocation96_spill] sm:$0xff] %v8751_v40  ;;  %v2369_v7 = vld [vmem:[%s8424_s22 + $0x51] sm:$0xff]  ;;  %v6336_v40 = vld [vmem:[%s8424_s22 + $0x3a0] sm:$0xff] }
 0x1ce   : >> { %v3315_v26 = vadd.f32 %v3299_v39, %v3262_v5  ;;  %v8711_v39 = vld [vmem:[%s11614_s3 + $0x26] ss:$0 sm:$0xff]  ;;  %v2565_v5 = vadd.f32 %v2549_v9, %v2512_v12  ;;  %v2231_v38 = vmul.f32 %v8422_v6, %v2210_v41  ;;  %v5780_v9 = vld [vmem:[%s8424_s22 + $0xa9] sm:$0xff]  ;;  %v6249_v12 = vld [vmem:[%s8424_s22 + $0x316] sm:$0xff]  ;;  %v2284_v41 = vmul.f32 %v8437_v23, %v2263_v48 }
 0x1cf   : >> { %12335 = vst [vmem:[#allocation92_spill] sm:$0xff] %v8711_v39  ;;  %v8754_v6 = vmul.f32 %v8697_v30, %v6181_v46  ;;  %v5799_v10 = vld [vmem:[%s8424_s22 + $0x127] sm:$0xff]  ;;  %v2761_v44 = vmul.f32 %v8500_v43, %v5780_v9  ;;  %v8782_v51 = vmul.f32 %v8711_v39, %v6215_v57  ;;  %v5681_v9 = vld [vmem:[%s8424_s22 + $0xcf] sm:$0xff] }
 0x1d0   : >> { %v3368_v47 = vadd.f32 %v3352_v2, %v3315_v26  ;;  %v8736_v26 = vld [vmem:[%s11614_s3 + $0x28] ss:$0 sm:$0xff]  ;;  %v6266_v2 = vld [vmem:[%s8424_s22 + $0x319] sm:$0xff]  ;;  %v2618_v24 = vadd.f32 %v2602_v13, %v2565_v5  ;;  %v8759_v13 = vld [vmem:[%s11614_s3 + $0x2a] ss:$0 sm:$0xff]  ;;  %v2247_v48 = vadd.f32 %v2231_v38, %v2194_v19  ;;  %v2337_v5 = vmul.f32 %v8444_v49, %v2316_v31 }
 0x1d1   : >> { %12337 = vst [vmem:[#allocation94_spill] sm:$0xff] %v8736_v26  ;;  %12340 = vst [vmem:[#allocation97_spill] sm:$0xff] %v8754_v6  ;;  %v8785_v6 = vmul.f32 %v8728_v60, %v6232_v42  ;;  %v8793_v38 = vld [vmem:[%s11614_s3 + $0x2d] ss:$0 sm:$0xff]  ;;  %v2817_v57 = vmul.f32 %v8507_v58, %v5799_v10  ;;  %v2390_v31 = vmul.f32 %v8451_v54, %v2369_v7 }
 0x1d2   : >> { %v3421_v18 = vadd.f32 %v3405_v32, %v3368_v47  ;;  %12341 = vst [vmem:[#allocation98_spill] sm:$0xff] %v8759_v13  ;;  %v6302_v47 = vld [vmem:[%s8424_s22 + $0x39a] sm:$0xff]  ;;  %v8767_v32 = vld [vmem:[%s11614_s3 + $0x2b] ss:$0 sm:$0xff]  ;;  %v2671_v46 = vadd.f32 %v2655_v29, %v2618_v24  ;;  %12345 = vst [vmem:[#allocation102_spill] sm:$0xff] %v8793_v38  ;;  %v2300_v42 = vadd.f32 %v2284_v41, %v2247_v48 }
 0x1d3   : >> { %12342 = vst [vmem:[#allocation99_spill] sm:$0xff] %v8767_v32  ;;  %12344 = vst [vmem:[#allocation101_spill] sm:$0xff] %v8785_v6  ;;  %v5816_v29 = vld [vmem:[%s8424_s22 + $0x12a] sm:$0xff]  ;;  %v8805_v19 = vmul.f32 %v8736_v26, %v6249_v12  ;;  %v8808_v60 = vmul.f32 %v8742_v3, %v6266_v2  ;;  %v8811_v6 = vmul.f32 %v8759_v13, %v6285_v1 }
 0x1d4   : >> { %v3474_v30 = vadd.f32 %v8659_v45, %v3421_v18  ;;  %v6353_v18 = vld [vmem:[%s8424_s22 + $0x3a3] sm:$0xff]  ;;  %v8799_v45 = vld [vmem:[%s11614_s3 + $0x2e] ss:$0 sm:$0xff]  ;;  %v2724_v0 = vadd.f32 %v2708_v28, %v2671_v46  ;;  %v5698_v46 = vld [vmem:[%s8424_s22 + $0xd2] sm:$0xff]  ;;  %v2870_v2 = vmul.f32 %v8514_v27, %v5816_v29  ;;  %v2353_v1 = vadd.f32 %v2337_v5, %v2300_v42 }
 0x1d5   : >> { %12346 = vst [vmem:[#allocation103_spill] sm:$0xff] %v8799_v45  ;;  %12347 = vst [vmem:[#allocation104_spill] sm:$0xff] %v8808_v60  ;;  %v6370_v39 = vld [vmem:[%s8424_s22 + $0x3a6] sm:$0xff]  ;;  %v8819_v41 = vld [vmem:[%s11614_s3 + $0x2f] ss:$0 sm:$0xff]  ;;  %v2446_v10 = vmul.f32 %v8458_v25, %v5681_v9  ;;  %v8831_v48 = vmul.f32 %v8767_v32, %v6302_v47  ;;  %v8837_v60 = vmul.f32 %v8793_v38, %v6336_v40 }
 0x1d6   : >> { %v3527_v24 = vadd.f32 %v8662_v16, %v3474_v30  ;;  %12348 = vst [vmem:[#allocation105_spill] sm:$0xff] %v8811_v6  ;;  %v5833_v28 = vld [vmem:[%s8424_s22 + $0x12d] sm:$0xff]  ;;  %12349 = vst [vmem:[#allocation106_spill] sm:$0xff] %v8819_v41  ;;  %v2777_v12 = vadd.f32 %v2761_v44, %v2724_v0  ;;  %v8834_v6 = vmul.f32 %v8773_v34, %v6319_v22  ;;  %v5715_v44 = vld [vmem:[%s8424_s22 + $0xd5] sm:$0xff] }
 0x1d7   : >> { %v6387_v16 = vld [vmem:[%s8424_s22 + $0x3a9] sm:$0xff]  ;;  %12351 = vst [vmem:[#allocation108_spill] sm:$0xff] %v8831_v48  ;;  %12353 = vst [vmem:[#allocation110_spill] sm:$0xff] %v8837_v60  ;;  %v2923_v5 = vmul.f32 %v8521_v14, %v5833_v28  ;;  %v5884_v9 = vld [vmem:[%s8424_s22 + $0x136] sm:$0xff]  ;;  %v2406_v0 = vadd.f32 %v2390_v31, %v2353_v1  ;;  %v2499_v42 = vmul.f32 %v8465_v56, %v5698_v46 }
 0x1d8   : >> { %v8825_v30 = vld [vmem:[%s11614_s3 + $0x30] ss:$0 sm:$0xff]  ;;  %v3583_v7 = vadd.f32 %v8686_v63, %v3527_v24  ;;  %12352 = vst [vmem:[#allocation109_spill] sm:$0xff] %v8834_v6  ;;  %v2833_v29 = vadd.f32 %v2817_v57, %v2777_v12  ;;  %v5867_v63 = vld [vmem:[%s8424_s22 + $0x133] sm:$0xff]  ;;  %v8848_v24 = vmul.f32 %v8799_v45, %v6353_v18  ;;  %v8851_v40 = vmul.f32 %v8819_v41, %v6370_v39  ;;  %v5971_v18 = vld [vmem:[%s8424_s22 + $0x1c0] sm:$0xff] }
 0x1d9   : >> { %12350 = vst [vmem:[#allocation107_spill] sm:$0xff] %v8825_v30  ;;  %v5850_v13 = vld [vmem:[%s8424_s22 + $0x130] sm:$0xff]  ;;  %v5901_v47 = vld [vmem:[%s8424_s22 + $0x139] sm:$0xff]  ;;  %v8854_v57 = vmul.f32 %v8825_v30, %v6387_v16  ;;  %v2462_v1 = vadd.f32 %v2446_v10, %v2406_v0  ;;  %v3082_v16 = vmul.f32 %v8550_v53, %v5884_v9 }
 0x1da   : >> { %v3636_v22 = vadd.f32 %v8689_v62, %v3583_v7  ;;  %12354 = vst [vmem:[#allocation111_spill] sm:$0xff] %v8848_v24  ;;  %12355 = vst [vmem:[#allocation112_spill] sm:$0xff] %v8851_v40  ;;  %v5920_v28 = vld [vmem:[%s8424_s22 + $0x1b7] sm:$0xff]  ;;  %v2886_v60 = vadd.f32 %v2870_v2, %v2833_v29  ;;  %v2976_v31 = vmul.f32 %v8528_v11, %v5850_v13  ;;  %v5988_v29 = vld [vmem:[%s8424_s22 + $0x1c3] sm:$0xff] }
 0x1db   : >> { %12356 = vst [vmem:[#allocation113_spill] sm:$0xff] %v8854_v57  ;;  %v5732_v12 = vld [vmem:[%s8424_s22 + $0xd8] sm:$0xff]  ;;  %v2552_v7 = vmul.f32 %v8472_v15, %v5715_v44  ;;  %v3029_v40 = vmul.f32 %v8540_v36, %v5867_v63  ;;  %v3135_v2 = vmul.f32 %v8559_v52, %v5901_v47  ;;  %v3191_v57 = vmul.f32 %v8568_v8, %v5920_v28  ;;  %v6005_v24 = vld [vmem:[%s8424_s22 + $0x1c6] sm:$0xff]  ;;  %v12357_v47 = vld [vmem:[#allocation77_spill] sm:$0xff] }
 0x1dc   : >> { %v5937_v46 = vld [vmem:[%s8424_s22 + $0x1ba] sm:$0xff]  ;;  %v3689_v39 = vadd.f32 %v8692_v33, %v3636_v22  ;;  %v2939_v30 = vadd.f32 %v2923_v5, %v2886_v60  ;;  %v2515_v10 = vadd.f32 %v2499_v42, %v2462_v1  ;;  %v2605_v44 = vmul.f32 %v8479_v50, %v5732_v12  ;;  %v2049_v33 = vld [vmem:[%s8424_s22 + $0xf] sm:$0xff] }
 0x1dd   : >> { %v5954_v62 = vld [vmem:[%s8424_s22 + $0x1bd] sm:$0xff]  ;;  %v2102_v63 = vld [vmem:[%s8424_s22 + $0x12] sm:$0xff]  ;;  %v8876_v0 = vmul.f32 %v8577_v21, %v5937_v46  ;;  %v6022_v41 = vld [vmem:[%s8424_s22 + $0x1c9] sm:$0xff] }
 0x1de   : >> { %v5749_v13 = vld [vmem:[%s8424_s22 + $0xdb] sm:$0xff]  ;;  %v3742_v9 = vadd.f32 %v8717_v4, %v3689_v39  ;;  %v8879_v22 = vmul.f32 %v12357_v47, %v5954_v62  ;;  %v2992_v1 = vadd.f32 %v2976_v31, %v2939_v30  ;;  %v2568_v48 = vadd.f32 %v2552_v7, %v2515_v10  ;;  %v12360_v39 = vld [vmem:[#allocation80_spill] sm:$0xff] }
 0x1df   : >> { %v12358_v60 = vld [vmem:[#allocation78_spill] sm:$0xff]  ;;  %v12359_v12 = vld [vmem:[#allocation79_spill] sm:$0xff]  ;;  %v2658_v4 = vmul.f32 %v8486_v35, %v5749_v13  ;;  %v6058_v45 = vld [vmem:[%s8424_s22 + $0x24a] sm:$0xff] }
 0x1e0   : >> { %v8882_v5 = vmul.f32 %v12358_v60, %v5971_v18  ;;  %v5766_v28 = vld [vmem:[%s8424_s22 + $0xde] sm:$0xff]  ;;  %v2155_v42 = vld [vmem:[%s8424_s22 + $0x15] sm:$0xff]  ;;  %v8887_v6 = vmul.f32 %v12359_v12, %v5988_v29  ;;  %v3795_v62 = vadd.f32 %v8720_v37, %v3742_v9  ;;  %v8894_v18 = vmul.f32 %v12360_v39, %v6005_v24  ;;  %v6041_v60 = vld [vmem:[%s8424_s22 + $0x247] sm:$0xff] }
 0x1e1   : >> { %v2208_v46 = vld [vmem:[%s8424_s22 + $0x18] sm:$0xff]  ;;  %v5783_v47 = vld [vmem:[%s8424_s22 + $0xe1] sm:$0xff]  ;;  %v3045_v12 = vadd.f32 %v3029_v40, %v2992_v1  ;;  %v2621_v7 = vadd.f32 %v2605_v44, %v2568_v48  ;;  %v2711_v13 = vmul.f32 %v8493_v17, %v5766_v28  ;;  %v12364_v9 = vld [vmem:[#allocation81_spill] sm:$0xff] }
 0x1e2   : >> { %v12361_v21 = vld [vmem:[#allocation70_spill] sm:$0xff]  ;;  %v12362_v31 = vld [vmem:[#allocation71_spill] sm:$0xff]  ;;  %v12363_v10 = vld [vmem:[#allocation72_spill] sm:$0xff]  ;;  %v3848_v24 = vadd.f32 %v8723_v59, %v3795_v62  ;;  %v8906_v39 = vmul.f32 %v12364_v9, %v6022_v41 }
 0x1e3   : >> { %v2070_v30 = vmul.f32 %v12361_v21, %v2049_v33  ;;  %v2123_v29 = vmul.f32 %v12362_v31, %v2102_v63  ;;  %v2176_v38 = vmul.f32 %v12363_v10, %v2155_v42  ;;  %v2261_v37 = vld [vmem:[%s8424_s22 + $0x1b] sm:$0xff]  ;;  %v6075_v33 = vld [vmem:[%s8424_s22 + $0x24d] sm:$0xff]  ;;  %v3098_v1 = vadd.f32 %v3082_v16, %v3045_v12 }
 0x1e4   : >> { %v5802_v21 = vld [vmem:[%s8424_s22 + $0x15f] sm:$0xff]  ;;  %v12365_v63 = vld [vmem:[#allocation73_spill] sm:$0xff]  ;;  %v2674_v42 = vadd.f32 %v2658_v4, %v2621_v7  ;;  %v2764_v10 = vmul.f32 %v8500_v43, %v5783_v47  ;;  %v3901_v41 = vadd.f32 %v8748_v20, %v3848_v24  ;;  %v2282_v16 = vmul.f32 %v8437_v23, %v2261_v37  ;;  %v12368_v12 = vld [vmem:[#allocation84_spill] sm:$0xff] }
 0x1e5   : >> { %v2139_v8 = vadd.f32 %v2123_v29, %v2070_v30  ;;  %v2229_v40 = vmul.f32 %v12365_v63, %v2208_v46  ;;  %v12366_v48 = vld [vmem:[#allocation82_spill] sm:$0xff]  ;;  %v6092_v28 = vld [vmem:[%s8424_s22 + $0x250] sm:$0xff]  ;;  %v12367_v62 = vld [vmem:[#allocation83_spill] sm:$0xff]  ;;  %v2820_v7 = vmul.f32 %v8507_v58, %v5802_v21 }
 0x1e6   : >> { %v8912_v44 = vmul.f32 %v12366_v48, %v6041_v60  ;;  %v2314_v59 = vld [vmem:[%s8424_s22 + $0x1e] sm:$0xff]  ;;  %v8919_v9 = vmul.f32 %v12367_v62, %v6058_v45  ;;  %v6109_v30 = vld [vmem:[%s8424_s22 + $0x253] sm:$0xff]  ;;  %v3151_v60 = vadd.f32 %v3135_v2, %v3098_v1  ;;  %v8925_v48 = vmul.f32 %v12368_v12, %v6075_v33  ;;  %v12369_v24 = vld [vmem:[#allocation96_spill] sm:$0xff] }
 0x1e7   : >> { %v5819_v29 = vld [vmem:[%s8424_s22 + $0x162] sm:$0xff]  ;;  %v2192_v46 = vadd.f32 %v2176_v38, %v2139_v8  ;;  %v6126_v4 = vld [vmem:[%s8424_s22 + $0x256] sm:$0xff]  ;;  %v2727_v47 = vadd.f32 %v2711_v13, %v2674_v42  ;;  %v3957_v45 = vadd.f32 %v12369_v24, %v3901_v41  ;;  %v2335_v2 = vmul.f32 %v8444_v49, %v2314_v59 }
 0x1e8   : >> { %v2367_v20 = vld [vmem:[%s8424_s22 + $0x21] sm:$0xff]  ;;  %v12370_v62 = vld [vmem:[#allocation85_spill] sm:$0xff]  ;;  %v6143_v8 = vld [vmem:[%s8424_s22 + $0x259] sm:$0xff]  ;;  %v3207_v33 = vadd.f32 %v3191_v57, %v3151_v60  ;;  %v2873_v12 = vmul.f32 %v8514_v27, %v5819_v29 }
 0x1e9   : >> { %v8932_v63 = vmul.f32 %v12370_v62, %v6092_v28  ;;  %v5836_v38 = vld [vmem:[%s8424_s22 + $0x165] sm:$0xff]  ;;  %v2245_v37 = vadd.f32 %v2229_v40, %v2192_v46  ;;  %v12371_v1 = vld [vmem:[#allocation86_spill] sm:$0xff]  ;;  %v2780_v21 = vadd.f32 %v2764_v10, %v2727_v47  ;;  %v12372_v41 = vld [vmem:[#allocation97_spill] sm:$0xff]  ;;  %v2388_v57 = vmul.f32 %v8451_v54, %v2367_v20 }
 0x1ea   : >> { %v8938_v13 = vmul.f32 %v12371_v1, %v6109_v30  ;;  %v6162_v42 = vld [vmem:[%s8424_s22 + $0x2d7] sm:$0xff]  ;;  %v4010_v28 = vadd.f32 %v12372_v41, %v3957_v45  ;;  %v12373_v24 = vld [vmem:[#allocation87_spill] sm:$0xff]  ;;  %v5853_v40 = vld [vmem:[%s8424_s22 + $0x168] sm:$0xff]  ;;  %v3260_v59 = vadd.f32 %v8876_v0, %v3207_v33  ;;  %v2926_v47 = vmul.f32 %v8521_v14, %v5836_v38 }
 0x1eb   : >> { %v8944_v62 = vmul.f32 %v12373_v24, %v6126_v4  ;;  %v6179_v23 = vld [vmem:[%s8424_s22 + $0x2da] sm:$0xff]  ;;  %v2298_v46 = vadd.f32 %v2282_v16, %v2245_v37  ;;  %v12374_v30 = vld [vmem:[#allocation88_spill] sm:$0xff]  ;;  %v2836_v29 = vadd.f32 %v2820_v7, %v2780_v21  ;;  %v12376_v16 = vld [vmem:[#allocation89_spill] sm:$0xff] }
 0x1ec   : >> { %v8951_v60 = vmul.f32 %v12374_v30, %v6143_v8  ;;  %v6196_v10 = vld [vmem:[%s8424_s22 + $0x2dd] sm:$0xff]  ;;  %v4063_v4 = vadd.f32 %v8779_v55, %v4010_v28  ;;  %v8960_v37 = vmul.f32 %v12376_v16, %v6162_v42  ;;  %v5870_v41 = vld [vmem:[%s8424_s22 + $0x16b] sm:$0xff]  ;;  %v3313_v7 = vadd.f32 %v8879_v22, %v3260_v59 }
 0x1ed   : >> { %v8956_v45 = vld [vmem:[%s8424_s22 + $0x9f] sm:$0xff]  ;;  %v2351_v0 = vadd.f32 %v2335_v2, %v2298_v46  ;;  %v2889_v30 = vadd.f32 %v2873_v12, %v2836_v29  ;;  %v2979_v55 = vmul.f32 %v8528_v11, %v5853_v40  ;;  %v8977_v28 = vmul.f32 %v8705_v61, %v6196_v10  ;;  %v12379_v59 = vld [vmem:[#allocation92_spill] sm:$0xff]  ;;  %v5904_v16 = vld [vmem:[%s8424_s22 + $0x171] sm:$0xff] }
 0x1ee   : >> { %12375 = vst [vmem:[#allocation71_spill] sm:$0xff] %v8956_v45  ;;  %v6213_v20 = vld [vmem:[%s8424_s22 + $0x2e0] sm:$0xff]  ;;  %v2444_v8 = vmul.f32 %v8458_v25, %v8956_v45  ;;  %v12377_v33 = vld [vmem:[#allocation90_spill] sm:$0xff]  ;;  %v4116_v2 = vadd.f32 %v8782_v51, %v4063_v4  ;;  %v5887_v45 = vld [vmem:[%s8424_s22 + $0x16e] sm:$0xff]  ;;  %v3366_v12 = vadd.f32 %v8882_v5, %v3313_v7  ;;  %v3032_v51 = vmul.f32 %v8540_v36, %v5870_v41 }
 0x1ef   : >> { %v8968_v38 = vmul.f32 %v12377_v33, %v6179_v23  ;;  %v6230_v21 = vld [vmem:[%s8424_s22 + $0x2e3] sm:$0xff]  ;;  %v2404_v22 = vadd.f32 %v2388_v57, %v2351_v0  ;;  %v8985_v40 = vmul.f32 %v12379_v59, %v6213_v20  ;;  %v2942_v33 = vadd.f32 %v2926_v47, %v2889_v30  ;;  %v12381_v4 = vld [vmem:[#allocation101_spill] sm:$0xff] }
 0x1f0   : >> { %v8973_v42 = vld [vmem:[%s8424_s22 + $0xa2] sm:$0xff]  ;;  %v4169_v57 = vadd.f32 %v12381_v4, %v4116_v2  ;;  %v12382_v0 = vld [vmem:[#allocation93_spill] sm:$0xff]  ;;  %v3419_v30 = vadd.f32 %v8887_v6, %v3366_v12  ;;  %v3085_v2 = vmul.f32 %v8550_v53, %v5887_v45 }
 0x1f1   : >> { %12378 = vst [vmem:[#allocation96_spill] sm:$0xff] %v8973_v42  ;;  %v6247_v46 = vld [vmem:[%s8424_s22 + $0x2e6] sm:$0xff]  ;;  %v2497_v23 = vmul.f32 %v8465_v56, %v8973_v42  ;;  %v8994_v61 = vmul.f32 %v12382_v0, %v6230_v21  ;;  %v2460_v5 = vadd.f32 %v2444_v8, %v2404_v22  ;;  %v2995_v7 = vadd.f32 %v2979_v55, %v2942_v33  ;;  %v12384_v55 = vld [vmem:[#allocation98_spill] sm:$0xff]  ;;  %v6334_v12 = vld [vmem:[%s8424_s22 + $0x370] sm:$0xff] }
 0x1f2   : >> { %v6264_v29 = vld [vmem:[%s8424_s22 + $0x2e9] sm:$0xff]  ;;  %v9002_v47 = vmul.f32 %v8736_v26, %v6247_v46  ;;  %v4222_v8 = vadd.f32 %v8805_v19, %v4169_v57  ;;  %v3472_v33 = vadd.f32 %v8894_v18, %v3419_v30  ;;  %v3138_v19 = vmul.f32 %v8559_v52, %v5904_v16 }
 0x1f3   : >> { %v8990_v10 = vld [vmem:[%s8424_s22 + $0xa5] sm:$0xff]  ;;  %v9011_v22 = vmul.f32 %v8742_v3, %v6264_v29  ;;  %v6317_v4 = vld [vmem:[%s8424_s22 + $0x36d] sm:$0xff]  ;;  %v2513_v6 = vadd.f32 %v2497_v23, %v2460_v5  ;;  %v3048_v26 = vadd.f32 %v3032_v51, %v2995_v7  ;;  %v6368_v51 = vld [vmem:[%s8424_s22 + $0x376] sm:$0xff] }
 0x1f4   : >> { %12380 = vst [vmem:[#allocation86_spill] sm:$0xff] %v8990_v10  ;;  %v6283_v42 = vld [vmem:[%s8424_s22 + $0x367] sm:$0xff]  ;;  %v2550_v20 = vmul.f32 %v8472_v15, %v8990_v10  ;;  %v5923_v10 = vld [vmem:[%s8424_s22 + $0x1ef] sm:$0xff]  ;;  %v3525_v30 = vadd.f32 %v8906_v39, %v3472_v33  ;;  %v9036_v16 = vmul.f32 %v8773_v34, %v6317_v4  ;;  %v5974_v39 = vld [vmem:[%s8424_s22 + $0x1f8] sm:$0xff] }
 0x1f5   : >> { %v6300_v41 = vld [vmem:[%s8424_s22 + $0x36a] sm:$0xff]  ;;  %v9019_v45 = vmul.f32 %v12384_v55, %v6283_v42  ;;  %v5940_v3 = vld [vmem:[%s8424_s22 + $0x1f2] sm:$0xff]  ;;  %v3101_v7 = vadd.f32 %v3085_v2, %v3048_v26  ;;  %v12395_v26 = vld [vmem:[#allocation103_spill] sm:$0xff] }
 0x1f6   : >> { %v9007_v21 = vld [vmem:[%s8424_s22 + $0xa8] sm:$0xff]  ;;  %v9028_v5 = vmul.f32 %v8767_v32, %v6300_v41  ;;  %v2566_v18 = vadd.f32 %v2550_v20, %v2513_v6  ;;  %12389 = vst [vmem:[#allocation93_spill] sm:$0xff] %v9036_v16  ;;  %v12392_v41 = vld [vmem:[#allocation105_spill] sm:$0xff]  ;;  %v12393_v32 = vld [vmem:[#allocation102_spill] sm:$0xff] }
 0x1f7   : >> { %12383 = vst [vmem:[#allocation97_spill] sm:$0xff] %v9007_v21  ;;  %v2603_v46 = vmul.f32 %v8479_v50, %v9007_v21  ;;  %12385 = vst [vmem:[#allocation87_spill] sm:$0xff] %v9019_v45  ;;  %v9024_v29 = vld [vmem:[%s8424_s22 + $0xab] sm:$0xff]  ;;  %v6351_v21 = vld [vmem:[%s8424_s22 + $0x373] sm:$0xff]  ;;  %v9045_v20 = vmul.f32 %v12393_v32, %v6334_v12  ;;  %v3154_v2 = vadd.f32 %v3138_v19, %v3101_v7 }
 0x1f8   : >> { %12386 = vst [vmem:[#allocation92_spill] sm:$0xff] %v9024_v29  ;;  %v12387_v57 = vld [vmem:[#allocation104_spill] sm:$0xff]  ;;  %12388 = vst [vmem:[#allocation101_spill] sm:$0xff] %v9028_v5  ;;  %v2656_v42 = vmul.f32 %v8486_v35, %v9024_v29  ;;  %v12390_v45 = vld [vmem:[#allocation75_spill] sm:$0xff]  ;;  %v3581_v29 = vadd.f32 %v8912_v44, %v3525_v30 }
 0x1f9   : >> { %v4275_v23 = vadd.f32 %v12387_v57, %v4222_v8  ;;  %v3194_v8 = vmul.f32 %v12390_v45, %v5923_v10  ;;  %v9041_v57 = vld [vmem:[%s8424_s22 + $0xae] sm:$0xff]  ;;  %12394 = vst [vmem:[#allocation104_spill] sm:$0xff] %v9045_v20  ;;  %v2619_v33 = vadd.f32 %v2603_v46, %v2566_v18  ;;  %v9053_v10 = vmul.f32 %v12395_v26, %v6351_v21  ;;  %v12400_v16 = vld [vmem:[#allocation106_spill] sm:$0xff] }
 0x1fa   : >> { %12391 = vst [vmem:[#allocation98_spill] sm:$0xff] %v9041_v57  ;;  %v5957_v6 = vld [vmem:[%s8424_s22 + $0x1f5] sm:$0xff]  ;;  %v2709_v4 = vmul.f32 %v8493_v17, %v9041_v57  ;;  %v12399_v32 = vld [vmem:[#allocation108_spill] sm:$0xff]  ;;  %v9062_v46 = vmul.f32 %v12400_v16, %v6368_v51  ;;  %v3634_v19 = vadd.f32 %v8919_v9, %v3581_v29 }
 0x1fb   : >> { %v4331_v5 = vadd.f32 %v12392_v41, %v4275_v23  ;;  %12396 = vst [vmem:[#allocation75_spill] sm:$0xff] %v9053_v10  ;;  %v12397_v23 = vld [vmem:[#allocation76_spill] sm:$0xff]  ;;  %v9057_v34 = vld [vmem:[%s8424_s22 + $0xb1] sm:$0xff]  ;;  %v2672_v17 = vadd.f32 %v2656_v42, %v2619_v33 }
 0x1fc   : >> { %v3247_v41 = vmul.f32 %v12397_v23, %v5940_v3  ;;  %12398 = vst [vmem:[#allocation105_spill] sm:$0xff] %v9057_v34  ;;  %v2053_v12 = vld [vmem:[%s8424_s22 + $0x6f] sm:$0xff]  ;;  %12401 = vst [vmem:[#allocation76_spill] sm:$0xff] %v9062_v46  ;;  %v2762_v44 = vmul.f32 %v8500_v43, %v9057_v34  ;;  %v3210_v3 = vadd.f32 %v3194_v8, %v3154_v2  ;;  %v12403_v57 = vld [vmem:[#allocation78_spill] sm:$0xff] }
 0x1fd   : >> { %v4384_v20 = vadd.f32 %v12399_v32, %v4331_v5  ;;  %v2106_v21 = vld [vmem:[%s8424_s22 + $0x72] sm:$0xff]  ;;  %v3353_v26 = vmul.f32 %v12403_v57, %v5974_v39  ;;  %v5991_v32 = vld [vmem:[%s8424_s22 + $0x1fb] sm:$0xff]  ;;  %v2725_v33 = vadd.f32 %v2709_v4, %v2672_v17  ;;  %v3687_v29 = vadd.f32 %v8925_v48, %v3634_v19  ;;  %v12406_v46 = vld [vmem:[#allocation72_spill] sm:$0xff] }
 0x1fe   : >> { %v2159_v18 = vld [vmem:[%s8424_s22 + $0x75] sm:$0xff]  ;;  %v3263_v8 = vadd.f32 %v3247_v41, %v3210_v3  ;;  %v2127_v2 = vmul.f32 %v12362_v31, %v2106_v21  ;;  %v12408_v17 = vld [vmem:[#allocation79_spill] sm:$0xff] }
 0x1ff   : >> { %v12402_v30 = vld [vmem:[#allocation77_spill] sm:$0xff]  ;;  %v12405_v34 = vld [vmem:[#allocation70_spill] sm:$0xff]  ;;  %v2180_v10 = vmul.f32 %v12406_v46, %v2159_v18  ;;  %v3740_v41 = vadd.f32 %v8932_v63, %v3687_v29  ;;  %v6025_v19 = vld [vmem:[%s8424_s22 + $0x201] sm:$0xff] }
 0x200   : >> { %v3300_v7 = vmul.f32 %v12402_v30, %v5957_v6  ;;  %v9073_v5 = vld [vmem:[%s8424_s22 + $0x12f] sm:$0xff]  ;;  %v2074_v16 = vmul.f32 %v12405_v34, %v2053_v12  ;;  %v2212_v9 = vld [vmem:[%s8424_s22 + $0x78] sm:$0xff]  ;;  %v12410_v18 = vld [vmem:[#allocation111_spill] sm:$0xff] }
 0x201   : >> { %v12404_v51 = vld [vmem:[#allocation109_spill] sm:$0xff]  ;;  %v2818_v43 = vmul.f32 %v8507_v58, %v9073_v5  ;;  %v6008_v6 = vld [vmem:[%s8424_s22 + $0x1fe] sm:$0xff]  ;;  %v3406_v58 = vmul.f32 %v12408_v17, %v5991_v32  ;;  %v12411_v32 = vld [vmem:[#allocation80_spill] sm:$0xff]  ;;  %v3793_v63 = vadd.f32 %v8938_v13, %v3740_v41 }
 0x202   : >> { %v4437_v42 = vadd.f32 %v12404_v51, %v4384_v20  ;;  %v9083_v39 = vld [vmem:[%s8424_s22 + $0x132] sm:$0xff]  ;;  %v2778_v51 = vadd.f32 %v2762_v44, %v2725_v33  ;;  %v2265_v48 = vld [vmem:[%s8424_s22 + $0x7b] sm:$0xff]  ;;  %v3316_v12 = vadd.f32 %v3300_v7, %v3263_v8  ;;  %v2143_v31 = vadd.f32 %v2127_v2, %v2074_v16 }
 0x203   : >> { %v12407_v20 = vld [vmem:[#allocation110_spill] sm:$0xff]  ;;  %v2871_v34 = vmul.f32 %v8514_v27, %v9083_v39  ;;  %v12409_v46 = vld [vmem:[#allocation73_spill] sm:$0xff]  ;;  %v3459_v44 = vmul.f32 %v12411_v32, %v6008_v6  ;;  %v3846_v13 = vadd.f32 %v8944_v62, %v3793_v63  ;;  %v6061_v41 = vld [vmem:[%s8424_s22 + $0x282] sm:$0xff] }
 0x204   : >> { %v4490_v4 = vadd.f32 %v12407_v20, %v4437_v42  ;;  %v9095_v3 = vld [vmem:[%s8424_s22 + $0x135] sm:$0xff]  ;;  %v2233_v21 = vmul.f32 %v12409_v46, %v2212_v9  ;;  %v2834_v33 = vadd.f32 %v2818_v43, %v2778_v51  ;;  %v2318_v20 = vld [vmem:[%s8424_s22 + $0x7e] sm:$0xff]  ;;  %v3369_v7 = vadd.f32 %v3353_v26, %v3316_v12  ;;  %v12413_v46 = vld [vmem:[#allocation112_spill] sm:$0xff] }
 0x205   : >> { %v2924_v27 = vmul.f32 %v8521_v14, %v9095_v3  ;;  %v6044_v29 = vld [vmem:[%s8424_s22 + $0x27f] sm:$0xff]  ;;  %v2196_v16 = vadd.f32 %v2180_v10, %v2143_v31  ;;  %v12414_v6 = vld [vmem:[#allocation81_spill] sm:$0xff]  ;;  %v2339_v12 = vmul.f32 %v8444_v49, %v2318_v20  ;;  %v3899_v62 = vadd.f32 %v8951_v60, %v3846_v13 }
 0x206   : >> { %v4543_v42 = vadd.f32 %v12410_v18, %v4490_v4  ;;  %v9106_v8 = vld [vmem:[%s8424_s22 + $0x138] sm:$0xff]  ;;  %v3512_v43 = vmul.f32 %v12414_v6, %v6025_v19  ;;  %v2887_v51 = vadd.f32 %v2871_v34, %v2834_v33  ;;  %v2371_v18 = vld [vmem:[%s8424_s22 + $0x81] sm:$0xff]  ;;  %v3422_v26 = vadd.f32 %v3406_v58, %v3369_v7  ;;  %v12415_v31 = vld [vmem:[#allocation113_spill] sm:$0xff] }
 0x207   : >> { %v12412_v9 = vld [vmem:[#allocation74_spill] sm:$0xff]  ;;  %v2977_v14 = vmul.f32 %v8528_v11, %v9106_v8  ;;  %v2392_v20 = vmul.f32 %v8451_v54, %v2371_v18  ;;  %v5700_v60 = vld [vmem:[%s8424_s22 + $0x102] sm:$0xff]  ;;  %v6112_v13 = vld [vmem:[%s8424_s22 + $0x28b] sm:$0xff] }
 0x208   : >> { %v2286_v2 = vmul.f32 %v12412_v9, %v2265_v48  ;;  %v4596_v4 = vadd.f32 %v12413_v46, %v4543_v42  ;;  %v9117_v10 = vld [vmem:[%s8424_s22 + $0x13b] sm:$0xff]  ;;  %v2249_v48 = vadd.f32 %v2233_v21, %v2196_v16  ;;  %v2940_v33 = vadd.f32 %v2924_v27, %v2887_v51  ;;  %v6078_v21 = vld [vmem:[%s8424_s22 + $0x285] sm:$0xff] }
 0x209   : >> { %v12416_v19 = vld [vmem:[#allocation82_spill] sm:$0xff]  ;;  %v3030_v11 = vmul.f32 %v8540_v36, %v9117_v10  ;;  %v3475_v63 = vadd.f32 %v3459_v44, %v3422_v26  ;;  %v12418_v16 = vld [vmem:[#allocation5_spill] sm:$0xff]  ;;  %v3955_v44 = vadd.f32 %v8960_v37, %v3899_v62 }
 0x20a   : >> { %v4649_v42 = vadd.f32 %v12415_v31, %v4596_v4  ;;  %v3568_v34 = vmul.f32 %v12416_v19, %v6044_v29  ;;  %v5683_v9 = vld [vmem:[%s8424_s22 + $0xff] sm:$0xff]  ;;  %v2302_v49 = vadd.f32 %v2286_v2, %v2249_v48  ;;  %v2993_v36 = vadd.f32 %v2977_v14, %v2940_v33  ;;  %v6095_v2 = vld [vmem:[%s8424_s22 + $0x288] sm:$0xff]  ;;  %v6146_v33 = vld [vmem:[%s8424_s22 + $0x291] sm:$0xff] }
 0x20b   : >> { %v6385_v58 = vld [vmem:[%s8424_s22 + $0x379] sm:$0xff]  ;;  %v3528_v51 = vadd.f32 %v3512_v43, %v3475_v63  ;;  %v9143_v54 = vld [vmem:[%s8424_s22 + $0x141] sm:$0xff]  ;;  %v2448_v26 = vmul.f32 %v8458_v25, %v5683_v9  ;;  %v6129_v25 = vld [vmem:[%s8424_s22 + $0x28e] sm:$0xff] }
 0x20c   : >> { %v9129_v7 = vld [vmem:[%s8424_s22 + $0x13e] sm:$0xff]  ;;  %v9133_v29 = vadd.f32 %v12418_v16, %v4649_v42  ;;  %12421 = vst [vmem:[#allocation78_spill] sm:$0xff] %v9143_v54  ;;  %v2355_v18 = vadd.f32 %v2339_v12, %v2302_v49  ;;  %v3046_v31 = vadd.f32 %v3030_v11, %v2993_v36  ;;  %v3136_v37 = vmul.f32 %v8559_v52, %v9143_v54  ;;  %v12425_v63 = vld [vmem:[#allocation85_spill] sm:$0xff] }
 0x20d   : >> { %12417 = vst [vmem:[#allocation108_spill] sm:$0xff] %v9129_v7  ;;  %v12420_v27 = vld [vmem:[#allocation83_spill] sm:$0xff]  ;;  %v3083_v4 = vmul.f32 %v8550_v53, %v9129_v7  ;;  %v12423_v53 = vld [vmem:[#allocation84_spill] sm:$0xff]  ;;  %v4008_v42 = vadd.f32 %v8968_v38, %v3955_v44  ;;  %v3584_v12 = vadd.f32 %v3568_v34, %v3528_v51  ;;  %v3780_v11 = vmul.f32 %v12371_v1, %v6112_v13 }
 0x20e   : >> { %12419 = vst [vmem:[#allocation77_spill] sm:$0xff] %v9133_v29  ;;  %v3621_v46 = vmul.f32 %v12420_v27, %v6061_v41  ;;  %4705 = vperm.xlu1 %6468, %v9133_v29   ;;  %v12422_v14 = vld [vmem:[#allocation107_spill] sm:$0xff]  ;;  %v3674_v48 = vmul.f32 %v12423_v53, %v6078_v21  ;;  %v2408_v62 = vadd.f32 %v2392_v20, %v2355_v18  ;;  %v5734_v38 = vld [vmem:[%s8424_s22 + $0x108] sm:$0xff]  ;;  %v6182_v20 = vld [vmem:[%s8424_s22 + $0x312] sm:$0xff] }
 0x20f   : >> { %v9148_v41 = vmul.f32 %v12422_v14, %v6385_v58  ;;  %v5717_v43 = vld [vmem:[%s8424_s22 + $0x105] sm:$0xff]  ;;  %v2501_v58 = vmul.f32 %v8465_v56, %v5700_v60  ;;  %v3727_v21 = vmul.f32 %v12425_v63, %v6095_v2  ;;  %v3099_v52 = vadd.f32 %v3083_v4, %v3046_v31  ;;  %v6165_v44 = vld [vmem:[%s8424_s22 + $0x30f] sm:$0xff] }
 0x210   : >> { %v9158_v9 = vld [vmem:[%s8424_s22 + $0x1bf] sm:$0xff]  ;;  %v4061_v34 = vadd.f32 %v8977_v28, %v4008_v42  ;;  %v3637_v36 = vadd.f32 %v3621_v46, %v3584_v12  ;;  %v2464_v56 = vadd.f32 %v2448_v26, %v2408_v62  ;;  %v2554_v60 = vmul.f32 %v8472_v15, %v5717_v43  ;;  %v12427_v4 = vld [vmem:[#allocation88_spill] sm:$0xff]  ;;  %v6199_v42 = vld [vmem:[%s8424_s22 + $0x315] sm:$0xff] }
 0x211   : >> { %12424 = vst [vmem:[#allocation109_spill] sm:$0xff] %v9158_v9  ;;  %v3192_v49 = vmul.f32 %v12390_v45, %v9158_v9  ;;  %v9170_v51 = vld [vmem:[%s8424_s22 + $0x1c2] sm:$0xff]  ;;  %v3833_v2 = vmul.f32 %v12373_v24, %v6129_v25  ;;  %v3886_v13 = vmul.f32 %v12427_v4, %v6146_v33  ;;  %v3152_v45 = vadd.f32 %v3136_v37, %v3099_v52  ;;  %v5751_v28 = vld [vmem:[%s8424_s22 + $0x10b] sm:$0xff]  ;;  %v6216_v26 = vld [vmem:[%s8424_s22 + $0x318] sm:$0xff] }
 0x212   : >> { %12426 = vst [vmem:[#allocation70_spill] sm:$0xff] %v9170_v51  ;;  %v3245_v18 = vmul.f32 %v12397_v23, %v9170_v51  ;;  %v4114_v46 = vadd.f32 %v8985_v40, %v4061_v34  ;;  %v3690_v31 = vadd.f32 %v3674_v48, %v3637_v36  ;;  %v9182_v12 = vld [vmem:[%s8424_s22 + $0x1c5] sm:$0xff]  ;;  %v2517_v15 = vadd.f32 %v2501_v58, %v2464_v56  ;;  %v12429_v25 = vld [vmem:[#allocation89_spill] sm:$0xff]  ;;  %v12430_v37 = vld [vmem:[#allocation90_spill] sm:$0xff] }
 0x213   : >> { %12428 = vst [vmem:[#allocation72_spill] sm:$0xff] %v9182_v12  ;;  %v2607_v43 = vmul.f32 %v8479_v50, %v5734_v38  ;;  %v3942_v33 = vmul.f32 %v12429_v25, %v6165_v44  ;;  %v9187_v62 = vmul.f32 %v12430_v37, %v6182_v20  ;;  %v3208_v23 = vadd.f32 %v3192_v49, %v3152_v45  ;;  %v5768_v40 = vld [vmem:[%s8424_s22 + $0x10e] sm:$0xff]  ;;  %v6233_v58 = vld [vmem:[%s8424_s22 + $0x31b] sm:$0xff] }
 0x214   : >> { %v3298_v52 = vmul.f32 %v12402_v30, %v9182_v12  ;;  %v4167_v48 = vadd.f32 %v8994_v61, %v4114_v46  ;;  %v3743_v34 = vadd.f32 %v3727_v21, %v3690_v31  ;;  %v6250_v36 = vld [vmem:[%s8424_s22 + $0x31e] sm:$0xff]  ;;  %v9196_v50 = vld [vmem:[%s8424_s22 + $0x1c8] sm:$0xff]  ;;  %v2570_v38 = vadd.f32 %v2554_v60, %v2517_v15  ;;  %v5785_v45 = vld [vmem:[%s8424_s22 + $0x111] sm:$0xff] }
 0x215   : >> { %12431 = vst [vmem:[#allocation110_spill] sm:$0xff] %v9196_v50  ;;  %v2660_v44 = vmul.f32 %v8486_v35, %v5751_v28  ;;  %v12432_v20 = vld [vmem:[#allocation91_spill] sm:$0xff]  ;;  %v9203_v49 = vmul.f32 %v12379_v59, %v6216_v26  ;;  %v3261_v30 = vadd.f32 %v3245_v18, %v3208_v23  ;;  %v3351_v61 = vmul.f32 %v12403_v57, %v9196_v50  ;;  %v9212_v35 = vld [vmem:[%s8424_s22 + $0x1cb] sm:$0xff]  ;;  %v9324_v29 = vld [vmem:[%s8424_s22 + $0x255] sm:$0xff] }
 0x216   : >> { %v9200_v56 = vmul.f32 %v12432_v20, %v6199_v42  ;;  %v4220_v21 = vadd.f32 %v9002_v47, %v4167_v48  ;;  %v3796_v46 = vadd.f32 %v3780_v11, %v3743_v34  ;;  %v6267_v60 = vld [vmem:[%s8424_s22 + $0x321] sm:$0xff]  ;;  %12433 = vst [vmem:[#allocation79_spill] sm:$0xff] %v9212_v35  ;;  %v2623_v28 = vadd.f32 %v2607_v43, %v2570_v38  ;;  %v9217_v59 = vld [vmem:[%s11614_s3 + $0xc] ss:$0 sm:$0xff]  ;;  %v12434_v42 = vld [vmem:[#allocation94_spill] sm:$0xff] }
 0x217   : >> { %v6286_v31 = vld [vmem:[%s8424_s22 + $0x39f] sm:$0xff]  ;;  %v2713_v18 = vmul.f32 %v9217_v59, %v5768_v40  ;;  %v9221_v57 = vmul.f32 %v12382_v0, %v6233_v58  ;;  %v9224_v47 = vmul.f32 %v12434_v42, %v6250_v36  ;;  %v3314_v11 = vadd.f32 %v3298_v52, %v3261_v30  ;;  %v5804_v15 = vld [vmem:[%s8424_s22 + $0x18f] sm:$0xff]  ;;  %v9237_v0 = vld [vmem:[%s11614_s3 + $0xd] ss:$0 sm:$0xff]  ;;  %12452 = vst [vmem:[#allocation85_spill] sm:$0xff] %v9324_v29 }
 0x218   : >> { %v3404_v26 = vmul.f32 %v12408_v17, %v9212_v35  ;;  %v4273_v43 = vadd.f32 %v9011_v22, %v4220_v21  ;;  %v3849_v25 = vadd.f32 %v3833_v2, %v3796_v46  ;;  %v6303_v37 = vld [vmem:[%s8424_s22 + $0x3a2] sm:$0xff]  ;;  %v9232_v23 = vld [vmem:[%s8424_s22 + $0x1ce] sm:$0xff]  ;;  %v2676_v40 = vadd.f32 %v2660_v44, %v2623_v28  ;;  %12436 = vst [vmem:[#allocation111_spill] sm:$0xff] %v9237_v0 }
 0x219   : >> { %12435 = vst [vmem:[#allocation73_spill] sm:$0xff] %v9232_v23  ;;  %v2766_v52 = vmul.f32 %v9237_v0, %v5785_v45  ;;  %v5821_v48 = vld [vmem:[%s8424_s22 + $0x192] sm:$0xff]  ;;  %v12437_v17 = vld [vmem:[#allocation95_spill] sm:$0xff]  ;;  %v9245_v22 = vmul.f32 %v12384_v55, %v6286_v31  ;;  %v3367_v2 = vadd.f32 %v3351_v61, %v3314_v11  ;;  %v3457_v58 = vmul.f32 %v12411_v32, %v9232_v23  ;;  %v9257_v21 = vld [vmem:[%s11614_s3 + $0xe] ss:$0 sm:$0xff] }
 0x21a   : >> { %v9242_v34 = vmul.f32 %v12437_v17, %v6267_v60  ;;  %v2052_v36 = vld [vmem:[%s8424_s22 + $0x67] sm:$0xff]  ;;  %v3902_v20 = vadd.f32 %v3886_v13, %v3849_v25  ;;  %v9252_v30 = vld [vmem:[%s8424_s22 + $0x1d1] sm:$0xff]  ;;  %v2729_v45 = vadd.f32 %v2713_v18, %v2676_v40  ;;  %12440 = vst [vmem:[#allocation74_spill] sm:$0xff] %v9257_v21  ;;  %v2822_v55 = vmul.f32 %v9257_v21, %v5804_v15  ;;  %v9270_v28 = vld [vmem:[%s11614_s3 + $0xf] ss:$0 sm:$0xff] }
 0x21b   : >> { %v12438_v38 = vld [vmem:[#allocation87_spill] sm:$0xff]  ;;  %12439 = vst [vmem:[#allocation80_spill] sm:$0xff] %v9252_v30  ;;  %v2105_v61 = vld [vmem:[%s8424_s22 + $0x6a] sm:$0xff]  ;;  %v3420_v31 = vadd.f32 %v3404_v26, %v3367_v2  ;;  %v3510_v13 = vmul.f32 %v12414_v6, %v9252_v30  ;;  %12442 = vst [vmem:[#allocation112_spill] sm:$0xff] %v9270_v28  ;;  %v2875_v18 = vmul.f32 %v9270_v28, %v5821_v48 }
 0x21c   : >> { %v4329_v44 = vadd.f32 %v12438_v38, %v4273_v43  ;;  %v2158_v46 = vld [vmem:[%s8424_s22 + $0x6d] sm:$0xff]  ;;  %v12441_v60 = vld [vmem:[#allocation99_spill] sm:$0xff]  ;;  %v5838_v42 = vld [vmem:[%s8424_s22 + $0x195] sm:$0xff]  ;;  %v3958_v43 = vadd.f32 %v3942_v33, %v3902_v20 }
 0x21d   : >> { %v9263_v32 = vmul.f32 %v12441_v60, %v6303_v37  ;;  %v12443_v11 = vld [vmem:[#allocation101_spill] sm:$0xff]  ;;  %v2782_v37 = vadd.f32 %v2766_v52, %v2729_v45  ;;  %v9281_v26 = vld [vmem:[%s11614_s3] ss:$0 sm:$0xff]  ;;  %v3473_v17 = vadd.f32 %v3457_v58, %v3420_v31  ;;  %v5855_v2 = vld [vmem:[%s8424_s22 + $0x198] sm:$0xff] }
 0x21e   : >> { %v4382_v15 = vadd.f32 %v12443_v11, %v4329_v44  ;;  %v9276_v25 = vld [vmem:[%s8424_s22 + $0x24f] sm:$0xff]  ;;  %v2073_v6 = vmul.f32 %v9281_v26, %v2052_v36  ;;  %v9291_v33 = vld [vmem:[%s11614_s3 + $0x1] ss:$0 sm:$0xff]  ;;  %v9297_v38 = vld [vmem:[%s11614_s3 + $0x2] ss:$0 sm:$0xff] }
 0x21f   : >> { %12444 = vst [vmem:[#allocation81_spill] sm:$0xff] %v9276_v25  ;;  %v2211_v40 = vld [vmem:[%s8424_s22 + $0x70] sm:$0xff]  ;;  %v3566_v48 = vmul.f32 %v12416_v19, %v9276_v25  ;;  %12445 = vst [vmem:[#allocation113_spill] sm:$0xff] %v9291_v33  ;;  %v2126_v52 = vmul.f32 %v9291_v33, %v2105_v61  ;;  %v2179_v36 = vmul.f32 %v9297_v38, %v2158_v46  ;;  %v9487_v23 = vld [vmem:[%s8424_s22 + $0x2e5] sm:$0xff] }
 0x220   : >> { %12446 = vst [vmem:[#allocation82_spill] sm:$0xff] %v9297_v38  ;;  %v12447_v58 = vld [vmem:[#allocation93_spill] sm:$0xff]  ;;  %v4011_v19 = vadd.f32 %v9187_v62, %v3958_v43  ;;  %v2838_v45 = vadd.f32 %v2822_v55, %v2782_v37  ;;  %v3526_v11 = vadd.f32 %v3510_v13, %v3473_v17  ;;  %v9318_v62 = vld [vmem:[%s11614_s3 + $0x3] ss:$0 sm:$0xff]  ;;  %v12451_v43 = vld [vmem:[#allocation104_spill] sm:$0xff] }
 0x221   : >> { %v4435_v44 = vadd.f32 %v12447_v58, %v4382_v15  ;;  %v9303_v20 = vld [vmem:[%s8424_s22 + $0x252] sm:$0xff]  ;;  %v9308_v61 = vld [vmem:[%s11614_s3 + $0x10] ss:$0 sm:$0xff]  ;;  %v5872_v15 = vld [vmem:[%s8424_s22 + $0x19b] sm:$0xff]  ;;  %v2142_v58 = vadd.f32 %v2126_v52, %v2073_v6  ;;  %12450 = vst [vmem:[#allocation84_spill] sm:$0xff] %v9318_v62  ;;  %v2232_v55 = vmul.f32 %v9318_v62, %v2211_v40  ;;  %v3672_v40 = vmul.f32 %v12423_v53, %v9324_v29 }
 0x222   : >> { %12448 = vst [vmem:[#allocation83_spill] sm:$0xff] %v9303_v20  ;;  %12449 = vst [vmem:[#allocation107_spill] sm:$0xff] %v9308_v61  ;;  %v2928_v60 = vmul.f32 %v9308_v61, %v5838_v42  ;;  %v2264_v31 = vld [vmem:[%s8424_s22 + $0x73] sm:$0xff]  ;;  %v3619_v46 = vmul.f32 %v12420_v27, %v9303_v20  ;;  %v4064_v42 = vadd.f32 %v9200_v56, %v4011_v19  ;;  %v9329_v27 = vld [vmem:[%s11614_s3 + $0x11] ss:$0 sm:$0xff] }
 0x223   : >> { %v4488_v37 = vadd.f32 %v12451_v43, %v4435_v44  ;;  %v2891_v13 = vadd.f32 %v2875_v18, %v2838_v45  ;;  %12453 = vst [vmem:[#allocation88_spill] sm:$0xff] %v9329_v27  ;;  %v2981_v6 = vmul.f32 %v9329_v27, %v5855_v2  ;;  %v2317_v17 = vld [vmem:[%s8424_s22 + $0x76] sm:$0xff]  ;;  %v3582_v52 = vadd.f32 %v3566_v48, %v3526_v11  ;;  %v5889_v44 = vld [vmem:[%s8424_s22 + $0x19e] sm:$0xff]  ;;  %v9350_v53 = vld [vmem:[%s11614_s3 + $0x12] ss:$0 sm:$0xff] }
 0x224   : >> { %v2195_v43 = vadd.f32 %v2179_v36, %v2142_v58  ;;  %v9339_v56 = vld [vmem:[%s11614_s3 + $0x4] ss:$0 sm:$0xff]  ;;  %v4117_v2 = vadd.f32 %v9203_v49, %v4064_v42  ;;  %v9345_v20 = vld [vmem:[%s8424_s22 + $0x258] sm:$0xff]  ;;  %12456 = vst [vmem:[#allocation90_spill] sm:$0xff] %v9350_v53  ;;  %v3034_v36 = vmul.f32 %v9350_v53, %v5872_v15  ;;  %v9360_v49 = vld [vmem:[%s11614_s3 + $0x5] ss:$0 sm:$0xff] }
 0x225   : >> { %v2285_v18 = vmul.f32 %v9339_v56, %v2264_v31  ;;  %v12454_v19 = vld [vmem:[#allocation75_spill] sm:$0xff]  ;;  %12455 = vst [vmem:[#allocation89_spill] sm:$0xff] %v9345_v20  ;;  %v2944_v48 = vadd.f32 %v2928_v60, %v2891_v13  ;;  %v3635_v58 = vadd.f32 %v3619_v46, %v3582_v52  ;;  %v3725_v31 = vmul.f32 %v12425_v63, %v9345_v20  ;;  %v12457_v42 = vld [vmem:[#allocation76_spill] sm:$0xff]  ;;  %v9371_v63 = vld [vmem:[%s11614_s3 + $0x13] ss:$0 sm:$0xff] }
 0x226   : >> { %v4541_v45 = vadd.f32 %v12454_v19, %v4488_v37  ;;  %v2370_v11 = vld [vmem:[%s8424_s22 + $0x79] sm:$0xff]  ;;  %v5906_v37 = vld [vmem:[%s8424_s22 + $0x1a1] sm:$0xff]  ;;  %v2248_v19 = vadd.f32 %v2232_v55, %v2195_v43  ;;  %v2338_v60 = vmul.f32 %v9360_v49, %v2317_v17  ;;  %v4170_v15 = vadd.f32 %v9221_v57, %v4117_v2  ;;  %v6371_v30 = vld [vmem:[%s8424_s22 + $0x3ae] sm:$0xff]  ;;  %12470 = vst [vmem:[#allocation76_spill] sm:$0xff] %v9487_v23 }
 0x227   : >> { %v9366_v29 = vld [vmem:[%s8424_s22 + $0x25b] sm:$0xff]  ;;  %v2997_v46 = vadd.f32 %v2981_v6, %v2944_v48  ;;  %v3087_v55 = vmul.f32 %v9371_v63, %v5889_v44  ;;  %v3688_v43 = vadd.f32 %v3672_v40, %v3635_v58  ;;  %v9381_v6 = vld [vmem:[%s11614_s3 + $0x6] ss:$0 sm:$0xff]  ;;  %v6388_v50 = vld [vmem:[%s8424_s22 + $0x3b1] sm:$0xff] }
 0x228   : >> { %v4594_v13 = vadd.f32 %v12457_v42, %v4541_v45  ;;  %12458 = vst [vmem:[#allocation91_spill] sm:$0xff] %v9366_v29  ;;  %v5682_v52 = vld [vmem:[%s8424_s22 + $0xf7] sm:$0xff]  ;;  %v3778_v17 = vmul.f32 %v12371_v1, %v9366_v29  ;;  %v5925_v45 = vld [vmem:[%s8424_s22 + $0x21f] sm:$0xff]  ;;  %v2301_v57 = vadd.f32 %v2285_v18, %v2248_v19  ;;  %v2391_v2 = vmul.f32 %v9381_v6, %v2370_v11  ;;  %v9392_v1 = vld [vmem:[%s11614_s3 + $0x14] ss:$0 sm:$0xff] }
 0x229   : >> { %v4223_v44 = vadd.f32 %v9224_v47, %v4170_v15  ;;  %v9387_v42 = vld [vmem:[%s8424_s22 + $0x25e] sm:$0xff]  ;;  %v3050_v40 = vadd.f32 %v3034_v36, %v2997_v46  ;;  %12460 = vst [vmem:[#allocation95_spill] sm:$0xff] %v9392_v1  ;;  %v3140_v18 = vmul.f32 %v9392_v1, %v5906_v37  ;;  %v3741_v11 = vadd.f32 %v3725_v31, %v3688_v43  ;;  %v9403_v36 = vld [vmem:[%s11614_s3 + $0x7] ss:$0 sm:$0xff]  ;;  %v12464_v29 = vld [vmem:[#allocation100_spill] sm:$0xff] }
 0x22a   : >> { %v4647_v48 = vadd.f32 %v9148_v41, %v4594_v13  ;;  %12459 = vst [vmem:[#allocation94_spill] sm:$0xff] %v9387_v42  ;;  %v5699_v58 = vld [vmem:[%s8424_s22 + $0xfa] sm:$0xff]  ;;  %v6320_v19 = vld [vmem:[%s8424_s22 + $0x3a5] sm:$0xff]  ;;  %v3831_v41 = vmul.f32 %v12373_v24, %v9387_v42  ;;  %v2354_v13 = vadd.f32 %v2338_v60, %v2301_v57  ;;  %v2447_v15 = vmul.f32 %v9403_v36, %v5682_v52  ;;  %v9416_v24 = vld [vmem:[%s11614_s3 + $0x15] ss:$0 sm:$0xff] }
 0x22b   : >> { %v5942_v47 = vld [vmem:[%s8424_s22 + $0x222] sm:$0xff]  ;;  %v4276_v37 = vadd.f32 %v9242_v34, %v4223_v44  ;;  %v3103_v43 = vadd.f32 %v3087_v55, %v3050_v40  ;;  %12463 = vst [vmem:[#allocation101_spill] sm:$0xff] %v9416_v24  ;;  %v3196_v60 = vmul.f32 %v9416_v24, %v5925_v45  ;;  %v3794_v42 = vadd.f32 %v3778_v17, %v3741_v11 }
 0x22c   : >> { %v9407_v46 = vadd.f32 %v12418_v16, %v4647_v48  ;;  %v9411_v31 = vld [vmem:[%s8424_s22 + $0x261] sm:$0xff]  ;;  %v2407_v44 = vadd.f32 %v2391_v2, %v2354_v13  ;;  %v4422_v20 = vmul.f32 %v12464_v29, %v6320_v19  ;;  %v9439_v2 = vld [vmem:[%s11614_s3 + $0x16] ss:$0 sm:$0xff] }
 0x22d   : >> { %12462 = vst [vmem:[#allocation99_spill] sm:$0xff] %v9411_v31  ;;  %v5716_v57 = vld [vmem:[%s8424_s22 + $0xfd] sm:$0xff]  ;;  %v6337_v52 = vld [vmem:[%s8424_s22 + $0x3a8] sm:$0xff]  ;;  %v3884_v48 = vmul.f32 %v12427_v4, %v9411_v31  ;;  %v4332_v45 = vadd.f32 %v9245_v22, %v4276_v37  ;;  %v3156_v4 = vadd.f32 %v3140_v18, %v3103_v43  ;;  %v3249_v11 = vmul.f32 %v9439_v2, %v5942_v47 }
 0x22e   : >> { %12461 = vst [vmem:[#allocation87_spill] sm:$0xff] %v9407_v46  ;;  %v5959_v34 = vld [vmem:[%s8424_s22 + $0x225] sm:$0xff]  ;;  %4695 = vperm.xlu0 %6467, %v9407_v46   ;;  %v3847_v46 = vadd.f32 %v3831_v41, %v3794_v42  ;;  %v9447_v29 = vld [vmem:[%s11614_s3 + $0x23] ss:$0 sm:$0xff]  ;;  %v2463_v19 = vadd.f32 %v2447_v15, %v2407_v44  ;;  %v12467_v41 = vld [vmem:[#allocation102_spill] sm:$0xff] }
 0x22f   : >> { %v9427_v55 = vld [vmem:[%s11614_s3 + $0x8] ss:$0 sm:$0xff]  ;;  %v9434_v17 = vld [vmem:[%s8424_s22 + $0x2df] sm:$0xff]  ;;  %12466 = vst [vmem:[#allocation104_spill] sm:$0xff] %v9447_v29  ;;  %v9455_v47 = vld [vmem:[%s11614_s3 + $0x9] ss:$0 sm:$0xff]  ;;  %v4385_v42 = vadd.f32 %v9263_v32, %v4332_v45  ;;  %v4475_v43 = vmul.f32 %v12467_v41, %v6337_v52  ;;  %v3212_v25 = vadd.f32 %v3196_v60, %v3156_v4 }
 0x230   : >> { %v2500_v40 = vmul.f32 %v9427_v55, %v5699_v58  ;;  %12465 = vst [vmem:[#allocation93_spill] sm:$0xff] %v9434_v17  ;;  %v5733_v13 = vld [vmem:[%s8424_s22 + $0x100] sm:$0xff]  ;;  %v6354_v58 = vld [vmem:[%s8424_s22 + $0x3ab] sm:$0xff]  ;;  %v3940_v22 = vmul.f32 %v9447_v29, %v9434_v17  ;;  %v2553_v37 = vmul.f32 %v9455_v47, %v5716_v57  ;;  %v9466_v17 = vld [vmem:[%s11614_s3 + $0x17] ss:$0 sm:$0xff]  ;;  %v3900_v57 = vadd.f32 %v3884_v48, %v3847_v46 }
 0x231   : >> { %v5976_v18 = vld [vmem:[%s8424_s22 + $0x228] sm:$0xff]  ;;  %v3302_v15 = vmul.f32 %v9466_v17, %v5959_v34  ;;  %v9474_v32 = vld [vmem:[%s11614_s3 + $0x24] ss:$0 sm:$0xff]  ;;  %v4438_v41 = vadd.f32 %v4422_v20, %v4385_v42  ;;  %v3265_v35 = vadd.f32 %v3249_v11, %v3212_v25  ;;  %v9500_v20 = vld [vmem:[%s11614_s3 + $0x25] ss:$0 sm:$0xff] }
 0x232   : >> { %v9461_v31 = vld [vmem:[%s8424_s22 + $0x2e2] sm:$0xff]  ;;  %v5993_v52 = vld [vmem:[%s8424_s22 + $0x22b] sm:$0xff]  ;;  %v2516_v45 = vadd.f32 %v2500_v40, %v2463_v19  ;;  %v9482_v34 = vld [vmem:[%s11614_s3 + $0xa] ss:$0 sm:$0xff]  ;;  %v3956_v12 = vadd.f32 %v3940_v22, %v3900_v57  ;;  %v4046_v25 = vmul.f32 %v9500_v20, %v9487_v23 }
 0x233   : >> { %12468 = vst [vmem:[#allocation75_spill] sm:$0xff] %v9461_v31  ;;  %v5750_v44 = vld [vmem:[%s8424_s22 + $0x103] sm:$0xff]  ;;  %v3993_v60 = vmul.f32 %v9474_v32, %v9461_v31  ;;  %v2606_v4 = vmul.f32 %v9482_v34, %v5733_v13  ;;  %v9492_v31 = vld [vmem:[%s11614_s3 + $0x18] ss:$0 sm:$0xff]  ;;  %v6010_v11 = vld [vmem:[%s8424_s22 + $0x22e] sm:$0xff]  ;;  %v4491_v22 = vadd.f32 %v4475_v43, %v4438_v41  ;;  %v3318_v51 = vadd.f32 %v3302_v15, %v3265_v35 }
 0x234   : >> { %v12469_v46 = vld [vmem:[#allocation103_spill] sm:$0xff]  ;;  %v3355_v40 = vmul.f32 %v9492_v31, %v5976_v18  ;;  %v2569_v13 = vadd.f32 %v2553_v37, %v2516_v45  ;;  %v12471_v42 = vld [vmem:[#allocation106_spill] sm:$0xff]  ;;  %v5784_v45 = vld [vmem:[%s8424_s22 + $0x109] sm:$0xff] }
 0x235   : >> { %v4528_v48 = vmul.f32 %v12469_v46, %v6354_v58  ;;  %v5767_v19 = vld [vmem:[%s8424_s22 + $0x106] sm:$0xff]  ;;  %v4581_v57 = vmul.f32 %v12471_v42, %v6371_v30  ;;  %v9518_v23 = vld [vmem:[%s11614_s3 + $0x19] ss:$0 sm:$0xff]  ;;  %v4009_v9 = vadd.f32 %v3993_v60, %v3956_v12  ;;  %v6027_v30 = vld [vmem:[%s8424_s22 + $0x231] sm:$0xff] }
 0x236   : >> { %v9508_v58 = vld [vmem:[%s11614_s3 + $0xb] ss:$0 sm:$0xff]  ;;  %v3408_v37 = vmul.f32 %v9518_v23, %v5993_v52  ;;  %v9525_v43 = vld [vmem:[%s11614_s3 + $0x26] ss:$0 sm:$0xff]  ;;  %v2622_v15 = vadd.f32 %v2606_v4, %v2569_v13  ;;  %v4634_v52 = vmul.f32 %v12422_v14, %v6388_v50  ;;  %v3371_v12 = vadd.f32 %v3355_v40, %v3318_v51  ;;  %v9538_v60 = vld [vmem:[%s11614_s3 + $0x1a] ss:$0 sm:$0xff] }
 0x237   : >> { %v2659_v18 = vmul.f32 %v9508_v58, %v5750_v44  ;;  %v9513_v46 = vld [vmem:[%s8424_s22 + $0x2e8] sm:$0xff]  ;;  %v2712_v44 = vmul.f32 %v9217_v59, %v5767_v19  ;;  %v4544_v41 = vadd.f32 %v4528_v48, %v4491_v22  ;;  %12474 = vst [vmem:[#allocation103_spill] sm:$0xff] %v9538_v60  ;;  %v3461_v54 = vmul.f32 %v9538_v60, %v6010_v11  ;;  %v9545_v4 = vld [vmem:[%s11614_s3 + $0x27] ss:$0 sm:$0xff]  ;;  %v6063_v48 = vld [vmem:[%s8424_s22 + $0x2b2] sm:$0xff] }
 0x238   : >> { %12472 = vst [vmem:[#allocation100_spill] sm:$0xff] %v9513_v46  ;;  %v4099_v35 = vmul.f32 %v9525_v43, %v9513_v46  ;;  %v9533_v42 = vld [vmem:[%s8424_s22 + $0x2eb] sm:$0xff]  ;;  %v4062_v7 = vadd.f32 %v4046_v25, %v4009_v9  ;;  %v2765_v19 = vmul.f32 %v9237_v0, %v5784_v45  ;;  %v9558_v9 = vld [vmem:[%s11614_s3 + $0x28] ss:$0 sm:$0xff]  ;;  %v3424_v22 = vadd.f32 %v3408_v37, %v3371_v12 }
 0x239   : >> { %12473 = vst [vmem:[#allocation102_spill] sm:$0xff] %v9533_v42  ;;  %v5803_v46 = vld [vmem:[%s8424_s22 + $0x187] sm:$0xff]  ;;  %v4152_v14 = vmul.f32 %v9545_v4, %v9533_v42  ;;  %v6046_v51 = vld [vmem:[%s8424_s22 + $0x2af] sm:$0xff]  ;;  %v2675_v40 = vadd.f32 %v2659_v18, %v2622_v15  ;;  %v4597_v13 = vadd.f32 %v4581_v57, %v4544_v41  ;;  %12476 = vst [vmem:[#allocation114_spill] sm:$0xff] %v9558_v9 }
 0x23a   : >> { %v9550_v50 = vld [vmem:[%s8424_s22 + $0x2ee] sm:$0xff]  ;;  %v9568_v42 = vld [vmem:[%s11614_s3 + $0x1b] ss:$0 sm:$0xff]  ;;  %v4115_v45 = vadd.f32 %v4099_v35, %v4062_v7  ;;  %v9575_v15 = vld [vmem:[%s11614_s3 + $0x29] ss:$0 sm:$0xff]  ;;  %v2821_v12 = vmul.f32 %v9257_v21, %v5803_v46  ;;  %v3477_v0 = vadd.f32 %v3461_v54, %v3424_v22 }
 0x23b   : >> { %12475 = vst [vmem:[#allocation106_spill] sm:$0xff] %v9550_v50  ;;  %v4205_v25 = vmul.f32 %v9558_v9, %v9550_v50  ;;  %v9563_v11 = vld [vmem:[%s8424_s22 + $0x2f1] sm:$0xff]  ;;  %12478 = vst [vmem:[#allocation116_spill] sm:$0xff] %v9568_v42  ;;  %v3514_v18 = vmul.f32 %v9568_v42, %v6027_v30  ;;  %v2728_v37 = vadd.f32 %v2712_v44, %v2675_v40  ;;  %v9583_v30 = vld [vmem:[%s11614_s3 + $0x1c] ss:$0 sm:$0xff] }
 0x23c   : >> { %12477 = vst [vmem:[#allocation115_spill] sm:$0xff] %v9563_v11  ;;  %v5820_v57 = vld [vmem:[%s8424_s22 + $0x18a] sm:$0xff]  ;;  %12479 = vst [vmem:[#allocation117_spill] sm:$0xff] %v9575_v15  ;;  %v4258_v41 = vmul.f32 %v9575_v15, %v9563_v11  ;;  %v4650_v50 = vadd.f32 %v4634_v52, %v4597_v13  ;;  %v3570_v7 = vmul.f32 %v9583_v30, %v6046_v51  ;;  %v9589_v35 = vld [vmem:[%s11614_s3 + $0x1d] ss:$0 sm:$0xff] }
 0x23d   : >> { %12480 = vst [vmem:[#allocation118_spill] sm:$0xff] %v9583_v30  ;;  %12481 = vst [vmem:[#allocation119_spill] sm:$0xff] %v9589_v35  ;;  %v3623_v11 = vmul.f32 %v9589_v35, %v6063_v48  ;;  %v5837_v44 = vld [vmem:[%s8424_s22 + $0x18d] sm:$0xff]  ;;  %v4168_v46 = vadd.f32 %v4152_v14, %v4115_v45  ;;  %v6080_v40 = vld [vmem:[%s8424_s22 + $0x2b5] sm:$0xff]  ;;  %v2781_v52 = vadd.f32 %v2765_v19, %v2728_v37 }
 0x23e   : >> { %v2874_v54 = vmul.f32 %v9270_v28, %v5820_v57  ;;  %v12482_v13 = vld [vmem:[#allocation71_spill] sm:$0xff]  ;;  %v9598_v51 = vadd.f32 %v12418_v16, %v4650_v50  ;;  %v9601_v30 = vld [vmem:[%s8424_s22 + $0x36f] sm:$0xff]  ;;  %v3530_v21 = vadd.f32 %v3514_v18, %v3477_v0  ;;  %v12486_v14 = vld [vmem:[#allocation86_spill] sm:$0xff]  ;;  %v2927_v0 = vmul.f32 %v9308_v61, %v5837_v44 }
 0x23f   : >> { %v2076_v22 = vmul.f32 %v9281_v26, %v12482_v13  ;;  %12484 = vst [vmem:[#allocation120_spill] sm:$0xff] %v9601_v30  ;;  %v5854_v42 = vld [vmem:[%s8424_s22 + $0x190] sm:$0xff]  ;;  %v12485_v48 = vld [vmem:[#allocation96_spill] sm:$0xff]  ;;  %v2182_v19 = vmul.f32 %v9297_v38, %v12486_v14  ;;  %v4221_v45 = vadd.f32 %v4205_v25, %v4168_v46  ;;  %v6097_v37 = vld [vmem:[%s8424_s22 + $0x2b8] sm:$0xff]  ;;  %v2837_v13 = vadd.f32 %v2821_v12, %v2781_v52 }
 0x240   : >> { %12483 = vst [vmem:[#allocation71_spill] sm:$0xff] %v9598_v51  ;;  %v2129_v35 = vmul.f32 %v9291_v33, %v12485_v48  ;;  %v9611_v57 = vld [vmem:[%s11614_s3 + $0x2a] ss:$0 sm:$0xff]  ;;  %4710 = vperm.xlu1 %6468, %v9598_v51   ;;  %v9619_v18 = vld [vmem:[%s8424_s22 + $0x372] sm:$0xff]  ;;  %v3586_v48 = vadd.f32 %v3570_v7, %v3530_v21  ;;  %v9624_v25 = vld [vmem:[%s11614_s3 + $0x1e] ss:$0 sm:$0xff] }
 0x241   : >> { %12487 = vst [vmem:[#allocation96_spill] sm:$0xff] %v9611_v57  ;;  %v4314_v50 = vmul.f32 %v9611_v57, %v9601_v30  ;;  %12488 = vst [vmem:[#allocation86_spill] sm:$0xff] %v9619_v18  ;;  %v3676_v46 = vmul.f32 %v9624_v25, %v6080_v40  ;;  %v5871_v14 = vld [vmem:[%s8424_s22 + $0x193] sm:$0xff]  ;;  %v4274_v52 = vadd.f32 %v4258_v41, %v4221_v45  ;;  %v9633_v44 = vld [vmem:[%s11614_s3 + $0x2b] ss:$0 sm:$0xff] }
 0x242   : >> { %12489 = vst [vmem:[#allocation121_spill] sm:$0xff] %v9624_v25  ;;  %v2145_v30 = vadd.f32 %v2129_v35, %v2076_v22  ;;  %v12490_v28 = vld [vmem:[#allocation97_spill] sm:$0xff]  ;;  %v4367_v21 = vmul.f32 %v9633_v44, %v9619_v18  ;;  %v6114_v7 = vld [vmem:[%s8424_s22 + $0x2bb] sm:$0xff]  ;;  %v2890_v51 = vadd.f32 %v2874_v54, %v2837_v13  ;;  %v2980_v40 = vmul.f32 %v9329_v27, %v5854_v42  ;;  %v12494_v61 = vld [vmem:[#allocation92_spill] sm:$0xff] }
 0x243   : >> { %v2235_v12 = vmul.f32 %v9318_v62, %v12490_v28  ;;  %12491 = vst [vmem:[#allocation97_spill] sm:$0xff] %v9633_v44  ;;  %v9640_v25 = vld [vmem:[%s8424_s22 + $0x375] sm:$0xff]  ;;  %v3639_v35 = vadd.f32 %v3623_v11, %v3586_v48  ;;  %v9645_v28 = vld [vmem:[%s11614_s3 + $0x1f] ss:$0 sm:$0xff]  ;;  %v2288_v18 = vmul.f32 %v9339_v56, %v12494_v61  ;;  %v4330_v44 = vadd.f32 %v4314_v50, %v4274_v52  ;;  %v9654_v42 = vld [vmem:[%s11614_s3 + $0x2c] ss:$0 sm:$0xff] }
 0x244   : >> { %12492 = vst [vmem:[#allocation122_spill] sm:$0xff] %v9640_v25  ;;  %12493 = vst [vmem:[#allocation123_spill] sm:$0xff] %v9645_v28  ;;  %v3729_v41 = vmul.f32 %v9645_v28, %v6097_v37  ;;  %v5888_v22 = vld [vmem:[%s8424_s22 + $0x196] sm:$0xff]  ;;  %v2198_v45 = vadd.f32 %v2182_v19, %v2145_v30  ;;  %v4420_v11 = vmul.f32 %v9654_v42, %v9640_v25  ;;  %v6131_v54 = vld [vmem:[%s8424_s22 + $0x2be] sm:$0xff] }
 0x245   : >> { %12495 = vst [vmem:[#allocation92_spill] sm:$0xff] %v9654_v42  ;;  %v2943_v13 = vadd.f32 %v2927_v0, %v2890_v51  ;;  %v3033_v37 = vmul.f32 %v9350_v53, %v5871_v14  ;;  %v9661_v48 = vld [vmem:[%s8424_s22 + $0x378] sm:$0xff]  ;;  %v3692_v30 = vadd.f32 %v3676_v46, %v3639_v35  ;;  %v9666_v61 = vld [vmem:[%s11614_s3 + $0x20] ss:$0 sm:$0xff]  ;;  %v4383_v27 = vadd.f32 %v4367_v21, %v4330_v44  ;;  %v9675_v51 = vld [vmem:[%s11614_s3 + $0x2d] ss:$0 sm:$0xff] }
 0x246   : >> { %12496 = vst [vmem:[#allocation124_spill] sm:$0xff] %v9661_v48  ;;  %12497 = vst [vmem:[#allocation125_spill] sm:$0xff] %v9666_v61  ;;  %v3782_v19 = vmul.f32 %v9666_v61, %v6114_v7  ;;  %v5905_v50 = vld [vmem:[%s8424_s22 + $0x199] sm:$0xff]  ;;  %v2251_v52 = vadd.f32 %v2235_v12, %v2198_v45  ;;  %v4473_v0 = vmul.f32 %v9675_v51, %v9661_v48  ;;  %v6148_v46 = vld [vmem:[%s8424_s22 + $0x2c1] sm:$0xff] }
 0x247   : >> { %v12498_v28 = vld [vmem:[#allocation98_spill] sm:$0xff]  ;;  %v2996_v14 = vadd.f32 %v2980_v40, %v2943_v13  ;;  %v3086_v7 = vmul.f32 %v9371_v63, %v5888_v22  ;;  %v3745_v12 = vadd.f32 %v3729_v41, %v3692_v30  ;;  %v9687_v44 = vld [vmem:[%s11614_s3 + $0x21] ss:$0 sm:$0xff]  ;;  %v12501_v61 = vld [vmem:[#allocation105_spill] sm:$0xff]  ;;  %v4436_v53 = vadd.f32 %v4420_v11, %v4383_v27 }
 0x248   : >> { %v2341_v25 = vmul.f32 %v9360_v49, %v12498_v28  ;;  %v9682_v35 = vld [vmem:[%s8424_s22 + $0x37b] sm:$0xff]  ;;  %12500 = vst [vmem:[#allocation126_spill] sm:$0xff] %v9687_v44  ;;  %v3835_v21 = vmul.f32 %v9687_v44, %v6131_v54  ;;  %v2304_v45 = vadd.f32 %v2288_v18, %v2251_v52  ;;  %v2394_v48 = vmul.f32 %v9381_v6, %v12501_v61  ;;  %v9696_v40 = vld [vmem:[%s11614_s3 + $0x2e] ss:$0 sm:$0xff] }
 0x249   : >> { %12499 = vst [vmem:[#allocation98_spill] sm:$0xff] %v9682_v35  ;;  %v5924_v28 = vld [vmem:[%s8424_s22 + $0x217] sm:$0xff]  ;;  %v4526_v41 = vmul.f32 %v9696_v40, %v9682_v35  ;;  %v6167_v22 = vld [vmem:[%s8424_s22 + $0x33f] sm:$0xff]  ;;  %v3049_v13 = vadd.f32 %v3033_v37, %v2996_v14  ;;  %v3139_v54 = vmul.f32 %v9392_v1, %v5905_v50  ;;  %v3798_v18 = vadd.f32 %v3782_v19, %v3745_v12  ;;  %v9717_v50 = vld [vmem:[%s11614_s3 + $0x2f] ss:$0 sm:$0xff] }
 0x24a   : >> { %v9703_v30 = vld [vmem:[%s8424_s22 + $0x37e] sm:$0xff]  ;;  %v2357_v52 = vadd.f32 %v2341_v25, %v2304_v45  ;;  %v2450_v35 = vmul.f32 %v9403_v36, %v9073_v5  ;;  %v4489_v37 = vadd.f32 %v4473_v0, %v4436_v53  ;;  %v3944_v5 = vmul.f32 %v9447_v29, %v6167_v22 }
 0x24b   : >> { %12502 = vst [vmem:[#allocation105_spill] sm:$0xff] %v9703_v30  ;;  %v9708_v27 = vld [vmem:[%s11614_s3 + $0x22] ss:$0 sm:$0xff]  ;;  %v5941_v61 = vld [vmem:[%s8424_s22 + $0x21a] sm:$0xff]  ;;  %v4579_v19 = vmul.f32 %v9717_v50, %v9703_v30  ;;  %v3102_v12 = vadd.f32 %v3086_v7, %v3049_v13  ;;  %v3851_v25 = vadd.f32 %v3835_v21, %v3798_v18  ;;  %v2503_v45 = vmul.f32 %v9427_v55, %v9083_v39  ;;  %v9733_v30 = vld [vmem:[%s11614_s3 + $0x30] ss:$0 sm:$0xff] }
 0x24c   : >> { %12503 = vst [vmem:[#allocation127_spill] sm:$0xff] %v9708_v27  ;;  %v3888_v11 = vmul.f32 %v9708_v27, %v6148_v46  ;;  %v6184_v14 = vld [vmem:[%s8424_s22 + $0x342] sm:$0xff]  ;;  %v3195_v46 = vmul.f32 %v9416_v24, %v5924_v28  ;;  %v2410_v0 = vadd.f32 %v2394_v48, %v2357_v52  ;;  %v4542_v1 = vadd.f32 %v4526_v41, %v4489_v37 }
 0x24d   : >> { %v9724_v27 = vld [vmem:[%s8424_s22 + $0x381] sm:$0xff]  ;;  %v3155_v21 = vadd.f32 %v3139_v54, %v3102_v12  ;;  %v3248_v22 = vmul.f32 %v9439_v2, %v5941_v61  ;;  %v3997_v48 = vmul.f32 %v9474_v32, %v6184_v14  ;;  %v2556_v41 = vmul.f32 %v9455_v47, %v9095_v3  ;;  %v6235_v12 = vld [vmem:[%s8424_s22 + $0x34b] sm:$0xff] }
 0x24e   : >> { %12504 = vst [vmem:[#allocation128_spill] sm:$0xff] %v9724_v27  ;;  %v5958_v53 = vld [vmem:[%s8424_s22 + $0x21d] sm:$0xff]  ;;  %v4632_v7 = vmul.f32 %v9733_v30, %v9724_v27  ;;  %v6201_v28 = vld [vmem:[%s8424_s22 + $0x345] sm:$0xff]  ;;  %v3904_v13 = vadd.f32 %v3888_v11, %v3851_v25  ;;  %v2466_v39 = vadd.f32 %v2450_v35, %v2410_v0  ;;  %v4595_v52 = vadd.f32 %v4579_v19, %v4542_v1  ;;  %v6252_v25 = vld [vmem:[%s8424_s22 + $0x34e] sm:$0xff] }
 0x24f   : >> { %v5975_v18 = vld [vmem:[%s8424_s22 + $0x220] sm:$0xff]  ;;  %v6218_v37 = vld [vmem:[%s8424_s22 + $0x348] sm:$0xff]  ;;  %v3211_v29 = vadd.f32 %v3195_v46, %v3155_v21  ;;  %v3301_v27 = vmul.f32 %v9466_v17, %v5958_v53  ;;  %v4050_v54 = vmul.f32 %v9500_v20, %v6201_v28  ;;  %v2609_v14 = vmul.f32 %v9482_v34, %v9106_v8 }
 0x250   : >> { %v3960_v24 = vadd.f32 %v3944_v5, %v3904_v13  ;;  %v5992_v61 = vld [vmem:[%s8424_s22 + $0x223] sm:$0xff]  ;;  %v2519_v11 = vadd.f32 %v2503_v45, %v2466_v39  ;;  %v4648_v35 = vadd.f32 %v4632_v7, %v4595_v52  ;;  %v3354_v1 = vmul.f32 %v9492_v31, %v5975_v18  ;;  %v6269_v45 = vld [vmem:[%s8424_s22 + $0x351] sm:$0xff]  ;;  %v2107_v18 = vld [vmem:[%s8424_s22 + $0x9a] sm:$0xff] }
 0x251   : >> { %v3264_v3 = vadd.f32 %v3248_v22, %v3211_v29  ;;  %v4103_v46 = vmul.f32 %v9525_v43, %v6218_v37  ;;  %v6009_v5 = vld [vmem:[%s8424_s22 + $0x226] sm:$0xff]  ;;  %v2662_v0 = vmul.f32 %v9508_v58, %v9117_v10  ;;  %v3407_v29 = vmul.f32 %v9518_v23, %v5992_v61  ;;  %v2054_v10 = vld [vmem:[%s8424_s22 + $0x97] sm:$0xff] }
 0x252   : >> { %v4013_v19 = vadd.f32 %v3997_v48, %v3960_v24  ;;  %v2572_v53 = vadd.f32 %v2556_v41, %v2519_v11  ;;  %v9757_v8 = vadd.f32 %v12418_v16, %v4648_v35  ;;  %v4156_v24 = vmul.f32 %v9545_v4, %v6235_v12  ;;  %v6026_v21 = vld [vmem:[%s8424_s22 + $0x229] sm:$0xff]  ;;  %v2160_v52 = vld [vmem:[%s8424_s22 + $0x9d] sm:$0xff] }
 0x253   : >> { %v3317_v7 = vadd.f32 %v3301_v27, %v3264_v3  ;;  %v12506_v13 = vld [vmem:[#allocation108_spill] sm:$0xff]  ;;  %v4209_v39 = vmul.f32 %v9558_v9, %v6252_v25  ;;  %v3460_v41 = vmul.f32 %v9538_v60, %v6009_v5  ;;  %v12508_v35 = vld [vmem:[#allocation111_spill] sm:$0xff]  ;;  %v2128_v5 = vmul.f32 %v9291_v33, %v2107_v18 }
 0x254   : >> { %12505 = vst [vmem:[#allocation129_spill] sm:$0xff] %v9757_v8  ;;  %v4066_v28 = vadd.f32 %v4050_v54, %v4013_v19  ;;  %v2625_v22 = vadd.f32 %v2609_v14, %v2572_v53  ;;  %v2715_v48 = vmul.f32 %v9217_v59, %v12506_v13  ;;  %4700 = vperm.xlu0 %6467, %v9757_v8   ;;  %v6045_v61 = vld [vmem:[%s8424_s22 + $0x2a7] sm:$0xff]  ;;  %v12507_v14 = vld [vmem:[#allocation78_spill] sm:$0xff]  ;;  %v6288_v19 = vld [vmem:[%s8424_s22 + $0x3cf] sm:$0xff] }
 0x255   : >> { %v3370_v27 = vadd.f32 %v3354_v1, %v3317_v7  ;;  %v4262_v54 = vmul.f32 %v9575_v15, %v6269_v45  ;;  %v2768_v12 = vmul.f32 %v12508_v35, %v12507_v14  ;;  %v2213_v3 = vld [vmem:[%s8424_s22 + $0xa0] sm:$0xff]  ;;  %v12509_v13 = vld [vmem:[#allocation116_spill] sm:$0xff]  ;;  %v2075_v1 = vmul.f32 %v9281_v26, %v2054_v10  ;;  %v6305_v15 = vld [vmem:[%s8424_s22 + $0x3d2] sm:$0xff] }
 0x256   : >> { %v4119_v37 = vadd.f32 %v4103_v46, %v4066_v28  ;;  %v2678_v11 = vadd.f32 %v2662_v0, %v2625_v22  ;;  %v3513_v25 = vmul.f32 %v12509_v13, %v6026_v21  ;;  %v6062_v7 = vld [vmem:[%s8424_s22 + $0x2aa] sm:$0xff]  ;;  %v12511_v0 = vld [vmem:[#allocation74_spill] sm:$0xff]  ;;  %v2181_v14 = vmul.f32 %v9297_v38, %v2160_v52 }
 0x257   : >> { %v3423_v53 = vadd.f32 %v3407_v29, %v3370_v27  ;;  %v12510_v28 = vld [vmem:[#allocation109_spill] sm:$0xff]  ;;  %v2266_v8 = vld [vmem:[%s8424_s22 + $0xa3] sm:$0xff]  ;;  %v12512_v27 = vld [vmem:[#allocation118_spill] sm:$0xff]  ;;  %v2144_v13 = vadd.f32 %v2128_v5, %v2075_v1  ;;  %v2234_v10 = vmul.f32 %v9318_v62, %v2213_v3 }
 0x258   : >> { %v4172_v46 = vadd.f32 %v4156_v24, %v4119_v37  ;;  %v2731_v45 = vadd.f32 %v2715_v48, %v2678_v11  ;;  %v2824_v22 = vmul.f32 %v12511_v0, %v12510_v28  ;;  %v3569_v21 = vmul.f32 %v12512_v27, %v6045_v61  ;;  %v6079_v48 = vld [vmem:[%s8424_s22 + $0x2ad] sm:$0xff]  ;;  %v12513_v11 = vld [vmem:[#allocation70_spill] sm:$0xff] }
 0x259   : >> { %v3476_v29 = vadd.f32 %v3460_v41, %v3423_v53  ;;  %v4318_v24 = vmul.f32 %v9611_v57, %v6288_v19  ;;  %v12514_v28 = vld [vmem:[#allocation112_spill] sm:$0xff]  ;;  %v6322_v38 = vld [vmem:[%s8424_s22 + $0x3d5] sm:$0xff]  ;;  %v12515_v41 = vld [vmem:[#allocation119_spill] sm:$0xff]  ;;  %v2197_v61 = vadd.f32 %v2181_v14, %v2144_v13  ;;  %v2287_v1 = vmul.f32 %v9339_v56, %v2266_v8 }
 0x25a   : >> { %v4225_v18 = vadd.f32 %v4209_v39, %v4172_v46  ;;  %v2784_v37 = vadd.f32 %v2768_v12, %v2731_v45  ;;  %v2877_v60 = vmul.f32 %v12514_v28, %v12513_v11  ;;  %v2319_v52 = vld [vmem:[%s8424_s22 + $0xa6] sm:$0xff]  ;;  %v3622_v53 = vmul.f32 %v12515_v41, %v6062_v7  ;;  %v12516_v39 = vld [vmem:[#allocation97_spill] sm:$0xff]  ;;  %v6339_v57 = vld [vmem:[%s8424_s22 + $0x3d8] sm:$0xff] }
 0x25b   : >> { %v3529_v33 = vadd.f32 %v3513_v25, %v3476_v29  ;;  %v4371_v5 = vmul.f32 %v12516_v39, %v6305_v15  ;;  %v6096_v19 = vld [vmem:[%s8424_s22 + $0x2b0] sm:$0xff]  ;;  %v12517_v12 = vld [vmem:[#allocation72_spill] sm:$0xff]  ;;  %v12518_v45 = vld [vmem:[#allocation107_spill] sm:$0xff]  ;;  %v2250_v7 = vadd.f32 %v2234_v10, %v2197_v61  ;;  %v2340_v13 = vmul.f32 %v9360_v49, %v2319_v52 }
 0x25c   : >> { %v4278_v3 = vadd.f32 %v4262_v54, %v4225_v18  ;;  %v2840_v46 = vadd.f32 %v2824_v22, %v2784_v37  ;;  %v2930_v27 = vmul.f32 %v12518_v45, %v12517_v12  ;;  %v2372_v11 = vld [vmem:[%s8424_s22 + $0xa9] sm:$0xff]  ;;  %v4424_v54 = vmul.f32 %v9654_v42, %v6322_v38  ;;  %v6113_v15 = vld [vmem:[%s8424_s22 + $0x2b3] sm:$0xff]  ;;  %v6356_v41 = vld [vmem:[%s8424_s22 + $0x3db] sm:$0xff] }
 0x25d   : >> { %v3585_v62 = vadd.f32 %v3569_v21, %v3529_v33  ;;  %v12519_v25 = vld [vmem:[#allocation121_spill] sm:$0xff]  ;;  %v12520_v22 = vld [vmem:[#allocation110_spill] sm:$0xff]  ;;  %v12521_v18 = vld [vmem:[#allocation88_spill] sm:$0xff]  ;;  %v2393_v10 = vmul.f32 %v9381_v6, %v2372_v11 }
 0x25e   : >> { %v3675_v29 = vmul.f32 %v12519_v25, %v6079_v48  ;;  %v4334_v8 = vadd.f32 %v4318_v24, %v4278_v3  ;;  %v2893_v14 = vadd.f32 %v2877_v60, %v2840_v46  ;;  %v2983_v37 = vmul.f32 %v12521_v18, %v12520_v22  ;;  %v5684_v12 = vld [vmem:[%s8424_s22 + $0x127] sm:$0xff]  ;;  %v6130_v38 = vld [vmem:[%s8424_s22 + $0x2b6] sm:$0xff]  ;;  %v6373_v25 = vld [vmem:[%s8424_s22 + $0x3de] sm:$0xff] }
 0x25f   : >> { %v3638_v39 = vadd.f32 %v3622_v53, %v3585_v62  ;;  %v12522_v33 = vld [vmem:[#allocation123_spill] sm:$0xff]  ;;  %v2303_v48 = vadd.f32 %v2287_v1, %v2250_v7  ;;  %v4477_v24 = vmul.f32 %v9675_v51, %v6339_v57  ;;  %v12524_v3 = vld [vmem:[#allocation90_spill] sm:$0xff]  ;;  %v5701_v22 = vld [vmem:[%s8424_s22 + $0x12a] sm:$0xff]  ;;  %v2449_v1 = vmul.f32 %v9403_v36, %v5684_v12 }
 0x260   : >> { %v3728_v21 = vmul.f32 %v12522_v33, %v6096_v19  ;;  %v4387_v52 = vadd.f32 %v4371_v5, %v4334_v8  ;;  %v2946_v61 = vadd.f32 %v2930_v27, %v2893_v14  ;;  %v12523_v60 = vld [vmem:[#allocation79_spill] sm:$0xff]  ;;  %v12525_v62 = vld [vmem:[#allocation125_spill] sm:$0xff]  ;;  %v4530_v5 = vmul.f32 %v9696_v40, %v6356_v41 }
 0x261   : >> { %v3036_v46 = vmul.f32 %v12524_v3, %v12523_v60  ;;  %v3691_v42 = vadd.f32 %v3675_v29, %v3638_v39  ;;  %v3781_v53 = vmul.f32 %v12525_v62, %v6113_v15  ;;  %v2356_v19 = vadd.f32 %v2340_v13, %v2303_v48  ;;  %v6147_v57 = vld [vmem:[%s8424_s22 + $0x2b9] sm:$0xff]  ;;  %v12526_v8 = vld [vmem:[#allocation73_spill] sm:$0xff]  ;;  %v6390_v60 = vld [vmem:[%s8424_s22 + $0x3e1] sm:$0xff] }
 0x262   : >> { %v4440_v11 = vadd.f32 %v4424_v54, %v4387_v52  ;;  %v2999_v7 = vadd.f32 %v2983_v37, %v2946_v61  ;;  %v3089_v27 = vmul.f32 %v9371_v63, %v12526_v8  ;;  %v5718_v14 = vld [vmem:[%s8424_s22 + $0x12d] sm:$0xff]  ;;  %v3834_v39 = vmul.f32 %v9687_v44, %v6130_v38  ;;  %v6166_v12 = vld [vmem:[%s8424_s22 + $0x337] sm:$0xff]  ;;  %v12528_v37 = vld [vmem:[#allocation95_spill] sm:$0xff] }
 0x263   : >> { %v3744_v33 = vadd.f32 %v3728_v21, %v3691_v42  ;;  %v2409_v29 = vadd.f32 %v2393_v10, %v2356_v19  ;;  %v2502_v13 = vmul.f32 %v9427_v55, %v5701_v22  ;;  %v4583_v54 = vmul.f32 %v9717_v50, %v6373_v25  ;;  %v12527_v48 = vld [vmem:[#allocation80_spill] sm:$0xff]  ;;  %v5735_v61 = vld [vmem:[%s8424_s22 + $0x130] sm:$0xff]  ;;  %v12529_v62 = vld [vmem:[#allocation127_spill] sm:$0xff] }
 0x264   : >> { %v4493_v15 = vadd.f32 %v4477_v24, %v4440_v11  ;;  %v3052_v41 = vadd.f32 %v3036_v46, %v2999_v7  ;;  %v3142_v52 = vmul.f32 %v12528_v37, %v12527_v48  ;;  %v3887_v42 = vmul.f32 %v12529_v62, %v6147_v57  ;;  %v6183_v24 = vld [vmem:[%s8424_s22 + $0x33a] sm:$0xff]  ;;  %v12530_v19 = vld [vmem:[#allocation81_spill] sm:$0xff]  ;;  %v12532_v44 = vld [vmem:[#allocation104_spill] sm:$0xff] }
 0x265   : >> { %v3797_v8 = vadd.f32 %v3781_v53, %v3744_v33  ;;  %v2465_v21 = vadd.f32 %v2449_v1, %v2409_v29  ;;  %v2555_v10 = vmul.f32 %v9455_v47, %v5718_v14  ;;  %v4636_v22 = vmul.f32 %v9733_v30, %v6390_v60  ;;  %v12531_v46 = vld [vmem:[#allocation101_spill] sm:$0xff]  ;;  %v6200_v14 = vld [vmem:[%s8424_s22 + $0x33d] sm:$0xff] }
 0x266   : >> { %v4546_v38 = vadd.f32 %v4530_v5, %v4493_v15  ;;  %v3105_v25 = vadd.f32 %v3089_v27, %v3052_v41  ;;  %v3198_v11 = vmul.f32 %v12531_v46, %v12530_v19  ;;  %v5752_v7 = vld [vmem:[%s8424_s22 + $0x133] sm:$0xff]  ;;  %v3943_v33 = vmul.f32 %v12532_v44, %v6166_v12  ;;  %v12533_v60 = vld [vmem:[#allocation83_spill] sm:$0xff] }
 0x267   : >> { %v3850_v48 = vadd.f32 %v3834_v39, %v3797_v8  ;;  %v2518_v53 = vadd.f32 %v2502_v13, %v2465_v21  ;;  %v2608_v1 = vmul.f32 %v9482_v34, %v5735_v61  ;;  %v3251_v29 = vmul.f32 %v9439_v2, %v12533_v60  ;;  %v5769_v27 = vld [vmem:[%s8424_s22 + $0x136] sm:$0xff]  ;;  %v6217_v19 = vld [vmem:[%s8424_s22 + $0x340] sm:$0xff] }
 0x268   : >> { %v4599_v57 = vadd.f32 %v4583_v54, %v4546_v38  ;;  %v3158_v5 = vadd.f32 %v3142_v52, %v3105_v25  ;;  %v3996_v41 = vmul.f32 %v9474_v32, %v6183_v24  ;;  %v2661_v12 = vmul.f32 %v9508_v58, %v5752_v7  ;;  %v6234_v61 = vld [vmem:[%s8424_s22 + $0x343] sm:$0xff]  ;;  %v12534_v8 = vld [vmem:[#allocation85_spill] sm:$0xff]  ;;  %v5786_v21 = vld [vmem:[%s8424_s22 + $0x139] sm:$0xff] }
 0x269   : >> { %v3903_v15 = vadd.f32 %v3887_v42, %v3850_v48  ;;  %v2571_v39 = vadd.f32 %v2555_v10, %v2518_v53  ;;  %v3304_v52 = vmul.f32 %v9466_v17, %v12534_v8  ;;  %v4049_v25 = vmul.f32 %v9500_v20, %v6200_v14  ;;  %v6251_v42 = vld [vmem:[%s8424_s22 + $0x346] sm:$0xff]  ;;  %v5805_v48 = vld [vmem:[%s8424_s22 + $0x1b7] sm:$0xff] }
 0x26a   : >> { %v4652_v13 = vadd.f32 %v4636_v22, %v4599_v57  ;;  %v3214_v54 = vadd.f32 %v3198_v11, %v3158_v5  ;;  %v2714_v10 = vmul.f32 %v9217_v59, %v5769_v27  ;;  %v4102_v22 = vmul.f32 %v9525_v43, %v6217_v19  ;;  %v12536_v53 = vld [vmem:[#allocation89_spill] sm:$0xff]  ;;  %v5822_v27 = vld [vmem:[%s8424_s22 + $0x1ba] sm:$0xff] }
 0x26b   : >> { %v3959_v38 = vadd.f32 %v3943_v33, %v3903_v15  ;;  %v2624_v24 = vadd.f32 %v2608_v1, %v2571_v39  ;;  %v3357_v57 = vmul.f32 %v9492_v31, %v12536_v53  ;;  %v2057_v33 = vld [vmem:[%s8424_s22 + $0xcf] sm:$0xff]  ;;  %v4155_v1 = vmul.f32 %v9545_v4, %v6234_v61  ;;  %v12537_v39 = vld [vmem:[#allocation91_spill] sm:$0xff] }
 0x26c   : >> { %v9858_v7 = vadd.f32 %v12418_v16, %v4652_v13  ;;  %v3267_v11 = vadd.f32 %v3251_v29, %v3214_v54  ;;  %v2110_v5 = vld [vmem:[%s8424_s22 + $0xd2] sm:$0xff]  ;;  %v2767_v59 = vmul.f32 %v12508_v35, %v5786_v21  ;;  %v4208_v29 = vmul.f32 %v9558_v9, %v6251_v42  ;;  %v5839_v35 = vld [vmem:[%s8424_s22 + $0x1bd] sm:$0xff] }
 0x26d   : >> { %v4012_v14 = vadd.f32 %v3996_v41, %v3959_v38  ;;  %v2677_v60 = vadd.f32 %v2661_v12, %v2624_v24  ;;  %v2163_v15 = vld [vmem:[%s8424_s22 + $0xd5] sm:$0xff]  ;;  %v3410_v13 = vmul.f32 %v9518_v23, %v12537_v39  ;;  %v2823_v54 = vmul.f32 %v12511_v0, %v5805_v48  ;;  %v6268_v12 = vld [vmem:[%s8424_s22 + $0x349] sm:$0xff] }
 0x26e   : >> { %12535 = vst [vmem:[#allocation108_spill] sm:$0xff] %v9858_v7  ;;  %4720 = vperm.xlu1 %6468, %v9858_v7   ;;  %v3320_v19 = vadd.f32 %v3304_v52, %v3267_v11  ;;  %v2216_v41 = vld [vmem:[%s8424_s22 + $0xd8] sm:$0xff]  ;;  %v2078_v21 = vmul.f32 %v9281_v26, %v2057_v33  ;;  %v12538_v38 = vld [vmem:[#allocation113_spill] sm:$0xff]  ;;  %v12540_v52 = vld [vmem:[#allocation103_spill] sm:$0xff]  ;;  %v2876_v39 = vmul.f32 %v12514_v28, %v5822_v27 }
 0x26f   : >> { %v4065_v61 = vadd.f32 %v4049_v25, %v4012_v14  ;;  %v2730_v8 = vadd.f32 %v2714_v10, %v2677_v60  ;;  %v2131_v24 = vmul.f32 %v12538_v38, %v2110_v5  ;;  %v12539_v42 = vld [vmem:[#allocation94_spill] sm:$0xff]  ;;  %v6287_v14 = vld [vmem:[%s8424_s22 + $0x3c7] sm:$0xff]  ;;  %v12543_v5 = vld [vmem:[#allocation117_spill] sm:$0xff]  ;;  %v2929_v28 = vmul.f32 %v12518_v45, %v5839_v35 }
 0x270   : >> { %v3373_v53 = vadd.f32 %v3357_v57, %v3320_v19  ;;  %v3463_v11 = vmul.f32 %v12540_v52, %v12539_v42  ;;  %v12541_v7 = vld [vmem:[#allocation82_spill] sm:$0xff]  ;;  %v5856_v60 = vld [vmem:[%s8424_s22 + $0x1c0] sm:$0xff]  ;;  %v12542_v26 = vld [vmem:[#allocation84_spill] sm:$0xff]  ;;  %v4261_v57 = vmul.f32 %v12543_v5, %v6268_v12 }
 0x271   : >> { %v2184_v0 = vmul.f32 %v12541_v7, %v2163_v15  ;;  %v2269_v48 = vld [vmem:[%s8424_s22 + $0xdb] sm:$0xff]  ;;  %v4118_v25 = vadd.f32 %v4102_v22, %v4065_v61  ;;  %v2783_v10 = vadd.f32 %v2767_v59, %v2730_v8  ;;  %v2147_v9 = vadd.f32 %v2131_v24, %v2078_v21  ;;  %v12545_v42 = vld [vmem:[#allocation116_spill] sm:$0xff] }
 0x272   : >> { %v2237_v33 = vmul.f32 %v12542_v26, %v2216_v41  ;;  %v3426_v19 = vadd.f32 %v3410_v13, %v3373_v53  ;;  %v12544_v38 = vld [vmem:[#allocation99_spill] sm:$0xff]  ;;  %v6304_v22 = vld [vmem:[%s8424_s22 + $0x3ca] sm:$0xff]  ;;  %v2290_v8 = vmul.f32 %v9339_v56, %v2269_v48  ;;  %v12548_v24 = vld [vmem:[#allocation118_spill] sm:$0xff]  ;;  %v2982_v26 = vmul.f32 %v12521_v18, %v5856_v60 }
 0x273   : >> { %v3516_v16 = vmul.f32 %v12545_v42, %v12544_v38  ;;  %v2322_v7 = vld [vmem:[%s8424_s22 + $0xde] sm:$0xff]  ;;  %v4171_v27 = vadd.f32 %v4155_v1, %v4118_v25  ;;  %v2839_v15 = vadd.f32 %v2823_v54, %v2783_v10  ;;  %v2200_v61 = vadd.f32 %v2184_v0, %v2147_v9  ;;  %v12546_v41 = vld [vmem:[#allocation96_spill] sm:$0xff]  ;;  %v12547_v13 = vld [vmem:[#allocation93_spill] sm:$0xff] }
 0x274   : >> { %v5873_v59 = vld [vmem:[%s8424_s22 + $0x1c3] sm:$0xff]  ;;  %v4317_v21 = vmul.f32 %v12546_v41, %v6287_v14  ;;  %v3479_v12 = vadd.f32 %v3463_v11, %v3426_v19  ;;  %v3572_v53 = vmul.f32 %v12548_v24, %v12547_v13  ;;  %v6321_v1 = vld [vmem:[%s8424_s22 + $0x3cd] sm:$0xff]  ;;  %v2343_v9 = vmul.f32 %v9360_v49, %v2322_v7 }
 0x275   : >> { %v2375_v45 = vld [vmem:[%s8424_s22 + $0xe1] sm:$0xff]  ;;  %v4224_v35 = vadd.f32 %v4208_v29, %v4171_v27  ;;  %v2892_v25 = vadd.f32 %v2876_v39, %v2839_v15  ;;  %v2253_v10 = vadd.f32 %v2237_v33, %v2200_v61  ;;  %v12549_v56 = vld [vmem:[#allocation97_spill] sm:$0xff]  ;;  %v3035_v38 = vmul.f32 %v12524_v3, %v5873_v59 }
 0x276   : >> { %v5890_v54 = vld [vmem:[%s8424_s22 + $0x1c6] sm:$0xff]  ;;  %v4370_v0 = vmul.f32 %v12549_v56, %v6304_v22  ;;  %v3532_v48 = vadd.f32 %v3516_v16, %v3479_v12  ;;  %v6338_v29 = vld [vmem:[%s8424_s22 + $0x3d0] sm:$0xff]  ;;  %v2396_v33 = vmul.f32 %v9381_v6, %v2375_v45 }
 0x277   : >> { %v12550_v11 = vld [vmem:[#allocation75_spill] sm:$0xff]  ;;  %v4277_v60 = vadd.f32 %v4261_v57, %v4224_v35  ;;  %v2945_v27 = vadd.f32 %v2929_v28, %v2892_v25  ;;  %v5907_v39 = vld [vmem:[%s8424_s22 + $0x1c9] sm:$0xff]  ;;  %v2306_v15 = vadd.f32 %v2290_v8, %v2253_v10  ;;  %v3088_v13 = vmul.f32 %v9371_v63, %v5890_v54  ;;  %v6355_v57 = vld [vmem:[%s8424_s22 + $0x3d3] sm:$0xff] }
 0x278   : >> { %v12551_v14 = vld [vmem:[#allocation119_spill] sm:$0xff]  ;;  %v12552_v49 = vld [vmem:[#allocation92_spill] sm:$0xff]  ;;  %v3588_v22 = vadd.f32 %v3572_v53, %v3532_v48  ;;  %v12554_v61 = vld [vmem:[#allocation121_spill] sm:$0xff]  ;;  %v4476_v6 = vmul.f32 %v9675_v51, %v6338_v29  ;;  %v3141_v48 = vmul.f32 %v12528_v37, %v5907_v39 }
 0x279   : >> { %v3625_v19 = vmul.f32 %v12551_v14, %v12550_v11  ;;  %v5687_v18 = vld [vmem:[%s8424_s22 + $0x15f] sm:$0xff]  ;;  %v4423_v7 = vmul.f32 %v12552_v49, %v6321_v1  ;;  %v12553_v16 = vld [vmem:[#allocation76_spill] sm:$0xff]  ;;  %v4333_v59 = vadd.f32 %v4317_v21, %v4277_v60  ;;  %v2998_v35 = vadd.f32 %v2982_v26, %v2945_v27  ;;  %v6372_v21 = vld [vmem:[%s8424_s22 + $0x3d6] sm:$0xff] }
 0x27a   : >> { %v3678_v12 = vmul.f32 %v12554_v61, %v12553_v16  ;;  %v5704_v3 = vld [vmem:[%s8424_s22 + $0x162] sm:$0xff]  ;;  %v2359_v25 = vadd.f32 %v2343_v9, %v2306_v15  ;;  %v2452_v8 = vmul.f32 %v9403_v36, %v5687_v18  ;;  %v5943_v26 = vld [vmem:[%s8424_s22 + $0x24a] sm:$0xff]  ;;  %v4529_v36 = vmul.f32 %v9696_v40, %v6355_v57 }
 0x27b   : >> { %v5926_v28 = vld [vmem:[%s8424_s22 + $0x247] sm:$0xff]  ;;  %v3641_v45 = vadd.f32 %v3625_v19, %v3588_v22  ;;  %v4386_v54 = vadd.f32 %v4370_v0, %v4333_v59  ;;  %v3051_v11 = vadd.f32 %v3035_v38, %v2998_v35  ;;  %v2505_v9 = vmul.f32 %v9427_v55, %v5704_v3  ;;  %v12557_v19 = vld [vmem:[#allocation102_spill] sm:$0xff]  ;;  %v12558_v29 = vld [vmem:[#allocation125_spill] sm:$0xff] }
 0x27c   : >> { %v12555_v53 = vld [vmem:[#allocation100_spill] sm:$0xff]  ;;  %v12556_v1 = vld [vmem:[#allocation123_spill] sm:$0xff]  ;;  %v2412_v60 = vadd.f32 %v2396_v33, %v2359_v25  ;;  %v3784_v27 = vmul.f32 %v12558_v29, %v12557_v19  ;;  %v3197_v15 = vmul.f32 %v12531_v46, %v5926_v28  ;;  %v4582_v55 = vmul.f32 %v9717_v50, %v6372_v21  ;;  %v12559_v59 = vld [vmem:[#allocation106_spill] sm:$0xff] }
 0x27d   : >> { %v3731_v10 = vmul.f32 %v12556_v1, %v12555_v53  ;;  %v5721_v63 = vld [vmem:[%s8424_s22 + $0x165] sm:$0xff]  ;;  %v3694_v18 = vadd.f32 %v3678_v12, %v3641_v45  ;;  %v4439_v39 = vadd.f32 %v4423_v7, %v4386_v54  ;;  %v6389_v22 = vld [vmem:[%s8424_s22 + $0x3d9] sm:$0xff]  ;;  %v3104_v0 = vadd.f32 %v3088_v13, %v3051_v11  ;;  %v5960_v16 = vld [vmem:[%s8424_s22 + $0x24d] sm:$0xff] }
 0x27e   : >> { %v5738_v37 = vld [vmem:[%s8424_s22 + $0x168] sm:$0xff]  ;;  %v2468_v38 = vadd.f32 %v2452_v8, %v2412_v60  ;;  %v2558_v33 = vmul.f32 %v9455_v47, %v5721_v63  ;;  %v12560_v12 = vld [vmem:[#allocation126_spill] sm:$0xff]  ;;  %v3250_v35 = vmul.f32 %v9439_v2, %v5943_v26  ;;  %v5977_v7 = vld [vmem:[%s8424_s22 + $0x250] sm:$0xff]  ;;  %v4635_v8 = vmul.f32 %v9733_v30, %v6389_v22 }
 0x27f   : >> { %v3747_v3 = vadd.f32 %v3731_v10, %v3694_v18  ;;  %v3837_v57 = vmul.f32 %v12560_v12, %v12559_v59  ;;  %v5755_v25 = vld [vmem:[%s8424_s22 + $0x16b] sm:$0xff]  ;;  %v4492_v46 = vadd.f32 %v4476_v6, %v4439_v39  ;;  %v3157_v28 = vadd.f32 %v3141_v48, %v3104_v0  ;;  %v12561_v53 = vld [vmem:[#allocation115_spill] sm:$0xff]  ;;  %v5994_v6 = vld [vmem:[%s8424_s22 + $0x253] sm:$0xff] }
 0x280   : >> { %v2521_v45 = vadd.f32 %v2505_v9, %v2468_v38  ;;  %v2611_v13 = vmul.f32 %v9482_v34, %v5738_v37  ;;  %v3890_v10 = vmul.f32 %v12529_v62, %v12561_v53  ;;  %v3303_v63 = vmul.f32 %v9466_v17, %v5960_v16  ;;  %v5772_v54 = vld [vmem:[%s8424_s22 + $0x16e] sm:$0xff]  ;;  %v12563_v9 = vld [vmem:[#allocation86_spill] sm:$0xff] }
 0x281   : >> { %v3800_v47 = vadd.f32 %v3784_v27, %v3747_v3  ;;  %v4545_v21 = vadd.f32 %v4529_v36, %v4492_v46  ;;  %v3213_v2 = vadd.f32 %v3197_v15, %v3157_v28  ;;  %v2664_v11 = vmul.f32 %v9508_v58, %v5755_v25  ;;  %v12562_v60 = vld [vmem:[#allocation120_spill] sm:$0xff]  ;;  %v5789_v27 = vld [vmem:[%s8424_s22 + $0x171] sm:$0xff] }
 0x282   : >> { %v2574_v48 = vadd.f32 %v2558_v33, %v2521_v45  ;;  %v3946_v34 = vmul.f32 %v12532_v44, %v12562_v60  ;;  %v3999_v18 = vmul.f32 %v9474_v32, %v12563_v9  ;;  %v3356_v19 = vmul.f32 %v9492_v31, %v5977_v7  ;;  %v6011_v36 = vld [vmem:[%s8424_s22 + $0x256] sm:$0xff]  ;;  %v9959_v58 = vld [vmem:[%s11614_s3 + $0xc] ss:$0 sm:$0xff]  ;;  %v9984_v45 = vld [vmem:[%s11614_s3 + $0xe] ss:$0 sm:$0xff] }
 0x283   : >> { %v3853_v26 = vadd.f32 %v3837_v57, %v3800_v47  ;;  %v4598_v17 = vadd.f32 %v4582_v55, %v4545_v21  ;;  %v3266_v37 = vadd.f32 %v3250_v35, %v3213_v2  ;;  %v2717_v39 = vmul.f32 %v9959_v58, %v5772_v54  ;;  %v5808_v44 = vld [vmem:[%s8424_s22 + $0x1ef] sm:$0xff]  ;;  %v12564_v32 = vld [vmem:[#allocation122_spill] sm:$0xff]  ;;  %v2056_v33 = vld [vmem:[%s8424_s22 + $0xc7] sm:$0xff] }
 0x284   : >> { %v2627_v15 = vadd.f32 %v2611_v13, %v2574_v48  ;;  %v4052_v31 = vmul.f32 %v9500_v20, %v12564_v32  ;;  %v12565_v0 = vld [vmem:[#allocation124_spill] sm:$0xff]  ;;  %v3409_v38 = vmul.f32 %v9518_v23, %v5994_v6  ;;  %v3462_v28 = vmul.f32 %v12540_v52, %v6011_v36  ;;  %v6028_v7 = vld [vmem:[%s8424_s22 + $0x259] sm:$0xff]  ;;  %v2215_v54 = vld [vmem:[%s8424_s22 + $0xd0] sm:$0xff] }
 0x285   : >> { %v3906_v22 = vadd.f32 %v3890_v10, %v3853_v26  ;;  %v4105_v16 = vmul.f32 %v9525_v43, %v12565_v0  ;;  %v4651_v55 = vadd.f32 %v4635_v8, %v4598_v17  ;;  %v3319_v3 = vadd.f32 %v3303_v63, %v3266_v37  ;;  %v9972_v57 = vld [vmem:[%s11614_s3 + $0xd] ss:$0 sm:$0xff]  ;;  %v12566_v43 = vld [vmem:[#allocation98_spill] sm:$0xff]  ;;  %v12567_v47 = vld [vmem:[#allocation5_spill] sm:$0xff] }
 0x286   : >> { %v2680_v59 = vadd.f32 %v2664_v11, %v2627_v15  ;;  %v2770_v35 = vmul.f32 %v9972_v57, %v5789_v27  ;;  %v2109_v25 = vld [vmem:[%s8424_s22 + $0xca] sm:$0xff]  ;;  %v4158_v23 = vmul.f32 %v9545_v4, %v12566_v43  ;;  %v2826_v13 = vmul.f32 %v9984_v45, %v5808_v44  ;;  %v5825_v8 = vld [vmem:[%s8424_s22 + $0x1f2] sm:$0xff]  ;;  %v9994_v4 = vld [vmem:[%s11614_s3] ss:$0 sm:$0xff] }
 0x287   : >> { %v2162_v20 = vld [vmem:[%s8424_s22 + $0xcd] sm:$0xff]  ;;  %v3962_v46 = vadd.f32 %v3946_v34, %v3906_v22  ;;  %v9989_v53 = vadd.f32 %v12567_v47, %v4651_v55  ;;  %v3372_v10 = vadd.f32 %v3356_v19, %v3319_v3  ;;  %v2077_v52 = vmul.f32 %v9994_v4, %v2056_v33  ;;  %v12570_v6 = vld [vmem:[#allocation114_spill] sm:$0xff]  ;;  %v10005_v60 = vld [vmem:[%s11614_s3 + $0x1] ss:$0 sm:$0xff] }
 0x288   : >> { %v2733_v63 = vadd.f32 %v2717_v39, %v2680_v59  ;;  %v12569_v2 = vld [vmem:[#allocation105_spill] sm:$0xff]  ;;  %v2130_v34 = vmul.f32 %v10005_v60, %v2109_v25  ;;  %v10011_v9 = vld [vmem:[%s11614_s3 + $0x2] ss:$0 sm:$0xff]  ;;  %v3515_v17 = vmul.f32 %v12545_v42, %v6028_v7  ;;  %v10020_v36 = vld [vmem:[%s11614_s3 + $0xf] ss:$0 sm:$0xff] }
 0x289   : >> { %12568 = vst [vmem:[#allocation78_spill] sm:$0xff] %v9989_v53  ;;  %v4015_v21 = vadd.f32 %v3999_v18, %v3962_v46  ;;  %v4211_v48 = vmul.f32 %v12570_v6, %v12569_v2  ;;  %v6047_v11 = vld [vmem:[%s8424_s22 + $0x2d7] sm:$0xff]  ;;  %v2183_v18 = vmul.f32 %v10011_v9, %v2162_v20  ;;  %4715 = vperm.xlu0 %6467, %v9989_v53   ;;  %v6290_v19 = vld [vmem:[%s8424_s22 + $0x3ff] sm:$0xff]  ;;  %v12571_v22 = vld [vmem:[#allocation128_spill] sm:$0xff] }
 0x28a   : >> { %v5842_v26 = vld [vmem:[%s8424_s22 + $0x1f5] sm:$0xff]  ;;  %v3425_v27 = vadd.f32 %v3409_v38, %v3372_v10  ;;  %v2786_v37 = vadd.f32 %v2770_v35, %v2733_v63  ;;  %v2879_v15 = vmul.f32 %v10020_v36, %v5825_v8  ;;  %v4264_v32 = vmul.f32 %v12543_v5, %v12571_v22  ;;  %v10031_v42 = vld [vmem:[%s11614_s3 + $0x3] ss:$0 sm:$0xff]  ;;  %v10039_v5 = vld [vmem:[%s11614_s3 + $0x10] ss:$0 sm:$0xff] }
 0x28b   : >> { %v2268_v39 = vld [vmem:[%s8424_s22 + $0xd3] sm:$0xff]  ;;  %v4068_v44 = vadd.f32 %v4052_v31, %v4015_v21  ;;  %v2146_v33 = vadd.f32 %v2130_v34, %v2077_v52  ;;  %12572 = vst [vmem:[#allocation111_spill] sm:$0xff] %v10031_v42  ;;  %v2236_v55 = vmul.f32 %v10031_v42, %v2215_v54  ;;  %v6307_v3 = vld [vmem:[%s8424_s22 + $0x402] sm:$0xff]  ;;  %v3571_v31 = vmul.f32 %v12548_v24, %v6047_v11 }
 0x28c   : >> { %v6064_v0 = vld [vmem:[%s8424_s22 + $0x2da] sm:$0xff]  ;;  %v3478_v59 = vadd.f32 %v3462_v28, %v3425_v27  ;;  %v2842_v35 = vadd.f32 %v2826_v13, %v2786_v37  ;;  %v2932_v25 = vmul.f32 %v10039_v5, %v5842_v26  ;;  %v4320_v43 = vmul.f32 %v12546_v41, %v6290_v19  ;;  %v10049_v24 = vld [vmem:[%s11614_s3 + $0x4] ss:$0 sm:$0xff]  ;;  %v6324_v10 = vld [vmem:[%s8424_s22 + $0x405] sm:$0xff] }
 0x28d   : >> { %v5859_v38 = vld [vmem:[%s8424_s22 + $0x1f8] sm:$0xff]  ;;  %v4121_v46 = vadd.f32 %v4105_v16, %v4068_v44  ;;  %v2199_v28 = vadd.f32 %v2183_v18, %v2146_v33  ;;  %12573 = vst [vmem:[#allocation109_spill] sm:$0xff] %v10049_v24  ;;  %v2289_v13 = vmul.f32 %v10049_v24, %v2268_v39  ;;  %v3624_v52 = vmul.f32 %v12551_v14, %v6064_v0  ;;  %v10057_v41 = vld [vmem:[%s11614_s3 + $0x11] ss:$0 sm:$0xff]  ;;  %v6098_v11 = vld [vmem:[%s8424_s22 + $0x2e0] sm:$0xff] }
 0x28e   : >> { %v2321_v20 = vld [vmem:[%s8424_s22 + $0xd6] sm:$0xff]  ;;  %v3531_v63 = vadd.f32 %v3515_v17, %v3478_v59  ;;  %v2895_v16 = vadd.f32 %v2879_v15, %v2842_v35  ;;  %v2985_v54 = vmul.f32 %v10057_v41, %v5859_v38  ;;  %v4373_v6 = vmul.f32 %v12549_v56, %v6307_v3  ;;  %v5893_v26 = vld [vmem:[%s8424_s22 + $0x1fe] sm:$0xff]  ;;  %v6341_v19 = vld [vmem:[%s8424_s22 + $0x408] sm:$0xff] }
 0x28f   : >> { %v6081_v7 = vld [vmem:[%s8424_s22 + $0x2dd] sm:$0xff]  ;;  %v4174_v2 = vadd.f32 %v4158_v23, %v4121_v46  ;;  %v2252_v34 = vadd.f32 %v2236_v55, %v2199_v28  ;;  %v10067_v14 = vld [vmem:[%s11614_s3 + $0x5] ss:$0 sm:$0xff]  ;;  %v10075_v56 = vld [vmem:[%s11614_s3 + $0x12] ss:$0 sm:$0xff]  ;;  %v4426_v44 = vmul.f32 %v12552_v49, %v6324_v10  ;;  %v3730_v59 = vmul.f32 %v12556_v1, %v6098_v11 }
 0x290   : >> { %v5876_v8 = vld [vmem:[%s8424_s22 + $0x1fb] sm:$0xff]  ;;  %12574 = vst [vmem:[#allocation74_spill] sm:$0xff] %v10067_v14  ;;  %v2342_v18 = vmul.f32 %v10067_v14, %v2321_v20  ;;  %v3587_v27 = vadd.f32 %v3571_v31, %v3531_v63  ;;  %v3677_v17 = vmul.f32 %v12554_v61, %v6081_v7  ;;  %v2948_v23 = vadd.f32 %v2932_v25, %v2895_v16  ;;  %v6115_v22 = vld [vmem:[%s8424_s22 + $0x2e3] sm:$0xff]  ;;  %v6358_v55 = vld [vmem:[%s8424_s22 + $0x40b] sm:$0xff] }
 0x291   : >> { %v2374_v21 = vld [vmem:[%s8424_s22 + $0xd9] sm:$0xff]  ;;  %v3038_v37 = vmul.f32 %v10075_v56, %v5876_v8  ;;  %v4227_v39 = vadd.f32 %v4211_v48, %v4174_v2  ;;  %v5910_v0 = vld [vmem:[%s8424_s22 + $0x201] sm:$0xff]  ;;  %v2305_v38 = vadd.f32 %v2289_v13, %v2252_v34  ;;  %v10093_v49 = vld [vmem:[%s11614_s3 + $0x13] ss:$0 sm:$0xff]  ;;  %v4479_v20 = vmul.f32 %v9675_v51, %v6341_v19 }
 0x292   : >> { %v5686_v15 = vld [vmem:[%s8424_s22 + $0x157] sm:$0xff]  ;;  %v10085_v61 = vld [vmem:[%s11614_s3 + $0x6] ss:$0 sm:$0xff]  ;;  %v3640_v3 = vadd.f32 %v3624_v52, %v3587_v27  ;;  %v3001_v48 = vadd.f32 %v2985_v54, %v2948_v23  ;;  %v3091_v31 = vmul.f32 %v10093_v49, %v5893_v26  ;;  %v10103_v1 = vld [vmem:[%s11614_s3 + $0x7] ss:$0 sm:$0xff]  ;;  %v3783_v63 = vmul.f32 %v12558_v29, %v6115_v22 }
 0x293   : >> { %12575 = vst [vmem:[#allocation70_spill] sm:$0xff] %v10085_v61  ;;  %v2395_v33 = vmul.f32 %v10085_v61, %v2374_v21  ;;  %v5703_v35 = vld [vmem:[%s8424_s22 + $0x15a] sm:$0xff]  ;;  %v4280_v25 = vadd.f32 %v4264_v32, %v4227_v39  ;;  %v6132_v46 = vld [vmem:[%s8424_s22 + $0x2e6] sm:$0xff]  ;;  %v2358_v8 = vadd.f32 %v2342_v18, %v2305_v38  ;;  %12576 = vst [vmem:[#allocation112_spill] sm:$0xff] %v10103_v1 }
 0x294   : >> { %v5929_v7 = vld [vmem:[%s8424_s22 + $0x27f] sm:$0xff]  ;;  %v2451_v28 = vmul.f32 %v10103_v1, %v5686_v15  ;;  %v6375_v13 = vld [vmem:[%s8424_s22 + $0x40e] sm:$0xff]  ;;  %v3693_v10 = vadd.f32 %v3677_v17, %v3640_v3  ;;  %v3054_v32 = vadd.f32 %v3038_v37, %v3001_v48  ;;  %v4532_v21 = vmul.f32 %v9696_v40, %v6358_v55  ;;  %v10121_v29 = vld [vmem:[%s11614_s3 + $0x8] ss:$0 sm:$0xff] }
 0x295   : >> { %v10111_v51 = vld [vmem:[%s11614_s3 + $0x14] ss:$0 sm:$0xff]  ;;  %v5720_v16 = vld [vmem:[%s8424_s22 + $0x15d] sm:$0xff]  ;;  %v4336_v54 = vadd.f32 %v4320_v43, %v4280_v25  ;;  %v6149_v2 = vld [vmem:[%s8424_s22 + $0x2e9] sm:$0xff]  ;;  %v2411_v26 = vadd.f32 %v2395_v33, %v2358_v8  ;;  %12578 = vst [vmem:[#allocation107_spill] sm:$0xff] %v10121_v29  ;;  %v2504_v34 = vmul.f32 %v10121_v29, %v5703_v35  ;;  %v3836_v27 = vmul.f32 %v12560_v12, %v6132_v46 }
 0x296   : >> { %12577 = vst [vmem:[#allocation72_spill] sm:$0xff] %v10111_v51  ;;  %v3144_v52 = vmul.f32 %v10111_v51, %v5910_v0  ;;  %v5946_v11 = vld [vmem:[%s8424_s22 + $0x282] sm:$0xff]  ;;  %v6392_v18 = vld [vmem:[%s8424_s22 + $0x411] sm:$0xff]  ;;  %v3746_v19 = vadd.f32 %v3730_v59, %v3693_v10  ;;  %v3107_v43 = vadd.f32 %v3091_v31, %v3054_v32  ;;  %v4585_v15 = vmul.f32 %v9717_v50, %v6375_v13 }
 0x297   : >> { %v10129_v40 = vld [vmem:[%s11614_s3 + $0x15] ss:$0 sm:$0xff]  ;;  %v5737_v23 = vld [vmem:[%s8424_s22 + $0x160] sm:$0xff]  ;;  %v4389_v37 = vadd.f32 %v4373_v6, %v4336_v54  ;;  %v2467_v0 = vadd.f32 %v2451_v28, %v2411_v26  ;;  %v10139_v12 = vld [vmem:[%s11614_s3 + $0x9] ss:$0 sm:$0xff]  ;;  %v3889_v55 = vmul.f32 %v12529_v62, %v6149_v2  ;;  %v4638_v35 = vmul.f32 %v9733_v30, %v6392_v18 }
 0x298   : >> { %v3200_v17 = vmul.f32 %v10129_v40, %v5929_v7  ;;  %v6168_v39 = vld [vmem:[%s8424_s22 + $0x367] sm:$0xff]  ;;  %12579 = vst [vmem:[#allocation110_spill] sm:$0xff] %v10139_v12  ;;  %v2557_v38 = vmul.f32 %v10139_v12, %v5720_v16  ;;  %v3799_v33 = vadd.f32 %v3783_v63, %v3746_v19  ;;  %v3160_v6 = vadd.f32 %v3144_v52, %v3107_v43  ;;  %v10147_v50 = vld [vmem:[%s11614_s3 + $0x16] ss:$0 sm:$0xff]  ;;  %v10163_v13 = vld [vmem:[%s11614_s3 + $0x23] ss:$0 sm:$0xff] }
 0x299   : >> { %v5963_v22 = vld [vmem:[%s8424_s22 + $0x285] sm:$0xff]  ;;  %12580 = vst [vmem:[#allocation88_spill] sm:$0xff] %v10147_v50  ;;  %v3253_v59 = vmul.f32 %v10147_v50, %v5946_v11  ;;  %v4442_v31 = vadd.f32 %v4426_v44, %v4389_v37  ;;  %v6202_v25 = vld [vmem:[%s8424_s22 + $0x36d] sm:$0xff]  ;;  %v2520_v62 = vadd.f32 %v2504_v34, %v2467_v0  ;;  %12582 = vst [vmem:[#allocation90_spill] sm:$0xff] %v10163_v13 }
 0x29a   : >> { %v6185_v3 = vld [vmem:[%s8424_s22 + $0x36a] sm:$0xff]  ;;  %v3852_v28 = vadd.f32 %v3836_v27, %v3799_v33  ;;  %v3945_v30 = vmul.f32 %v10163_v13, %v6168_v39  ;;  %v3216_v10 = vadd.f32 %v3200_v17, %v3160_v6  ;;  %v10170_v63 = vld [vmem:[%s11614_s3 + $0x17] ss:$0 sm:$0xff]  ;;  %v10177_v54 = vld [vmem:[%s11614_s3 + $0x24] ss:$0 sm:$0xff] }
 0x29b   : >> { %v5754_v48 = vld [vmem:[%s8424_s22 + $0x163] sm:$0xff]  ;;  %v6219_v44 = vld [vmem:[%s8424_s22 + $0x370] sm:$0xff]  ;;  %v3306_v32 = vmul.f32 %v10170_v63, %v5963_v22  ;;  %v4495_v16 = vadd.f32 %v4479_v20, %v4442_v31  ;;  %12583 = vst [vmem:[#allocation73_spill] sm:$0xff] %v10177_v54  ;;  %v3998_v2 = vmul.f32 %v10177_v54, %v6185_v3  ;;  %v2573_v34 = vadd.f32 %v2557_v38, %v2520_v62  ;;  %v10185_v18 = vld [vmem:[%s11614_s3 + $0xb] ss:$0 sm:$0xff] }
 0x29c   : >> { %v5980_v46 = vld [vmem:[%s8424_s22 + $0x288] sm:$0xff]  ;;  %v6236_v11 = vld [vmem:[%s8424_s22 + $0x373] sm:$0xff]  ;;  %12584 = vst [vmem:[#allocation80_spill] sm:$0xff] %v10185_v18  ;;  %v2663_v19 = vmul.f32 %v10185_v18, %v5754_v48  ;;  %v3905_v20 = vadd.f32 %v3889_v55, %v3852_v28  ;;  %v10191_v27 = vld [vmem:[%s11614_s3 + $0x25] ss:$0 sm:$0xff]  ;;  %v3269_v17 = vadd.f32 %v3253_v59, %v3216_v10 }
 0x29d   : >> { %v10157_v7 = vld [vmem:[%s11614_s3 + $0xa] ss:$0 sm:$0xff]  ;;  %v5997_v26 = vld [vmem:[%s8424_s22 + $0x28b] sm:$0xff]  ;;  %v4051_v43 = vmul.f32 %v10191_v27, %v6202_v25  ;;  %v4548_v0 = vadd.f32 %v4532_v21, %v4495_v16  ;;  %v10205_v38 = vld [vmem:[%s11614_s3 + $0x26] ss:$0 sm:$0xff] }
 0x29e   : >> { %12581 = vst [vmem:[#allocation79_spill] sm:$0xff] %v10157_v7  ;;  %v2610_v8 = vmul.f32 %v10157_v7, %v5737_v23  ;;  %v5771_v52 = vld [vmem:[%s8424_s22 + $0x166] sm:$0xff]  ;;  %v10197_v23 = vld [vmem:[%s11614_s3 + $0x18] ss:$0 sm:$0xff]  ;;  %v6014_v39 = vld [vmem:[%s8424_s22 + $0x28e] sm:$0xff]  ;;  %v4104_v33 = vmul.f32 %v10205_v38, %v6219_v44  ;;  %v3961_v48 = vadd.f32 %v3945_v30, %v3905_v20  ;;  %v3322_v25 = vadd.f32 %v3306_v32, %v3269_v17 }
 0x29f   : >> { %v3359_v37 = vmul.f32 %v10197_v23, %v5980_v46  ;;  %v5788_v22 = vld [vmem:[%s8424_s22 + $0x169] sm:$0xff]  ;;  %v2716_v3 = vmul.f32 %v9959_v58, %v5771_v52  ;;  %v2059_v59 = vld [vmem:[%s8424_s22 + $0xff] sm:$0xff]  ;;  %v10214_v31 = vld [vmem:[%s11614_s3 + $0x27] ss:$0 sm:$0xff]  ;;  %v4601_v30 = vadd.f32 %v4585_v15, %v4548_v0 }
 0x2a0   : >> { %v2626_v55 = vadd.f32 %v2610_v8, %v2573_v34  ;;  %v5807_v6 = vld [vmem:[%s8424_s22 + $0x1e7] sm:$0xff]  ;;  %12585 = vst [vmem:[#allocation95_spill] sm:$0xff] %v10214_v31  ;;  %v4157_v21 = vmul.f32 %v10214_v31, %v6236_v11  ;;  %v10220_v46 = vld [vmem:[%s11614_s3 + $0x19] ss:$0 sm:$0xff]  ;;  %v10228_v44 = vld [vmem:[%s11614_s3 + $0x1a] ss:$0 sm:$0xff]  ;;  %v2769_v16 = vmul.f32 %v9972_v57, %v5788_v22  ;;  %v4014_v34 = vadd.f32 %v3998_v2, %v3961_v48 }
 0x2a1   : >> { %v3412_v62 = vmul.f32 %v10220_v46, %v5997_v26  ;;  %v2112_v8 = vld [vmem:[%s8424_s22 + $0x102] sm:$0xff]  ;;  %v3465_v10 = vmul.f32 %v10228_v44, %v6014_v39  ;;  %v6031_v32 = vld [vmem:[%s8424_s22 + $0x291] sm:$0xff]  ;;  %v3375_v26 = vadd.f32 %v3359_v37, %v3322_v25  ;;  %v2825_v20 = vmul.f32 %v9984_v45, %v5807_v6  ;;  %v10244_v37 = vld [vmem:[%s11614_s3 + $0x1b] ss:$0 sm:$0xff] }
 0x2a2   : >> { %v2165_v28 = vld [vmem:[%s8424_s22 + $0x105] sm:$0xff]  ;;  %v2679_v52 = vadd.f32 %v2663_v19, %v2626_v55  ;;  %v2080_v15 = vmul.f32 %v9994_v4, %v2059_v59  ;;  %v4654_v0 = vadd.f32 %v4638_v35, %v4601_v30  ;;  %v6253_v53 = vld [vmem:[%s8424_s22 + $0x376] sm:$0xff]  ;;  %v2133_v19 = vmul.f32 %v10005_v60, %v2112_v8  ;;  %v5841_v35 = vld [vmem:[%s8424_s22 + $0x1ed] sm:$0xff] }
 0x2a3   : >> { %v5824_v11 = vld [vmem:[%s8424_s22 + $0x1ea] sm:$0xff]  ;;  %v2186_v22 = vmul.f32 %v10011_v9, %v2165_v28  ;;  %v4067_v55 = vadd.f32 %v4051_v43, %v4014_v34  ;;  %v3428_v2 = vadd.f32 %v3412_v62, %v3375_v26  ;;  %v3518_v6 = vmul.f32 %v10244_v37, %v6031_v32  ;;  %v6270_v43 = vld [vmem:[%s8424_s22 + $0x379] sm:$0xff]  ;;  %v10259_v32 = vld [vmem:[%s11614_s3 + $0x28] ss:$0 sm:$0xff] }
 0x2a4   : >> { %v2218_v17 = vld [vmem:[%s8424_s22 + $0x108] sm:$0xff]  ;;  %v2732_v39 = vadd.f32 %v2716_v3, %v2679_v52  ;;  %v2878_v59 = vmul.f32 %v10020_v36, %v5824_v11  ;;  %v10251_v3 = vadd.f32 %v12567_v47, %v4654_v0  ;;  %v6067_v25 = vld [vmem:[%s8424_s22 + $0x312] sm:$0xff]  ;;  %v2149_v8 = vadd.f32 %v2133_v19, %v2080_v15  ;;  %12587 = vst [vmem:[#allocation81_spill] sm:$0xff] %v10259_v32  ;;  %v10265_v34 = vld [vmem:[%s11614_s3 + $0x1c] ss:$0 sm:$0xff] }
 0x2a5   : >> { %v6050_v31 = vld [vmem:[%s8424_s22 + $0x30f] sm:$0xff]  ;;  %v2239_v28 = vmul.f32 %v10031_v42, %v2218_v17  ;;  %v4120_v30 = vadd.f32 %v4104_v33, %v4067_v55  ;;  %v4210_v52 = vmul.f32 %v10259_v32, %v6253_v53  ;;  %v3481_v11 = vadd.f32 %v3465_v10, %v3428_v2  ;;  %v6289_v33 = vld [vmem:[%s8424_s22 + $0x3f7] sm:$0xff] }
 0x2a6   : >> { %v2271_v48 = vld [vmem:[%s8424_s22 + $0x10b] sm:$0xff]  ;;  %12586 = vst [vmem:[#allocation127_spill] sm:$0xff] %v10251_v3  ;;  %v2785_v62 = vadd.f32 %v2769_v16, %v2732_v39  ;;  %v3574_v26 = vmul.f32 %v10265_v34, %v6050_v31  ;;  %4730 = vperm.xlu1 %6468, %v10251_v3   ;;  %v6084_v17 = vld [vmem:[%s8424_s22 + $0x315] sm:$0xff]  ;;  %v2931_v53 = vmul.f32 %v10039_v5, %v5841_v35  ;;  %v10278_v31 = vld [vmem:[%s11614_s3 + $0x29] ss:$0 sm:$0xff] }
 0x2a7   : >> { %v5858_v16 = vld [vmem:[%s8424_s22 + $0x1f0] sm:$0xff]  ;;  %v2202_v10 = vadd.f32 %v2186_v22, %v2149_v8  ;;  %v2292_v39 = vmul.f32 %v10049_v24, %v2271_v48  ;;  %v4173_v19 = vadd.f32 %v4157_v21, %v4120_v30  ;;  %12588 = vst [vmem:[#allocation101_spill] sm:$0xff] %v10278_v31  ;;  %v4263_v55 = vmul.f32 %v10278_v31, %v6270_v43  ;;  %v10284_v3 = vld [vmem:[%s11614_s3 + $0x1d] ss:$0 sm:$0xff]  ;;  %v10302_v24 = vld [vmem:[%s11614_s3 + $0x1e] ss:$0 sm:$0xff] }
 0x2a8   : >> { %v2324_v15 = vld [vmem:[%s8424_s22 + $0x10e] sm:$0xff]  ;;  %v2841_v0 = vadd.f32 %v2825_v20, %v2785_v62  ;;  %v3534_v2 = vadd.f32 %v3518_v6, %v3481_v11  ;;  %12589 = vst [vmem:[#allocation104_spill] sm:$0xff] %v10284_v3  ;;  %v3627_v20 = vmul.f32 %v10284_v3, %v6067_v25  ;;  %v6306_v35 = vld [vmem:[%s8424_s22 + $0x3fa] sm:$0xff]  ;;  %v2984_v8 = vmul.f32 %v10057_v41, %v5858_v16  ;;  %v10296_v11 = vld [vmem:[%s11614_s3 + $0x2a] ss:$0 sm:$0xff] }
 0x2a9   : >> { %v5875_v22 = vld [vmem:[%s8424_s22 + $0x1f3] sm:$0xff]  ;;  %v2255_v43 = vadd.f32 %v2239_v28, %v2202_v10  ;;  %v2345_v6 = vmul.f32 %v10067_v14, %v2324_v15  ;;  %v4226_v30 = vadd.f32 %v4210_v52, %v4173_v19  ;;  %12590 = vst [vmem:[#allocation83_spill] sm:$0xff] %v10296_v11  ;;  %v4319_v25 = vmul.f32 %v10296_v11, %v6289_v33  ;;  %v6323_v16 = vld [vmem:[%s8424_s22 + $0x3fd] sm:$0xff] }
 0x2aa   : >> { %v2377_v21 = vld [vmem:[%s8424_s22 + $0x111] sm:$0xff]  ;;  %v2894_v62 = vadd.f32 %v2878_v59, %v2841_v0  ;;  %v3590_v3 = vadd.f32 %v3574_v26, %v3534_v2  ;;  %12591 = vst [vmem:[#allocation85_spill] sm:$0xff] %v10302_v24  ;;  %v3680_v59 = vmul.f32 %v10302_v24, %v6084_v17  ;;  %v6118_v15 = vld [vmem:[%s8424_s22 + $0x31b] sm:$0xff]  ;;  %v3037_v10 = vmul.f32 %v10075_v56, %v5875_v22  ;;  %v10314_v2 = vld [vmem:[%s11614_s3 + $0x2b] ss:$0 sm:$0xff] }
 0x2ab   : >> { %v6101_v48 = vld [vmem:[%s8424_s22 + $0x318] sm:$0xff]  ;;  %v5689_v52 = vld [vmem:[%s8424_s22 + $0x18f] sm:$0xff]  ;;  %v2308_v33 = vadd.f32 %v2292_v39, %v2255_v43  ;;  %v2398_v26 = vmul.f32 %v10085_v61, %v2377_v21  ;;  %v4279_v19 = vadd.f32 %v4263_v55, %v4226_v30  ;;  %12592 = vst [vmem:[#allocation89_spill] sm:$0xff] %v10314_v2  ;;  %v4372_v17 = vmul.f32 %v10314_v2, %v6306_v35  ;;  %v6340_v22 = vld [vmem:[%s8424_s22 + $0x400] sm:$0xff] }
 0x2ac   : >> { %v5892_v28 = vld [vmem:[%s8424_s22 + $0x1f6] sm:$0xff]  ;;  %v2947_v0 = vadd.f32 %v2931_v53, %v2894_v62  ;;  %v3643_v24 = vadd.f32 %v3627_v20, %v3590_v3  ;;  %v10320_v14 = vld [vmem:[%s11614_s3 + $0x1f] ss:$0 sm:$0xff]  ;;  %v2454_v3 = vmul.f32 %v10103_v1, %v5689_v52  ;;  %v10332_v30 = vld [vmem:[%s11614_s3 + $0x2c] ss:$0 sm:$0xff] }
 0x2ad   : >> { %12593 = vst [vmem:[#allocation91_spill] sm:$0xff] %v10320_v14  ;;  %v3733_v53 = vmul.f32 %v10320_v14, %v6101_v48  ;;  %v5909_v39 = vld [vmem:[%s8424_s22 + $0x1f9] sm:$0xff]  ;;  %v3090_v43 = vmul.f32 %v10093_v49, %v5892_v28  ;;  %v2361_v35 = vadd.f32 %v2345_v6, %v2308_v33  ;;  %v4335_v20 = vadd.f32 %v4319_v25, %v4279_v19  ;;  %v6357_v28 = vld [vmem:[%s8424_s22 + $0x403] sm:$0xff]  ;;  %v10350_v19 = vld [vmem:[%s11614_s3 + $0x2d] ss:$0 sm:$0xff] }
 0x2ae   : >> { %v5706_v55 = vld [vmem:[%s8424_s22 + $0x192] sm:$0xff]  ;;  %v6135_v21 = vld [vmem:[%s8424_s22 + $0x31e] sm:$0xff]  ;;  %v3000_v62 = vadd.f32 %v2984_v8, %v2947_v0  ;;  %12594 = vst [vmem:[#allocation113_spill] sm:$0xff] %v10332_v30  ;;  %v4425_v48 = vmul.f32 %v10332_v30, %v6323_v16  ;;  %v3696_v14 = vadd.f32 %v3680_v59, %v3643_v24  ;;  %v3143_v33 = vmul.f32 %v10111_v51, %v5909_v39  ;;  %v6374_v39 = vld [vmem:[%s8424_s22 + $0x406] sm:$0xff] }
 0x2af   : >> { %v10338_v61 = vld [vmem:[%s11614_s3 + $0x20] ss:$0 sm:$0xff]  ;;  %v5928_v6 = vld [vmem:[%s8424_s22 + $0x277] sm:$0xff]  ;;  %v6152_v52 = vld [vmem:[%s8424_s22 + $0x321] sm:$0xff]  ;;  %v2414_v16 = vadd.f32 %v2398_v26, %v2361_v35  ;;  %v2507_v24 = vmul.f32 %v10121_v29, %v5706_v55  ;;  %v4388_v59 = vadd.f32 %v4372_v17, %v4335_v20  ;;  %12596 = vst [vmem:[#allocation103_spill] sm:$0xff] %v10350_v19 }
 0x2b0   : >> { %12595 = vst [vmem:[#allocation94_spill] sm:$0xff] %v10338_v61  ;;  %v3786_v8 = vmul.f32 %v10338_v61, %v6118_v15  ;;  %v5723_v25 = vld [vmem:[%s8424_s22 + $0x195] sm:$0xff]  ;;  %v3053_v0 = vadd.f32 %v3037_v10, %v3000_v62  ;;  %v4478_v15 = vmul.f32 %v10350_v19, %v6340_v22  ;;  %v3749_v61 = vadd.f32 %v3733_v53, %v3696_v14  ;;  %v10356_v1 = vld [vmem:[%s11614_s3 + $0x21] ss:$0 sm:$0xff]  ;;  %v10368_v20 = vld [vmem:[%s11614_s3 + $0x2e] ss:$0 sm:$0xff] }
 0x2b1   : >> { %12597 = vst [vmem:[#allocation82_spill] sm:$0xff] %v10356_v1  ;;  %v3839_v10 = vmul.f32 %v10356_v1, %v6135_v21  ;;  %v5945_v26 = vld [vmem:[%s8424_s22 + $0x27a] sm:$0xff]  ;;  %v3199_v35 = vmul.f32 %v10129_v40, %v5928_v6  ;;  %v2470_v22 = vadd.f32 %v2454_v3, %v2414_v16  ;;  %v2560_v14 = vmul.f32 %v10139_v12, %v5723_v25  ;;  %v10374_v29 = vld [vmem:[%s11614_s3 + $0x22] ss:$0 sm:$0xff]  ;;  %v6391_v6 = vld [vmem:[%s8424_s22 + $0x409] sm:$0xff] }
 0x2b2   : >> { %v5740_v17 = vld [vmem:[%s8424_s22 + $0x198] sm:$0xff]  ;;  %v3106_v62 = vadd.f32 %v3090_v43, %v3053_v0  ;;  %v4441_v53 = vadd.f32 %v4425_v48, %v4388_v59  ;;  %12598 = vst [vmem:[#allocation84_spill] sm:$0xff] %v10368_v20  ;;  %v4531_v21 = vmul.f32 %v10368_v20, %v6357_v28  ;;  %v3802_v1 = vadd.f32 %v3786_v8, %v3749_v61  ;;  %v6188_v25 = vld [vmem:[%s8424_s22 + $0x3a2] sm:$0xff]  ;;  %v10386_v59 = vld [vmem:[%s11614_s3 + $0x2f] ss:$0 sm:$0xff] }
 0x2b3   : >> { %v6171_v55 = vld [vmem:[%s8424_s22 + $0x39f] sm:$0xff]  ;;  %12599 = vst [vmem:[#allocation117_spill] sm:$0xff] %v10374_v29  ;;  %v3892_v43 = vmul.f32 %v10374_v29, %v6152_v52  ;;  %v3252_v16 = vmul.f32 %v10147_v50, %v5945_v26  ;;  %v2523_v28 = vadd.f32 %v2507_v24, %v2470_v22  ;;  %v2613_v61 = vmul.f32 %v10157_v7, %v5740_v17  ;;  %v6222_v24 = vld [vmem:[%s8424_s22 + $0x3a8] sm:$0xff] }
 0x2b4   : >> { %v5962_v3 = vld [vmem:[%s8424_s22 + $0x27d] sm:$0xff]  ;;  %v3159_v0 = vadd.f32 %v3143_v33, %v3106_v62  ;;  %v4494_v8 = vadd.f32 %v4478_v15, %v4441_v53  ;;  %12600 = vst [vmem:[#allocation99_spill] sm:$0xff] %v10386_v59  ;;  %v4584_v52 = vmul.f32 %v10386_v59, %v6374_v39  ;;  %v3855_v29 = vadd.f32 %v3839_v10, %v3802_v1  ;;  %v6205_v26 = vld [vmem:[%s8424_s22 + $0x3a5] sm:$0xff]  ;;  %v10399_v1 = vld [vmem:[%s11614_s3 + $0x30] ss:$0 sm:$0xff] }
 0x2b5   : >> { %v5757_v48 = vld [vmem:[%s8424_s22 + $0x19b] sm:$0xff]  ;;  %v3948_v12 = vmul.f32 %v10163_v13, %v6171_v55  ;;  %v3305_v15 = vmul.f32 %v10170_v63, %v5962_v3  ;;  %v2576_v22 = vadd.f32 %v2560_v14, %v2523_v28  ;;  %12601 = vst [vmem:[#allocation116_spill] sm:$0xff] %v10399_v1  ;;  %v4637_v10 = vmul.f32 %v10399_v1, %v6391_v6  ;;  %v5996_v13 = vld [vmem:[%s8424_s22 + $0x283] sm:$0xff] }
 0x2b6   : >> { %v5979_v33 = vld [vmem:[%s8424_s22 + $0x280] sm:$0xff]  ;;  %v3215_v17 = vadd.f32 %v3199_v35, %v3159_v0  ;;  %v2666_v53 = vmul.f32 %v10185_v18, %v5757_v48  ;;  %v4547_v7 = vadd.f32 %v4531_v21, %v4494_v8  ;;  %v3908_v39 = vadd.f32 %v3892_v43, %v3855_v29  ;;  %v6239_v0 = vld [vmem:[%s8424_s22 + $0x3ab] sm:$0xff] }
 0x2b7   : >> { %v5774_v62 = vld [vmem:[%s8424_s22 + $0x19e] sm:$0xff]  ;;  %v4001_v55 = vmul.f32 %v10177_v54, %v6188_v25  ;;  %v3358_v21 = vmul.f32 %v10197_v23, %v5979_v33  ;;  %v6013_v3 = vld [vmem:[%s8424_s22 + $0x286] sm:$0xff]  ;;  %v2629_v48 = vadd.f32 %v2613_v61, %v2576_v22  ;;  %v4054_v29 = vmul.f32 %v10191_v27, %v6205_v26 }
 0x2b8   : >> { %v5791_v35 = vld [vmem:[%s8424_s22 + $0x1a1] sm:$0xff]  ;;  %v3268_v14 = vadd.f32 %v3252_v16, %v3215_v17  ;;  %v2719_v28 = vmul.f32 %v9959_v58, %v5774_v62  ;;  %v4600_v8 = vadd.f32 %v4584_v52, %v4547_v7  ;;  %v3964_v18 = vadd.f32 %v3948_v12, %v3908_v39  ;;  %v2058_v25 = vld [vmem:[%s8424_s22 + $0xf7] sm:$0xff]  ;;  %v6030_v22 = vld [vmem:[%s8424_s22 + $0x289] sm:$0xff] }
 0x2b9   : >> { %v4107_v43 = vmul.f32 %v10205_v38, %v6222_v24  ;;  %v5810_v6 = vld [vmem:[%s8424_s22 + $0x21f] sm:$0xff]  ;;  %v3411_v16 = vmul.f32 %v10220_v46, %v5996_v13  ;;  %v2682_v33 = vadd.f32 %v2666_v53, %v2629_v48  ;;  %v2772_v61 = vmul.f32 %v9972_v57, %v5791_v35 }
 0x2ba   : >> { %v3321_v54 = vadd.f32 %v3305_v15, %v3268_v14  ;;  %v2111_v17 = vld [vmem:[%s8424_s22 + $0xfa] sm:$0xff]  ;;  %v4653_v12 = vadd.f32 %v4637_v10, %v4600_v8  ;;  %v4017_v52 = vadd.f32 %v4001_v55, %v3964_v18  ;;  %v3464_v24 = vmul.f32 %v10228_v44, %v6013_v3  ;;  %v5827_v39 = vld [vmem:[%s8424_s22 + $0x222] sm:$0xff]  ;;  %v6256_v15 = vld [vmem:[%s8424_s22 + $0x3ae] sm:$0xff] }
 0x2bb   : >> { %v2164_v7 = vld [vmem:[%s8424_s22 + $0xfd] sm:$0xff]  ;;  %v2735_v13 = vadd.f32 %v2719_v28, %v2682_v33  ;;  %v2828_v53 = vmul.f32 %v9984_v45, %v5810_v6  ;;  %v2079_v35 = vmul.f32 %v9994_v4, %v2058_v25  ;;  %v6049_v55 = vld [vmem:[%s8424_s22 + $0x307] sm:$0xff]  ;;  %v2132_v3 = vmul.f32 %v10005_v60, %v2111_v17 }
 0x2bc   : >> { %v12602_v62 = vld [vmem:[#allocation95_spill] sm:$0xff]  ;;  %v3374_v14 = vadd.f32 %v3358_v21, %v3321_v54  ;;  %v10426_v10 = vadd.f32 %v12567_v47, %v4653_v12  ;;  %v4070_v18 = vadd.f32 %v4054_v29, %v4017_v52  ;;  %v2185_v54 = vmul.f32 %v10011_v9, %v2164_v7  ;;  %v6273_v21 = vld [vmem:[%s8424_s22 + $0x3b1] sm:$0xff]  ;;  %v5861_v17 = vld [vmem:[%s8424_s22 + $0x228] sm:$0xff] }
 0x2bd   : >> { %v4160_v26 = vmul.f32 %v12602_v62, %v6239_v0  ;;  %v2217_v48 = vld [vmem:[%s8424_s22 + $0x100] sm:$0xff]  ;;  %v3517_v8 = vmul.f32 %v10244_v37, %v6030_v22  ;;  %v2788_v6 = vadd.f32 %v2772_v61, %v2735_v13  ;;  %v2881_v25 = vmul.f32 %v10020_v36, %v5827_v39  ;;  %v6066_v52 = vld [vmem:[%s8424_s22 + $0x30a] sm:$0xff] }
 0x2be   : >> { %12603 = vst [vmem:[#allocation96_spill] sm:$0xff] %v10426_v10  ;;  %v5844_v0 = vld [vmem:[%s8424_s22 + $0x225] sm:$0xff]  ;;  %v3427_v28 = vadd.f32 %v3411_v16, %v3374_v14  ;;  %4725 = vperm.xlu0 %6467, %v10426_v10   ;;  %v4123_v29 = vadd.f32 %v4107_v43, %v4070_v18  ;;  %v4213_v12 = vmul.f32 %v10259_v32, %v6256_v15  ;;  %v6292_v14 = vld [vmem:[%s8424_s22 + $0x42f] sm:$0xff] }
 0x2bf   : >> { %v2270_v33 = vld [vmem:[%s8424_s22 + $0x103] sm:$0xff]  ;;  %v2148_v7 = vadd.f32 %v2132_v3, %v2079_v35  ;;  %v2238_v16 = vmul.f32 %v10031_v42, %v2217_v48  ;;  %v3573_v61 = vmul.f32 %v10265_v34, %v6049_v55  ;;  %v2844_v39 = vadd.f32 %v2828_v53, %v2788_v6  ;;  %v6083_v18 = vld [vmem:[%s8424_s22 + $0x30d] sm:$0xff] }
 0x2c0   : >> { %v3480_v22 = vadd.f32 %v3464_v24, %v3427_v28  ;;  %v2934_v13 = vmul.f32 %v10039_v5, %v5844_v0  ;;  %v2323_v10 = vld [vmem:[%s8424_s22 + $0x106] sm:$0xff]  ;;  %v4176_v43 = vadd.f32 %v4160_v26, %v4123_v29  ;;  %v4266_v15 = vmul.f32 %v10278_v31, %v6273_v21  ;;  %v12604_v3 = vld [vmem:[#allocation109_spill] sm:$0xff] }
 0x2c1   : >> { %v5878_v32 = vld [vmem:[%s8424_s22 + $0x22b] sm:$0xff]  ;;  %v2201_v35 = vadd.f32 %v2185_v54, %v2148_v7  ;;  %v2291_v48 = vmul.f32 %v12604_v3, %v2270_v33  ;;  %v2897_v53 = vadd.f32 %v2881_v25, %v2844_v39  ;;  %v2987_v0 = vmul.f32 %v10057_v41, %v5861_v17  ;;  %v12606_v7 = vld [vmem:[#allocation74_spill] sm:$0xff] }
 0x2c2   : >> { %v6309_v42 = vld [vmem:[%s8424_s22 + $0x432] sm:$0xff]  ;;  %v3533_v24 = vadd.f32 %v3517_v8, %v3480_v22  ;;  %v12605_v28 = vld [vmem:[#allocation104_spill] sm:$0xff]  ;;  %v4229_v26 = vadd.f32 %v4213_v12, %v4176_v43  ;;  %v4322_v21 = vmul.f32 %v10296_v11, %v6292_v14  ;;  %v2344_v33 = vmul.f32 %v12606_v7, %v2323_v10 }
 0x2c3   : >> { %v3626_v55 = vmul.f32 %v12605_v28, %v6066_v52  ;;  %v2376_v6 = vld [vmem:[%s8424_s22 + $0x109] sm:$0xff]  ;;  %v2254_v54 = vadd.f32 %v2238_v16, %v2201_v35  ;;  %v6326_v3 = vld [vmem:[%s8424_s22 + $0x435] sm:$0xff]  ;;  %v2950_v25 = vadd.f32 %v2934_v13, %v2897_v53  ;;  %v3040_v17 = vmul.f32 %v10075_v56, %v5878_v32 }
 0x2c4   : >> { %v6100_v29 = vld [vmem:[%s8424_s22 + $0x310] sm:$0xff]  ;;  %v3589_v8 = vadd.f32 %v3573_v61, %v3533_v24  ;;  %v5688_v39 = vld [vmem:[%s8424_s22 + $0x187] sm:$0xff]  ;;  %v4282_v12 = vadd.f32 %v4266_v15, %v4229_v26  ;;  %v4375_v14 = vmul.f32 %v10314_v2, %v6309_v42  ;;  %v12608_v35 = vld [vmem:[#allocation70_spill] sm:$0xff]  ;;  %v4428_v42 = vmul.f32 %v10332_v30, %v6326_v3 }
 0x2c5   : >> { %v5895_v31 = vld [vmem:[%s8424_s22 + $0x22e] sm:$0xff]  ;;  %v2307_v16 = vadd.f32 %v2291_v48, %v2254_v54  ;;  %v2397_v10 = vmul.f32 %v12608_v35, %v2376_v6  ;;  %v6343_v7 = vld [vmem:[%s8424_s22 + $0x438] sm:$0xff]  ;;  %v12609_v24 = vld [vmem:[#allocation91_spill] sm:$0xff]  ;;  %v3003_v13 = vadd.f32 %v2987_v0, %v2950_v25 }
 0x2c6   : >> { %v12607_v22 = vld [vmem:[#allocation85_spill] sm:$0xff]  ;;  %v3642_v61 = vadd.f32 %v3626_v55, %v3589_v8  ;;  %v3093_v32 = vmul.f32 %v10093_v49, %v5895_v31  ;;  %v4338_v15 = vadd.f32 %v4322_v21, %v4282_v12  ;;  %v12610_v54 = vld [vmem:[#allocation112_spill] sm:$0xff]  ;;  %v6360_v35 = vld [vmem:[%s8424_s22 + $0x43b] sm:$0xff]  ;;  %v4481_v3 = vmul.f32 %v10350_v19, %v6343_v7 }
 0x2c7   : >> { %v3679_v52 = vmul.f32 %v12607_v22, %v6083_v18  ;;  %v6117_v43 = vld [vmem:[%s8424_s22 + $0x313] sm:$0xff]  ;;  %v3732_v18 = vmul.f32 %v12609_v24, %v6100_v29  ;;  %v5705_v53 = vld [vmem:[%s8424_s22 + $0x18a] sm:$0xff]  ;;  %v2360_v48 = vadd.f32 %v2344_v33, %v2307_v16  ;;  %v2453_v6 = vmul.f32 %v12610_v54, %v5688_v39  ;;  %v12612_v16 = vld [vmem:[#allocation107_spill] sm:$0xff] }
 0x2c8   : >> { %v5912_v11 = vld [vmem:[%s8424_s22 + $0x231] sm:$0xff]  ;;  %v3056_v0 = vadd.f32 %v3040_v17, %v3003_v13  ;;  %v4391_v21 = vadd.f32 %v4375_v14, %v4338_v15  ;;  %v6151_v12 = vld [vmem:[%s8424_s22 + $0x319] sm:$0xff]  ;;  %v2506_v39 = vmul.f32 %v12612_v16, %v5705_v53  ;;  %v4534_v7 = vmul.f32 %v10368_v20, %v6360_v35 }
 0x2c9   : >> { %v6134_v26 = vld [vmem:[%s8424_s22 + $0x316] sm:$0xff]  ;;  %v3695_v55 = vadd.f32 %v3679_v52, %v3642_v61  ;;  %v3146_v31 = vmul.f32 %v10111_v51, %v5912_v11  ;;  %v5722_v25 = vld [vmem:[%s8424_s22 + $0x18d] sm:$0xff]  ;;  %v2413_v33 = vadd.f32 %v2397_v10, %v2360_v48  ;;  %v6377_v54 = vld [vmem:[%s8424_s22 + $0x43e] sm:$0xff] }
 0x2ca   : >> { %v5931_v2 = vld [vmem:[%s8424_s22 + $0x2af] sm:$0xff]  ;;  %v12611_v8 = vld [vmem:[#allocation94_spill] sm:$0xff]  ;;  %v3109_v17 = vadd.f32 %v3093_v32, %v3056_v0  ;;  %v4444_v14 = vadd.f32 %v4428_v42, %v4391_v21  ;;  %v6394_v48 = vld [vmem:[%s8424_s22 + $0x441] sm:$0xff]  ;;  %v4587_v35 = vmul.f32 %v10386_v59, %v6377_v54 }
 0x2cb   : >> { %v3785_v29 = vmul.f32 %v12611_v8, %v6117_v43  ;;  %v5948_v30 = vld [vmem:[%s8424_s22 + $0x2b2] sm:$0xff]  ;;  %v3748_v52 = vadd.f32 %v3732_v18, %v3695_v55  ;;  %v3202_v11 = vmul.f32 %v10129_v40, %v5931_v2  ;;  %v2469_v51 = vadd.f32 %v2453_v6, %v2413_v33  ;;  %v6187_v21 = vld [vmem:[%s8424_s22 + $0x39a] sm:$0xff] }
 0x2cc   : >> { %v12613_v61 = vld [vmem:[#allocation82_spill] sm:$0xff]  ;;  %v5739_v13 = vld [vmem:[%s8424_s22 + $0x190] sm:$0xff]  ;;  %v3162_v32 = vadd.f32 %v3146_v31, %v3109_v17  ;;  %v3255_v2 = vmul.f32 %v10147_v50, %v5948_v30  ;;  %v4497_v42 = vadd.f32 %v4481_v3, %v4444_v14  ;;  %v12616_v33 = vld [vmem:[#allocation79_spill] sm:$0xff]  ;;  %v4640_v3 = vmul.f32 %v10399_v1, %v6394_v48 }
 0x2cd   : >> { %v3838_v43 = vmul.f32 %v12613_v61, %v6134_v26  ;;  %v6170_v15 = vld [vmem:[%s8424_s22 + $0x397] sm:$0xff]  ;;  %v3801_v18 = vadd.f32 %v3785_v29, %v3748_v52  ;;  %v2522_v6 = vadd.f32 %v2506_v39, %v2469_v51  ;;  %v6221_v54 = vld [vmem:[%s8424_s22 + $0x3a0] sm:$0xff]  ;;  %v12618_v39 = vld [vmem:[#allocation80_spill] sm:$0xff] }
 0x2ce   : >> { %v5965_v19 = vld [vmem:[%s8424_s22 + $0x2b5] sm:$0xff]  ;;  %v3218_v31 = vadd.f32 %v3202_v11, %v3162_v32  ;;  %v4550_v50 = vadd.f32 %v4534_v7, %v4497_v42  ;;  %v6016_v42 = vld [vmem:[%s8424_s22 + $0x2be] sm:$0xff] }
 0x2cf   : >> { %v12614_v10 = vld [vmem:[#allocation110_spill] sm:$0xff]  ;;  %v12615_v55 = vld [vmem:[#allocation117_spill] sm:$0xff]  ;;  %v3308_v30 = vmul.f32 %v10170_v63, %v5965_v19 }
 0x2d0   : >> { %v2559_v53 = vmul.f32 %v12614_v10, %v5722_v25  ;;  %v3891_v26 = vmul.f32 %v12615_v55, %v6151_v12  ;;  %v5756_v0 = vld [vmem:[%s8424_s22 + $0x193] sm:$0xff]  ;;  %v2612_v25 = vmul.f32 %v12616_v33, %v5739_v13  ;;  %v3854_v10 = vadd.f32 %v3838_v43, %v3801_v18  ;;  %v6204_v12 = vld [vmem:[%s8424_s22 + $0x39d] sm:$0xff] }
 0x2d1   : >> { %v5982_v20 = vld [vmem:[%s8424_s22 + $0x2b8] sm:$0xff]  ;;  %v2665_v59 = vmul.f32 %v12618_v39, %v5756_v0  ;;  %v12619_v43 = vld [vmem:[#allocation73_spill] sm:$0xff]  ;;  %v6238_v18 = vld [vmem:[%s8424_s22 + $0x3a3] sm:$0xff]  ;;  %v3271_v11 = vadd.f32 %v3255_v2, %v3218_v31  ;;  %v4603_v7 = vadd.f32 %v4587_v35, %v4550_v50  ;;  %v4053_v48 = vmul.f32 %v10191_v27, %v6204_v12 }
 0x2d2   : >> { %v12617_v29 = vld [vmem:[#allocation90_spill] sm:$0xff]  ;;  %v2575_v51 = vadd.f32 %v2559_v53, %v2522_v6  ;;  %v3907_v13 = vadd.f32 %v3891_v26, %v3854_v10  ;;  %v3361_v19 = vmul.f32 %v10197_v23, %v5982_v20  ;;  %v4106_v26 = vmul.f32 %v10205_v38, %v6221_v54  ;;  %v2061_v20 = vld [vmem:[%s8424_s22 + $0x12f] sm:$0xff]  ;;  %v6033_v12 = vld [vmem:[%s8424_s22 + $0x2c1] sm:$0xff] }
 0x2d3   : >> { %v3947_v52 = vmul.f32 %v12617_v29, %v6170_v15  ;;  %v5773_v17 = vld [vmem:[%s8424_s22 + $0x196] sm:$0xff]  ;;  %v4000_v15 = vmul.f32 %v12619_v43, %v6187_v21  ;;  %v3324_v21 = vadd.f32 %v3308_v30, %v3271_v11  ;;  %v4656_v35 = vadd.f32 %v4640_v3, %v4603_v7 }
 0x2d4   : >> { %v5999_v14 = vld [vmem:[%s8424_s22 + $0x2bb] sm:$0xff]  ;;  %v2628_v1 = vadd.f32 %v2612_v25, %v2575_v51  ;;  %v2718_v53 = vmul.f32 %v9959_v58, %v5773_v17  ;;  %v2114_v50 = vld [vmem:[%s8424_s22 + $0x132] sm:$0xff]  ;;  %v4159_v6 = vmul.f32 %v12602_v62, %v6238_v18  ;;  %v3467_v30 = vmul.f32 %v10228_v44, %v6016_v42  ;;  %v6272_v42 = vld [vmem:[%s8424_s22 + $0x3a9] sm:$0xff] }
 0x2d5   : >> { %v5790_v32 = vld [vmem:[%s8424_s22 + $0x199] sm:$0xff]  ;;  %v3963_v10 = vadd.f32 %v3947_v52, %v3907_v13  ;;  %v3414_v2 = vmul.f32 %v10220_v46, %v5999_v14  ;;  %v3377_v17 = vadd.f32 %v3361_v19, %v3324_v21  ;;  %v10526_v3 = vadd.f32 %v12567_v47, %v4656_v35  ;;  %v6255_v13 = vld [vmem:[%s8424_s22 + $0x3a6] sm:$0xff] }
 0x2d6   : >> { %v5809_v0 = vld [vmem:[%s8424_s22 + $0x217] sm:$0xff]  ;;  %v2681_v25 = vadd.f32 %v2665_v59, %v2628_v1  ;;  %v2771_v58 = vmul.f32 %v9972_v57, %v5790_v32  ;;  %v6052_v59 = vld [vmem:[%s8424_s22 + $0x33f] sm:$0xff]  ;;  %v2082_v57 = vmul.f32 %v9994_v4, %v2061_v20  ;;  %v3520_v19 = vmul.f32 %v10244_v37, %v6033_v12 }
 0x2d7   : >> { %v2167_v31 = vld [vmem:[%s8424_s22 + $0x135] sm:$0xff]  ;;  %v4016_v52 = vadd.f32 %v4000_v15, %v3963_v10  ;;  %v2827_v54 = vmul.f32 %v9984_v45, %v5809_v0  ;;  %12620 = vst [vmem:[#allocation93_spill] sm:$0xff] %v10526_v3  ;;  %v2135_v15 = vmul.f32 %v10005_v60, %v2114_v50  ;;  %v3430_v11 = vadd.f32 %v3414_v2, %v3377_v17  ;;  %v5843_v45 = vld [vmem:[%s8424_s22 + $0x21d] sm:$0xff] }
 0x2d8   : >> { %v5826_v14 = vld [vmem:[%s8424_s22 + $0x21a] sm:$0xff]  ;;  %v2734_v1 = vadd.f32 %v2718_v53, %v2681_v25  ;;  %v2188_v32 = vmul.f32 %v10011_v9, %v2167_v31  ;;  %4740 = vperm.xlu1 %6468, %v10526_v3   ;;  %v6069_v53 = vld [vmem:[%s8424_s22 + $0x342] sm:$0xff]  ;;  %v12622_v2 = vld [vmem:[#allocation81_spill] sm:$0xff]  ;;  %v3576_v9 = vmul.f32 %v10265_v34, %v6052_v59 }
 0x2d9   : >> { %v2220_v51 = vld [vmem:[%s8424_s22 + $0x138] sm:$0xff]  ;;  %v4069_v18 = vadd.f32 %v4053_v48, %v4016_v52  ;;  %v2880_v4 = vmul.f32 %v10020_v36, %v5826_v14  ;;  %v2151_v60 = vadd.f32 %v2135_v15, %v2082_v57  ;;  %v12621_v48 = vld [vmem:[#allocation111_spill] sm:$0xff]  ;;  %v4212_v20 = vmul.f32 %v12622_v2, %v6255_v13  ;;  %v12623_v17 = vld [vmem:[#allocation109_spill] sm:$0xff] }
 0x2da   : >> { %v2273_v7 = vld [vmem:[%s8424_s22 + $0x13b] sm:$0xff]  ;;  %v2787_v0 = vadd.f32 %v2771_v58, %v2734_v1  ;;  %v2241_v10 = vmul.f32 %v12621_v48, %v2220_v51  ;;  %v3483_v50 = vadd.f32 %v3467_v30, %v3430_v11  ;;  %v6291_v25 = vld [vmem:[%s8424_s22 + $0x427] sm:$0xff]  ;;  %v2933_v36 = vmul.f32 %v10039_v5, %v5843_v45  ;;  %v12624_v51 = vld [vmem:[#allocation101_spill] sm:$0xff] }
 0x2db   : >> { %v4122_v21 = vadd.f32 %v4106_v26, %v4069_v18  ;;  %v5860_v35 = vld [vmem:[%s8424_s22 + $0x220] sm:$0xff]  ;;  %v2204_v52 = vadd.f32 %v2188_v32, %v2151_v60  ;;  %v2294_v14 = vmul.f32 %v12623_v17, %v2273_v7  ;;  %v4265_v13 = vmul.f32 %v12624_v51, %v6272_v42  ;;  %v6308_v15 = vld [vmem:[%s8424_s22 + $0x42a] sm:$0xff]  ;;  %v12625_v45 = vld [vmem:[#allocation74_spill] sm:$0xff] }
 0x2dc   : >> { %v2326_v12 = vld [vmem:[%s8424_s22 + $0x13e] sm:$0xff]  ;;  %v2843_v58 = vadd.f32 %v2827_v54, %v2787_v0  ;;  %v3536_v30 = vadd.f32 %v3520_v19, %v3483_v50  ;;  %v3629_v59 = vmul.f32 %v12605_v28, %v6069_v53  ;;  %v6103_v18 = vld [vmem:[%s8424_s22 + $0x348] sm:$0xff]  ;;  %v2986_v5 = vmul.f32 %v10057_v41, %v5860_v35  ;;  %v6342_v17 = vld [vmem:[%s8424_s22 + $0x430] sm:$0xff] }
 0x2dd   : >> { %v6086_v31 = vld [vmem:[%s8424_s22 + $0x345] sm:$0xff]  ;;  %v4175_v26 = vadd.f32 %v4159_v6, %v4122_v21  ;;  %v2257_v11 = vadd.f32 %v2241_v10, %v2204_v52  ;;  %v2347_v32 = vmul.f32 %v12625_v45, %v2326_v12  ;;  %v6325_v48 = vld [vmem:[%s8424_s22 + $0x42d] sm:$0xff]  ;;  %v12627_v50 = vld [vmem:[#allocation70_spill] sm:$0xff] }
 0x2de   : >> { %v5877_v1 = vld [vmem:[%s8424_s22 + $0x223] sm:$0xff]  ;;  %v2896_v54 = vadd.f32 %v2880_v4, %v2843_v58  ;;  %v3592_v19 = vadd.f32 %v3576_v9, %v3536_v30  ;;  %v3682_v53 = vmul.f32 %v12607_v22, %v6086_v31  ;;  %v6120_v21 = vld [vmem:[%s8424_s22 + $0x34b] sm:$0xff]  ;;  %v3735_v31 = vmul.f32 %v12609_v24, %v6103_v18  ;;  %v6359_v45 = vld [vmem:[%s8424_s22 + $0x433] sm:$0xff] }
 0x2df   : >> { %v2379_v57 = vld [vmem:[%s8424_s22 + $0x141] sm:$0xff]  ;;  %v4228_v6 = vadd.f32 %v4212_v20, %v4175_v26  ;;  %v3039_v41 = vmul.f32 %v10075_v56, %v5877_v1  ;;  %v2310_v10 = vadd.f32 %v2294_v14, %v2257_v11  ;;  %v12628_v12 = vld [vmem:[#allocation89_spill] sm:$0xff]  ;;  %v3788_v18 = vmul.f32 %v12611_v8, %v6120_v21 }
 0x2e0   : >> { %v12626_v7 = vld [vmem:[#allocation83_spill] sm:$0xff]  ;;  %v2949_v4 = vadd.f32 %v2933_v36, %v2896_v54  ;;  %v2400_v35 = vmul.f32 %v12627_v50, %v2379_v57  ;;  %v3645_v9 = vadd.f32 %v3629_v59, %v3592_v19  ;;  %v5911_v58 = vld [vmem:[%s8424_s22 + $0x229] sm:$0xff]  ;;  %v6376_v50 = vld [vmem:[%s8424_s22 + $0x436] sm:$0xff] }
 0x2e1   : >> { %v4321_v42 = vmul.f32 %v12626_v7, %v6291_v25  ;;  %v5894_v0 = vld [vmem:[%s8424_s22 + $0x226] sm:$0xff]  ;;  %v4281_v20 = vadd.f32 %v4265_v13, %v4228_v6  ;;  %v4374_v25 = vmul.f32 %v12628_v12, %v6308_v15  ;;  %v6137_v26 = vld [vmem:[%s8424_s22 + $0x34e] sm:$0xff]  ;;  %v2363_v14 = vadd.f32 %v2347_v32, %v2310_v10 }
 0x2e2   : >> { %v5691_v60 = vld [vmem:[%s8424_s22 + $0x1bf] sm:$0xff]  ;;  %v3002_v36 = vadd.f32 %v2986_v5, %v2949_v4  ;;  %v3092_v56 = vmul.f32 %v10093_v49, %v5894_v0  ;;  %v12629_v30 = vld [vmem:[#allocation112_spill] sm:$0xff]  ;;  %v12630_v57 = vld [vmem:[#allocation113_spill] sm:$0xff]  ;;  %v3698_v59 = vadd.f32 %v3682_v53, %v3645_v9  ;;  %v3841_v21 = vmul.f32 %v12613_v61, %v6137_v26 }
 0x2e3   : >> { %v5708_v52 = vld [vmem:[%s8424_s22 + $0x1c2] sm:$0xff]  ;;  %v2456_v1 = vmul.f32 %v12629_v30, %v5691_v60  ;;  %v4337_v13 = vadd.f32 %v4321_v42, %v4281_v20  ;;  %v4427_v15 = vmul.f32 %v12630_v57, %v6325_v48  ;;  %v6154_v6 = vld [vmem:[%s8424_s22 + $0x351] sm:$0xff]  ;;  %v2416_v32 = vadd.f32 %v2400_v35, %v2363_v14  ;;  %v6393_v30 = vld [vmem:[%s8424_s22 + $0x439] sm:$0xff] }
 0x2e4   : >> { %v5930_v54 = vld [vmem:[%s8424_s22 + $0x2a7] sm:$0xff]  ;;  %v3055_v5 = vadd.f32 %v3039_v41, %v3002_v36  ;;  %v2509_v0 = vmul.f32 %v12612_v16, %v5708_v52  ;;  %v3751_v53 = vadd.f32 %v3735_v31, %v3698_v59  ;;  %v6173_v20 = vld [vmem:[%s8424_s22 + $0x3cf] sm:$0xff]  ;;  %v3894_v26 = vmul.f32 %v12615_v55, %v6154_v6 }
 0x2e5   : >> { %v5725_v11 = vld [vmem:[%s8424_s22 + $0x1c5] sm:$0xff]  ;;  %v4390_v42 = vadd.f32 %v4374_v25, %v4337_v13  ;;  %v3201_v9 = vmul.f32 %v10129_v40, %v5930_v54  ;;  %v2472_v35 = vadd.f32 %v2456_v1, %v2416_v32  ;;  %v5964_v36 = vld [vmem:[%s8424_s22 + $0x2ad] sm:$0xff]  ;;  %v3950_v6 = vmul.f32 %v12617_v29, %v6173_v20  ;;  %v6207_v32 = vld [vmem:[%s8424_s22 + $0x3d5] sm:$0xff] }
 0x2e6   : >> { %v12631_v19 = vld [vmem:[#allocation72_spill] sm:$0xff]  ;;  %v12632_v60 = vld [vmem:[#allocation103_spill] sm:$0xff]  ;;  %v3108_v41 = vadd.f32 %v3092_v56, %v3055_v5  ;;  %v3804_v31 = vadd.f32 %v3788_v18, %v3751_v53  ;;  %v6190_v13 = vld [vmem:[%s8424_s22 + $0x3d2] sm:$0xff]  ;;  %v3307_v53 = vmul.f32 %v10170_v63, %v5964_v36 }
 0x2e7   : >> { %v3145_v49 = vmul.f32 %v12631_v19, %v5911_v58  ;;  %v4480_v48 = vmul.f32 %v12632_v60, %v6342_v17  ;;  %v5947_v4 = vld [vmem:[%s8424_s22 + $0x2aa] sm:$0xff]  ;;  %v12633_v58 = vld [vmem:[#allocation110_spill] sm:$0xff]  ;;  %v4443_v25 = vadd.f32 %v4427_v15, %v4390_v42  ;;  %v2525_v1 = vadd.f32 %v2509_v0, %v2472_v35 }
 0x2e8   : >> { %v5742_v10 = vld [vmem:[%s8424_s22 + $0x1c8] sm:$0xff]  ;;  %v2562_v16 = vmul.f32 %v12633_v58, %v5725_v11  ;;  %v12636_v11 = vld [vmem:[#allocation99_spill] sm:$0xff]  ;;  %v3857_v18 = vadd.f32 %v3841_v21, %v3804_v31  ;;  %v5981_v5 = vld [vmem:[%s8424_s22 + $0x2b0] sm:$0xff]  ;;  %v4003_v21 = vmul.f32 %v12619_v43, %v6190_v13  ;;  %v4056_v43 = vmul.f32 %v10191_v27, %v6207_v32 }
 0x2e9   : >> { %v12634_v52 = vld [vmem:[#allocation84_spill] sm:$0xff]  ;;  %v3161_v56 = vadd.f32 %v3145_v49, %v3108_v41  ;;  %v2615_v54 = vmul.f32 %v12616_v33, %v5742_v10  ;;  %v4496_v15 = vadd.f32 %v4480_v48, %v4443_v25  ;;  %v6224_v42 = vld [vmem:[%s8424_s22 + $0x3d8] sm:$0xff]  ;;  %v3360_v58 = vmul.f32 %v10197_v23, %v5981_v5  ;;  %v10645_v32 = vld [vmem:[%s11614_s3] ss:$0 sm:$0xff] }
 0x2ea   : >> { %v4533_v17 = vmul.f32 %v12634_v52, %v6359_v45  ;;  %v5759_v14 = vld [vmem:[%s8424_s22 + $0x1cb] sm:$0xff]  ;;  %v4586_v45 = vmul.f32 %v12636_v11, %v6376_v50  ;;  %v2578_v0 = vadd.f32 %v2562_v16, %v2525_v1  ;;  %v3910_v50 = vadd.f32 %v3894_v26, %v3857_v18  ;;  %v5998_v29 = vld [vmem:[%s8424_s22 + $0x2b3] sm:$0xff]  ;;  %v6241_v41 = vld [vmem:[%s8424_s22 + $0x3db] sm:$0xff] }
 0x2eb   : >> { %v12635_v59 = vld [vmem:[#allocation88_spill] sm:$0xff]  ;;  %v3217_v49 = vadd.f32 %v3201_v9, %v3161_v56  ;;  %v2668_v33 = vmul.f32 %v12618_v39, %v5759_v14  ;;  %v5793_v20 = vld [vmem:[%s8424_s22 + $0x1d1] sm:$0xff]  ;;  %v4109_v31 = vmul.f32 %v10205_v38, %v6224_v42  ;;  %v3413_v14 = vmul.f32 %v10220_v46, %v5998_v29  ;;  %v6032_v46 = vld [vmem:[%s8424_s22 + $0x2b9] sm:$0xff] }
 0x2ec   : >> { %v3254_v40 = vmul.f32 %v12635_v59, %v5947_v4  ;;  %v5776_v19 = vld [vmem:[%s8424_s22 + $0x1ce] sm:$0xff]  ;;  %v4549_v48 = vadd.f32 %v4533_v17, %v4496_v15  ;;  %v6015_v9 = vld [vmem:[%s8424_s22 + $0x2b6] sm:$0xff]  ;;  %v2631_v63 = vadd.f32 %v2615_v54, %v2578_v0  ;;  %v10615_v39 = vld [vmem:[%s11614_s3 + $0xc] ss:$0 sm:$0xff]  ;;  %v3966_v17 = vadd.f32 %v3950_v6, %v3910_v50 }
 0x2ed   : >> { %v12637_v4 = vld [vmem:[#allocation116_spill] sm:$0xff]  ;;  %v2721_v16 = vmul.f32 %v10615_v39, %v5776_v19  ;;  %v4162_v1 = vmul.f32 %v12602_v62, %v6241_v41  ;;  %v3466_v54 = vmul.f32 %v10228_v44, %v6015_v9  ;;  %v5829_v15 = vld [vmem:[%s8424_s22 + $0x252] sm:$0xff] }
 0x2ee   : >> { %v4639_v10 = vmul.f32 %v12637_v4, %v6393_v30  ;;  %v3270_v35 = vadd.f32 %v3254_v40, %v3217_v49  ;;  %v4602_v25 = vadd.f32 %v4586_v45, %v4549_v48  ;;  %v5812_v23 = vld [vmem:[%s8424_s22 + $0x24f] sm:$0xff]  ;;  %v2060_v26 = vld [vmem:[%s8424_s22 + $0x127] sm:$0xff]  ;;  %v2684_v30 = vadd.f32 %v2668_v33, %v2631_v63  ;;  %v6258_v45 = vld [vmem:[%s8424_s22 + $0x3de] sm:$0xff] }
 0x2ef   : >> { %v10626_v13 = vld [vmem:[%s11614_s3 + $0xd] ss:$0 sm:$0xff]  ;;  %v4019_v38 = vadd.f32 %v4003_v21, %v3966_v17  ;;  %v10639_v5 = vld [vmem:[%s11614_s3 + $0xe] ss:$0 sm:$0xff]  ;;  %v2081_v44 = vmul.f32 %v10645_v32, %v2060_v26  ;;  %v2219_v62 = vld [vmem:[%s8424_s22 + $0x130] sm:$0xff] }
 0x2f0   : >> { %v3323_v36 = vadd.f32 %v3307_v53, %v3270_v35  ;;  %v2774_v56 = vmul.f32 %v10626_v13, %v5793_v20  ;;  %v2113_v59 = vld [vmem:[%s8424_s22 + $0x12a] sm:$0xff]  ;;  %v4655_v40 = vadd.f32 %v4639_v10, %v4602_v25  ;;  %v2737_v6 = vadd.f32 %v2721_v16, %v2684_v30  ;;  %v6051_v53 = vld [vmem:[%s8424_s22 + $0x337] sm:$0xff]  ;;  %v10657_v33 = vld [vmem:[%s11614_s3 + $0x1] ss:$0 sm:$0xff] }
 0x2f1   : >> { %v2166_v27 = vld [vmem:[%s8424_s22 + $0x12d] sm:$0xff]  ;;  %v2830_v19 = vmul.f32 %v10639_v5, %v5812_v23  ;;  %v4072_v49 = vadd.f32 %v4056_v43, %v4019_v38  ;;  %v5846_v0 = vld [vmem:[%s8424_s22 + $0x255] sm:$0xff]  ;;  %v2134_v48 = vmul.f32 %v10657_v33, %v2113_v59  ;;  %v10663_v10 = vld [vmem:[%s11614_s3 + $0x2] ss:$0 sm:$0xff]  ;;  %v3519_v20 = vmul.f32 %v10244_v37, %v6032_v46 }
 0x2f2   : >> { %v3376_v18 = vadd.f32 %v3360_v58, %v3323_v36  ;;  %v10650_v42 = vadd.f32 %v12567_v47, %v4655_v40  ;;  %v2187_v50 = vmul.f32 %v10663_v10, %v2166_v27  ;;  %v6275_v21 = vld [vmem:[%s8424_s22 + $0x3e1] sm:$0xff]  ;;  %v2790_v41 = vadd.f32 %v2774_v56, %v2737_v6  ;;  %v10671_v35 = vld [vmem:[%s11614_s3 + $0xf] ss:$0 sm:$0xff]  ;;  %v2272_v9 = vld [vmem:[%s8424_s22 + $0x133] sm:$0xff] }
 0x2f3   : >> { %v2883_v58 = vmul.f32 %v10671_v35, %v5829_v15  ;;  %v4125_v63 = vadd.f32 %v4109_v31, %v4072_v49  ;;  %v4215_v16 = vmul.f32 %v12622_v2, %v6258_v45  ;;  %v6068_v25 = vld [vmem:[%s8424_s22 + $0x33a] sm:$0xff]  ;;  %v2150_v37 = vadd.f32 %v2134_v48, %v2081_v44  ;;  %v10682_v43 = vld [vmem:[%s11614_s3 + $0x3] ss:$0 sm:$0xff]  ;;  %v10690_v2 = vld [vmem:[%s11614_s3 + $0x10] ss:$0 sm:$0xff] }
 0x2f4   : >> { %12638 = vst [vmem:[#allocation118_spill] sm:$0xff] %v10650_v42  ;;  %v3429_v29 = vadd.f32 %v3413_v14, %v3376_v18  ;;  %4735 = vperm.xlu0 %6467, %v10650_v42   ;;  %v5863_v17 = vld [vmem:[%s8424_s22 + $0x258] sm:$0xff]  ;;  %v2240_v23 = vmul.f32 %v10682_v43, %v2219_v62  ;;  %v3575_v14 = vmul.f32 %v10265_v34, %v6051_v53  ;;  %v10700_v34 = vld [vmem:[%s11614_s3 + $0x4] ss:$0 sm:$0xff]  ;;  %v2275_v3 = vld [vmem:[%s8424_s22 + $0x16b] sm:$0xff] }
 0x2f5   : >> { %v6294_v26 = vld [vmem:[%s8424_s22 + $0x45f] sm:$0xff]  ;;  %v2846_v31 = vadd.f32 %v2830_v19, %v2790_v41  ;;  %v2936_v30 = vmul.f32 %v10690_v2, %v5846_v0  ;;  %v2325_v56 = vld [vmem:[%s8424_s22 + $0x136] sm:$0xff]  ;;  %v4178_v59 = vadd.f32 %v4162_v1, %v4125_v63  ;;  %v4268_v27 = vmul.f32 %v12624_v51, %v6275_v21  ;;  %12639 = vst [vmem:[#allocation97_spill] sm:$0xff] %v10700_v34  ;;  %v10708_v51 = vld [vmem:[%s11614_s3 + $0x11] ss:$0 sm:$0xff] }
 0x2f6   : >> { %v3482_v36 = vadd.f32 %v3466_v54, %v3429_v29  ;;  %v6085_v40 = vld [vmem:[%s8424_s22 + $0x33d] sm:$0xff]  ;;  %v2203_v54 = vadd.f32 %v2187_v50, %v2150_v37  ;;  %v2293_v46 = vmul.f32 %v10700_v34, %v2272_v9  ;;  %v3628_v18 = vmul.f32 %v12605_v28, %v6068_v25  ;;  %v10718_v28 = vld [vmem:[%s11614_s3 + $0x5] ss:$0 sm:$0xff] }
 0x2f7   : >> { %v5880_v38 = vld [vmem:[%s8424_s22 + $0x25b] sm:$0xff]  ;;  %v2899_v1 = vadd.f32 %v2883_v58, %v2846_v31  ;;  %v2989_v6 = vmul.f32 %v10708_v51, %v5863_v17  ;;  %v4231_v44 = vadd.f32 %v4215_v16, %v4178_v59  ;;  %v4324_v62 = vmul.f32 %v12626_v7, %v6294_v26  ;;  %12640 = vst [vmem:[#allocation75_spill] sm:$0xff] %v10718_v28  ;;  %v6328_v50 = vld [vmem:[%s8424_s22 + $0x465] sm:$0xff]  ;;  %v10726_v7 = vld [vmem:[%s11614_s3 + $0x12] ss:$0 sm:$0xff] }
 0x2f8   : >> { %v6311_v15 = vld [vmem:[%s8424_s22 + $0x462] sm:$0xff]  ;;  %v3535_v45 = vadd.f32 %v3519_v20, %v3482_v36  ;;  %v2378_v19 = vld [vmem:[%s8424_s22 + $0x139] sm:$0xff]  ;;  %v2256_v0 = vadd.f32 %v2240_v23, %v2203_v54  ;;  %v2346_v48 = vmul.f32 %v10718_v28, %v2325_v56  ;;  %v3681_v29 = vmul.f32 %v12607_v22, %v6085_v40 }
 0x2f9   : >> { %v6102_v49 = vld [vmem:[%s8424_s22 + $0x340] sm:$0xff]  ;;  %v2952_v20 = vadd.f32 %v2936_v30, %v2899_v1  ;;  %v3042_v41 = vmul.f32 %v10726_v7, %v5880_v38  ;;  %v5690_v58 = vld [vmem:[%s8424_s22 + $0x1b7] sm:$0xff]  ;;  %v4284_v9 = vadd.f32 %v4268_v27, %v4231_v44  ;;  %v4377_v63 = vmul.f32 %v12628_v12, %v6311_v15  ;;  %v6345_v23 = vld [vmem:[%s8424_s22 + $0x468] sm:$0xff] }
 0x2fa   : >> { %v5897_v53 = vld [vmem:[%s8424_s22 + $0x25e] sm:$0xff]  ;;  %v3591_v21 = vadd.f32 %v3575_v14, %v3535_v45  ;;  %v2309_v17 = vadd.f32 %v2293_v46, %v2256_v0  ;;  %v10736_v22 = vld [vmem:[%s11614_s3 + $0x6] ss:$0 sm:$0xff]  ;;  %v3734_v36 = vmul.f32 %v12609_v24, %v6102_v49  ;;  %v10744_v12 = vld [vmem:[%s11614_s3 + $0x13] ss:$0 sm:$0xff]  ;;  %v4430_v59 = vmul.f32 %v12630_v57, %v6328_v50 }
 0x2fb   : >> { %v6119_v16 = vld [vmem:[%s8424_s22 + $0x343] sm:$0xff]  ;;  %12641 = vst [vmem:[#allocation119_spill] sm:$0xff] %v10736_v22  ;;  %v2399_v37 = vmul.f32 %v10736_v22, %v2378_v19  ;;  %v3005_v14 = vadd.f32 %v2989_v6, %v2952_v20  ;;  %v3095_v31 = vmul.f32 %v10744_v12, %v5897_v53  ;;  %v5707_v30 = vld [vmem:[%s8424_s22 + $0x1ba] sm:$0xff]  ;;  %v4340_v56 = vadd.f32 %v4324_v62, %v4284_v9  ;;  %v6362_v46 = vld [vmem:[%s8424_s22 + $0x46b] sm:$0xff] }
 0x2fc   : >> { %v5914_v25 = vld [vmem:[%s8424_s22 + $0x261] sm:$0xff]  ;;  %v3644_v26 = vadd.f32 %v3628_v18, %v3591_v21  ;;  %v2362_v38 = vadd.f32 %v2346_v48, %v2309_v17  ;;  %v3787_v45 = vmul.f32 %v12611_v8, %v6119_v16  ;;  %v10762_v57 = vld [vmem:[%s11614_s3 + $0x14] ss:$0 sm:$0xff]  ;;  %v4483_v44 = vmul.f32 %v12632_v60, %v6345_v23  ;;  %v6153_v62 = vld [vmem:[%s8424_s22 + $0x349] sm:$0xff] }
 0x2fd   : >> { %v6136_v27 = vld [vmem:[%s8424_s22 + $0x346] sm:$0xff]  ;;  %v3058_v18 = vadd.f32 %v3042_v41, %v3005_v14  ;;  %12643 = vst [vmem:[#allocation76_spill] sm:$0xff] %v10762_v57  ;;  %v3148_v1 = vmul.f32 %v10762_v57, %v5914_v25  ;;  %v5724_v6 = vld [vmem:[%s8424_s22 + $0x1bd] sm:$0xff]  ;;  %v4393_v19 = vadd.f32 %v4377_v63, %v4340_v56  ;;  %v6379_v48 = vld [vmem:[%s8424_s22 + $0x46e] sm:$0xff]  ;;  %v4536_v9 = vmul.f32 %v12634_v52, %v6362_v46 }
 0x2fe   : >> { %v5933_v40 = vld [vmem:[%s8424_s22 + $0x2df] sm:$0xff]  ;;  %v10754_v24 = vld [vmem:[%s11614_s3 + $0x7] ss:$0 sm:$0xff]  ;;  %v3697_v15 = vadd.f32 %v3681_v29, %v3644_v26  ;;  %v2415_v53 = vadd.f32 %v2399_v37, %v2362_v38  ;;  %v10772_v8 = vld [vmem:[%s11614_s3 + $0x8] ss:$0 sm:$0xff]  ;;  %v3840_v21 = vmul.f32 %v12613_v61, %v6136_v27  ;;  %v3893_v26 = vmul.f32 %v12615_v55, %v6153_v62 }
 0x2ff   : >> { %12642 = vst [vmem:[#allocation92_spill] sm:$0xff] %v10754_v24  ;;  %v2455_v54 = vmul.f32 %v10754_v24, %v5690_v58  ;;  %v5950_v49 = vld [vmem:[%s8424_s22 + $0x2e2] sm:$0xff]  ;;  %12644 = vst [vmem:[#allocation121_spill] sm:$0xff] %v10772_v8  ;;  %v2508_v0 = vmul.f32 %v10772_v8, %v5707_v30  ;;  %v3111_v29 = vadd.f32 %v3095_v31, %v3058_v18  ;;  %v10780_v60 = vld [vmem:[%s11614_s3 + $0x15] ss:$0 sm:$0xff] }
 0x300   : >> { %v3750_v50 = vadd.f32 %v3734_v36, %v3697_v15  ;;  %v3204_v20 = vmul.f32 %v10780_v60, %v5933_v40  ;;  %v5741_v41 = vld [vmem:[%s8424_s22 + $0x1c0] sm:$0xff]  ;;  %v4446_v58 = vadd.f32 %v4430_v59, %v4393_v19  ;;  %v10790_v61 = vld [vmem:[%s11614_s3 + $0x9] ss:$0 sm:$0xff]  ;;  %v6396_v37 = vld [vmem:[%s8424_s22 + $0x471] sm:$0xff]  ;;  %v4589_v56 = vmul.f32 %v12636_v11, %v6379_v48 }
 0x301   : >> { %v6172_v63 = vld [vmem:[%s8424_s22 + $0x3c7] sm:$0xff]  ;;  %v2471_v25 = vadd.f32 %v2455_v54, %v2415_v53  ;;  %12645 = vst [vmem:[#allocation100_spill] sm:$0xff] %v10790_v61  ;;  %v2561_v17 = vmul.f32 %v10790_v61, %v5724_v6  ;;  %v3164_v36 = vadd.f32 %v3148_v1, %v3111_v29  ;;  %v10798_v52 = vld [vmem:[%s11614_s3 + $0x16] ss:$0 sm:$0xff]  ;;  %v10814_v46 = vld [vmem:[%s11614_s3 + $0x23] ss:$0 sm:$0xff] }
 0x302   : >> { %v5967_v16 = vld [vmem:[%s8424_s22 + $0x2e5] sm:$0xff]  ;;  %v3803_v23 = vadd.f32 %v3787_v45, %v3750_v50  ;;  %v3257_v14 = vmul.f32 %v10798_v52, %v5950_v49  ;;  %v4499_v30 = vadd.f32 %v4483_v44, %v4446_v58  ;;  %12647 = vst [vmem:[#allocation102_spill] sm:$0xff] %v10814_v46  ;;  %v3949_v11 = vmul.f32 %v10814_v46, %v6172_v63  ;;  %v6206_v15 = vld [vmem:[%s8424_s22 + $0x3cd] sm:$0xff]  ;;  %v10821_v18 = vld [vmem:[%s11614_s3 + $0x17] ss:$0 sm:$0xff] }
 0x303   : >> { %v5758_v31 = vld [vmem:[%s8424_s22 + $0x1c3] sm:$0xff]  ;;  %v2524_v40 = vadd.f32 %v2508_v0, %v2471_v25  ;;  %v3220_v45 = vadd.f32 %v3204_v20, %v3164_v36  ;;  %v3310_v1 = vmul.f32 %v10821_v18, %v5967_v16  ;;  %v4642_v44 = vmul.f32 %v12637_v4, %v6396_v37  ;;  %v6223_v62 = vld [vmem:[%s8424_s22 + $0x3d0] sm:$0xff]  ;;  %v10831_v0 = vld [vmem:[%s11614_s3 + $0xb] ss:$0 sm:$0xff] }
 0x304   : >> { %v6189_v59 = vld [vmem:[%s8424_s22 + $0x3ca] sm:$0xff]  ;;  %v3856_v54 = vadd.f32 %v3840_v21, %v3803_v23  ;;  %v4552_v19 = vadd.f32 %v4536_v9, %v4499_v30  ;;  %12648 = vst [vmem:[#allocation125_spill] sm:$0xff] %v10831_v0  ;;  %v2667_v48 = vmul.f32 %v10831_v0, %v5758_v31  ;;  %v10837_v21 = vld [vmem:[%s11614_s3 + $0x24] ss:$0 sm:$0xff]  ;;  %v6240_v29 = vld [vmem:[%s8424_s22 + $0x3d3] sm:$0xff] }
 0x305   : >> { %v5984_v27 = vld [vmem:[%s8424_s22 + $0x2e8] sm:$0xff]  ;;  %v2577_v53 = vadd.f32 %v2561_v17, %v2524_v40  ;;  %12649 = vst [vmem:[#allocation106_spill] sm:$0xff] %v10837_v21  ;;  %v4002_v4 = vmul.f32 %v10837_v21, %v6189_v59  ;;  %v3273_v20 = vadd.f32 %v3257_v14, %v3220_v45  ;;  %v10851_v16 = vld [vmem:[%s11614_s3 + $0x25] ss:$0 sm:$0xff]  ;;  %v10860_v14 = vld [vmem:[%s11614_s3 + $0x26] ss:$0 sm:$0xff] }
 0x306   : >> { %v10808_v55 = vld [vmem:[%s11614_s3 + $0xa] ss:$0 sm:$0xff]  ;;  %v6001_v49 = vld [vmem:[%s8424_s22 + $0x2eb] sm:$0xff]  ;;  %v3909_v50 = vadd.f32 %v3893_v26, %v3856_v54  ;;  %v4605_v63 = vadd.f32 %v4589_v56, %v4552_v19  ;;  %v4055_v25 = vmul.f32 %v10851_v16, %v6206_v15  ;;  %v4108_v31 = vmul.f32 %v10860_v14, %v6223_v62  ;;  %v10866_v56 = vld [vmem:[%s11614_s3 + $0x19] ss:$0 sm:$0xff] }
 0x307   : >> { %12646 = vst [vmem:[#allocation123_spill] sm:$0xff] %v10808_v55  ;;  %v2614_v38 = vmul.f32 %v10808_v55, %v5741_v41  ;;  %v5775_v6 = vld [vmem:[%s8424_s22 + $0x1c6] sm:$0xff]  ;;  %v10844_v41 = vld [vmem:[%s11614_s3 + $0x18] ss:$0 sm:$0xff]  ;;  %v6018_v17 = vld [vmem:[%s8424_s22 + $0x2ee] sm:$0xff]  ;;  %v3326_v30 = vadd.f32 %v3310_v1, %v3273_v20  ;;  %v3416_v59 = vmul.f32 %v10866_v56, %v6001_v49 }
 0x308   : >> { %v3363_v58 = vmul.f32 %v10844_v41, %v5984_v27  ;;  %v5792_v9 = vld [vmem:[%s8424_s22 + $0x1c9] sm:$0xff]  ;;  %v2720_v23 = vmul.f32 %v10615_v39, %v5775_v6  ;;  %v3965_v36 = vadd.f32 %v3949_v11, %v3909_v50  ;;  %v2063_v27 = vld [vmem:[%s8424_s22 + $0x15f] sm:$0xff]  ;;  %v10874_v54 = vld [vmem:[%s11614_s3 + $0x27] ss:$0 sm:$0xff] }
 0x309   : >> { %v2630_v37 = vadd.f32 %v2614_v38, %v2577_v53  ;;  %v5811_v26 = vld [vmem:[%s8424_s22 + $0x247] sm:$0xff]  ;;  %v4658_v38 = vadd.f32 %v4642_v44, %v4605_v63  ;;  %v4161_v11 = vmul.f32 %v10874_v54, %v6240_v29  ;;  %v6035_v15 = vld [vmem:[%s8424_s22 + $0x2f1] sm:$0xff]  ;;  %v2773_v1 = vmul.f32 %v10626_v13, %v5792_v9  ;;  %v10883_v44 = vld [vmem:[%s11614_s3 + $0x1a] ss:$0 sm:$0xff] }
 0x30a   : >> { %v2116_v40 = vld [vmem:[%s8424_s22 + $0x162] sm:$0xff]  ;;  %v4018_v19 = vadd.f32 %v4002_v4, %v3965_v36  ;;  %v3379_v62 = vadd.f32 %v3363_v58, %v3326_v30  ;;  %v3469_v49 = vmul.f32 %v10883_v44, %v6018_v17  ;;  %v2829_v53 = vmul.f32 %v10639_v5, %v5811_v26  ;;  %v5828_v50 = vld [vmem:[%s8424_s22 + $0x24a] sm:$0xff]  ;;  %v6257_v4 = vld [vmem:[%s8424_s22 + $0x3d6] sm:$0xff] }
 0x30b   : >> { %v2683_v45 = vadd.f32 %v2667_v48, %v2630_v37  ;;  %v2169_v6 = vld [vmem:[%s8424_s22 + $0x165] sm:$0xff]  ;;  %v10890_v48 = vadd.f32 %v12567_v47, %v4658_v38  ;;  %v6054_v20 = vld [vmem:[%s8424_s22 + $0x36f] sm:$0xff]  ;;  %v2084_v9 = vmul.f32 %v10645_v32, %v2063_v27  ;;  %v2137_v63 = vmul.f32 %v10657_v33, %v2116_v40  ;;  %v10899_v17 = vld [vmem:[%s11614_s3 + $0x1b] ss:$0 sm:$0xff] }
 0x30c   : >> { %v2222_v29 = vld [vmem:[%s8424_s22 + $0x168] sm:$0xff]  ;;  %v4071_v37 = vadd.f32 %v4055_v25, %v4018_v19  ;;  %v3432_v36 = vadd.f32 %v3416_v59, %v3379_v62  ;;  %v3522_v26 = vmul.f32 %v10899_v17, %v6035_v15  ;;  %v2190_v38 = vmul.f32 %v10663_v10, %v2169_v6  ;;  %v6071_v25 = vld [vmem:[%s8424_s22 + $0x372] sm:$0xff] }
 0x30d   : >> { %12650 = vst [vmem:[#allocation126_spill] sm:$0xff] %v10890_v48  ;;  %v2736_v58 = vadd.f32 %v2720_v23, %v2683_v45  ;;  %v5845_v30 = vld [vmem:[%s8424_s22 + $0x24d] sm:$0xff]  ;;  %4750 = vperm.xlu1 %6468, %v10890_v48   ;;  %v6274_v23 = vld [vmem:[%s8424_s22 + $0x3d9] sm:$0xff]  ;;  %v2882_v27 = vmul.f32 %v10671_v35, %v5828_v50  ;;  %v2153_v40 = vadd.f32 %v2137_v63, %v2084_v9  ;;  %v10913_v15 = vld [vmem:[%s11614_s3 + $0x28] ss:$0 sm:$0xff] }
 0x30e   : >> { %v2243_v45 = vmul.f32 %v10682_v43, %v2222_v29  ;;  %v4124_v19 = vadd.f32 %v4108_v31, %v4071_v37  ;;  %v4214_v6 = vmul.f32 %v10913_v15, %v6257_v4  ;;  %v3485_v62 = vadd.f32 %v3469_v49, %v3432_v36  ;;  %v10919_v48 = vld [vmem:[%s11614_s3 + $0x1c] ss:$0 sm:$0xff]  ;;  %v5862_v50 = vld [vmem:[%s8424_s22 + $0x250] sm:$0xff]  ;;  %v10931_v36 = vld [vmem:[%s11614_s3 + $0x29] ss:$0 sm:$0xff] }
 0x30f   : >> { %v2789_v59 = vadd.f32 %v2773_v1, %v2736_v58  ;;  %12651 = vst [vmem:[#allocation115_spill] sm:$0xff] %v10919_v48  ;;  %v3578_v1 = vmul.f32 %v10919_v48, %v6054_v20  ;;  %v2328_v31 = vld [vmem:[%s8424_s22 + $0x16e] sm:$0xff]  ;;  %v6293_v29 = vld [vmem:[%s8424_s22 + $0x457] sm:$0xff]  ;;  %v2935_v63 = vmul.f32 %v10690_v2, %v5845_v30  ;;  %v2206_v4 = vadd.f32 %v2190_v38, %v2153_v40 }
 0x310   : >> { %v6088_v58 = vld [vmem:[%s8424_s22 + $0x375] sm:$0xff]  ;;  %v2296_v49 = vmul.f32 %v10700_v34, %v2275_v3  ;;  %v4177_v37 = vadd.f32 %v4161_v11, %v4124_v19  ;;  %v4267_v20 = vmul.f32 %v10931_v36, %v6274_v23  ;;  %v3538_v42 = vadd.f32 %v3522_v26, %v3485_v62  ;;  %v10937_v48 = vld [vmem:[%s11614_s3 + $0x1d] ss:$0 sm:$0xff]  ;;  %v10949_v62 = vld [vmem:[%s11614_s3 + $0x2a] ss:$0 sm:$0xff] }
 0x311   : >> { %v2845_v9 = vadd.f32 %v2829_v53, %v2789_v59  ;;  %12652 = vst [vmem:[#allocation120_spill] sm:$0xff] %v10937_v48  ;;  %v3631_v53 = vmul.f32 %v10937_v48, %v6071_v25  ;;  %v5879_v30 = vld [vmem:[%s8424_s22 + $0x253] sm:$0xff]  ;;  %v2988_v40 = vmul.f32 %v10708_v51, %v5862_v50  ;;  %v2259_v23 = vadd.f32 %v2243_v45, %v2206_v4  ;;  %v10955_v34 = vld [vmem:[%s11614_s3 + $0x1e] ss:$0 sm:$0xff] }
 0x312   : >> { %v2381_v3 = vld [vmem:[%s8424_s22 + $0x171] sm:$0xff]  ;;  %v6310_v11 = vld [vmem:[%s8424_s22 + $0x45a] sm:$0xff]  ;;  %v2349_v26 = vmul.f32 %v10718_v28, %v2328_v31  ;;  %v4230_v19 = vadd.f32 %v4214_v6, %v4177_v37  ;;  %v4323_v25 = vmul.f32 %v10949_v62, %v6293_v29  ;;  %v3594_v48 = vadd.f32 %v3578_v1, %v3538_v42  ;;  %12653 = vst [vmem:[#allocation86_spill] sm:$0xff] %v10955_v34  ;;  %v10967_v37 = vld [vmem:[%s11614_s3 + $0x2b] ss:$0 sm:$0xff] }
 0x313   : >> { %v6105_v38 = vld [vmem:[%s8424_s22 + $0x378] sm:$0xff]  ;;  %v2898_v59 = vadd.f32 %v2882_v27, %v2845_v9  ;;  %v3684_v27 = vmul.f32 %v10955_v34, %v6088_v58  ;;  %v5693_v6 = vld [vmem:[%s8424_s22 + $0x1ef] sm:$0xff]  ;;  %v3041_v4 = vmul.f32 %v10726_v7, %v5879_v30  ;;  %v2312_v29 = vadd.f32 %v2296_v49, %v2259_v23  ;;  %12654 = vst [vmem:[#allocation122_spill] sm:$0xff] %v10967_v37  ;;  %v6344_v30 = vld [vmem:[%s8424_s22 + $0x460] sm:$0xff] }
 0x314   : >> { %v5896_v45 = vld [vmem:[%s8424_s22 + $0x256] sm:$0xff]  ;;  %v2402_v42 = vmul.f32 %v10736_v22, %v2381_v3  ;;  %v4283_v1 = vadd.f32 %v4267_v20, %v4230_v19  ;;  %v4376_v58 = vmul.f32 %v10967_v37, %v6310_v11  ;;  %v3647_v34 = vadd.f32 %v3631_v53, %v3594_v48  ;;  %v10973_v28 = vld [vmem:[%s11614_s3 + $0x1f] ss:$0 sm:$0xff]  ;;  %v10985_v19 = vld [vmem:[%s11614_s3 + $0x2c] ss:$0 sm:$0xff] }
 0x315   : >> { %v6327_v50 = vld [vmem:[%s8424_s22 + $0x45d] sm:$0xff]  ;;  %v2951_v9 = vadd.f32 %v2935_v63, %v2898_v59  ;;  %12655 = vst [vmem:[#allocation124_spill] sm:$0xff] %v10973_v28  ;;  %v3737_v63 = vmul.f32 %v10973_v28, %v6105_v38  ;;  %v5710_v20 = vld [vmem:[%s8424_s22 + $0x1f2] sm:$0xff]  ;;  %v3094_v23 = vmul.f32 %v10744_v12, %v5896_v45  ;;  %v2365_v11 = vadd.f32 %v2349_v26, %v2312_v29 }
 0x316   : >> { %v6122_v31 = vld [vmem:[%s8424_s22 + $0x37b] sm:$0xff]  ;;  %v2458_v48 = vmul.f32 %v10754_v24, %v5693_v6  ;;  %v4339_v53 = vadd.f32 %v4323_v25, %v4283_v1  ;;  %12656 = vst [vmem:[#allocation98_spill] sm:$0xff] %v10985_v19  ;;  %v4429_v38 = vmul.f32 %v10985_v19, %v6327_v50  ;;  %v3700_v28 = vadd.f32 %v3684_v27, %v3647_v34  ;;  %v6361_v45 = vld [vmem:[%s8424_s22 + $0x463] sm:$0xff]  ;;  %v11003_v1 = vld [vmem:[%s11614_s3 + $0x2d] ss:$0 sm:$0xff] }
 0x317   : >> { %v5913_v49 = vld [vmem:[%s8424_s22 + $0x259] sm:$0xff]  ;;  %v3004_v59 = vadd.f32 %v2988_v40, %v2951_v9  ;;  %v6156_v6 = vld [vmem:[%s8424_s22 + $0x381] sm:$0xff]  ;;  %v2418_v50 = vadd.f32 %v2402_v42, %v2365_v11  ;;  %v2511_v34 = vmul.f32 %v10772_v8, %v5710_v20  ;;  %12658 = vst [vmem:[#allocation114_spill] sm:$0xff] %v11003_v1 }
 0x318   : >> { %v6139_v3 = vld [vmem:[%s8424_s22 + $0x37e] sm:$0xff]  ;;  %v5727_v25 = vld [vmem:[%s8424_s22 + $0x1f5] sm:$0xff]  ;;  %v3147_v29 = vmul.f32 %v10762_v57, %v5913_v49  ;;  %v4392_v27 = vadd.f32 %v4376_v58, %v4339_v53  ;;  %v6378_v49 = vld [vmem:[%s8424_s22 + $0x466] sm:$0xff] }
 0x319   : >> { %v10991_v22 = vld [vmem:[%s11614_s3 + $0x20] ss:$0 sm:$0xff]  ;;  %v5932_v26 = vld [vmem:[%s8424_s22 + $0x2d7] sm:$0xff]  ;;  %v3057_v9 = vadd.f32 %v3041_v4, %v3004_v59  ;;  %v11009_v24 = vld [vmem:[%s11614_s3 + $0x21] ss:$0 sm:$0xff] }
 0x31a   : >> { %12657 = vst [vmem:[#allocation105_spill] sm:$0xff] %v10991_v22  ;;  %v3790_v40 = vmul.f32 %v10991_v22, %v6122_v31  ;;  %v4482_v31 = vmul.f32 %v11003_v1, %v6344_v30  ;;  %v3753_v22 = vadd.f32 %v3737_v63, %v3700_v28  ;;  %12659 = vst [vmem:[#allocation128_spill] sm:$0xff] %v11009_v24  ;;  %v5949_v42 = vld [vmem:[%s8424_s22 + $0x2da] sm:$0xff]  ;;  %v11021_v53 = vld [vmem:[%s11614_s3 + $0x2e] ss:$0 sm:$0xff] }
 0x31b   : >> { %v3843_v4 = vmul.f32 %v11009_v24, %v6139_v3  ;;  %v5744_v58 = vld [vmem:[%s8424_s22 + $0x1f8] sm:$0xff]  ;;  %v3110_v59 = vadd.f32 %v3094_v23, %v3057_v9  ;;  %v3203_v11 = vmul.f32 %v10780_v60, %v5932_v26  ;;  %v2474_v30 = vadd.f32 %v2458_v48, %v2418_v50  ;;  %12660 = vst [vmem:[#allocation95_spill] sm:$0xff] %v11021_v53  ;;  %v11027_v8 = vld [vmem:[%s11614_s3 + $0x22] ss:$0 sm:$0xff]  ;;  %v6395_v26 = vld [vmem:[%s8424_s22 + $0x469] sm:$0xff] }
 0x31c   : >> { %v6175_v20 = vld [vmem:[%s8424_s22 + $0x3ff] sm:$0xff]  ;;  %v2564_v28 = vmul.f32 %v10790_v61, %v5727_v25  ;;  %v4445_v63 = vadd.f32 %v4429_v38, %v4392_v27  ;;  %v4535_v3 = vmul.f32 %v11021_v53, %v6361_v45  ;;  %v3806_v24 = vadd.f32 %v3790_v40, %v3753_v22  ;;  %12661 = vst [vmem:[#allocation104_spill] sm:$0xff] %v11027_v8  ;;  %v11039_v27 = vld [vmem:[%s11614_s3 + $0x2f] ss:$0 sm:$0xff] }
 0x31d   : >> { %v3896_v23 = vmul.f32 %v11027_v8, %v6156_v6  ;;  %v5966_v48 = vld [vmem:[%s8424_s22 + $0x2dd] sm:$0xff]  ;;  %v3163_v9 = vadd.f32 %v3147_v29, %v3110_v59  ;;  %v3256_v50 = vmul.f32 %v10798_v52, %v5949_v42  ;;  %v2527_v45 = vadd.f32 %v2511_v34, %v2474_v30  ;;  %12662 = vst [vmem:[#allocation85_spill] sm:$0xff] %v11039_v27  ;;  %v6209_v42 = vld [vmem:[%s8424_s22 + $0x405] sm:$0xff] }
 0x31e   : >> { %v5761_v38 = vld [vmem:[%s8424_s22 + $0x1fb] sm:$0xff]  ;;  %v2617_v22 = vmul.f32 %v10808_v55, %v5744_v58  ;;  %v4498_v40 = vadd.f32 %v4482_v31, %v4445_v63  ;;  %v4588_v6 = vmul.f32 %v11039_v27, %v6378_v49  ;;  %v3859_v8 = vadd.f32 %v3843_v4, %v3806_v24  ;;  %v6226_v34 = vld [vmem:[%s8424_s22 + $0x408] sm:$0xff]  ;;  %v11052_v24 = vld [vmem:[%s11614_s3 + $0x30] ss:$0 sm:$0xff] }
 0x31f   : >> { %v6192_v25 = vld [vmem:[%s8424_s22 + $0x402] sm:$0xff]  ;;  %v3952_v61 = vmul.f32 %v10814_v46, %v6175_v20  ;;  %v3219_v58 = vadd.f32 %v3203_v11, %v3163_v9  ;;  %v3309_v31 = vmul.f32 %v10821_v18, %v5966_v48  ;;  %v2580_v30 = vadd.f32 %v2564_v28, %v2527_v45  ;;  %v6243_v9 = vld [vmem:[%s8424_s22 + $0x40b] sm:$0xff] }
 0x320   : >> { %v5983_v29 = vld [vmem:[%s8424_s22 + $0x2e0] sm:$0xff]  ;;  %v2670_v63 = vmul.f32 %v10831_v0, %v5761_v38  ;;  %v4551_v55 = vadd.f32 %v4535_v3, %v4498_v40  ;;  %v4641_v4 = vmul.f32 %v11052_v24, %v6395_v26  ;;  %v3912_v49 = vadd.f32 %v3896_v23, %v3859_v8 }
 0x321   : >> { %v5778_v59 = vld [vmem:[%s8424_s22 + $0x1fe] sm:$0xff]  ;;  %v4005_v20 = vmul.f32 %v10837_v21, %v6192_v25  ;;  %v3272_v28 = vadd.f32 %v3256_v50, %v3219_v58  ;;  %v3362_v3 = vmul.f32 %v10844_v41, %v5983_v29  ;;  %v6017_v48 = vld [vmem:[%s8424_s22 + $0x2e6] sm:$0xff]  ;;  %v2633_v38 = vadd.f32 %v2617_v22, %v2580_v30 }
 0x322   : >> { %v6000_v46 = vld [vmem:[%s8424_s22 + $0x2e3] sm:$0xff]  ;;  %v2723_v45 = vmul.f32 %v10615_v39, %v5778_v59  ;;  %v4604_v40 = vadd.f32 %v4588_v6, %v4551_v55  ;;  %v3968_v0 = vadd.f32 %v3952_v61, %v3912_v49  ;;  %v4058_v8 = vmul.f32 %v10851_v16, %v6209_v42  ;;  %v2062_v25 = vld [vmem:[%s8424_s22 + $0x157] sm:$0xff] }
 0x323   : >> { %v5795_v11 = vld [vmem:[%s8424_s22 + $0x201] sm:$0xff]  ;;  %v4111_v23 = vmul.f32 %v10860_v14, %v6226_v34  ;;  %v3325_v21 = vadd.f32 %v3309_v31, %v3272_v28  ;;  %v3415_v50 = vmul.f32 %v10866_v56, %v6000_v46  ;;  %v2686_v29 = vadd.f32 %v2670_v63, %v2633_v38  ;;  %v6034_v34 = vld [vmem:[%s8424_s22 + $0x2e9] sm:$0xff] }
 0x324   : >> { %v5814_v26 = vld [vmem:[%s8424_s22 + $0x27f] sm:$0xff]  ;;  %v2776_v22 = vmul.f32 %v10626_v13, %v5795_v11  ;;  %v4657_v61 = vadd.f32 %v4641_v4, %v4604_v40  ;;  %v4021_v6 = vadd.f32 %v4005_v20, %v3968_v0  ;;  %v4164_v59 = vmul.f32 %v10874_v54, %v6243_v9  ;;  %v6260_v31 = vld [vmem:[%s8424_s22 + $0x40e] sm:$0xff] }
 0x325   : >> { %v2115_v58 = vld [vmem:[%s8424_s22 + $0x15a] sm:$0xff]  ;;  %v3468_v42 = vmul.f32 %v10883_v44, %v6017_v48  ;;  %v5831_v30 = vld [vmem:[%s8424_s22 + $0x282] sm:$0xff]  ;;  %v3378_v49 = vadd.f32 %v3362_v3, %v3325_v21  ;;  %v2739_v46 = vadd.f32 %v2723_v45, %v2686_v29  ;;  %v2832_v63 = vmul.f32 %v10639_v5, %v5814_v26  ;;  %v6277_v3 = vld [vmem:[%s8424_s22 + $0x411] sm:$0xff] }
 0x326   : >> { %v2168_v55 = vld [vmem:[%s8424_s22 + $0x15d] sm:$0xff]  ;;  %v2083_v11 = vmul.f32 %v10645_v32, %v2062_v25  ;;  %v11079_v4 = vadd.f32 %v12567_v47, %v4657_v61  ;;  %v4074_v0 = vadd.f32 %v4058_v8, %v4021_v6  ;;  %v6053_v20 = vld [vmem:[%s8424_s22 + $0x367] sm:$0xff]  ;;  %v2136_v48 = vmul.f32 %v10657_v33, %v2115_v58  ;;  %v6296_v58 = vld [vmem:[%s8424_s22 + $0x48f] sm:$0xff] }
 0x327   : >> { %v2221_v28 = vld [vmem:[%s8424_s22 + $0x160] sm:$0xff]  ;;  %v2189_v21 = vmul.f32 %v10663_v10, %v2168_v55  ;;  %v3431_v38 = vadd.f32 %v3415_v50, %v3378_v49  ;;  %v3521_v45 = vmul.f32 %v10899_v17, %v6034_v34  ;;  %v2792_v32 = vadd.f32 %v2776_v22, %v2739_v46  ;;  %v6070_v29 = vld [vmem:[%s8424_s22 + $0x36a] sm:$0xff] }
 0x328   : >> { %12663 = vst [vmem:[#allocation91_spill] sm:$0xff] %v11079_v4  ;;  %v5848_v9 = vld [vmem:[%s8424_s22 + $0x285] sm:$0xff]  ;;  %v2885_v40 = vmul.f32 %v10671_v35, %v5831_v30  ;;  %4745 = vperm.xlu0 %6467, %v11079_v4   ;;  %v4127_v8 = vadd.f32 %v4111_v23, %v4074_v0  ;;  %v4217_v25 = vmul.f32 %v10913_v15, %v6260_v31  ;;  %v6087_v49 = vld [vmem:[%s8424_s22 + $0x36d] sm:$0xff] }
 0x329   : >> { %v2274_v26 = vld [vmem:[%s8424_s22 + $0x163] sm:$0xff]  ;;  %v2152_v10 = vadd.f32 %v2136_v48, %v2083_v11  ;;  %v2242_v50 = vmul.f32 %v10682_v43, %v2221_v28  ;;  %v3484_v55 = vadd.f32 %v3468_v42, %v3431_v38  ;;  %v2848_v6 = vadd.f32 %v2832_v63, %v2792_v32  ;;  %v5882_v46 = vld [vmem:[%s8424_s22 + $0x28b] sm:$0xff] }
 0x32a   : >> { %v5865_v33 = vld [vmem:[%s8424_s22 + $0x288] sm:$0xff]  ;;  %v12664_v61 = vld [vmem:[#allocation115_spill] sm:$0xff]  ;;  %v2938_v34 = vmul.f32 %v10690_v2, %v5848_v9  ;;  %v4180_v23 = vadd.f32 %v4164_v59, %v4127_v8  ;;  %v4270_v31 = vmul.f32 %v10931_v36, %v6277_v3  ;;  %v12665_v0 = vld [vmem:[#allocation97_spill] sm:$0xff]  ;;  %v4326_v3 = vmul.f32 %v10949_v62, %v6296_v58 }
 0x32b   : >> { %v3577_v22 = vmul.f32 %v12664_v61, %v6053_v20  ;;  %v2327_v30 = vld [vmem:[%s8424_s22 + $0x166] sm:$0xff]  ;;  %v2205_v11 = vadd.f32 %v2189_v21, %v2152_v10  ;;  %v2295_v43 = vmul.f32 %v12665_v0, %v2274_v26  ;;  %v6313_v28 = vld [vmem:[%s8424_s22 + $0x492] sm:$0xff]  ;;  %v3537_v42 = vadd.f32 %v3521_v45, %v3484_v55 }
 0x32c   : >> { %v12666_v48 = vld [vmem:[#allocation120_spill] sm:$0xff]  ;;  %v2901_v63 = vadd.f32 %v2885_v40, %v2848_v6  ;;  %v2991_v9 = vmul.f32 %v10708_v51, %v5865_v33  ;;  %v4233_v59 = vadd.f32 %v4217_v25, %v4180_v23  ;;  %v6104_v32 = vld [vmem:[%s8424_s22 + $0x370] sm:$0xff]  ;;  %v12667_v10 = vld [vmem:[#allocation75_spill] sm:$0xff]  ;;  %v3044_v33 = vmul.f32 %v10726_v7, %v5882_v46 }
 0x32d   : >> { %v3630_v20 = vmul.f32 %v12666_v48, %v6070_v29  ;;  %v2380_v38 = vld [vmem:[%s8424_s22 + $0x169] sm:$0xff]  ;;  %v2258_v21 = vadd.f32 %v2242_v50, %v2205_v11  ;;  %v2348_v26 = vmul.f32 %v12667_v10, %v2327_v30  ;;  %v6330_v0 = vld [vmem:[%s8424_s22 + $0x495] sm:$0xff]  ;;  %v3593_v45 = vadd.f32 %v3577_v22, %v3537_v42  ;;  %v12669_v11 = vld [vmem:[#allocation119_spill] sm:$0xff] }
 0x32e   : >> { %v5899_v8 = vld [vmem:[%s8424_s22 + $0x28e] sm:$0xff]  ;;  %v12668_v55 = vld [vmem:[#allocation86_spill] sm:$0xff]  ;;  %v2954_v40 = vadd.f32 %v2938_v34, %v2901_v63  ;;  %v4286_v25 = vadd.f32 %v4270_v31, %v4233_v59  ;;  %v4379_v58 = vmul.f32 %v10967_v37, %v6313_v28  ;;  %v2401_v30 = vmul.f32 %v12669_v11, %v2380_v38 }
 0x32f   : >> { %v3683_v29 = vmul.f32 %v12668_v55, %v6087_v49  ;;  %v5692_v6 = vld [vmem:[%s8424_s22 + $0x1e7] sm:$0xff]  ;;  %v6121_v23 = vld [vmem:[%s8424_s22 + $0x373] sm:$0xff]  ;;  %v2311_v50 = vadd.f32 %v2295_v43, %v2258_v21  ;;  %v3646_v22 = vadd.f32 %v3630_v20, %v3593_v45  ;;  %v3097_v46 = vmul.f32 %v10744_v12, %v5899_v8  ;;  %v6364_v11 = vld [vmem:[%s8424_s22 + $0x49b] sm:$0xff] }
 0x330   : >> { %v5916_v4 = vld [vmem:[%s8424_s22 + $0x291] sm:$0xff]  ;;  %v12670_v42 = vld [vmem:[#allocation124_spill] sm:$0xff]  ;;  %v3007_v34 = vadd.f32 %v2991_v9, %v2954_v40  ;;  %v4342_v31 = vadd.f32 %v4326_v3, %v4286_v25  ;;  %v4432_v28 = vmul.f32 %v10985_v19, %v6330_v0  ;;  %v6155_v25 = vld [vmem:[%s8424_s22 + $0x379] sm:$0xff] }
 0x331   : >> { %v6347_v10 = vld [vmem:[%s8424_s22 + $0x498] sm:$0xff]  ;;  %v3736_v49 = vmul.f32 %v12670_v42, %v6104_v32  ;;  %v5709_v63 = vld [vmem:[%s8424_s22 + $0x1ea] sm:$0xff]  ;;  %v2364_v43 = vadd.f32 %v2348_v26, %v2311_v50  ;;  %v3699_v20 = vadd.f32 %v3683_v29, %v3646_v22  ;;  %v3150_v8 = vmul.f32 %v10762_v57, %v5916_v4 }
 0x332   : >> { %v6138_v59 = vld [vmem:[%s8424_s22 + $0x376] sm:$0xff]  ;;  %v12671_v21 = vld [vmem:[#allocation92_spill] sm:$0xff]  ;;  %v3060_v9 = vadd.f32 %v3044_v33, %v3007_v34  ;;  %v4395_v3 = vadd.f32 %v4379_v58, %v4342_v31  ;;  %v4485_v0 = vmul.f32 %v11003_v1, %v6347_v10  ;;  %v4538_v10 = vmul.f32 %v11021_v53, %v6364_v11 }
 0x333   : >> { %v5935_v37 = vld [vmem:[%s8424_s22 + $0x30f] sm:$0xff]  ;;  %v2457_v38 = vmul.f32 %v12671_v21, %v5692_v6  ;;  %v2417_v26 = vadd.f32 %v2401_v30, %v2364_v43  ;;  %v6381_v21 = vld [vmem:[%s8424_s22 + $0x49e] sm:$0xff]  ;;  %v3752_v29 = vadd.f32 %v3736_v49, %v3699_v20 }
 0x334   : >> { %v12672_v45 = vld [vmem:[#allocation105_spill] sm:$0xff]  ;;  %v12674_v22 = vld [vmem:[#allocation128_spill] sm:$0xff]  ;;  %v3113_v33 = vadd.f32 %v3097_v46, %v3060_v9  ;;  %v3206_v4 = vmul.f32 %v10780_v60, %v5935_v37  ;;  %v4448_v58 = vadd.f32 %v4432_v28, %v4395_v3  ;;  %v4591_v28 = vmul.f32 %v11039_v27, %v6381_v21  ;;  %v6191_v11 = vld [vmem:[%s8424_s22 + $0x3fa] sm:$0xff] }
 0x335   : >> { %v3789_v32 = vmul.f32 %v12672_v45, %v6121_v23  ;;  %v5726_v40 = vld [vmem:[%s8424_s22 + $0x1ed] sm:$0xff]  ;;  %v3842_v23 = vmul.f32 %v12674_v22, %v6138_v59  ;;  %v6174_v31 = vld [vmem:[%s8424_s22 + $0x3f7] sm:$0xff]  ;;  %v2473_v57 = vadd.f32 %v2457_v38, %v2417_v26  ;;  %v12677_v38 = vld [vmem:[#allocation123_spill] sm:$0xff] }
 0x336   : >> { %v5952_v19 = vld [vmem:[%s8424_s22 + $0x312] sm:$0xff]  ;;  %v12675_v30 = vld [vmem:[#allocation100_spill] sm:$0xff]  ;;  %v3166_v59 = vadd.f32 %v3150_v8, %v3113_v33  ;;  %v4501_v9 = vadd.f32 %v4485_v0, %v4448_v58  ;;  %v6208_v33 = vld [vmem:[%s8424_s22 + $0x3fd] sm:$0xff] }
 0x337   : >> { %v12673_v50 = vld [vmem:[#allocation121_spill] sm:$0xff]  ;;  %v2563_v43 = vmul.f32 %v12675_v30, %v5726_v40  ;;  %v3805_v49 = vadd.f32 %v3789_v32, %v3752_v29  ;;  %v12676_v20 = vld [vmem:[#allocation104_spill] sm:$0xff]  ;;  %v3259_v37 = vmul.f32 %v10798_v52, %v5952_v19  ;;  %v5986_v3 = vld [vmem:[%s8424_s22 + $0x318] sm:$0xff] }
 0x338   : >> { %v2510_v6 = vmul.f32 %v12673_v50, %v5709_v63  ;;  %v5743_v34 = vld [vmem:[%s8424_s22 + $0x1f0] sm:$0xff]  ;;  %v6398_v63 = vld [vmem:[%s8424_s22 + $0x4a1] sm:$0xff]  ;;  %v3895_v50 = vmul.f32 %v12676_v20, %v6155_v25  ;;  %v12678_v30 = vld [vmem:[#allocation102_spill] sm:$0xff]  ;;  %v3222_v25 = vadd.f32 %v3206_v4, %v3166_v59  ;;  %v4554_v29 = vadd.f32 %v4538_v10, %v4501_v9 }
 0x339   : >> { %v5969_v1 = vld [vmem:[%s8424_s22 + $0x315] sm:$0xff]  ;;  %v2616_v26 = vmul.f32 %v12677_v38, %v5743_v34  ;;  %v3858_v40 = vadd.f32 %v3842_v23, %v3805_v49  ;;  %v3951_v32 = vmul.f32 %v12678_v30, %v6174_v31  ;;  %v4644_v0 = vmul.f32 %v11052_v24, %v6398_v63  ;;  %v6225_v59 = vld [vmem:[%s8424_s22 + $0x400] sm:$0xff] }
 0x33a   : >> { %v5760_v46 = vld [vmem:[%s8424_s22 + $0x1f3] sm:$0xff]  ;;  %v2526_v53 = vadd.f32 %v2510_v6, %v2473_v57  ;;  %v3312_v8 = vmul.f32 %v10821_v18, %v5969_v1  ;;  %v6003_v21 = vld [vmem:[%s8424_s22 + $0x31b] sm:$0xff]  ;;  %v3275_v31 = vadd.f32 %v3259_v37, %v3222_v25  ;;  %v3365_v4 = vmul.f32 %v10844_v41, %v5986_v3 }
 0x33b   : >> { %v5777_v19 = vld [vmem:[%s8424_s22 + $0x1f6] sm:$0xff]  ;;  %v3911_v6 = vadd.f32 %v3895_v50, %v3858_v40  ;;  %v4607_v1 = vadd.f32 %v4591_v28, %v4554_v29  ;;  %v6020_v10 = vld [vmem:[%s8424_s22 + $0x31e] sm:$0xff]  ;;  %v3418_v50 = vmul.f32 %v10866_v56, %v6003_v21 }
 0x33c   : >> { %v2579_v58 = vadd.f32 %v2563_v43, %v2526_v53  ;;  %v12679_v27 = vld [vmem:[#allocation125_spill] sm:$0xff]  ;;  %v12680_v34 = vld [vmem:[#allocation106_spill] sm:$0xff]  ;;  %v2722_v63 = vmul.f32 %v10615_v39, %v5777_v19  ;;  %v3328_v43 = vadd.f32 %v3312_v8, %v3275_v31  ;;  %v6037_v3 = vld [vmem:[%s8424_s22 + $0x321] sm:$0xff]  ;;  %v4110_v39 = vmul.f32 %v10860_v14, %v6225_v59 }
 0x33d   : >> { %v2669_v57 = vmul.f32 %v12679_v27, %v5760_v46  ;;  %v4004_v23 = vmul.f32 %v12680_v34, %v6191_v11  ;;  %v5794_v49 = vld [vmem:[%s8424_s22 + $0x1f9] sm:$0xff]  ;;  %v3967_v53 = vadd.f32 %v3951_v32, %v3911_v6  ;;  %v4057_v27 = vmul.f32 %v10851_v16, %v6208_v33  ;;  %v6242_v11 = vld [vmem:[%s8424_s22 + $0x403] sm:$0xff] }
 0x33e   : >> { %v2632_v9 = vadd.f32 %v2616_v26, %v2579_v58  ;;  %v5813_v46 = vld [vmem:[%s8424_s22 + $0x277] sm:$0xff]  ;;  %v4660_v37 = vadd.f32 %v4644_v0, %v4607_v1  ;;  %v2775_v28 = vmul.f32 %v10626_v13, %v5794_v49  ;;  %v3381_v40 = vadd.f32 %v3365_v4, %v3328_v43  ;;  %v6259_v19 = vld [vmem:[%s8424_s22 + $0x406] sm:$0xff] }
 0x33f   : >> { %v4020_v26 = vadd.f32 %v4004_v23, %v3967_v53  ;;  %v3471_v32 = vmul.f32 %v10883_v44, %v6020_v10  ;;  %v5830_v25 = vld [vmem:[%s8424_s22 + $0x27a] sm:$0xff]  ;;  %v2831_v33 = vmul.f32 %v10639_v5, %v5813_v46  ;;  %v4163_v21 = vmul.f32 %v10874_v54, %v6242_v11  ;;  %v6276_v23 = vld [vmem:[%s8424_s22 + $0x409] sm:$0xff] }
 0x340   : >> { %v2685_v38 = vadd.f32 %v2669_v57, %v2632_v9  ;;  %v11173_v8 = vadd.f32 %v12567_v47, %v4660_v37  ;;  %v6056_v29 = vld [vmem:[%s8424_s22 + $0x39f] sm:$0xff]  ;;  %v3434_v58 = vadd.f32 %v3418_v50, %v3381_v40  ;;  %v3524_v57 = vmul.f32 %v10899_v17, %v6037_v3  ;;  %v6312_v3 = vld [vmem:[%s8424_s22 + $0x48a] sm:$0xff] }
 0x341   : >> { %v4073_v13 = vadd.f32 %v4057_v27, %v4020_v26  ;;  %v5847_v6 = vld [vmem:[%s8424_s22 + $0x27d] sm:$0xff]  ;;  %v2884_v49 = vmul.f32 %v10671_v35, %v5830_v25  ;;  %v4216_v1 = vmul.f32 %v10913_v15, %v6259_v19  ;;  %v3580_v10 = vmul.f32 %v12664_v61, %v6056_v29  ;;  %v6090_v53 = vld [vmem:[%s8424_s22 + $0x3a5] sm:$0xff]  ;;  %v6329_v19 = vld [vmem:[%s8424_s22 + $0x48d] sm:$0xff] }
 0x342   : >> { %v2738_v0 = vadd.f32 %v2722_v63, %v2685_v38  ;;  %4760 = vperm.xlu1 %6468, %v11173_v8   ;;  %v6073_v31 = vld [vmem:[%s8424_s22 + $0x3a2] sm:$0xff]  ;;  %v3487_v59 = vadd.f32 %v3471_v32, %v3434_v58  ;;  %v2937_v43 = vmul.f32 %v10690_v2, %v5847_v6  ;;  %v4269_v46 = vmul.f32 %v10931_v36, %v6276_v23  ;;  %v6124_v29 = vld [vmem:[%s8424_s22 + $0x3ab] sm:$0xff] }
 0x343   : >> { %v4126_v5 = vadd.f32 %v4110_v39, %v4073_v13  ;;  %v5864_v9 = vld [vmem:[%s8424_s22 + $0x280] sm:$0xff]  ;;  %v3633_v37 = vmul.f32 %v12666_v48, %v6073_v31  ;;  %v6107_v38 = vld [vmem:[%s8424_s22 + $0x3a8] sm:$0xff]  ;;  %v3686_v32 = vmul.f32 %v12668_v55, %v6090_v53  ;;  %v6346_v23 = vld [vmem:[%s8424_s22 + $0x490] sm:$0xff] }
 0x344   : >> { %v2791_v4 = vadd.f32 %v2775_v28, %v2738_v0  ;;  %v6295_v63 = vld [vmem:[%s8424_s22 + $0x487] sm:$0xff]  ;;  %v3540_v35 = vadd.f32 %v3524_v57, %v3487_v59  ;;  %v2990_v26 = vmul.f32 %v10708_v51, %v5864_v9  ;;  %v3739_v57 = vmul.f32 %v12670_v42, %v6107_v38  ;;  %v6158_v53 = vld [vmem:[%s8424_s22 + $0x3b1] sm:$0xff] }
 0x345   : >> { %v4179_v50 = vadd.f32 %v4163_v21, %v4126_v5  ;;  %v5881_v11 = vld [vmem:[%s8424_s22 + $0x283] sm:$0xff]  ;;  %v4325_v40 = vmul.f32 %v10949_v62, %v6295_v63  ;;  %v12681_v21 = vld [vmem:[#allocation122_spill] sm:$0xff]  ;;  %v6141_v31 = vld [vmem:[%s8424_s22 + $0x3ae] sm:$0xff] }
 0x346   : >> { %v2847_v27 = vadd.f32 %v2831_v33, %v2791_v4  ;;  %v3596_v2 = vadd.f32 %v3580_v10, %v3540_v35  ;;  %v5898_v25 = vld [vmem:[%s8424_s22 + $0x286] sm:$0xff]  ;;  %v3043_v33 = vmul.f32 %v10726_v7, %v5881_v11  ;;  %v4378_v58 = vmul.f32 %v12681_v21, %v6312_v3  ;;  %v6363_v63 = vld [vmem:[%s8424_s22 + $0x493] sm:$0xff] }
 0x347   : >> { %v4232_v39 = vadd.f32 %v4216_v1, %v4179_v50  ;;  %v5915_v6 = vld [vmem:[%s8424_s22 + $0x289] sm:$0xff]  ;;  %v12682_v1 = vld [vmem:[#allocation98_spill] sm:$0xff]  ;;  %v3792_v10 = vmul.f32 %v12672_v45, %v6124_v29  ;;  %v3845_v11 = vmul.f32 %v12674_v22, %v6141_v31 }
 0x348   : >> { %v2900_v28 = vadd.f32 %v2884_v49, %v2847_v27  ;;  %v3649_v51 = vadd.f32 %v3633_v37, %v3596_v2  ;;  %v3096_v49 = vmul.f32 %v10744_v12, %v5898_v25  ;;  %v4431_v59 = vmul.f32 %v12682_v1, %v6329_v19  ;;  %v5934_v9 = vld [vmem:[%s8424_s22 + $0x307] sm:$0xff]  ;;  %v12684_v35 = vld [vmem:[#allocation114_spill] sm:$0xff]  ;;  %v5985_v31 = vld [vmem:[%s8424_s22 + $0x310] sm:$0xff] }
 0x349   : >> { %v4285_v13 = vadd.f32 %v4269_v46, %v4232_v39  ;;  %v4484_v37 = vmul.f32 %v12684_v35, %v6346_v23  ;;  %v5951_v3 = vld [vmem:[%s8424_s22 + $0x30a] sm:$0xff]  ;;  %v6380_v38 = vld [vmem:[%s8424_s22 + $0x496] sm:$0xff]  ;;  %v3205_v39 = vmul.f32 %v10780_v60, %v5934_v9  ;;  %v12685_v2 = vld [vmem:[#allocation95_spill] sm:$0xff]  ;;  %v3898_v19 = vmul.f32 %v12676_v20, %v6158_v53 }
 0x34a   : >> { %v2953_v0 = vadd.f32 %v2937_v43, %v2900_v28  ;;  %v3702_v7 = vadd.f32 %v3686_v32, %v3649_v51  ;;  %v12683_v43 = vld [vmem:[#allocation76_spill] sm:$0xff]  ;;  %v4537_v32 = vmul.f32 %v12685_v2, %v6363_v63  ;;  %v6002_v9 = vld [vmem:[%s8424_s22 + $0x313] sm:$0xff] }
 0x34b   : >> { %v4341_v5 = vadd.f32 %v4325_v40, %v4285_v13  ;;  %v3149_v50 = vmul.f32 %v12683_v43, %v5915_v6  ;;  %v6177_v28 = vld [vmem:[%s8424_s22 + $0x42f] sm:$0xff]  ;;  %v6228_v63 = vld [vmem:[%s8424_s22 + $0x438] sm:$0xff] }
 0x34c   : >> { %v3006_v4 = vadd.f32 %v2990_v26, %v2953_v0  ;;  %v3755_v12 = vadd.f32 %v3739_v57, %v3702_v7  ;;  %v5968_v29 = vld [vmem:[%s8424_s22 + $0x30d] sm:$0xff]  ;;  %v6397_v0 = vld [vmem:[%s8424_s22 + $0x499] sm:$0xff]  ;;  %v3954_v60 = vmul.f32 %v12678_v30, %v6177_v28  ;;  %v4113_v28 = vmul.f32 %v10860_v14, %v6228_v63 }
 0x34d   : >> { %v4394_v46 = vadd.f32 %v4378_v58, %v4341_v5  ;;  %v3258_v58 = vmul.f32 %v10798_v52, %v5951_v3  ;;  %v12686_v57 = vld [vmem:[#allocation85_spill] sm:$0xff]  ;;  %v3311_v5 = vmul.f32 %v10821_v18, %v5968_v29  ;;  %v4643_v7 = vmul.f32 %v11052_v24, %v6397_v0  ;;  %v6279_v29 = vld [vmem:[%s8424_s22 + $0x441] sm:$0xff] }
 0x34e   : >> { %v3059_v27 = vadd.f32 %v3043_v33, %v3006_v4  ;;  %v3808_v25 = vadd.f32 %v3792_v10, %v3755_v12  ;;  %v6194_v33 = vld [vmem:[%s8424_s22 + $0x432] sm:$0xff]  ;;  %v4590_v6 = vmul.f32 %v12686_v57, %v6380_v38 }
 0x34f   : >> { %v4447_v40 = vadd.f32 %v4431_v59, %v4394_v46  ;;  %v6211_v4 = vld [vmem:[%s8424_s22 + $0x435] sm:$0xff]  ;;  %v4007_v52 = vmul.f32 %v12680_v34, %v6194_v33 }
 0x350   : >> { %v3112_v26 = vadd.f32 %v3096_v49, %v3059_v27  ;;  %v3861_v23 = vadd.f32 %v3845_v11, %v3808_v25  ;;  %v3364_v27 = vmul.f32 %v10844_v41, %v5985_v31  ;;  %v4060_v46 = vmul.f32 %v10851_v16, %v6211_v4  ;;  %v6019_v18 = vld [vmem:[%s8424_s22 + $0x316] sm:$0xff] }
 0x351   : >> { %v4500_v51 = vadd.f32 %v4484_v37, %v4447_v40  ;;  %v6245_v37 = vld [vmem:[%s8424_s22 + $0x43b] sm:$0xff]  ;;  %v3417_v11 = vmul.f32 %v10866_v56, %v6002_v9  ;;  %v3470_v40 = vmul.f32 %v10883_v44, %v6019_v18  ;;  %v4272_v31 = vmul.f32 %v10931_v36, %v6279_v29 }
 0x352   : >> { %v3165_v13 = vadd.f32 %v3149_v50, %v3112_v26  ;;  %v3914_v10 = vadd.f32 %v3898_v19, %v3861_v23  ;;  %v6036_v26 = vld [vmem:[%s8424_s22 + $0x319] sm:$0xff]  ;;  %v4166_v19 = vmul.f32 %v10874_v54, %v6245_v37  ;;  %v6140_v37 = vld [vmem:[%s8424_s22 + $0x3a6] sm:$0xff] }
 0x353   : >> { %v4553_v59 = vadd.f32 %v4537_v32, %v4500_v51  ;;  %v6055_v56 = vld [vmem:[%s8424_s22 + $0x397] sm:$0xff]  ;;  %v3523_v33 = vmul.f32 %v10899_v17, %v6036_v26  ;;  %v6298_v51 = vld [vmem:[%s8424_s22 + $0x4bf] sm:$0xff]  ;;  %v6383_v26 = vld [vmem:[%s8424_s22 + $0x4ce] sm:$0xff] }
 0x354   : >> { %v3221_v49 = vadd.f32 %v3205_v39, %v3165_v13  ;;  %v3970_v50 = vadd.f32 %v3954_v60, %v3914_v10  ;;  %v6262_v39 = vld [vmem:[%s8424_s22 + $0x43e] sm:$0xff]  ;;  %v3579_v23 = vmul.f32 %v12664_v61, %v6055_v56 }
 0x355   : >> { %v4606_v43 = vadd.f32 %v4590_v6, %v4553_v59  ;;  %v4219_v44 = vmul.f32 %v10913_v15, %v6262_v39  ;;  %v6089_v4 = vld [vmem:[%s8424_s22 + $0x39d] sm:$0xff] }
 0x356   : >> { %v3274_v53 = vadd.f32 %v3258_v58, %v3221_v49  ;;  %v4023_v38 = vadd.f32 %v4007_v52, %v3970_v50  ;;  %v6072_v58 = vld [vmem:[%s8424_s22 + $0x39a] sm:$0xff]  ;;  %v6315_v49 = vld [vmem:[%s8424_s22 + $0x4c2] sm:$0xff]  ;;  %v3685_v61 = vmul.f32 %v12668_v55, %v6089_v4 }
 0x357   : >> { %v4659_v3 = vadd.f32 %v4643_v7, %v4606_v43  ;;  %v4328_v7 = vmul.f32 %v10949_v62, %v6298_v51  ;;  %v6106_v10 = vld [vmem:[%s8424_s22 + $0x3a0] sm:$0xff]  ;;  %v6349_v43 = vld [vmem:[%s8424_s22 + $0x4c8] sm:$0xff] }
 0x358   : >> { %v3327_v12 = vadd.f32 %v3311_v5, %v3274_v53  ;;  %v4076_v25 = vadd.f32 %v4060_v46, %v4023_v38  ;;  %v3632_v5 = vmul.f32 %v12666_v48, %v6072_v58  ;;  %v6332_v52 = vld [vmem:[%s8424_s22 + $0x4c5] sm:$0xff]  ;;  %v4381_v53 = vmul.f32 %v12681_v21, %v6315_v49  ;;  %v6210_v51 = vld [vmem:[%s8424_s22 + $0x42d] sm:$0xff] }
 0x359   : >> { %v11246_v32 = vadd.f32 %v12567_v47, %v4659_v3  ;;  %v3738_v48 = vmul.f32 %v12670_v42, %v6106_v10  ;;  %v4434_v18 = vmul.f32 %v12682_v1, %v6332_v52  ;;  %v4487_v38 = vmul.f32 %v12684_v35, %v6349_v43  ;;  %v6278_v52 = vld [vmem:[%s8424_s22 + $0x439] sm:$0xff] }
 0x35a   : >> { %v3380_v41 = vadd.f32 %v3364_v27, %v3327_v12  ;;  %v4129_v13 = vadd.f32 %v4113_v28, %v4076_v25  ;;  %v6123_v27 = vld [vmem:[%s8424_s22 + $0x3a3] sm:$0xff]  ;;  %v6366_v12 = vld [vmem:[%s8424_s22 + $0x4cb] sm:$0xff]  ;;  %v4059_v4 = vmul.f32 %v10851_v16, %v6210_v51 }
 0x35b   : >> { %4755 = vperm.xlu0 %6467, %v11246_v32   ;;  %v3791_v55 = vmul.f32 %v12672_v45, %v6123_v27  ;;  %v6157_v28 = vld [vmem:[%s8424_s22 + $0x3a9] sm:$0xff]  ;;  %v6648_v27 = vmov 1  }
 0x35c   : >> { %v3433_v0 = vadd.f32 %v3417_v11, %v3380_v41  ;;  %v4182_v60 = vadd.f32 %v4166_v19, %v4129_v13  ;;  %v3844_v41 = vmul.f32 %v12674_v22, %v6140_v37  ;;  %v6176_v25 = vld [vmem:[%s8424_s22 + $0x427] sm:$0xff]  ;;  %v6400_v19 = vld [vmem:[%s8424_s22 + $0x4d1] sm:$0xff]  ;;  %v3897_v29 = vmul.f32 %v12676_v20, %v6157_v28 }
 0x35d   : >> { %v4646_v22 = vmul.f32 %v11052_v24, %v6400_v19  ;;  %v6227_v20 = vld [vmem:[%s8424_s22 + $0x430] sm:$0xff] }
 0x35e   : >> { %v3486_v6 = vadd.f32 %v3470_v40, %v3433_v0  ;;  %v4235_v59 = vadd.f32 %v4219_v44, %v4182_v60  ;;  %v4540_v40 = vmul.f32 %v12685_v2, %v6366_v12  ;;  %v4593_v0 = vmul.f32 %v12686_v57, %v6383_v26  ;;  %v12689_v26 = vld [vmem:[#allocation78_spill] sm:$0xff] }
 0x35f   : >> { %v3953_v44 = vmul.f32 %v12678_v30, %v6176_v25  ;;  %v4112_v30 = vmul.f32 %v10860_v14, %v6227_v20  ;;  %v4271_v14 = vmul.f32 %v10931_v36, %v6278_v52  ;;  %v6365_v36 = vld [vmem:[%s8424_s22 + $0x4c3] sm:$0xff] }
 0x360   : >> { %v3539_v17 = vadd.f32 %v3523_v33, %v3486_v6  ;;  %v4288_v63 = vadd.f32 %v4272_v31, %v4235_v59  ;;  %v6193_v33 = vld [vmem:[%s8424_s22 + $0x42a] sm:$0xff] }
 0x362   : >> { %v3595_v9 = vadd.f32 %v3579_v23, %v3539_v17  ;;  %v4344_v46 = vadd.f32 %v4328_v7, %v4288_v63  ;;  %v4006_v23 = vmul.f32 %v12680_v34, %v6193_v33  ;;  %v6244_v17 = vld [vmem:[%s8424_s22 + $0x433] sm:$0xff] }
 0x363   : >> { %v6261_v7 = vld [vmem:[%s8424_s22 + $0x436] sm:$0xff]  ;;  %v4165_v34 = vmul.f32 %v10874_v54, %v6244_v17  ;;  %v11379_v17 = vld [vmem:[%s11616_s5] ss:$0 sm:$0xff] }
 0x364   : >> { %v3648_v50 = vadd.f32 %v3632_v5, %v3595_v9  ;;  %v4397_v3 = vadd.f32 %v4381_v53, %v4344_v46  ;;  %v4218_v16 = vmul.f32 %v10913_v15, %v6261_v7  ;;  %v6314_v53 = vld [vmem:[%s8424_s22 + $0x4ba] sm:$0xff]  ;;  %v12687_v54 = vld [vmem:[#allocation129_spill] sm:$0xff] }
 0x365   : >> { %v6348_v15 = vld [vmem:[%s8424_s22 + $0x4c0] sm:$0xff]  ;;  %v12697_v33 = vld [vmem:[#allocation93_spill] sm:$0xff] }
 0x366   : >> { %v3701_v11 = vadd.f32 %v3685_v61, %v3648_v50  ;;  %v4450_v42 = vadd.f32 %v4434_v18, %v4397_v3  ;;  %v6297_v61 = vld [vmem:[%s8424_s22 + $0x4b7] sm:$0xff]  ;;  %v4380_v18 = vmul.f32 %v12681_v21, %v6314_v53  ;;  %v4486_v3 = vmul.f32 %v12684_v35, %v6348_v15 }
 0x367   : >> { %v4327_v50 = vmul.f32 %v10949_v62, %v6297_v61  ;;  %v4539_v62 = vmul.f32 %v12685_v2, %v6365_v36  ;;  %v12693_v2 = vld [vmem:[#allocation87_spill] sm:$0xff] }
 0x368   : >> { %v3754_v39 = vadd.f32 %v3738_v48, %v3701_v11  ;;  %v4503_v45 = vadd.f32 %v4487_v38, %v4450_v42  ;;  %v6331_v48 = vld [vmem:[%s8424_s22 + $0x4bd] sm:$0xff]  ;;  %v12688_v11 = vld [vmem:[#allocation77_spill] sm:$0xff]  ;;  %v6382_v38 = vld [vmem:[%s8424_s22 + $0x4c6] sm:$0xff] }
 0x369   : >> { %v4433_v12 = vmul.f32 %v12682_v1, %v6331_v48  ;;  %v4592_v21 = vmul.f32 %v12686_v57, %v6382_v38  ;;  %v12690_v1 = vld [vmem:[#allocation96_spill] sm:$0xff]  ;;  %v12694_v57 = vld [vmem:[#allocation71_spill] sm:$0xff] }
 0x36a   : >> { %v3807_v56 = vadd.f32 %v3791_v55, %v3754_v39  ;;  %v4556_v58 = vadd.f32 %v4540_v40, %v4503_v45  ;;  %v6399_v39 = vld [vmem:[%s8424_s22 + $0x4c9] sm:$0xff] }
 0x36b   : >> { %v4645_v40 = vmul.f32 %v11052_v24, %v6399_v39  ;;  %v6649_v24 = vmov 2   ;;  %v12695_v45 = vld [vmem:[#allocation108_spill] sm:$0xff] }
 0x36c   : >> { %v3860_v13 = vadd.f32 %v3844_v41, %v3807_v56  ;;  %v4609_v60 = vadd.f32 %v4593_v0, %v4556_v58  ;;  %v12691_v56 = vld [vmem:[#allocation118_spill] sm:$0xff]  ;;  %v12696_v0 = vld [vmem:[#allocation127_spill] sm:$0xff]  ;;  %v4706_v58 = vpop.permute.xlu1 %4705 }
 0x36e   : >> { %v3913_v6 = vadd.f32 %v3897_v29, %v3860_v13  ;;  %v4662_v49 = vadd.f32 %v4646_v22, %v4609_v60  ;;  %v12692_v29 = vld [vmem:[#allocation91_spill] sm:$0xff]  ;;  %v12698_v13 = vld [vmem:[#allocation126_spill] sm:$0xff]  ;;  %v11365_v60 = vpop.permute.xlu0 %4695 }
 0x370   : >> { %v3969_v31 = vadd.f32 %v3953_v44, %v3913_v6  ;;  %v11292_v59 = vadd.f32 %v12567_v47, %v4662_v49  ;;  %v6650_v44 = vmov 3   ;;  %v11350_v22 = vpop.permute.xlu1 %4710 }
 0x372   : >> { %v4022_v5 = vadd.f32 %v4006_v23, %v3969_v31  ;;  %4770 = vperm.xlu1 %6468, %v11292_v59  }
 0x374   : >> { %v4075_v10 = vadd.f32 %v4059_v4, %v4022_v5  ;;  %v11355_v51 = vpop.permute.xlu1 %4720 }
 0x376   : >> { %v4128_v9 = vadd.f32 %v4112_v30, %v4075_v10  ;;  %6470 = vset.pattern.permute.xlu1 %v6648_v27  ;;  %v12699_v10 = vld [vmem:[#allocation6_spill] sm:$0xff] }
 0x377   : >> { %4815 = vperm.xlu1 %6470, %v12687_v54  }
 0x378   : >> { %v4181_v63 = vadd.f32 %v4165_v34, %v4128_v9  ;;  %v11359_v6 = vpop.permute.xlu1 %4730 }
 0x37a   : >> { %v4234_v43 = vadd.f32 %v4218_v16, %v4181_v63 }
 0x37b   : >> { %4819 = vperm.xlu1 %6470, %v12688_v11  }
 0x37c   : >> { %v4287_v46 = vadd.f32 %v4271_v14, %v4234_v43  ;;  %v11363_v23 = vpop.permute.xlu1 %4740 }
 0x37e   : >> { %v4343_v37 = vadd.f32 %v4327_v50, %v4287_v46 }
 0x37f   : >> { %4827 = vperm.xlu1 %6470, %v12689_v26  }
 0x380   : >> { %v4396_v55 = vadd.f32 %v4380_v18, %v4343_v37 }
 0x382   : >> { %v4449_v28 = vadd.f32 %v4433_v12, %v4396_v55 }
 0x383   : >> { %4835 = vperm.xlu1 %6470, %v12690_v1  }
 0x384   : >> { %v4502_v41 = vadd.f32 %v4486_v3, %v4449_v28 }
 0x386   : >> { %v4555_v42 = vadd.f32 %v4539_v62, %v4502_v41 }
 0x387   : >> { %4843 = vperm.xlu1 %6470, %v12691_v56  }
 0x388   : >> { %v4608_v25 = vadd.f32 %v4592_v21, %v4555_v42 }
 0x38a   : >> { %v4661_v19 = vadd.f32 %v4645_v40, %v4608_v25 }
 0x38b   : >> { %4851 = vperm.xlu1 %6470, %v12692_v29  }
 0x38c   : >> { %v4683_v35 = vadd.f32 %v12567_v47, %v4661_v19  ;;  %v11368_v20 = vpop.permute.xlu1 %4750 }
 0x38e   : >> { %4765 = vperm.xlu0 %6467, %v4683_v35  }
 0x38f   : >> { %4859 = vperm.xlu1 %6470, %v11246_v32  }
 0x392   : >> { %6469 = vset.pattern.permute.xlu0 %v6648_v27 }
 0x393   : >> { %4811 = vperm.xlu0 %6469, %v12693_v2   ;;  %4867 = vperm.xlu1 %6470, %v4683_v35  }
 0x397   : >> { %4823 = vperm.xlu0 %6469, %v12694_v57   ;;  %6471 = vset.pattern.permute.xlu1 %v6649_v24 }
 0x398   : >> { %4912 = vperm.xlu1 %6471, %v12693_v2  }
 0x39b   : >> { %4831 = vperm.xlu0 %6469, %v12695_v45  }
 0x39c   : >> { %4920 = vperm.xlu1 %6471, %v12688_v11  }
 0x39f   : >> { %4839 = vperm.xlu0 %6469, %v12696_v0  }
 0x3a0   : >> { %4924 = vperm.xlu1 %6471, %v12694_v57  }
 0x3a3   : >> { %4847 = vperm.xlu0 %6469, %v12697_v33  }
 0x3a4   : >> { %4932 = vperm.xlu1 %6471, %v12695_v45  }
 0x3a7   : >> { %4855 = vperm.xlu0 %6469, %v12698_v13  }
 0x3a8   : >> { %4940 = vperm.xlu1 %6471, %v12696_v0  }
 0x3ab   : >> { %4863 = vperm.xlu0 %6469, %v11173_v8  }
 0x3ac   : >> { %4948 = vperm.xlu1 %6471, %v12697_v33  }
 0x3af   : >> { %4871 = vperm.xlu0 %6469, %v11292_v59  }
 0x3b0   : >> { %4956 = vperm.xlu1 %6471, %v12698_v13  }
 0x3b3   : >> { %6472 = vset.pattern.permute.xlu0 %v6649_v24 }
 0x3b4   : >> { %4916 = vperm.xlu0 %6472, %v12687_v54   ;;  %4964 = vperm.xlu1 %6471, %v11173_v8  }
 0x3b8   : >> { %4928 = vperm.xlu0 %6472, %v12689_v26   ;;  %4972 = vperm.xlu1 %6471, %v11292_v59  }
 0x3bc   : >> { %4936 = vperm.xlu0 %6472, %v12690_v1   ;;  %6474 = vset.pattern.permute.xlu1 %v6650_v44 }
 0x3bd   : >> { %5017 = vperm.xlu1 %6474, %v12687_v54  }
 0x3c0   : >> { %4944 = vperm.xlu0 %6472, %v12691_v56  }
 0x3c1   : >> { %5021 = vperm.xlu1 %6474, %v12688_v11   ;;  %v11372_v31 = vpop.permute.xlu1 %4760 }
 0x3c4   : >> { %4952 = vperm.xlu0 %6472, %v12692_v29  }
 0x3c5   : >> { %5029 = vperm.xlu1 %6474, %v12689_v26  }
 0x3c8   : >> { %4960 = vperm.xlu0 %6472, %v11246_v32  }
 0x3c9   : >> { %5037 = vperm.xlu1 %6474, %v12690_v1  }
 0x3cc   : >> { %4968 = vperm.xlu0 %6472, %v4683_v35  }
 0x3cd   : >> { %5045 = vperm.xlu1 %6474, %v12691_v56  }
 0x3d0   : >> { %6473 = vset.pattern.permute.xlu0 %v6650_v44 }
 0x3d1   : >> { %5013 = vperm.xlu0 %6473, %v12693_v2   ;;  %5053 = vperm.xlu1 %6474, %v12692_v29  }
 0x3d5   : >> { %5025 = vperm.xlu0 %6473, %v12694_v57   ;;  %5061 = vperm.xlu1 %6474, %v11246_v32   ;;  %v4701_v32 = vpop.permute.xlu0 %4700 }
 0x3d6   : >> { %v4778_v30 = vmul.f32 %v11379_v17, %v4701_v32 }
 0x3d8   : >> { %v4794_v34 = vadd.f32 %v12699_v10, %v4778_v30 }
 0x3d9   : >> { %5033 = vperm.xlu0 %6473, %v12695_v45   ;;  %5069 = vperm.xlu1 %6474, %v4683_v35   ;;  %v4716_v4 = vpop.permute.xlu0 %4715 }
 0x3da   : >> { %v4781_v14 = vmul.f32 %v11379_v17, %v4716_v4 }
 0x3dc   : >> { %v4797_v54 = vadd.f32 %v12699_v10, %v4781_v14 }
 0x3dd   : >> { %5041 = vperm.xlu0 %6473, %v12696_v0   ;;  %v4726_v5 = vpop.permute.xlu0 %4725 }
 0x3de   : >> { %v4783_v48 = vmul.f32 %v11379_v17, %v4726_v5 }
 0x3e0   : >> { %v4799_v37 = vadd.f32 %v12699_v10, %v4783_v48 }
 0x3e1   : >> { %5049 = vperm.xlu0 %6473, %v12697_v33   ;;  %v4736_v9 = vpop.permute.xlu0 %4735 }
 0x3e2   : >> { %v4785_v12 = vmul.f32 %v11379_v17, %v4736_v9 }
 0x3e4   : >> { %v4801_v38 = vadd.f32 %v12699_v10, %v4785_v12 }
 0x3e5   : >> { %5057 = vperm.xlu0 %6473, %v12698_v13   ;;  %v4746_v43 = vpop.permute.xlu0 %4745 }
 0x3e6   : >> { %v4787_v28 = vmul.f32 %v11379_v17, %v4746_v43  ;;  %v11455_v43 = vld [vmem:[%s11616_s5 + $0x2] ss:$0 sm:$0xff] }
 0x3e8   : >> { %v4803_v21 = vadd.f32 %v12699_v10, %v4787_v28 }
 0x3e9   : >> { %5065 = vperm.xlu0 %6473, %v11173_v8   ;;  %v11385_v8 = vld [vmem:[%s11616_s5 + $0x1] ss:$0 sm:$0xff]  ;;  %v4756_v36 = vpop.permute.xlu0 %4755 }
 0x3ea   : >> { %v4789_v42 = vmul.f32 %v11379_v17, %v4756_v36 }
 0x3ec   : >> { %v4805_v19 = vadd.f32 %v12699_v10, %v4789_v42  ;;  %v6412_v42 = vld [vmem:[%s11469_s14 + $0x68] sm:$0xff] }
 0x3ed   : >> { %5073 = vperm.xlu0 %6473, %v11292_v59   ;;  %v4779_v59 = vmul.f32 %v11379_v17, %v4706_v58 }
 0x3ef   : >> { %v4795_v63 = vadd.f32 %v12699_v10, %v4779_v59 }
 0x3f1   : >> { %v11374_v49 = vpop.permute.xlu1 %4770 }
 0x3f6   : >> { %v4816_v7 = vpop.permute.xlu1 %4815 }
 0x3f7   : >> { %v4879_v52 = vmul.f32 %v11385_v8, %v4816_v7 }
 0x3f9   : >> { %v11390_v16 = vadd.f32 %v4879_v52, %v4794_v34 }
 0x3fa   : >> { %v4820_v61 = vpop.permute.xlu1 %4819 }
 0x3fb   : >> { %v4880_v53 = vmul.f32 %v11385_v8, %v4820_v61 }
 0x3fd   : >> { %v11395_v27 = vadd.f32 %v4880_v53, %v4795_v63 }
 0x3fe   : >> { %v4828_v50 = vpop.permute.xlu1 %4827 }
 0x3ff   : >> { %v4882_v46 = vmul.f32 %v11385_v8, %v4828_v50 }
 0x401   : >> { %v11400_v18 = vadd.f32 %v4882_v46, %v4797_v54 }
 0x402   : >> { %v4836_v15 = vpop.permute.xlu1 %4835 }
 0x403   : >> { %v4884_v11 = vmul.f32 %v11385_v8, %v4836_v15  ;;  %v11464_v15 = vld [vmem:[%s11616_s5 + $0x3] ss:$0 sm:$0xff] }
 0x405   : >> { %v11405_v55 = vadd.f32 %v4884_v11, %v4799_v37 }
 0x406   : >> { %v4844_v3 = vpop.permute.xlu1 %4843 }
 0x407   : >> { %v4886_v62 = vmul.f32 %v11385_v8, %v4844_v3  ;;  %v6411_v3 = vld [vmem:[%s11469_s14 + $0x50] sm:$0xff] }
 0x409   : >> { %v11410_v26 = vadd.f32 %v4886_v62, %v4801_v38 }
 0x40a   : >> { %v4852_v41 = vpop.permute.xlu1 %4851 }
 0x40b   : >> { %v4888_v40 = vmul.f32 %v11385_v8, %v4852_v41 }
 0x40d   : >> { %v4766_v39 = vpop.permute.xlu0 %4765  ;;  %v11415_v1 = vadd.f32 %v4888_v40, %v4803_v21 }
 0x40e   : >> { %v4860_v25 = vpop.permute.xlu1 %4859  ;;  %v4791_v56 = vmul.f32 %v11379_v17, %v4766_v39 }
 0x40f   : >> { %v4890_v29 = vmul.f32 %v11385_v8, %v4860_v25 }
 0x410   : >> { %v4807_v24 = vadd.f32 %v12699_v10, %v4791_v56 }
 0x411   : >> { %v11420_v2 = vadd.f32 %v4890_v29, %v4805_v19 }
 0x412   : >> { %v4812_v35 = vpop.permute.xlu0 %4811  ;;  %v4868_v57 = vpop.permute.xlu1 %4867 }
 0x413   : >> { %v4892_v0 = vmul.f32 %v11385_v8, %v4868_v57 }
 0x415   : >> { %v11426_v33 = vadd.f32 %v4892_v0, %v4807_v24  ;;  %v4777_v24 = vmul.f32 %v11379_v17, %v11365_v60  ;;  %v6414_v0 = vld [vmem:[%s11469_s14 + $0x88] sm:$0xff]  ;;  %v4780_v60 = vmul.f32 %v11379_v17, %v11350_v22 }
 0x416   : >> { %v11423_v45 = vpop.permute.xlu0 %4823 }
 0x417   : >> { %v4913_v44 = vpop.permute.xlu1 %4912 }
 0x41a   : >> { %v11428_v13 = vpop.permute.xlu0 %4831 }
 0x41b   : >> { %v4921_v32 = vpop.permute.xlu1 %4920 }
 0x41c   : >> { %v4981_v11 = vmul.f32 %v11455_v43, %v4921_v32 }
 0x41e   : >> { %v11430_v58 = vpop.permute.xlu0 %4839  ;;  %v4997_v39 = vadd.f32 %v4981_v11, %v11395_v27  ;;  %v4793_v11 = vadd.f32 %v12699_v10, %v4777_v24 }
 0x41f   : >> { %v11434_v5 = vpop.permute.xlu1 %4924 }
 0x422   : >> { %v11432_v4 = vpop.permute.xlu0 %4847 }
 0x423   : >> { %v11438_v7 = vpop.permute.xlu1 %4932 }
 0x426   : >> { %v11436_v30 = vpop.permute.xlu0 %4855 }
 0x427   : >> { %v11442_v34 = vpop.permute.xlu1 %4940 }
 0x42a   : >> { %v11440_v59 = vpop.permute.xlu0 %4863 }
 0x42b   : >> { %v11446_v9 = vpop.permute.xlu1 %4948 }
 0x42e   : >> { %v11444_v52 = vpop.permute.xlu0 %4871 }
 0x42f   : >> { %v11448_v61 = vpop.permute.xlu1 %4956 }
 0x433   : >> { %v4917_v63 = vpop.permute.xlu0 %4916  ;;  %v11450_v14 = vpop.permute.xlu1 %4964 }
 0x434   : >> { %v4980_v48 = vmul.f32 %v11455_v43, %v4917_v63  ;;  %v4878_v63 = vmul.f32 %v11385_v8, %v4812_v35 }
 0x436   : >> { %v4996_v12 = vadd.f32 %v4980_v48, %v11390_v16 }
 0x437   : >> { %v4929_v53 = vpop.permute.xlu0 %4928  ;;  %v11457_v50 = vpop.permute.xlu1 %4972 }
 0x438   : >> { %v4983_v41 = vmul.f32 %v11455_v43, %v4929_v53 }
 0x43a   : >> { %v4999_v56 = vadd.f32 %v4983_v41, %v11400_v18 }
 0x43b   : >> { %v4937_v54 = vpop.permute.xlu0 %4936 }
 0x43c   : >> { %v5018_v37 = vpop.permute.xlu1 %5017  ;;  %v4985_v29 = vmul.f32 %v11455_v43, %v4937_v54 }
 0x43d   : >> { %v5081_v36 = vmul.f32 %v11464_v15, %v5018_v37 }
 0x43e   : >> { %v5001_v18 = vadd.f32 %v4985_v29, %v11405_v55  ;;  %v4782_v55 = vmul.f32 %v11379_v17, %v11355_v51  ;;  %v4982_v51 = vmul.f32 %v11455_v43, %v11434_v5 }
 0x43f   : >> { %v4945_v46 = vpop.permute.xlu0 %4944  ;;  %v5097_v38 = vadd.f32 %v5081_v36, %v4996_v12  ;;  %v4979_v36 = vmul.f32 %v11455_v43, %v4913_v44 }
 0x440   : >> { %v5022_v62 = vpop.permute.xlu1 %5021  ;;  %v4987_v54 = vmul.f32 %v11455_v43, %v4945_v46  ;;  %v4894_v46 = vadd.f32 %v4878_v63, %v4793_v11  ;;  %v6413_v11 = vld [vmem:[%s11469_s14 + $0x70] sm:$0xff] }
 0x441   : >> { %v5132_v21 = vmul.f32 %v6411_v3, %v5097_v38  ;;  %v5082_v16 = vmul.f32 %v11464_v15, %v5022_v62  ;;  %v6416_v3 = vld [vmem:[%s11469_s14 + $0xa8] sm:$0xff]  ;;  %v4881_v38 = vmul.f32 %v11385_v8, %v11423_v45  ;;  %v4784_v45 = vmul.f32 %v11379_v17, %v11359_v6 }
 0x443   : >> { %v4953_v28 = vpop.permute.xlu0 %4952  ;;  %5150 = vst.msk [vmem:[%s11477_s17 + $0x8] sm:$0xff] %vm279_vm0, %v5132_v21  ;;  %v5098_v40 = vadd.f32 %v5082_v16, %v4997_v39  ;;  %v5003_v39 = vadd.f32 %v4987_v54, %v11410_v26  ;;  %v4796_v16 = vadd.f32 %v12699_v10, %v4780_v60 }
 0x444   : >> { %v5030_v19 = vpop.permute.xlu1 %5029  ;;  %v4989_v22 = vmul.f32 %v11455_v43, %v4953_v28  ;;  %v4798_v28 = vadd.f32 %v12699_v10, %v4782_v55 }
 0x445   : >> { %v5133_v27 = vmul.f32 %v6412_v42, %v5098_v40  ;;  %v5084_v57 = vmul.f32 %v11464_v15, %v5030_v19  ;;  %v4995_v42 = vadd.f32 %v4979_v36, %v4894_v46  ;;  %v6418_v19 = vld [vmem:[%s11469_s14 + $0xc8] sm:$0xff]  ;;  %v4897_v29 = vadd.f32 %v4881_v38, %v4796_v16 }
 0x446   : >> { %v5005_v24 = vadd.f32 %v4989_v22, %v11415_v1  ;;  %v4887_v16 = vmul.f32 %v11385_v8, %v11432_v4 }
 0x447   : >> { %v4961_v25 = vpop.permute.xlu0 %4960  ;;  %5151 = vst.msk [vmem:[%s11477_s17 + $0x10] sm:$0xff] %vm279_vm0, %v5133_v27  ;;  %v5100_v32 = vadd.f32 %v5084_v57, %v4999_v56  ;;  %v6410_v56 = vld [vmem:[%s11469_s14 + $0x48] sm:$0xff]  ;;  %v4883_v27 = vmul.f32 %v11385_v8, %v11428_v13  ;;  %v4800_v13 = vadd.f32 %v12699_v10, %v4784_v45 }
 0x448   : >> { %v5038_v48 = vpop.permute.xlu1 %5037 }
 0x449   : >> { %v5135_v37 = vmul.f32 %v6414_v0, %v5100_v32  ;;  %v5086_v12 = vmul.f32 %v11464_v15, %v5038_v48  ;;  %v4991_v0 = vmul.f32 %v11455_v43, %v4961_v25  ;;  %v4998_v48 = vadd.f32 %v4982_v51, %v4897_v29 }
 0x44a   : >> { %v4786_v25 = vmul.f32 %v11379_v17, %v11363_v23  ;;  %v4899_v60 = vadd.f32 %v4883_v27, %v4798_v28  ;;  %v4788_v51 = vmul.f32 %v11379_v17, %v11368_v20  ;;  %v4988_v28 = vmul.f32 %v11455_v43, %v11446_v9  ;;  %v6424_v27 = vld [vmem:[%s11469_s14 + $0x128] sm:$0xff] }
 0x44b   : >> { %v4969_v53 = vpop.permute.xlu0 %4968  ;;  %5153 = vst.msk [vmem:[%s11477_s17 + $0x20] sm:$0xff] %vm279_vm0, %v5135_v37  ;;  %v5102_v35 = vadd.f32 %v5086_v12, %v5001_v18  ;;  %v4984_v18 = vmul.f32 %v11455_v43, %v11438_v7  ;;  %v6420_v12 = vld [vmem:[%s11469_s14 + $0xe8] sm:$0xff]  ;;  %v4885_v7 = vmul.f32 %v11385_v8, %v11430_v58 }
 0x44c   : >> { %v5046_v62 = vpop.permute.xlu1 %5045  ;;  %v4993_v55 = vmul.f32 %v11455_v43, %v4969_v53  ;;  %v4804_v9 = vadd.f32 %v12699_v10, %v4788_v51 }
 0x44d   : >> { %v5137_v41 = vmul.f32 %v6416_v3, %v5102_v35  ;;  %v5088_v21 = vmul.f32 %v11464_v15, %v5046_v62  ;;  %v5007_v35 = vadd.f32 %v4991_v0, %v11420_v2  ;;  %v5000_v23 = vadd.f32 %v4984_v18, %v4899_v60 }
 0x44e   : >> { %v4802_v2 = vadd.f32 %v12699_v10, %v4786_v25  ;;  %v4901_v53 = vadd.f32 %v4885_v7, %v4800_v13  ;;  %v4790_v0 = vmul.f32 %v11379_v17, %v11372_v31  ;;  %v4992_v25 = vmul.f32 %v11455_v43, %v11450_v14 }
 0x44f   : >> { %5155 = vst.msk [vmem:[%s11477_s17 + $0x30] sm:$0xff] %vm279_vm0, %v5137_v41  ;;  %v5104_v26 = vadd.f32 %v5088_v21, %v5003_v39  ;;  %v4986_v39 = vmul.f32 %v11455_v43, %v11442_v34  ;;  %v6415_v41 = vld [vmem:[%s11469_s14 + $0x90] sm:$0xff]  ;;  %v4994_v14 = vmul.f32 %v11455_v43, %v11457_v50 }
 0x450   : >> { %v5014_v44 = vpop.permute.xlu0 %5013  ;;  %v5054_v57 = vpop.permute.xlu1 %5053  ;;  %v4806_v13 = vadd.f32 %v12699_v10, %v4790_v0 }
 0x451   : >> { %v5080_v40 = vmul.f32 %v11464_v15, %v5014_v44  ;;  %v5139_v32 = vmul.f32 %v6418_v19, %v5104_v26  ;;  %v5090_v63 = vmul.f32 %v11464_v15, %v5054_v57  ;;  %v6422_v44 = vld [vmem:[%s11469_s14 + $0x108] sm:$0xff]  ;;  %v5002_v26 = vadd.f32 %v4986_v39, %v4901_v53 }
 0x452   : >> { %v4903_v57 = vadd.f32 %v4887_v16, %v4802_v2 }
 0x453   : >> { %v5096_v5 = vadd.f32 %v5080_v40, %v4995_v42  ;;  %5157 = vst.msk [vmem:[%s11477_s17 + $0x40] sm:$0xff] %vm279_vm0, %v5139_v32  ;;  %v5106_v1 = vadd.f32 %v5090_v63, %v5005_v24  ;;  %v5009_v40 = vadd.f32 %v4993_v55, %v11426_v33  ;;  %v4889_v33 = vmul.f32 %v11385_v8, %v11436_v30 }
 0x454   : >> { %v5026_v6 = vpop.permute.xlu0 %5025  ;;  %v5062_v3 = vpop.permute.xlu1 %5061  ;;  %v5004_v63 = vadd.f32 %v4988_v28, %v4903_v57 }
 0x455   : >> { %v5131_v54 = vmul.f32 %v6410_v56, %v5096_v5  ;;  %v5083_v37 = vmul.f32 %v11464_v15, %v5026_v6  ;;  %v5141_v38 = vmul.f32 %v6420_v12, %v5106_v1  ;;  %v5092_v62 = vmul.f32 %v11464_v15, %v5062_v3  ;;  %v6417_v5 = vld [vmem:[%s11469_s14 + $0xb0] sm:$0xff] }
 0x456   : >> { %v4905_v30 = vadd.f32 %v4889_v33, %v4804_v9  ;;  %v4891_v12 = vmul.f32 %v11385_v8, %v11440_v59  ;;  %v4893_v3 = vmul.f32 %v11385_v8, %v11444_v52 }
 0x457   : >> { %5149 = vst.msk [vmem:[%s11477_s17] sm:$0xff] %vm279_vm0, %v5131_v54  ;;  %v5099_v36 = vadd.f32 %v5083_v37, %v4998_v48  ;;  %5159 = vst.msk [vmem:[%s11477_s17 + $0x50] sm:$0xff] %vm279_vm0, %v5141_v38  ;;  %v5108_v21 = vadd.f32 %v5092_v62, %v5007_v35  ;;  %v4990_v48 = vmul.f32 %v11455_v43, %v11448_v61  ;;  %v6419_v37 = vld [vmem:[%s11469_s14 + $0xd0] sm:$0xff] }
 0x458   : >> { %v5034_v46 = vpop.permute.xlu0 %5033  ;;  %v5070_v42 = vpop.permute.xlu1 %5069  ;;  %v4792_v61 = vmul.f32 %v11379_v17, %v11374_v49  ;;  %v4907_v59 = vadd.f32 %v4891_v12, %v4806_v13  ;;  %v6423_v62 = vld [vmem:[%s11469_s14 + $0x110] sm:$0xff] }
 0x459   : >> { %v5134_v22 = vmul.f32 %v6413_v11, %v5099_v36  ;;  %v5085_v58 = vmul.f32 %v11464_v15, %v5034_v46  ;;  %v5143_v45 = vmul.f32 %v6422_v44, %v5108_v21  ;;  %v5094_v56 = vmul.f32 %v11464_v15, %v5070_v42  ;;  %v6421_v36 = vld [vmem:[%s11469_s14 + $0xf0] sm:$0xff] }
 0x45a   : >> { %v5006_v1 = vadd.f32 %v4990_v48, %v4905_v30  ;;  %v4808_v49 = vadd.f32 %v12699_v10, %v4792_v61  ;;  %v5008_v55 = vadd.f32 %v4992_v25, %v4907_v59  ;;  %v6425_v44 = vld [vmem:[%s11469_s14 + $0x130] sm:$0xff] }
 0x45b   : >> { %5152 = vst.msk [vmem:[%s11477_s17 + $0x18] sm:$0xff] %vm279_vm0, %v5134_v22  ;;  %v5101_v34 = vadd.f32 %v5085_v58, %v5000_v23  ;;  %5161 = vst.msk [vmem:[%s11477_s17 + $0x60] sm:$0xff] %vm279_vm0, %v5143_v45  ;;  %v5110_v20 = vadd.f32 %v5094_v56, %v5009_v40 }
 0x45c   : >> { %v5042_v19 = vpop.permute.xlu0 %5041  ;;  %v4909_v23 = vadd.f32 %v4893_v3, %v4808_v49 }
 0x45d   : >> { %v5136_v29 = vmul.f32 %v6415_v41, %v5101_v34  ;;  %v5087_v4 = vmul.f32 %v11464_v15, %v5042_v19  ;;  %v5145_v32 = vmul.f32 %v6424_v27, %v5110_v20 }
 0x45e   : >> { %v5010_v39 = vadd.f32 %v4994_v14, %v4909_v23 }
 0x45f   : >> { %5154 = vst.msk [vmem:[%s11477_s17 + $0x28] sm:$0xff] %vm279_vm0, %v5136_v29  ;;  %v5103_v24 = vadd.f32 %v5087_v4, %v5002_v26  ;;  %5163 = vst.msk [vmem:[%s11477_s17 + $0x70] sm:$0xff] %vm279_vm0, %v5145_v32 }
 0x460   : >> { %v5050_v6 = vpop.permute.xlu0 %5049 }
 0x461   : >> { %v5138_v18 = vmul.f32 %v6417_v5, %v5103_v24  ;;  %v5089_v54 = vmul.f32 %v11464_v15, %v5050_v6 }
 0x463   : >> { %5156 = vst.msk [vmem:[%s11477_s17 + $0x38] sm:$0xff] %vm279_vm0, %v5138_v18  ;;  %v5105_v31 = vadd.f32 %v5089_v54, %v5004_v63 }
 0x464   : >> { %v5058_v11 = vpop.permute.xlu0 %5057 }
 0x465   : >> { %v5140_v60 = vmul.f32 %v6419_v37, %v5105_v31  ;;  %v5091_v7 = vmul.f32 %v11464_v15, %v5058_v11 }
 0x467   : >> { %5158 = vst.msk [vmem:[%s11477_s17 + $0x48] sm:$0xff] %vm279_vm0, %v5140_v60  ;;  %v5107_v35 = vadd.f32 %v5091_v7, %v5006_v1 }
 0x468   : >> { %v5066_v17 = vpop.permute.xlu0 %5065 }
 0x469   : >> { %v5142_v46 = vmul.f32 %v6421_v36, %v5107_v35  ;;  %v5093_v38 = vmul.f32 %v11464_v15, %v5066_v17 }
 0x46b   : >> { %5160 = vst.msk [vmem:[%s11477_s17 + $0x58] sm:$0xff] %vm279_vm0, %v5142_v46  ;;  %v5109_v8 = vadd.f32 %v5093_v38, %v5008_v55 }
 0x46c   : >> { %v5074_v52 = vpop.permute.xlu0 %5073 }
 0x46d   : >> { %v5144_v22 = vmul.f32 %v6423_v62, %v5109_v8  ;;  %v5095_v58 = vmul.f32 %v11464_v15, %v5074_v52  ;;  %2043 = sbr.rel (!%p2041_p5) target bundleno = 408 (0x198), region = 121 }
 0x46f   : >> { %5162 = vst.msk [vmem:[%s11477_s17 + $0x68] sm:$0xff] %vm279_vm0, %v5144_v22  ;;  %v5111_v41 = vadd.f32 %v5095_v58, %v5010_v39 }
 0x471   : >> { %v5146_v21 = vmul.f32 %v6425_v44, %v5111_v41 }
 0x473   : >> { %5164 = vst.msk [vmem:[%s11477_s17 + $0x78] sm:$0xff] %vm279_vm0, %v5146_v21 }
 0x474 PF: > { %s17_s24 = sadd.s32 1, %s6636_s24  }
 0x475   : > { %p14_p6 = scmp.ge.s32.totalorder %s17_s24, 4  }
 0x477   :  { %16 = sbr.rel (!%p14_p6) target bundleno = 1 (0x1), region = 132 }

</bundles_post_ra>
